<compile_context>
chip_gen: v6e
topology: v6e:2x2x1
jax: 0.10.0
libtpu: 0.0.40
codegen_flags: <defaults>
</compile_context>

<pallas_src>
import functools

import jax
import jax.numpy as jnp
import numpy as np
from jax.experimental import pallas as pl
from jax.experimental.pallas import tpu as pltpu


def _round_up(x, m):
    return ((x + m - 1) // m) * m


# ----------------------------------------------------------------------------
# Pallas kernel: one grid step == (batch b, tile t of TM output voxels,
# window k of TK image rows).  Trilinear weights/indices are computed on
# lane-dense (1, TM) rows; a (TK, TM) weighted selection slab is built for the
# current window only and contracted against the (C, TK) image block on the
# MXU, accumulating into a (C, TM) VMEM scratch.
# ----------------------------------------------------------------------------
def _stn_kernel(mesh_ref, flow_ref, im_ref, out_ref, acc_ref, *, H, W, D):
    TK = im_ref.shape[2]
    k = pl.program_id(2)

    @pl.when(k == 0)
    def _init():
        acc_ref[...] = jnp.zeros_like(acc_ref)

    dim3 = D
    dim2 = W * D

    # Mesh indices for this output tile, lane-dense (1, TM) rows: [h, w, d].
    m = mesh_ref[...]                        # (3, TM) int32
    h_m = m[0:1, :].astype(jnp.float32)
    w_m = m[1:2, :].astype(jnp.float32)
    d_m = m[2:3, :].astype(jnp.float32)

    # Flow displacements, lane-dense (1, TM).  PyTorch channel order:
    # 0 = dy (height), 1 = dx (width), 2 = dz (depth).
    fl = flow_ref[0]                         # (3, TM) f32
    dy = fl[0:1, :]
    dx = fl[1:2, :]
    dz = fl[2:3, :]

    # Sampling coordinates = mesh + flow (padding=False => no +1 offset).
    x = dx + w_m
    y = dy + h_m
    z = dz + d_m

    x0 = jnp.floor(x).astype(jnp.int32)
    y0 = jnp.floor(y).astype(jnp.int32)
    z0 = jnp.floor(z).astype(jnp.int32)
    x1 = x0 + 1
    y1 = y0 + 1
    z1 = z0 + 1

    x0 = jnp.clip(x0, 0, W - 1)
    x1 = jnp.clip(x1, 0, W - 1)
    y0 = jnp.clip(y0, 0, H - 1)
    y1 = jnp.clip(y1, 0, H - 1)
    z0 = jnp.clip(z0, 0, D - 1)
    z1 = jnp.clip(z1, 0, D - 1)

    # Fractional weights from the *clamped* upper corner (exact PyTorch
    # fidelity, including edge extrapolation weights).
    fx = x1.astype(jnp.float32) - x
    fy = y1.astype(jnp.float32) - y
    fz = z1.astype(jnp.float32) - z
    gx = 1.0 - fx
    gy = 1.0 - fy
    gz = 1.0 - fz

    by0 = y0 * dim2
    by1 = y1 * dim2
    bx0 = x0 * dim3
    bx1 = x1 * dim3

    # Eight corners: (flat index into N, trilinear weight), all (1, TM).
    corners = (
        (by0 + bx0 + z0, fz * fx * fy),
        (by1 + bx0 + z0, fz * fx * gy),
        (by0 + bx1 + z0, fz * gx * fy),
        (by1 + bx1 + z0, fz * gx * gy),
        (by0 + bx0 + z1, gz * fx * fy),
        (by1 + bx0 + z1, gz * fx * gy),
        (by0 + bx1 + z1, gz * gx * fy),
        (by1 + bx1 + z1, gz * gx * gy),
    )

    # Local (TK, 1) iota offset by this window's base row; it broadcasts
    # against the (1, TM) indices inside the compare, so no (TK, TM) int32
    # operand is materialized.  Clamped duplicate corners sum their weights
    # onto the same row (matches the reference's summed-duplicate semantics).
    row = jax.lax.broadcasted_iota(jnp.int32, (TK, 1), 0) + k * TK

    idx0, w0 = corners[0]
    S = jnp.where(row == idx0, w0, 0.0)
    for idx_c, w_c in corners[1:]:
        S = S + jnp.where(row == idx_c, w_c, 0.0)

    # Partial contraction on the MXU: (C, TK) @ (TK, TM) -> (C, TM).
    acc_ref[...] += jnp.dot(im_ref[0], S, preferred_element_type=jnp.float32)

    @pl.when(k == pl.num_programs(2) - 1)
    def _store():
        out_ref[0] = acc_ref[...]


# ----------------------------------------------------------------------------
# Wrapper (layout plumbing only — no post-kernel transpose).
# ----------------------------------------------------------------------------
def dense3d_spatial_transformer(I, flow, *, max_tm=512, max_tk=512,
                                s_budget_bytes=2 * 1024 * 1024):
    """Equivalent of Dense3DSpatialTransformer(padding=False)([I, flow]).

    max_tm / max_tk may be raised (e.g. to 1024) on v6e's larger VMEM; the
    defaults keep the per-step (TK, TM) slab + temporaries comfortably inside
    v7x's 64 MiB / v5e's scoped VMEM.
    """
    B, C, H, W, D = I.shape
    assert flow.shape == (B, 3, H, W, D), flow.shape
    N = H * W * D

    # Lane-aligned tiles; N is padded up to a tile multiple on each tiled
    # axis, so there is no "largest divisor with no budget" fallback cliff.
    TM = min(max_tm, _round_up(N, 128))
    TK = min(max_tk, _round_up(N, 128))
    while TK > 128 and TK * TM * 4 > s_budget_bytes:
        TK //= 2
    NM = _round_up(N, TM)
    NK = _round_up(N, TK)

    # Image channel-first, spatial flattened in (h, w, d) order -> (B, C, N).
    im = I.reshape(B, C, N).astype(jnp.float32)
    # Flow flattened the same way -> (B, 3, N); channel order preserved
    # (0 = dy, 1 = dx, 2 = dz).
    fl = flow.reshape(B, 3, N).astype(jnp.float32)

    # Precomputed mesh indices (3, N): rows [h, w, d] in flatten order — keeps
    # integer div/mod out of the kernel.
    h_m, w_m, d_m = jnp.meshgrid(
        jnp.arange(H, dtype=jnp.int32),
        jnp.arange(W, dtype=jnp.int32),
        jnp.arange(D, dtype=jnp.int32),
        indexing="ij",
    )
    mesh = jnp.stack(
        [h_m.reshape(-1), w_m.reshape(-1), d_m.reshape(-1)], axis=0
    )  # (3, N) int32

    # Pad the output-voxel axis (mesh/flow) and the image-row axis
    # independently.  Padded image rows are never selected (indices < N);
    # padded output columns are sliced off below.
    if NM > N:
        mesh = jnp.pad(mesh, ((0, 0), (0, NM - N)))
        fl = jnp.pad(fl, ((0, 0), (0, 0), (0, NM - N)))
    if NK > N:
        im = jnp.pad(im, ((0, 0), (0, 0), (0, NK - N)))

    kernel = functools.partial(_stn_kernel, H=H, W=W, D=D)

    out = pl.pallas_call(
        kernel,
        out_shape=jax.ShapeDtypeStruct((B, C, NM), jnp.float32),
        grid=(B, NM // TM, NK // TK),
        in_specs=[
            # mesh: batch-independent, one tile of TM voxels; constant over k
            pl.BlockSpec((3, TM), lambda b, t, k: (0, t)),
            # flow: per-batch tile of TM voxels, lane-dense; constant over k
            pl.BlockSpec((1, 3, TM), lambda b, t, k: (b, 0, t)),
            # image: streamed (C, TK) window over the reduction axis
            pl.BlockSpec((1, C, TK), lambda b, t, k: (b, 0, k)),
        ],
        # Output block constant over k -> resident accumulator target.
        out_specs=pl.BlockSpec((1, C, TM), lambda b, t, k: (b, 0, t)),
        scratch_shapes=[pltpu.VMEM((C, TM), jnp.float32)],
        compiler_params=pltpu.CompilerParams(
            dimension_semantics=("parallel", "parallel", "arbitrary"),
            vmem_limit_bytes=32 * 1024 * 1024,
        ),
    )(mesh, fl, im)

    if NM > N:
        out = out[:, :, :N]
    return out.reshape(B, C, H, W, D)


# ----------------------------------------------------------------------------
# Pure-JAX reference (mirrors the PyTorch code) for correctness checking.
# ----------------------------------------------------------------------------
def _reference(I, flow):
    B, C, H, W, D = I.shape
    dx, dy, dz = flow[:, 1], flow[:, 0], flow[:, 2]
    h_m, w_m, d_m = jnp.meshgrid(
        jnp.arange(H), jnp.arange(W), jnp.arange(D), indexing="ij"
    )
    x = dx + w_m[None].astype(jnp.float32)
    y = dy + h_m[None].astype(jnp.float32)
    z = dz + d_m[None].astype(jnp.float32)

    x0 = jnp.floor(x).astype(jnp.int32)
    y0 = jnp.floor(y).astype(jnp.int32)
    z0 = jnp.floor(z).astype(jnp.int32)
    x1, y1, z1 = x0 + 1, y0 + 1, z0 + 1
    x0 = jnp.clip(x0, 0, W - 1); x1 = jnp.clip(x1, 0, W - 1)
    y0 = jnp.clip(y0, 0, H - 1); y1 = jnp.clip(y1, 0, H - 1)
    z0 = jnp.clip(z0, 0, D - 1); z1 = jnp.clip(z1, 0, D - 1)

    fx = x1.astype(jnp.float32) - x
    fy = y1.astype(jnp.float32) - y
    fz = z1.astype(jnp.float32) - z

    im_flat = jnp.transpose(I, (0, 2, 3, 4, 1)).reshape(B, H * W * D, C)

    def gather(yy, xx, zz):
        idx = (yy * (W * D) + xx * D + zz).reshape(B, -1, 1)
        return jnp.take_along_axis(im_flat, idx, axis=1)  # (B, N, C)

    def w_(a):
        return a.reshape(B, -1, 1)

    out = (
        w_(fz * fx * fy) * gather(y0, x0, z0)
        + w_(fz * fx * (1 - fy)) * gather(y1, x0, z0)
        + w_(fz * (1 - fx) * fy) * gather(y0, x1, z0)
        + w_(fz * (1 - fx) * (1 - fy)) * gather(y1, x1, z0)
        + w_((1 - fz) * fx * fy) * gather(y0, x0, z1)
        + w_((1 - fz) * fx * (1 - fy)) * gather(y1, x0, z1)
        + w_((1 - fz) * (1 - fx) * fy) * gather(y0, x1, z1)
        + w_((1 - fz) * (1 - fx) * (1 - fy)) * gather(y1, x1, z1)
    )
    out = out.reshape(B, H, W, D, C)
    return jnp.transpose(out, (0, 4, 1, 2, 3))


if __name__ == "__main__":
    key = jax.random.PRNGKey(0)
    k1, k2, k3, k4 = jax.random.split(key, 4)

    # Case 1: lane-aligned volume.  N = 8*8*16 = 1024 -> TM = TK = 512 ->
    # grid (2, 2, 2): the K-tiled accumulator path is actually exercised.
    B, C, H, W, D = 2, 4, 8, 8, 16
    I1 = jax.random.normal(k1, (B, C, H, W, D), dtype=jnp.float32)
    # Moderate displacements; some samples land out of bounds to exercise clamp.
    F1 = 2.5 * jax.random.normal(k2, (B, 3, H, W, D), dtype=jnp.float32)
    out1 = jax.block_until_ready(dense3d_spatial_transformer(I1, F1))
    np.testing.assert_allclose(
        np.asarray(out1), np.asarray(_reference(I1, F1)), rtol=1e-5, atol=1e-5
    )
    assert out1.shape == (B, C, H, W, D)

    # Case 2: unaligned volume (N = 5*7*9 = 315) — exercises the pad-and-slice
    # path that replaced the old _pick_tm fallback.
    B2, C2, H2, W2, D2 = 1, 3, 5, 7, 9
    I2 = jax.random.normal(k3, (B2, C2, H2, W2, D2), dtype=jnp.float32)
    F2 = 1.5 * jax.random.normal(k4, (B2, 3, H2, W2, D2), dtype=jnp.float32)
    out2 = jax.block_until_ready(dense3d_spatial_transformer(I2, F2))
    np.testing.assert_allclose(
        np.asarray(out2), np.asarray(_reference(I2, F2)), rtol=1e-5, atol=1e-5
    )
    assert out2.shape == (B2, C2, H2, W2, D2)

    print("KERNEL_OK")
</pallas_src>

<mosaic_0001>
module attributes {stable_mosaic.version = 11 : i64} {
  func.func @_stn_kernel(%arg0: i32, %arg1: i32, %arg2: i32, %arg3: memref<3x512xi32, #tpu.memory_space<vmem>>, %arg4: memref<1x3x512xf32, #tpu.memory_space<vmem>>, %arg5: memref<1x4x512xf32, #tpu.memory_space<vmem>>, %arg6: memref<1x4x512xf32, #tpu.memory_space<vmem>>, %arg7: memref<4x512xf32, #tpu.memory_space<vmem>>) attributes {dimension_semantics = [#tpu.dimension_semantics<parallel>, #tpu.dimension_semantics<parallel>, #tpu.dimension_semantics<arbitrary>], iteration_bounds = array<i64: 2, 2, 2>, scalar_prefetch = 0 : i64, scratch_operands = 1 : i64, tpu.core_type = #tpu.core_type<tc>, window_params = [{transform_indices = @transform_0, window_bounds = array<i64: 3, 512>}, {transform_indices = @transform_1, window_bounds = array<i64: 1, 3, 512>}, {transform_indices = @transform_2, window_bounds = array<i64: 1, 4, 512>}, {transform_indices = @transform_3, window_bounds = array<i64: 1, 4, 512>}]} {
    %c0_i32 = arith.constant 0 : i32
    %0 = arith.cmpi eq, %arg2, %c0_i32 : i32
    %1 = arith.extui %0 : i1 to i32
    %c0_i32_0 = arith.constant 0 : i32
    %2 = arith.cmpi ne, %1, %c0_i32_0 : i32
    scf.if %2 {
      %cst_39 = arith.constant 0.000000e+00 : f32
      %182 = vector.broadcast %cst_39 : f32 to vector<4x512xf32>
      %c0_40 = arith.constant 0 : index
      %c0_41 = arith.constant 0 : index
      %183 = vector.load %arg7[%c0_40, %c0_41] : memref<4x512xf32, #tpu.memory_space<vmem>>, vector<4x512xf32>
      tpu.vector_store %arg7[%c0_40, %c0_41], %182 {strides = array<i32>} : memref<4x512xf32, #tpu.memory_space<vmem>>, vector<4x512xf32>,
    } else {
    }
    %c0 = arith.constant 0 : index
    %c0_1 = arith.constant 0 : index
    %3 = vector.load %arg3[%c0, %c0_1] : memref<3x512xi32, #tpu.memory_space<vmem>>, vector<3x512xi32>
    %4 = vector.extract_strided_slice %3 {offsets = [0, 0], sizes = [1, 512], strides = [1, 1]} : vector<3x512xi32> to vector<1x512xi32>
    %5 = arith.sitofp %4 : vector<1x512xi32> to vector<1x512xf32>
    %6 = vector.extract_strided_slice %3 {offsets = [1, 0], sizes = [1, 512], strides = [1, 1]} : vector<3x512xi32> to vector<1x512xi32>
    %7 = arith.sitofp %6 : vector<1x512xi32> to vector<1x512xf32>
    %8 = vector.extract_strided_slice %3 {offsets = [2, 0], sizes = [1, 512], strides = [1, 1]} : vector<3x512xi32> to vector<1x512xi32>
    %9 = arith.sitofp %8 : vector<1x512xi32> to vector<1x512xf32>
    %c0_2 = arith.constant 0 : index
    %c0_3 = arith.constant 0 : index
    %c0_4 = arith.constant 0 : index
    %10 = vector.load %arg4[%c0_2, %c0_3, %c0_4] : memref<1x3x512xf32, #tpu.memory_space<vmem>>, vector<1x3x512xf32>
    %11 = vector.shape_cast %10 : vector<1x3x512xf32> to vector<3x512xf32>
    %12 = vector.extract_strided_slice %11 {offsets = [0, 0], sizes = [1, 512], strides = [1, 1]} : vector<3x512xf32> to vector<1x512xf32>
    %13 = vector.extract_strided_slice %11 {offsets = [1, 0], sizes = [1, 512], strides = [1, 1]} : vector<3x512xf32> to vector<1x512xf32>
    %14 = vector.extract_strided_slice %11 {offsets = [2, 0], sizes = [1, 512], strides = [1, 1]} : vector<3x512xf32> to vector<1x512xf32>
    %15 = arith.addf %13, %7 : vector<1x512xf32>
    %16 = arith.addf %12, %5 : vector<1x512xf32>
    %17 = arith.addf %14, %9 : vector<1x512xf32>
    %18 = math.floor %15 : vector<1x512xf32>
    %19 = arith.fptosi %18 : vector<1x512xf32> to vector<1x512xi32>
    %20 = math.floor %16 : vector<1x512xf32>
    %21 = arith.fptosi %20 : vector<1x512xf32> to vector<1x512xi32>
    %22 = math.floor %17 : vector<1x512xf32>
    %23 = arith.fptosi %22 : vector<1x512xf32> to vector<1x512xi32>
    %c1_i32 = arith.constant 1 : i32
    %24 = vector.broadcast %c1_i32 : i32 to vector<1x512xi32>
    %25 = arith.addi %19, %24 : vector<1x512xi32>
    %c1_i32_5 = arith.constant 1 : i32
    %26 = vector.broadcast %c1_i32_5 : i32 to vector<1x512xi32>
    %27 = arith.addi %21, %26 : vector<1x512xi32>
    %c1_i32_6 = arith.constant 1 : i32
    %28 = vector.broadcast %c1_i32_6 : i32 to vector<1x512xi32>
    %29 = arith.addi %23, %28 : vector<1x512xi32>
    %c0_i32_7 = arith.constant 0 : i32
    %c7_i32 = arith.constant 7 : i32
    %30 = vector.broadcast %c0_i32_7 : i32 to vector<1x512xi32>
    %31 = arith.maxsi %30, %19 : vector<1x512xi32>
    %32 = vector.broadcast %c7_i32 : i32 to vector<1x512xi32>
    %33 = arith.minsi %32, %31 : vector<1x512xi32>
    %c0_i32_8 = arith.constant 0 : i32
    %c7_i32_9 = arith.constant 7 : i32
    %34 = vector.broadcast %c0_i32_8 : i32 to vector<1x512xi32>
    %35 = arith.maxsi %34, %25 : vector<1x512xi32>
    %36 = vector.broadcast %c7_i32_9 : i32 to vector<1x512xi32>
    %37 = arith.minsi %36, %35 : vector<1x512xi32>
    %c0_i32_10 = arith.constant 0 : i32
    %c7_i32_11 = arith.constant 7 : i32
    %38 = vector.broadcast %c0_i32_10 : i32 to vector<1x512xi32>
    %39 = arith.maxsi %38, %21 : vector<1x512xi32>
    %40 = vector.broadcast %c7_i32_11 : i32 to vector<1x512xi32>
    %41 = arith.minsi %40, %39 : vector<1x512xi32>
    %c0_i32_12 = arith.constant 0 : i32
    %c7_i32_13 = arith.constant 7 : i32
    %42 = vector.broadcast %c0_i32_12 : i32 to vector<1x512xi32>
    %43 = arith.maxsi %42, %27 : vector<1x512xi32>
    %44 = vector.broadcast %c7_i32_13 : i32 to vector<1x512xi32>
    %45 = arith.minsi %44, %43 : vector<1x512xi32>
    %c0_i32_14 = arith.constant 0 : i32
    %c15_i32 = arith.constant 15 : i32
    %46 = vector.broadcast %c0_i32_14 : i32 to vector<1x512xi32>
    %47 = arith.maxsi %46, %23 : vector<1x512xi32>
    %48 = vector.broadcast %c15_i32 : i32 to vector<1x512xi32>
    %49 = arith.minsi %48, %47 : vector<1x512xi32>
    %c0_i32_15 = arith.constant 0 : i32
    %c15_i32_16 = arith.constant 15 : i32
    %50 = vector.broadcast %c0_i32_15 : i32 to vector<1x512xi32>
    %51 = arith.maxsi %50, %29 : vector<1x512xi32>
    %52 = vector.broadcast %c15_i32_16 : i32 to vector<1x512xi32>
    %53 = arith.minsi %52, %51 : vector<1x512xi32>
    %54 = arith.sitofp %37 : vector<1x512xi32> to vector<1x512xf32>
    %55 = arith.subf %54, %15 : vector<1x512xf32>
    %56 = arith.sitofp %45 : vector<1x512xi32> to vector<1x512xf32>
    %57 = arith.subf %56, %16 : vector<1x512xf32>
    %58 = arith.sitofp %53 : vector<1x512xi32> to vector<1x512xf32>
    %59 = arith.subf %58, %17 : vector<1x512xf32>
    %cst = arith.constant 1.000000e+00 : f32
    %60 = vector.broadcast %cst : f32 to vector<1x512xf32>
    %61 = arith.subf %60, %55 : vector<1x512xf32>
    %cst_17 = arith.constant 1.000000e+00 : f32
    %62 = vector.broadcast %cst_17 : f32 to vector<1x512xf32>
    %63 = arith.subf %62, %57 : vector<1x512xf32>
    %cst_18 = arith.constant 1.000000e+00 : f32
    %64 = vector.broadcast %cst_18 : f32 to vector<1x512xf32>
    %65 = arith.subf %64, %59 : vector<1x512xf32>
    %c128_i32 = arith.constant 128 : i32
    %66 = vector.broadcast %c128_i32 : i32 to vector<1x512xi32>
    %67 = arith.muli %41, %66 : vector<1x512xi32>
    %c128_i32_19 = arith.constant 128 : i32
    %68 = vector.broadcast %c128_i32_19 : i32 to vector<1x512xi32>
    %69 = arith.muli %45, %68 : vector<1x512xi32>
    %c16_i32 = arith.constant 16 : i32
    %70 = vector.broadcast %c16_i32 : i32 to vector<1x512xi32>
    %71 = arith.muli %33, %70 : vector<1x512xi32>
    %c16_i32_20 = arith.constant 16 : i32
    %72 = vector.broadcast %c16_i32_20 : i32 to vector<1x512xi32>
    %73 = arith.muli %37, %72 : vector<1x512xi32>
    %74 = arith.addi %67, %71 : vector<1x512xi32>
    %75 = arith.addi %74, %49 : vector<1x512xi32>
    %76 = arith.mulf %59, %55 : vector<1x512xf32>
    %77 = arith.mulf %76, %57 : vector<1x512xf32>
    %78 = arith.addi %69, %71 : vector<1x512xi32>
    %79 = arith.addi %78, %49 : vector<1x512xi32>
    %80 = arith.mulf %59, %55 : vector<1x512xf32>
    %81 = arith.mulf %80, %63 : vector<1x512xf32>
    %82 = arith.addi %67, %73 : vector<1x512xi32>
    %83 = arith.addi %82, %49 : vector<1x512xi32>
    %84 = arith.mulf %59, %61 : vector<1x512xf32>
    %85 = arith.mulf %84, %57 : vector<1x512xf32>
    %86 = arith.addi %69, %73 : vector<1x512xi32>
    %87 = arith.addi %86, %49 : vector<1x512xi32>
    %88 = arith.mulf %59, %61 : vector<1x512xf32>
    %89 = arith.mulf %88, %63 : vector<1x512xf32>
    %90 = arith.addi %67, %71 : vector<1x512xi32>
    %91 = arith.addi %90, %53 : vector<1x512xi32>
    %92 = arith.mulf %65, %55 : vector<1x512xf32>
    %93 = arith.mulf %92, %57 : vector<1x512xf32>
    %94 = arith.addi %69, %71 : vector<1x512xi32>
    %95 = arith.addi %94, %53 : vector<1x512xi32>
    %96 = arith.mulf %65, %55 : vector<1x512xf32>
    %97 = arith.mulf %96, %63 : vector<1x512xf32>
    %98 = arith.addi %67, %73 : vector<1x512xi32>
    %99 = arith.addi %98, %53 : vector<1x512xi32>
    %100 = arith.mulf %65, %61 : vector<1x512xf32>
    %101 = arith.mulf %100, %57 : vector<1x512xf32>
    %102 = arith.addi %69, %73 : vector<1x512xi32>
    %103 = arith.addi %102, %53 : vector<1x512xi32>
    %104 = arith.mulf %65, %61 : vector<1x512xf32>
    %105 = arith.mulf %104, %63 : vector<1x512xf32>
    %106 = tpu.iota {dimensions = array<i32: 0>} : vector<512x1xi32>
    %c512_i32 = arith.constant 512 : i32
    %107 = arith.muli %arg2, %c512_i32 : i32
    %108 = vector.broadcast %107 : i32 to vector<512x1xi32>
    %109 = arith.addi %106, %108 : vector<512x1xi32>
    %110 = vector.broadcast %109 : vector<512x1xi32> to vector<512x512xi32>
    %111 = vector.broadcast %75 : vector<1x512xi32> to vector<512x512xi32>
    %112 = arith.cmpi eq, %110, %111 : vector<512x512xi32>
    %cst_21 = arith.constant 0.000000e+00 : f32
    %113 = vector.shape_cast %77 : vector<1x512xf32> to vector<1x512xf32>
    %114 = vector.broadcast %113 : vector<1x512xf32> to vector<512x512xf32>
    %115 = vector.broadcast %cst_21 : f32 to vector<512x512xf32>
    %116 = arith.select %112, %114, %115 : vector<512x512xi1>, vector<512x512xf32>
    %117 = vector.broadcast %109 : vector<512x1xi32> to vector<512x512xi32>
    %118 = vector.broadcast %79 : vector<1x512xi32> to vector<512x512xi32>
    %119 = arith.cmpi eq, %117, %118 : vector<512x512xi32>
    %cst_22 = arith.constant 0.000000e+00 : f32
    %120 = vector.shape_cast %81 : vector<1x512xf32> to vector<1x512xf32>
    %121 = vector.broadcast %120 : vector<1x512xf32> to vector<512x512xf32>
    %122 = vector.broadcast %cst_22 : f32 to vector<512x512xf32>
    %123 = arith.select %119, %121, %122 : vector<512x512xi1>, vector<512x512xf32>
    %124 = arith.addf %116, %123 : vector<512x512xf32>
    %125 = vector.broadcast %109 : vector<512x1xi32> to vector<512x512xi32>
    %126 = vector.broadcast %83 : vector<1x512xi32> to vector<512x512xi32>
    %127 = arith.cmpi eq, %125, %126 : vector<512x512xi32>
    %cst_23 = arith.constant 0.000000e+00 : f32
    %128 = vector.shape_cast %85 : vector<1x512xf32> to vector<1x512xf32>
    %129 = vector.broadcast %128 : vector<1x512xf32> to vector<512x512xf32>
    %130 = vector.broadcast %cst_23 : f32 to vector<512x512xf32>
    %131 = arith.select %127, %129, %130 : vector<512x512xi1>, vector<512x512xf32>
    %132 = arith.addf %124, %131 : vector<512x512xf32>
    %133 = vector.broadcast %109 : vector<512x1xi32> to vector<512x512xi32>
    %134 = vector.broadcast %87 : vector<1x512xi32> to vector<512x512xi32>
    %135 = arith.cmpi eq, %133, %134 : vector<512x512xi32>
    %cst_24 = arith.constant 0.000000e+00 : f32
    %136 = vector.shape_cast %89 : vector<1x512xf32> to vector<1x512xf32>
    %137 = vector.broadcast %136 : vector<1x512xf32> to vector<512x512xf32>
    %138 = vector.broadcast %cst_24 : f32 to vector<512x512xf32>
    %139 = arith.select %135, %137, %138 : vector<512x512xi1>, vector<512x512xf32>
    %140 = arith.addf %132, %139 : vector<512x512xf32>
    %141 = vector.broadcast %109 : vector<512x1xi32> to vector<512x512xi32>
    %142 = vector.broadcast %91 : vector<1x512xi32> to vector<512x512xi32>
    %143 = arith.cmpi eq, %141, %142 : vector<512x512xi32>
    %cst_25 = arith.constant 0.000000e+00 : f32
    %144 = vector.shape_cast %93 : vector<1x512xf32> to vector<1x512xf32>
    %145 = vector.broadcast %144 : vector<1x512xf32> to vector<512x512xf32>
    %146 = vector.broadcast %cst_25 : f32 to vector<512x512xf32>
    %147 = arith.select %143, %145, %146 : vector<512x512xi1>, vector<512x512xf32>
    %148 = arith.addf %140, %147 : vector<512x512xf32>
    %149 = vector.broadcast %109 : vector<512x1xi32> to vector<512x512xi32>
    %150 = vector.broadcast %95 : vector<1x512xi32> to vector<512x512xi32>
    %151 = arith.cmpi eq, %149, %150 : vector<512x512xi32>
    %cst_26 = arith.constant 0.000000e+00 : f32
    %152 = vector.shape_cast %97 : vector<1x512xf32> to vector<1x512xf32>
    %153 = vector.broadcast %152 : vector<1x512xf32> to vector<512x512xf32>
    %154 = vector.broadcast %cst_26 : f32 to vector<512x512xf32>
    %155 = arith.select %151, %153, %154 : vector<512x512xi1>, vector<512x512xf32>
    %156 = arith.addf %148, %155 : vector<512x512xf32>
    %157 = vector.broadcast %109 : vector<512x1xi32> to vector<512x512xi32>
    %158 = vector.broadcast %99 : vector<1x512xi32> to vector<512x512xi32>
    %159 = arith.cmpi eq, %157, %158 : vector<512x512xi32>
    %cst_27 = arith.constant 0.000000e+00 : f32
    %160 = vector.shape_cast %101 : vector<1x512xf32> to vector<1x512xf32>
    %161 = vector.broadcast %160 : vector<1x512xf32> to vector<512x512xf32>
    %162 = vector.broadcast %cst_27 : f32 to vector<512x512xf32>
    %163 = arith.select %159, %161, %162 : vector<512x512xi1>, vector<512x512xf32>
    %164 = arith.addf %156, %163 : vector<512x512xf32>
    %165 = vector.broadcast %109 : vector<512x1xi32> to vector<512x512xi32>
    %166 = vector.broadcast %103 : vector<1x512xi32> to vector<512x512xi32>
    %167 = arith.cmpi eq, %165, %166 : vector<512x512xi32>
    %cst_28 = arith.constant 0.000000e+00 : f32
    %168 = vector.shape_cast %105 : vector<1x512xf32> to vector<1x512xf32>
    %169 = vector.broadcast %168 : vector<1x512xf32> to vector<512x512xf32>
    %170 = vector.broadcast %cst_28 : f32 to vector<512x512xf32>
    %171 = arith.select %167, %169, %170 : vector<512x512xi1>, vector<512x512xf32>
    %172 = arith.addf %164, %171 : vector<512x512xf32>
    %c0_29 = arith.constant 0 : index
    %c0_30 = arith.constant 0 : index
    %173 = vector.load %arg7[%c0_29, %c0_30] : memref<4x512xf32, #tpu.memory_space<vmem>>, vector<4x512xf32>
    %c0_31 = arith.constant 0 : index
    %c0_32 = arith.constant 0 : index
    %c0_33 = arith.constant 0 : index
    %174 = vector.load %arg5[%c0_31, %c0_32, %c0_33] : memref<1x4x512xf32, #tpu.memory_space<vmem>>, vector<1x4x512xf32>
    %175 = vector.shape_cast %174 : vector<1x4x512xf32> to vector<4x512xf32>
    %cst_34 = arith.constant dense<0.000000e+00> : vector<4x512xf32>
    %176 = tpu.matmul %175, %172, %cst_34 {dimension_numbers = #tpu.dot_dimension_numbers<[1], [0], [0], [1], [0, 0, 1, 1], [], []>} : vector<4x512xf32>, vector<512x512xf32>, vector<4x512xf32> -> vector<4x512xf32>
    %177 = arith.addf %173, %176 : vector<4x512xf32>
    %c0_35 = arith.constant 0 : index
    %c0_36 = arith.constant 0 : index
    %178 = vector.load %arg7[%c0_35, %c0_36] : memref<4x512xf32, #tpu.memory_space<vmem>>, vector<4x512xf32>
    tpu.vector_store %arg7[%c0_35, %c0_36], %177 {strides = array<i32>} : memref<4x512xf32, #tpu.memory_space<vmem>>, vector<4x512xf32>,
    %c1_i32_37 = arith.constant 1 : i32
    %179 = arith.cmpi eq, %arg2, %c1_i32_37 : i32
    %180 = arith.extui %179 : i1 to i32
    %c0_i32_38 = arith.constant 0 : i32
    %181 = arith.cmpi ne, %180, %c0_i32_38 : i32
    scf.if %181 {
      %c0_39 = arith.constant 0 : index
      %c0_40 = arith.constant 0 : index
      %182 = vector.load %arg7[%c0_39, %c0_40] : memref<4x512xf32, #tpu.memory_space<vmem>>, vector<4x512xf32>
      %c0_41 = arith.constant 0 : index
      %c0_42 = arith.constant 0 : index
      %c0_43 = arith.constant 0 : index
      %183 = vector.load %arg6[%c0_41, %c0_42, %c0_43] : memref<1x4x512xf32, #tpu.memory_space<vmem>>, vector<1x4x512xf32>
      %184 = vector.shape_cast %183 : vector<1x4x512xf32> to vector<4x512xf32>
      %185 = vector.shape_cast %182 : vector<4x512xf32> to vector<1x4x512xf32>
      tpu.vector_store %arg6[%c0_41, %c0_42, %c0_43], %185 {strides = array<i32>} : memref<1x4x512xf32, #tpu.memory_space<vmem>>, vector<1x4x512xf32>,
    } else {
    }
    return
  }
  func.func @transform_0(%arg0: i32, %arg1: i32, %arg2: i32) -> (i32, i32) {
    %c0_i32 = arith.constant 0 : i32
    %c0_i32_0 = arith.constant 0 : i32
    return %c0_i32, %arg1 : i32, i32
  }
  func.func @transform_1(%arg0: i32, %arg1: i32, %arg2: i32) -> (i32, i32, i32) {
    %c0_i32 = arith.constant 0 : i32
    %c0_i32_0 = arith.constant 0 : i32
    return %arg0, %c0_i32, %arg1 : i32, i32, i32
  }
  func.func @transform_2(%arg0: i32, %arg1: i32, %arg2: i32) -> (i32, i32, i32) {
    %c0_i32 = arith.constant 0 : i32
    %c0_i32_0 = arith.constant 0 : i32
    return %arg0, %c0_i32, %arg2 : i32, i32, i32
  }
  func.func @transform_3(%arg0: i32, %arg1: i32, %arg2: i32) -> (i32, i32, i32) {
    %c0_i32 = arith.constant 0 : i32
    %c0_i32_0 = arith.constant 0 : i32
    return %arg0, %c0_i32, %arg1 : i32, i32, i32
  }
}

</mosaic_0001>

<bundles_post_ra>
// kernel: tpu_custom_call.1
= control target key start
LH: loop header
LB: loop body
LE: loop exit
PB: predicated region body
PF: predicated region fallthrough
CT: control target
= control target key end

     0   :  { %8 = vsyncpa [#allocation4], 0  ;;  %s15332_s0 = inlined_call_operand.vmem [shape: s32[3,1024], index: 0, kind: input, shape index: {}]   ;;  %s15333_s1 = inlined_call_operand.vmem [shape: f32[2,3,1024], index: 1, kind: input, shape index: {}]   ;;  %s15334_s2 = inlined_call_operand.vmem [shape: f32[2,4,1024], index: 2, kind: input, shape index: {}]   ;;  %s15335_s3 = inlined_call_operand.hbm [shape: f32[2,4,1024], index: 3, kind: output, shape index: {}]  }
   0x1   :  { %10 = vsyncpa [#allocation4 + $0x1], 0  ;;  %s7689_s12 = smov 0   ;;  %s7691_s13 = smov 0  }
   0x2   :  { %s7693_s14 = smov 0   ;;  %s7695_s15 = smov 0  }
   0x3   :  { %s7697_s16 = smov 0   ;;  %s7699_s17 = smov 0  }
   0x4   :  { %s7701_s18 = smov 0   ;;  %s7703_s19 = smov 0  }
   0x5   :  { %s7705_s20 = smov 0   ;;  %s7707_s21 = smov 0  }
   0x6 LB: > { %15453 = sst [smem:[#allocation6_spill]] %s7637_s14  ;;  %s7438_s22 = sadd.s32 4294967295, %s7665_s21   ;;  %s7665_s21 = sphi %s7707_s21, %s16_s21   ;;  %s7661_s20 = sphi %s7705_s20, %s15582_s20   ;;  %s7657_s19 = sphi %s7703_s19, %s15581_s19   ;;  %s7653_s18 = sphi %s7701_s18, %s15585_s18   ;;  %s7649_s17 = sphi %s7699_s17, %s15579_s17   ;;  %s7645_s16 = sphi %s7697_s16, %s15578_s16   ;;  %s7641_s15 = sphi %s7695_s15, %s15577_s15   ;;  %s7637_s14 = sphi %s7693_s14, %s15576_s14   ;;  %s7633_s13 = sphi %s7691_s13, %s15584_s13   ;;  %s7629_s12 = sphi %s7689_s12, %s15583_s12  }
   0x7   : > { %15454 = sst [smem:[#allocation7_spill]] %s7653_s18  ;;  %s7439_s23 = sadd.s32 4294967294, %s7665_s21  }
   0x8   : > { %15455 = sst [smem:[#allocation8_spill]] %s7657_s19  ;;  %s28_s24 = sadd.s32 1, %s7653_s18 }
   0x9   : > { %15456 = sst [smem:[#allocation9_spill]] %s7661_s20  ;;  %p29_p0 = scmp.ge.s32.totalorder %s28_s24, 2 }
   0xa   : > { %s31_s25 = sadd.s32 1, %s7657_s19  ;;  %s35_s26 = sadd.s32 1, %s7661_s20 }
   0xb   : > { %p136_p1 = scmp.ne.s32.totalorder %s7637_s14, %s7633_s13  ;;  %s15587_s24 = smov (%p29_p0, %s28_s24), 0 }
   0xc   : > { %15457 = sst [smem:[#allocation10_spill]] %s15587_s24  ;;  %s15589_s25 = smov (!%p29_p0, %s31_s25), %s7657_s19 }
   0xd   : > { %p137_p2 = scmp.eq.s32.totalorder %s7438_s22, 7  ;;  %p142_p3 = scmp.ne.s32.totalorder %s7633_s13, %s7629_s12 }
   0xe   : > { %p33_p4 = scmp.ge.s32.totalorder %s15589_s25, 2  ;;  %p143_p5 = scmp.eq.s32.totalorder %s7439_s23, 7 }
   0xf   : > { %p7751_p6 = por %p137_p2, %p136_p1  ;;  %p7442_p8 = scmp.ge.s32.totalorder %s7665_s21, 1 }
  0x10   : > { %s15591_s25 = smov (%p33_p4, %s15589_s25), 0  ;;  %s15593_s26 = smov (!%p33_p4, %s35_s26), %s7661_s20 }
  0x11   : > { %15459 = sst [smem:[#allocation11_spill]] %s15591_s25  ;;  %p7758_p7 = por %p143_p5, %p142_p3 }
  0x12   : > { %p37_p9 = scmp.ge.s32.totalorder %s15593_s26, 2  ;;  %p196_p10 = scmp.lt.s32.totalorder %s7665_s21, 9 }
  0x13   : > { %s122_s29 = ssub.s32 %s7657_s19, %s15591_s25  ;;  %s126_s5 = sadd.s32 1, %s7637_s14 }
  0x14   : > { %s15595_s26 = smov (%p37_p9, %s15593_s26), 0  ;;  %p197_p11 = pnand %p7442_p8, %p196_p10 }
  0x15   : > { %15461 = sst [smem:[#allocation12_spill]] %s15595_s26  ;;  %s121_s30 = ssub.s32 %s7661_s20, %s15595_s26 }
  0x16   : > { %s123_s4 = sor.u32 %s122_s29, %s121_s30 }
  0x17   : > { %p124_p12 = scmp.eq.s32.totalorder %s123_s4, 0  ;;  %200 = sbr.rel (%p197_p11) target bundleno = 1875 (0x753), region = 32 }
  0x19   : > { %s7772_s6 = scalar_select %p124_p12, %s7637_s14, %s126_s5  }
  0x1b   : > { %15462 = sst [smem:[#allocation13_spill]] %s7772_s6 }
  0x1c   : > { %s15339_s7 = sand.u32 1, %s7633_s13   ;;  %s7776_s8 = sshll.u32 %s7645_s16, 2 }
  0x1d   : > { %s7443_s9 = sshll.u32 %s15339_s7, 4  ;;  %p239_p13 = scmp.lt.s32.totalorder %s7776_s8, 7 }
  0x1e   : > { %p245_p0 = scmp.lt.s32.totalorder %s7649_s17, 1  ;;  %s7449_s23 = sshll.u32 %s7641_s15, 2 }
  0x1f   : > { %s240_s10 = scalar_select %p239_p13, %s7776_s8, 7 }
  0x20   : > { %s246_s11 = scalar_select %p245_p0, %s7649_s17, 1 }
  0x21   : > { %s7445_s22 = sshll.u32 %s240_s10, 2  ;;  %p257_p1 = scmp.lt.s32.totalorder %s7449_s23, 7 }
  0x22   : > { %s7788_s4 = scalar_lea.vmem %s15332_s0, %s7445_s22  ;;  %s7447_s5 = sshll.u32 %s246_s11, 3 }
  0x23   : > { %s250_s26 = sadd.s32 %s7447_s5, %s240_s10  ;;  %s15597_s23 = smov (!%p257_p1, %s7449_s23), 7 }
  0x24   : > { %s7448_s16 = sshll.u32 %s250_s26, 2  ;;  %s260_s7 = sadd.s32 %s7447_s5, %s15597_s23 }
  0x25   : > { %s7793_s20 = scalar_lea.vmem %s15333_s1, %s7448_s16  ;;  %s7451_s19 = sshll.u32 %s260_s7, 2 }
  0x26   : > { %s7798_s14 = scalar_lea.vmem %s15334_s2, %s7451_s19  ;;  %s7800_s29 = scalar_lea.vmem [#allocation3], %s7443_s9 }
  0x27   : > { %p7452_p2 = scmp.ne.s32.totalorder %s7641_s15, 0 }
  0x29   : > { %268 = sbr.rel (%p7452_p2) target bundleno = 48 (0x30), region = 36 }
  0x2e   : > { %v7667_v0 = vmov 0.0  }
  0x2f   : > { %269 = vst [vmem:[#allocation2] sm:$0xff] %v7667_v0  ;;  %270 = vst [vmem:[#allocation2 + $0x8] sm:$0xff] %v7667_v0 }
  0x30 PF: > { %v271_v1 = vld [vmem:[%s7788_s4] sm:$0x77]  ;;  %v413_v3 = vlaneseq  ;;  %s7453_s18 = sshll.u32 %s7641_s15, 9  ;;  %p7454_p3 = scmp.ne.s32.totalorder %s7641_s15, 1 }
  0x31   : > { %v275_v2 = vld [vmem:[%s7793_s20] sm:$0x77]  ;;  %v273_v4 = vcvt.s32.f32 %v271_v1  ;;  %v7809_v10 = vstv %s7453_s18 }
  0x32   : > { %v7805_v6 = vshrl.u32 %v413_v3, 7 }
  0x33   : > { %v277_v5 = vadd.f32 %v275_v2, %v273_v4 }
  0x34   : > { %v429_v8 = vadd.s32 120, %v7805_v6  ;;  %v461_v11 = vadd.s32 376, %v7805_v6  ;;  %v428_v12 = vadd.s32 112, %v7805_v6  ;;  %v460_v13 = vadd.s32 368, %v7805_v6 }
  0x35   : > { %v279_v7 = vfloor.f32 %v277_v5  ;;  %v427_v14 = vadd.s32 104, %v7805_v6  ;;  %v459_v15 = vadd.s32 360, %v7805_v6  ;;  %v7817_v17 = vsub.s32 0, %v7805_v6 }
  0x36   : > { %v7820_v18 = vsub.s32 4, %v7805_v6  ;;  %v7823_v19 = vadd.s32 %v7809_v10, %v429_v8  ;;  %v7826_v20 = vsub.s32 2, %v7805_v6  ;;  %v7829_v21 = vsub.s32 6, %v7805_v6 }
  0x37   : > { %v7461_v9 = vtrunc.f32 %v279_v7  ;;  %v426_v22 = vadd.s32 96, %v7805_v6  ;;  %v7833_v24 = vadd.s32 %v7809_v10, %v461_v11  ;;  %v7836_v25 = vadd.s32 %v7809_v10, %v428_v12 }
  0x38   : > { %15463 = vst [vmem:[#allocation14_spill] sm:$0xff] %v7823_v19  ;;  %15464 = vst [vmem:[#allocation15_spill] sm:$0xff] %v7826_v20  ;;  %v7839_v27 = vadd.s32 %v7809_v10, %v460_v13  ;;  %v7842_v28 = vadd.s32 %v7809_v10, %v427_v14  ;;  %v7845_v29 = vadd.s32 %v7809_v10, %v459_v15  ;;  %v458_v30 = vadd.s32 352, %v7805_v6 }
  0x39   : > { %v7462_v16 = vcvt.f32.s32 %v7461_v9  ;;  %15465 = vst [vmem:[#allocation16_spill] sm:$0xff] %v7833_v24  ;;  %v7849_v34 = vadd.s32 %v7809_v10, %v426_v22  ;;  %v425_v36 = vadd.s32 88, %v7805_v6  ;;  %v457_v40 = vadd.s32 344, %v7805_v6 }
  0x3a   : > { %15466 = vst [vmem:[#allocation17_spill] sm:$0xff] %v7842_v28  ;;  %15467 = vst [vmem:[#allocation18_spill] sm:$0xff] %v7845_v29  ;;  %v7854_v44 = vadd.s32 %v7809_v10, %v458_v30  ;;  %v7863_v0 = vadd.s32 80, %v7805_v6 }
  0x3b   : > { %v283_v23 = vadd.s32 1, %v7462_v16  ;;  %vm285_vm0 = vcmp.gt.s32.totalorder %v7462_v16, 0  ;;  %15468 = vst [vmem:[#allocation19_spill] sm:$0xff] %v7849_v34  ;;  %v7857_v52 = vadd.s32 %v7809_v10, %v425_v36  ;;  %v7860_v56 = vadd.s32 %v7809_v10, %v457_v40 }
  0x3c   : > { %v286_v26 = vsel %vm285_vm0, %v7462_v16, 0  ;;  %15469 = vst [vmem:[#allocation20_spill] sm:$0xff] %v7854_v44 }
  0x3d   : > { %vm289_vm1 = vcmp.lt.s32.totalorder %v286_v26, 7  ;;  %vm293_vm2 = vcmp.gt.s32.totalorder %v283_v23, 0  ;;  %vm301_vm3 = vcmp.lt.s32.totalorder %v286_v26, 15  ;;  %15470 = vst [vmem:[#allocation21_spill] sm:$0xff] %v7857_v52  ;;  %15471 = vst [vmem:[#allocation22_spill] sm:$0xff] %v7860_v56 }
  0x3e   : > { %v290_v31 = vsel %vm289_vm1, %v286_v26, 7  ;;  %v294_v32 = vsel %vm293_vm2, %v283_v23, 0  ;;  %v302_v33 = vsel %vm301_vm3, %v286_v26, 15 }
  0x3f   : > { %vm297_vm4 = vcmp.lt.s32.totalorder %v294_v32, 7  ;;  %vm305_vm5 = vcmp.lt.s32.totalorder %v294_v32, 15  ;;  %v325_v35 = vmul.u32 16, %v290_v31  ;;  %v335_v39 = vrot.slane %v302_v33, 6 }
  0x40   : > { %v298_v37 = vsel %vm297_vm4, %v294_v32, 7  ;;  %v306_v38 = vsel %vm305_vm5, %v294_v32, 15  ;;  %v321_v45 = vmul.u32 128, %v290_v31 }
  0x41   : > { %v309_v41 = vcvt.s32.f32 %v298_v37  ;;  %v313_v42 = vcvt.s32.f32 %v306_v38  ;;  %v327_v43 = vmul.u32 16, %v298_v37  ;;  %v323_v46 = vmul.u32 128, %v298_v37 }
  0x42   : > { %v329_v47 = vrot.slane %v325_v35, 5  ;;  %v389_v48 = vrot.slane %v306_v38, 6  ;;  %v336_v54 = vrot.slane %v335_v39, 4 }
  0x43   : > { %v311_v49 = vsub.f32 %v309_v41, %v277_v5  ;;  %v315_v50 = vsub.f32 %v313_v42, %v277_v5  ;;  %v367_v51 = vrot.slane %v327_v43, 5 }
  0x44   : > { %v330_v53 = vrot.slane %v329_v47, 4  ;;  %v390_v55 = vrot.slane %v389_v48, 4 }
  0x45   : > { %v317_v57 = vsub.f32 1.0, %v311_v49  ;;  %v319_v58 = vsub.f32 1.0, %v315_v50  ;;  %v343_v59 = vrot.slane %v311_v49, 7  ;;  %v349_v60 = vrot.slane %v311_v49, 6 }
  0x46   : > { %v333_v61 = vadd.s32 %v330_v53, %v321_v45  ;;  %v355_v62 = vadd.s32 %v330_v53, %v323_v46  ;;  %v368_v63 = vrot.slane %v367_v51, 4 }
  0x47   : > { %v347_v1 = vmul.f32 %v343_v59, %v315_v50  ;;  %v361_v2 = vrot.slane %v317_v57, 6  ;;  %v375_v3 = vrot.slane %v317_v57, 7  ;;  %v395_v4 = vmul.f32 %v343_v59, %v319_v58 }
  0x48   : > { %v7865_v5 = vadd.s32 %v336_v54, %v333_v61  ;;  %v7867_v7 = vadd.s32 %v355_v62, %v336_v54  ;;  %v371_v8 = vadd.s32 %v368_v63, %v321_v45  ;;  %v383_v9 = vadd.s32 %v368_v63, %v323_v46 }
  0x49   : > { %v7869_v11 = vmul.f32 %v349_v60, %v347_v1  ;;  %v7871_v12 = vmul.f32 %v361_v2, %v347_v1  ;;  %v379_v13 = vmul.f32 %v375_v3, %v315_v50  ;;  %v7873_v14 = vadd.s32 %v390_v55, %v333_v61 }
  0x4a   : > { %v7875_v15 = vadd.s32 %v371_v8, %v336_v54  ;;  %v7877_v16 = vadd.s32 %v383_v9, %v336_v54  ;;  %v7879_v22 = vmul.f32 %v395_v4, %v349_v60  ;;  %v7881_v23 = vadd.s32 %v390_v55, %v355_v62 }
  0x4b   : > { %v7883_v26 = vmul.f32 %v379_v13, %v349_v60  ;;  %v7885_v30 = vmul.f32 %v379_v13, %v361_v2  ;;  %v7887_v31 = vmul.f32 %v395_v4, %v361_v2  ;;  %v7889_v32 = vadd.s32 %v390_v55, %v371_v8 }
  0x4c   : > { %v405_v33 = vmul.f32 %v375_v3, %v319_v58  ;;  %v7891_v35 = vadd.s32 %v390_v55, %v383_v9  ;;  %v551_v36 = vrot.slane %v7865_v5, %v7820_v18  ;;  %v841_v37 = vrot.slane %v7869_v11, %v7829_v21 }
  0x4d   : > { %v1129_v38 = vrot.slane %v7867_v7, %v7817_v17  ;;  %v1133_v39 = vrot.slane %v7867_v7, %v7820_v18  ;;  %v1423_v40 = vrot.slane %v7871_v12, %v7829_v21  ;;  %v1967_v41 = vrot.slane %v7875_v15, %v7817_v17 }
  0x4e   : > { %v7905_v42 = vmul.f32 %v405_v33, %v349_v60  ;;  %v7907_v43 = vmul.f32 %v405_v33, %v361_v2  ;;  %v7910_v45 = vrot.slane %v551_v36, %v7817_v17  ;;  %v7913_v46 = vrot.slane %v841_v37, %v7826_v20 }
  0x4f   : > { %v7916_v47 = vrot.slane %v1133_v39, %v7817_v17  ;;  %v7919_v48 = vrot.slane %v1423_v40, %v7826_v20  ;;  %v1971_v49 = vrot.slane %v7875_v15, %v7820_v18  ;;  %v2261_v50 = vrot.slane %v7883_v26, %v7829_v21 }
  0x50   : > { %vm637_vm6 = vcmp.eq.s32.totalorder %v7823_v19, %v7910_v45  ;;  %v2809_v53 = vrot.slane %v7877_v16, %v7820_v18  ;;  %v3099_v54 = vrot.slane %v7885_v30, %v7829_v21  ;;  %v3647_v62 = vrot.slane %v7873_v14, %v7820_v18 }
  0x51   : > { %v931_v55 = vsel %vm637_vm6, %v7913_v46, 0.0  ;;  %vm1219_vm7 = vcmp.eq.s32.totalorder %v7823_v19, %v7916_v47  ;;  %v7937_v57 = vrot.slane %v1971_v49, %v7817_v17  ;;  %v7940_v58 = vrot.slane %v2261_v50, %v7826_v20 }
  0x52   : > { %v1513_v59 = vsel %vm1219_vm7, %v7919_v48, 0.0  ;;  %v7944_v60 = vrot.slane %v2809_v53, %v7817_v17  ;;  %v7947_v61 = vrot.slane %v3099_v54, %v7826_v20  ;;  %v3937_v1 = vrot.slane %v7879_v22, %v7829_v21 }
  0x53   : > { %v1769_v63 = vadd.f32 %v1513_v59, %v931_v55  ;;  %vm2057_vm8 = vcmp.eq.s32.totalorder %v7823_v19, %v7937_v57  ;;  %v4485_v2 = vrot.slane %v7881_v23, %v7820_v18  ;;  %v7961_v4 = vrot.slane %v3647_v62, %v7817_v17 }
  0x54   : > { %v2351_v3 = vsel %vm2057_vm8, %v7940_v58, 0.0  ;;  %vm2895_vm9 = vcmp.eq.s32.totalorder %v7823_v19, %v7944_v60  ;;  %v4775_v8 = vrot.slane %v7887_v31, %v7829_v21  ;;  %v7967_v33 = vrot.slane %v3937_v1, %v7826_v20 }
  0x55   : > { %v2607_v9 = vadd.f32 %v2351_v3, %v1769_v63  ;;  %v3189_v13 = vsel %vm2895_vm9, %v7947_v61, 0.0  ;;  %v7970_v36 = vrot.slane %v4485_v2, %v7817_v17  ;;  %vm3733_vm10 = vcmp.eq.s32.totalorder %v7823_v19, %v7961_v4 }
  0x56   : > { %v7975_v37 = vrot.slane %v4775_v8, %v7826_v20  ;;  %v5323_v39 = vrot.slane %v7889_v32, %v7820_v18  ;;  %v5613_v40 = vrot.slane %v7905_v42, %v7829_v21  ;;  %v4027_v50 = vsel %vm3733_vm10, %v7967_v33, 0.0 }
  0x57   : > { %v3445_v49 = vadd.f32 %v3189_v13, %v2607_v9  ;;  %vm4571_vm11 = vcmp.eq.s32.totalorder %v7823_v19, %v7970_v36  ;;  %v6161_v53 = vrot.slane %v7891_v35, %v7820_v18  ;;  %v6451_v62 = vrot.slane %v7907_v43, %v7829_v21 }
  0x58   : > { %v4865_v54 = vsel %vm4571_vm11, %v7975_v37, 0.0  ;;  %v7988_v55 = vrot.slane %v5323_v39, %v7817_v17  ;;  %v7991_v59 = vrot.slane %v5613_v40, %v7826_v20  ;;  %vm765_vm12 = vcmp.eq.s32.totalorder %v7833_v24, %v7910_v45 }
  0x59   : > { %v4283_v63 = vadd.f32 %v4027_v50, %v3445_v49  ;;  %v7996_v1 = vrot.slane %v6161_v53, %v7817_v17  ;;  %vm1347_vm13 = vcmp.eq.s32.totalorder %v7833_v24, %v7916_v47  ;;  %v8005_v2 = vrot.slane %v6451_v62, %v7826_v20 }
  0x5a   : > { %vm5409_vm14 = vcmp.eq.s32.totalorder %v7823_v19, %v7988_v55  ;;  %v1059_v3 = vsel %vm765_vm12, %v7913_v46, 0.0  ;;  %v1641_v8 = vsel %vm1347_vm13, %v7919_v48, 0.0  ;;  %vm2185_vm0 = vcmp.eq.s32.totalorder %v7833_v24, %v7937_v57 }
  0x5b   : > { %v5121_v9 = vadd.f32 %v4865_v54, %v4283_v63  ;;  %v5703_v13 = vsel %vm5409_vm14, %v7991_v59, 0.0  ;;  %vm6247_vm15 = vcmp.eq.s32.totalorder %v7823_v19, %v7996_v1  ;;  %v1897_v39 = vadd.f32 %v1641_v8, %v1059_v3 }
  0x5c   : > { %v6541_v40 = vsel %vm6247_vm15, %v8005_v2, 0.0  ;;  %vm3023_vm1 = vcmp.eq.s32.totalorder %v7833_v24, %v7944_v60  ;;  %vm3861_vm2 = vcmp.eq.s32.totalorder %v7833_v24, %v7961_v4  ;;  %v2479_v50 = vsel %vm2185_vm0, %v7940_v58, 0.0 }
  0x5d   : > { %v5959_v49 = vadd.f32 %v5703_v13, %v5121_v9  ;;  %v3317_v53 = vsel %vm3023_vm1, %v7947_v61, 0.0  ;;  %v4155_v54 = vsel %vm3861_vm2, %v7967_v33, 0.0  ;;  %v2735_v62 = vadd.f32 %v2479_v50, %v1897_v39 }
  0x5e   : > { %vm4699_vm3 = vcmp.eq.s32.totalorder %v7833_v24, %v7970_v36  ;;  %vm5537_vm4 = vcmp.eq.s32.totalorder %v7833_v24, %v7988_v55  ;;  %vm6375_vm5 = vcmp.eq.s32.totalorder %v7833_v24, %v7996_v1  ;;  %v547_v39 = vrot.slane %v7865_v5, %v7817_v17 }
  0x5f   : > { %v6797_v63 = vadd.f32 %v6541_v40, %v5959_v49  ;;  %v4993_v3 = vsel %vm4699_vm3, %v7975_v37, 0.0  ;;  %v5831_v8 = vsel %vm5537_vm4, %v7991_v59, 0.0  ;;  %v6669_v9 = vsel %vm6375_vm5, %v8005_v2, 0.0 }
  0x60   : > { %v3573_v13 = vadd.f32 %v3317_v53, %v2735_v62  ;;  %v837_v50 = vrot.slane %v7869_v11, %v7826_v20  ;;  %v8039_v51 = vrot.slane %v1129_v38, %v7817_v17  ;;  %v1419_v40 = vrot.slane %v7871_v12, %v7826_v20 }
  0x61   : > { %7002 = vmatprep.subr.mxu0 %v6797_v63  ;;  %v8047_v49 = vrot.slane %v1967_v41, %v7817_v17  ;;  %v2257_v5 = vrot.slane %v7883_v26, %v7826_v20  ;;  %v15472_v11 = vrot.slane %v7877_v16, %v7817_v17  ;;  %v8058_v53 = vrot.slane %v547_v39, %v7817_v17 }
  0x62   : > { %v4411_v38 = vadd.f32 %v4155_v54, %v3573_v13  ;;  %v8061_v12 = vrot.slane %v837_v50, %v7826_v20  ;;  %vm1218_vm6 = vcmp.eq.s32.totalorder %v7823_v19, %v8039_v51  ;;  %v8066_v15 = vrot.slane %v1419_v40, %v7826_v20 }
  0x63   : > { %v8055_v7 = vrot.slane %v15472_v11, %v7817_v17  ;;  %vm2056_vm7 = vcmp.eq.s32.totalorder %v7823_v19, %v8047_v49  ;;  %v8071_v16 = vrot.slane %v2257_v5, %v7826_v20  ;;  %vm636_vm9 = vcmp.eq.s32.totalorder %v7823_v19, %v8058_v53 }
  0x64   : > { %v5249_v26 = vadd.f32 %v4993_v3, %v4411_v38  ;;  %v3095_v41 = vrot.slane %v7885_v30, %v7826_v20  ;;  %v3643_v54 = vrot.slane %v7873_v14, %v7817_v17  ;;  %v930_v62 = vsel %vm636_vm9, %v8061_v12, 0.0 }
  0x65   : > { %vm2894_vm8 = vcmp.eq.s32.totalorder %v7823_v19, %v8055_v7  ;;  %v1512_v63 = vsel %vm1218_vm6, %v8066_v15, 0.0  ;;  %v2350_v13 = vsel %vm2056_vm7, %v8071_v16, 0.0  ;;  %v3933_v39 = vrot.slane %v7879_v22, %v7826_v20 }
  0x66   : > { %v6087_v50 = vadd.f32 %v5831_v8, %v5249_v26  ;;  %v1768_v3 = vadd.f32 %v1512_v63, %v930_v62  ;;  %v8087_v40 = vrot.slane %v3095_v41, %v7826_v20  ;;  %v8090_v5 = vrot.slane %v3643_v54, %v7817_v17 }
  0x67   : > { %v8093_v30 = vrot.slane %v3933_v39, %v7826_v20  ;;  %v4481_v14 = vrot.slane %v7881_v23, %v7817_v17  ;;  %v4771_v11 = vrot.slane %v7887_v31, %v7826_v20  ;;  %v5319_v22 = vrot.slane %v7889_v32, %v7817_v17 }
  0x68   : > { %v6925_v8 = vadd.f32 %v6669_v9, %v6087_v50  ;;  %v2606_v38 = vadd.f32 %v2350_v13, %v1768_v3  ;;  %v3188_v26 = vsel %vm2894_vm8, %v8087_v40, 0.0  ;;  %vm3732_vm10 = vcmp.eq.s32.totalorder %v7823_v19, %v8090_v5 }
  0x69   : > { %v4026_v41 = vsel %vm3732_vm10, %v8093_v30, 0.0  ;;  %v8109_v23 = vrot.slane %v4481_v14, %v7817_v17  ;;  %v8112_v31 = vrot.slane %v4771_v11, %v7826_v20  ;;  %v8115_v32 = vrot.slane %v5319_v22, %v7817_v17 }
  0x6a   : > { %7073 = vmatprep.subr.mxu1 %v6925_v8  ;;  %v3444_v9 = vadd.f32 %v3188_v26, %v2606_v38  ;;  %v5609_v54 = vrot.slane %v7905_v42, %v7826_v20  ;;  %v6157_v62 = vrot.slane %v7891_v35, %v7817_v17  ;;  %v6447_v63 = vrot.slane %v7907_v43, %v7826_v20 }
  0x6b   : > { %vm4570_vm11 = vcmp.eq.s32.totalorder %v7823_v19, %v8109_v23  ;;  %vm5408_vm12 = vcmp.eq.s32.totalorder %v7823_v19, %v8115_v32  ;;  %vm764_vm13 = vcmp.eq.s32.totalorder %v7833_v24, %v8058_v53  ;;  %vm1346_vm14 = vcmp.eq.s32.totalorder %v7833_v24, %v8039_v51 }
  0x6c   : > { %v4282_v13 = vadd.f32 %v4026_v41, %v3444_v9  ;;  %v4864_v42 = vsel %vm4570_vm11, %v8112_v31, 0.0  ;;  %v8133_v35 = vrot.slane %v5609_v54, %v7826_v20  ;;  %v8136_v43 = vrot.slane %v6157_v62, %v7817_v17 }
  0x6d   : > { %v8139_v39 = vrot.slane %v6447_v63, %v7826_v20  ;;  %v1058_v50 = vsel %vm764_vm13, %v8061_v12, 0.0  ;;  %v1640_v3 = vsel %vm1346_vm14, %v8066_v15, 0.0  ;;  %vm2184_vm15 = vcmp.eq.s32.totalorder %v7833_v24, %v8047_v49 }
  0x6e   : > { %v5120_v14 = vadd.f32 %v4864_v42, %v4282_v13  ;;  %v5702_v11 = vsel %vm5408_vm12, %v8133_v35, 0.0  ;;  %vm6246_vm0 = vcmp.eq.s32.totalorder %v7823_v19, %v8136_v43  ;;  %v1896_v22 = vadd.f32 %v1640_v3, %v1058_v50 }
  0x6f   : > { %v6540_v8 = vsel %vm6246_vm0, %v8139_v39, 0.0  ;;  %v2478_v38 = vsel %vm2184_vm15, %v8071_v16, 0.0  ;;  %vm3022_vm1 = vcmp.eq.s32.totalorder %v7833_v24, %v8055_v7  ;;  %vm3860_vm2 = vcmp.eq.s32.totalorder %v7833_v24, %v8090_v5 }
  0x70   : > { %v5958_v26 = vadd.f32 %v5702_v11, %v5120_v14  ;;  %v2734_v41 = vadd.f32 %v2478_v38, %v1896_v22  ;;  %v3316_v9 = vsel %vm3022_vm1, %v8087_v40, 0.0  ;;  %v4154_v54 = vsel %vm3860_vm2, %v8093_v30, 0.0 }
  0x71   : > { %vm4698_vm3 = vcmp.eq.s32.totalorder %v7833_v24, %v8109_v23  ;;  %vm5536_vm4 = vcmp.eq.s32.totalorder %v7833_v24, %v8115_v32  ;;  %vm6374_vm5 = vcmp.eq.s32.totalorder %v7833_v24, %v8136_v43  ;;  %vm633_vm6 = vcmp.eq.s32.totalorder %v7836_v25, %v7910_v45 }
  0x72   : > { %v6796_v62 = vadd.f32 %v6540_v8, %v5958_v26  ;;  %v3572_v63 = vadd.f32 %v3316_v9, %v2734_v41  ;;  %v4992_v13 = vsel %vm4698_vm3, %v8112_v31, 0.0  ;;  %v5830_v42 = vsel %vm5536_vm4, %v8133_v35, 0.0 }
  0x73   : > { %v6668_v50 = vsel %vm6374_vm5, %v8139_v39, 0.0  ;;  %v927_v3 = vsel %vm633_vm6, %v7913_v46, 0.0  ;;  %vm1215_vm7 = vcmp.eq.s32.totalorder %v7836_v25, %v7916_v47  ;;  %vm2053_vm8 = vcmp.eq.s32.totalorder %v7836_v25, %v7937_v57 }
  0x74   : > { %7003 = vmatpush1.msra.mxu0 %v6796_v62  ;;  %v4410_v14 = vadd.f32 %v4154_v54, %v3572_v63  ;;  %v1509_v11 = vsel %vm1215_vm7, %v7919_v48, 0.0  ;;  %v2347_v22 = vsel %vm2053_vm8, %v7940_v58, 0.0  ;;  %vm2891_vm9 = vcmp.eq.s32.totalorder %v7836_v25, %v7944_v60 }
  0x75   : > { %v1765_v8 = vadd.f32 %v1509_v11, %v927_v3  ;;  %v3185_v38 = vsel %vm2891_vm9, %v7947_v61, 0.0  ;;  %vm3729_vm10 = vcmp.eq.s32.totalorder %v7836_v25, %v7961_v4  ;;  %vm4567_vm11 = vcmp.eq.s32.totalorder %v7836_v25, %v7970_v36 }
  0x76   : > { %v5248_v26 = vadd.f32 %v4992_v13, %v4410_v14  ;;  %v4023_v41 = vsel %vm3729_vm10, %v7967_v33, 0.0  ;;  %v4861_v9 = vsel %vm4567_vm11, %v7975_v37, 0.0  ;;  %vm5405_vm12 = vcmp.eq.s32.totalorder %v7836_v25, %v7988_v55 }
  0x77   : > { %v2603_v54 = vadd.f32 %v2347_v22, %v1765_v8  ;;  %v5699_v62 = vsel %vm5405_vm12, %v7991_v59, 0.0  ;;  %vm6243_vm13 = vcmp.eq.s32.totalorder %v7836_v25, %v7996_v1  ;;  %vm761_vm14 = vcmp.eq.s32.totalorder %v7839_v27, %v7910_v45 }
  0x78   : > { %v6086_v63 = vadd.f32 %v5830_v42, %v5248_v26  ;;  %v6537_v3 = vsel %vm6243_vm13, %v8005_v2, 0.0  ;;  %v1055_v13 = vsel %vm761_vm14, %v7913_v46, 0.0  ;;  %vm1343_vm15 = vcmp.eq.s32.totalorder %v7839_v27, %v7916_v47 }
  0x79   : > { %v3441_v14 = vadd.f32 %v3185_v38, %v2603_v54  ;;  %v1637_v11 = vsel %vm1343_vm15, %v7919_v48, 0.0  ;;  %vm2181_vm0 = vcmp.eq.s32.totalorder %v7839_v27, %v7937_v57  ;;  %vm3019_vm1 = vcmp.eq.s32.totalorder %v7839_v27, %v7944_v60 }
  0x7a   : > { %v6924_v22 = vadd.f32 %v6668_v50, %v6086_v63  ;;  %v1893_v8 = vadd.f32 %v1637_v11, %v1055_v13  ;;  %v2475_v42 = vsel %vm2181_vm0, %v7940_v58, 0.0  ;;  %v3313_v26 = vsel %vm3019_vm1, %v7947_v61, 0.0 }
  0x7b   : > { %v4279_v24 = vadd.f32 %v4023_v41, %v3441_v14  ;;  %vm3857_vm2 = vcmp.eq.s32.totalorder %v7839_v27, %v7961_v4  ;;  %vm4695_vm3 = vcmp.eq.s32.totalorder %v7839_v27, %v7970_v36  ;;  %vm5533_vm4 = vcmp.eq.s32.totalorder %v7839_v27, %v7988_v55 }
  0x7c   : > { %7074 = vmatpush1.msra.mxu1 %v6924_v22  ;;  %v2731_v38 = vadd.f32 %v2475_v42, %v1893_v8  ;;  %v4151_v54 = vsel %vm3857_vm2, %v7967_v33, 0.0  ;;  %v4989_v50 = vsel %vm4695_vm3, %v7975_v37, 0.0  ;;  %v5827_v63 = vsel %vm5533_vm4, %v7991_v59, 0.0 }
  0x7d   : > { %v5117_v13 = vadd.f32 %v4861_v9, %v4279_v24  ;;  %vm6371_vm5 = vcmp.eq.s32.totalorder %v7839_v27, %v7996_v1  ;;  %vm632_vm6 = vcmp.eq.s32.totalorder %v7836_v25, %v8058_v53  ;;  %vm1214_vm7 = vcmp.eq.s32.totalorder %v7836_v25, %v8039_v51 }
  0x7e   : > { %v3569_v41 = vadd.f32 %v3313_v26, %v2731_v38  ;;  %v6665_v14 = vsel %vm6371_vm5, %v8005_v2, 0.0  ;;  %v926_v11 = vsel %vm632_vm6, %v8061_v12, 0.0  ;;  %v1508_v22 = vsel %vm1214_vm7, %v8066_v15, 0.0 }
  0x7f   : > { %v5955_v8 = vadd.f32 %v5699_v62, %v5117_v13  ;;  %v1764_v42 = vadd.f32 %v1508_v22, %v926_v11  ;;  %vm2052_vm8 = vcmp.eq.s32.totalorder %v7836_v25, %v8047_v49  ;;  %vm2890_vm9 = vcmp.eq.s32.totalorder %v7836_v25, %v8055_v7 }
  0x80   : > { %v4407_v24 = vadd.f32 %v4151_v54, %v3569_v41  ;;  %v2346_v9 = vsel %vm2052_vm8, %v8071_v16, 0.0  ;;  %v3184_v19 = vsel %vm2890_vm9, %v8087_v40, 0.0  ;;  %vm3728_vm10 = vcmp.eq.s32.totalorder %v7836_v25, %v8090_v5 }
  0x81   : > { %v6793_v26 = vadd.f32 %v6537_v3, %v5955_v8  ;;  %v2602_v38 = vadd.f32 %v2346_v9, %v1764_v42  ;;  %v4022_v20 = vsel %vm3728_vm10, %v8093_v30, 0.0  ;;  %vm4566_vm11 = vcmp.eq.s32.totalorder %v7836_v25, %v8109_v23 }
  0x82   : > { %v5245_v62 = vadd.f32 %v4989_v50, %v4407_v24  ;;  %v4860_v13 = vsel %vm4566_vm11, %v8112_v31, 0.0  ;;  %vm5404_vm12 = vcmp.eq.s32.totalorder %v7836_v25, %v8115_v32  ;;  %vm6242_vm13 = vcmp.eq.s32.totalorder %v7836_v25, %v8136_v43 }
  0x83   : > { %7004 = vmatprep.subr.mxu0 %v6793_v26  ;;  %v3440_v54 = vadd.f32 %v3184_v19, %v2602_v38  ;;  %v5698_v41 = vsel %vm5404_vm12, %v8133_v35, 0.0  ;;  %v6536_v3 = vsel %vm6242_vm13, %v8139_v39, 0.0  ;;  %vm760_vm14 = vcmp.eq.s32.totalorder %v7839_v27, %v8058_v53 }
  0x84   : > { %v6083_v11 = vadd.f32 %v5827_v63, %v5245_v62  ;;  %v1054_v50 = vsel %vm760_vm14, %v8061_v12, 0.0  ;;  %vm1342_vm15 = vcmp.eq.s32.totalorder %v7839_v27, %v8039_v51  ;;  %vm2180_vm0 = vcmp.eq.s32.totalorder %v7839_v27, %v8047_v49 }
  0x85   : > { %v4278_v22 = vadd.f32 %v4022_v20, %v3440_v54  ;;  %v1636_v8 = vsel %vm1342_vm15, %v8066_v15, 0.0  ;;  %v2474_v19 = vsel %vm2180_vm0, %v8071_v16, 0.0  ;;  %vm3018_vm1 = vcmp.eq.s32.totalorder %v7839_v27, %v8055_v7 }
  0x86   : > { %v6921_v42 = vadd.f32 %v6665_v14, %v6083_v11  ;;  %v1892_v24 = vadd.f32 %v1636_v8, %v1054_v50  ;;  %v3312_v63 = vsel %vm3018_vm1, %v8087_v40, 0.0  ;;  %vm3856_vm2 = vcmp.eq.s32.totalorder %v7839_v27, %v8090_v5 }
  0x87   : > { %v5116_v9 = vadd.f32 %v4860_v13, %v4278_v22  ;;  %v4150_v26 = vsel %vm3856_vm2, %v8093_v30, 0.0  ;;  %vm4694_vm3 = vcmp.eq.s32.totalorder %v7839_v27, %v8109_v23  ;;  %vm5532_vm4 = vcmp.eq.s32.totalorder %v7839_v27, %v8115_v32 }
  0x88   : > { %7075 = vmatprep.subr.mxu1 %v6921_v42  ;;  %v2730_v20 = vadd.f32 %v2474_v19, %v1892_v24  ;;  %v4988_v38 = vsel %vm4694_vm3, %v8112_v31, 0.0  ;;  %v5826_v14 = vsel %vm5532_vm4, %v8133_v35, 0.0  ;;  %vm6370_vm5 = vcmp.eq.s32.totalorder %v7839_v27, %v8136_v43 }
  0x89   : > { %v5954_v62 = vadd.f32 %v5698_v41, %v5116_v9  ;;  %v6664_v13 = vsel %vm6370_vm5, %v8139_v39, 0.0  ;;  %vm629_vm6 = vcmp.eq.s32.totalorder %v7842_v28, %v7910_v45  ;;  %vm1211_vm7 = vcmp.eq.s32.totalorder %v7842_v28, %v7916_v47 }
  0x8a   : > { %v3568_v54 = vadd.f32 %v3312_v63, %v2730_v20  ;;  %v923_v11 = vsel %vm629_vm6, %v7913_v46, 0.0  ;;  %v1505_v50 = vsel %vm1211_vm7, %v7919_v48, 0.0  ;;  %vm2049_vm8 = vcmp.eq.s32.totalorder %v7842_v28, %v7937_v57 }
  0x8b   : > { %v6792_v22 = vadd.f32 %v6536_v3, %v5954_v62  ;;  %v1761_v8 = vadd.f32 %v1505_v50, %v923_v11  ;;  %v2343_v41 = vsel %vm2049_vm8, %v7940_v58, 0.0  ;;  %vm2887_vm9 = vcmp.eq.s32.totalorder %v7842_v28, %v7944_v60 }
  0x8c   : > { %v4406_v19 = vadd.f32 %v4150_v26, %v3568_v54  ;;  %v3181_v42 = vsel %vm2887_vm9, %v7947_v61, 0.0  ;;  %vm3725_vm10 = vcmp.eq.s32.totalorder %v7842_v28, %v7961_v4  ;;  %vm4563_vm11 = vcmp.eq.s32.totalorder %v7842_v28, %v7970_v36 }
  0x8d   : > { %7005 = vmatpush1.msra.mxu0 %v6792_v22  ;;  %v2599_v24 = vadd.f32 %v2343_v41, %v1761_v8  ;;  %v4019_v63 = vsel %vm3725_vm10, %v7967_v33, 0.0  ;;  %v4857_v3 = vsel %vm4563_vm11, %v7975_v37, 0.0  ;;  %vm5401_vm12 = vcmp.eq.s32.totalorder %v7842_v28, %v7988_v55 }
  0x8e   : > { %v5244_v9 = vadd.f32 %v4988_v38, %v4406_v19  ;;  %v5695_v26 = vsel %vm5401_vm12, %v7991_v59, 0.0  ;;  %vm6239_vm13 = vcmp.eq.s32.totalorder %v7842_v28, %v7996_v1  ;;  %vm757_vm14 = vcmp.eq.s32.totalorder %v7845_v29, %v7910_v45 }
  0x8f   : > { %v3437_v20 = vadd.f32 %v3181_v42, %v2599_v24  ;;  %v6533_v62 = vsel %vm6239_vm13, %v8005_v2, 0.0  ;;  %v1051_v54 = vsel %vm757_vm14, %v7913_v46, 0.0  ;;  %vm1339_vm15 = vcmp.eq.s32.totalorder %v7845_v29, %v7916_v47 }
  0x90   : > { %v6082_v11 = vadd.f32 %v5826_v14, %v5244_v9  ;;  %v1633_v50 = vsel %vm1339_vm15, %v7919_v48, 0.0  ;;  %vm2177_vm0 = vcmp.eq.s32.totalorder %v7845_v29, %v7937_v57  ;;  %vm3015_vm1 = vcmp.eq.s32.totalorder %v7845_v29, %v7944_v60 }
  0x91   : > { %v4275_v38 = vadd.f32 %v4019_v63, %v3437_v20  ;;  %v1889_v22 = vadd.f32 %v1633_v50, %v1051_v54  ;;  %v2471_v8 = vsel %vm2177_vm0, %v7940_v58, 0.0  ;;  %v3309_v41 = vsel %vm3015_vm1, %v7947_v61, 0.0 }
  0x92   : > { %v6920_v19 = vadd.f32 %v6664_v13, %v6082_v11  ;;  %vm3853_vm2 = vcmp.eq.s32.totalorder %v7845_v29, %v7961_v4  ;;  %vm4691_vm3 = vcmp.eq.s32.totalorder %v7845_v29, %v7970_v36  ;;  %vm5529_vm4 = vcmp.eq.s32.totalorder %v7845_v29, %v7988_v55 }
  0x93   : > { %v5113_v14 = vadd.f32 %v4857_v3, %v4275_v38  ;;  %v2727_v42 = vadd.f32 %v2471_v8, %v1889_v22  ;;  %v4147_v24 = vsel %vm3853_vm2, %v7967_v33, 0.0  ;;  %v4985_v63 = vsel %vm4691_vm3, %v7975_v37, 0.0 }
  0x94   : > { %7076 = vmatpush1.msra.mxu1 %v6920_v19  ;;  %v5823_v9 = vsel %vm5529_vm4, %v7991_v59, 0.0  ;;  %vm6367_vm5 = vcmp.eq.s32.totalorder %v7845_v29, %v7996_v1  ;;  %vm628_vm6 = vcmp.eq.s32.totalorder %v7842_v28, %v8058_v53  ;;  %vm1210_vm7 = vcmp.eq.s32.totalorder %v7842_v28, %v8039_v51 }
  0x95   : > { %v5951_v13 = vadd.f32 %v5695_v26, %v5113_v14  ;;  %v3565_v20 = vadd.f32 %v3309_v41, %v2727_v42  ;;  %v6661_v3 = vsel %vm6367_vm5, %v8005_v2, 0.0  ;;  %v922_v54 = vsel %vm628_vm6, %v8061_v12, 0.0 }
  0x96   : > { %v1504_v11 = vsel %vm1210_vm7, %v8066_v15, 0.0  ;;  %vm2048_vm8 = vcmp.eq.s32.totalorder %v7842_v28, %v8047_v49  ;;  %vm2886_vm9 = vcmp.eq.s32.totalorder %v7842_v28, %v8055_v7  ;;  %vm3724_vm10 = vcmp.eq.s32.totalorder %v7842_v28, %v8090_v5 }
  0x97   : > { %v6789_v50 = vadd.f32 %v6533_v62, %v5951_v13  ;;  %v4403_v38 = vadd.f32 %v4147_v24, %v3565_v20  ;;  %v1760_v22 = vadd.f32 %v1504_v11, %v922_v54  ;;  %v2342_v26 = vsel %vm2048_vm8, %v8071_v16, 0.0 }
  0x98   : > { %v3180_v8 = vsel %vm2886_vm9, %v8087_v40, 0.0  ;;  %v4018_v41 = vsel %vm3724_vm10, %v8093_v30, 0.0  ;;  %vm4562_vm11 = vcmp.eq.s32.totalorder %v7842_v28, %v8109_v23  ;;  %vm5400_vm12 = vcmp.eq.s32.totalorder %v7842_v28, %v8115_v32 }
  0x99   : > { %7006 = vmatprep.subr.mxu0 %v6789_v50  ;;  %v5241_v19 = vadd.f32 %v4985_v63, %v4403_v38  ;;  %v2598_v14 = vadd.f32 %v2342_v26, %v1760_v22  ;;  %v4856_v42 = vsel %vm4562_vm11, %v8112_v31, 0.0  ;;  %v5694_v62 = vsel %vm5400_vm12, %v8133_v35, 0.0 }
  0x9a   : > { %vm6238_vm13 = vcmp.eq.s32.totalorder %v7842_v28, %v8136_v43  ;;  %vm756_vm14 = vcmp.eq.s32.totalorder %v7845_v29, %v8058_v53  ;;  %vm1338_vm15 = vcmp.eq.s32.totalorder %v7845_v29, %v8039_v51  ;;  %vm2176_vm0 = vcmp.eq.s32.totalorder %v7845_v29, %v8047_v49 }
  0x9b   : > { %v6079_v24 = vadd.f32 %v5823_v9, %v5241_v19  ;;  %v3436_v13 = vadd.f32 %v3180_v8, %v2598_v14  ;;  %v6532_v63 = vsel %vm6238_vm13, %v8139_v39, 0.0  ;;  %v1050_v20 = vsel %vm756_vm14, %v8061_v12, 0.0 }
  0x9c   : > { %v1632_v54 = vsel %vm1338_vm15, %v8066_v15, 0.0  ;;  %v2470_v11 = vsel %vm2176_vm0, %v8071_v16, 0.0  ;;  %vm3014_vm1 = vcmp.eq.s32.totalorder %v7845_v29, %v8055_v7  ;;  %vm3852_vm2 = vcmp.eq.s32.totalorder %v7845_v29, %v8090_v5 }
  0x9d   : > { %v6917_v50 = vadd.f32 %v6661_v3, %v6079_v24  ;;  %v4274_v38 = vadd.f32 %v4018_v41, %v3436_v13  ;;  %v1888_v22 = vadd.f32 %v1632_v54, %v1050_v20  ;;  %v3308_v9 = vsel %vm3014_vm1, %v8087_v40, 0.0 }
  0x9e   : > { %v4146_v26 = vsel %vm3852_vm2, %v8093_v30, 0.0  ;;  %vm4690_vm3 = vcmp.eq.s32.totalorder %v7845_v29, %v8109_v23  ;;  %vm5528_vm4 = vcmp.eq.s32.totalorder %v7845_v29, %v8115_v32  ;;  %vm6366_vm5 = vcmp.eq.s32.totalorder %v7845_v29, %v8136_v43 }
  0x9f   : > { %7077 = vmatprep.subr.mxu1 %v6917_v50  ;;  %v5112_v8 = vadd.f32 %v4856_v42, %v4274_v38  ;;  %v2726_v19 = vadd.f32 %v2470_v11, %v1888_v22  ;;  %v4984_v3 = vsel %vm4690_vm3, %v8112_v31, 0.0  ;;  %v5822_v41 = vsel %vm5528_vm4, %v8133_v35, 0.0 }
  0xa0   : > { %v6660_v14 = vsel %vm6366_vm5, %v8139_v39, 0.0  ;;  %vm625_vm6 = vcmp.eq.s32.totalorder %v7849_v34, %v7910_v45  ;;  %vm1207_vm7 = vcmp.eq.s32.totalorder %v7849_v34, %v7916_v47  ;;  %vm2045_vm8 = vcmp.eq.s32.totalorder %v7849_v34, %v7937_v57 }
  0xa1   : > { %v5950_v24 = vadd.f32 %v5694_v62, %v5112_v8  ;;  %v3564_v13 = vadd.f32 %v3308_v9, %v2726_v19  ;;  %v919_v42 = vsel %vm625_vm6, %v7913_v46, 0.0  ;;  %v1501_v20 = vsel %vm1207_vm7, %v7919_v48, 0.0 }
  0xa2   : > { %v1757_v54 = vadd.f32 %v1501_v20, %v919_v42  ;;  %v2339_v11 = vsel %vm2045_vm8, %v7940_v58, 0.0  ;;  %vm2883_vm9 = vcmp.eq.s32.totalorder %v7849_v34, %v7944_v60  ;;  %vm3721_vm10 = vcmp.eq.s32.totalorder %v7849_v34, %v7961_v4 }
  0xa3   : > { %v6788_v50 = vadd.f32 %v6532_v63, %v5950_v24  ;;  %v4402_v38 = vadd.f32 %v4146_v26, %v3564_v13  ;;  %v3177_v22 = vsel %vm2883_vm9, %v7947_v61, 0.0  ;;  %v4015_v62 = vsel %vm3721_vm10, %v7967_v33, 0.0 }
  0xa4   : > { %v2595_v9 = vadd.f32 %v2339_v11, %v1757_v54  ;;  %vm4559_vm11 = vcmp.eq.s32.totalorder %v7849_v34, %v7970_v36  ;;  %vm5397_vm12 = vcmp.eq.s32.totalorder %v7849_v34, %v7988_v55  ;;  %vm6235_vm13 = vcmp.eq.s32.totalorder %v7849_v34, %v7996_v1 }
  0xa5   : > { %7007 = vmatpush1.msra.mxu0 %v6788_v50  ;;  %v5240_v8 = vadd.f32 %v4984_v3, %v4402_v38  ;;  %v4853_v19 = vsel %vm4559_vm11, %v7975_v37, 0.0  ;;  %v5691_v63 = vsel %vm5397_vm12, %v7991_v59, 0.0  ;;  %v6529_v26 = vsel %vm6235_vm13, %v8005_v2, 0.0 }
  0xa6   : > { %v3433_v24 = vadd.f32 %v3177_v22, %v2595_v9  ;;  %vm753_vm14 = vcmp.eq.s32.totalorder %v7854_v44, %v7910_v45  ;;  %vm1335_vm15 = vcmp.eq.s32.totalorder %v7854_v44, %v7916_v47  ;;  %vm2173_vm0 = vcmp.eq.s32.totalorder %v7854_v44, %v7937_v57 }
  0xa7   : > { %v6078_v13 = vadd.f32 %v5822_v41, %v5240_v8  ;;  %v1047_v42 = vsel %vm753_vm14, %v7913_v46, 0.0  ;;  %v1629_v3 = vsel %vm1335_vm15, %v7919_v48, 0.0  ;;  %v2467_v20 = vsel %vm2173_vm0, %v7940_v58, 0.0 }
  0xa8   : > { %v4271_v54 = vadd.f32 %v4015_v62, %v3433_v24  ;;  %v1885_v11 = vadd.f32 %v1629_v3, %v1047_v42  ;;  %vm3011_vm1 = vcmp.eq.s32.totalorder %v7854_v44, %v7944_v60  ;;  %vm3849_vm2 = vcmp.eq.s32.totalorder %v7854_v44, %v7961_v4 }
  0xa9   : > { %v6916_v50 = vadd.f32 %v6660_v14, %v6078_v13  ;;  %v3305_v38 = vsel %vm3011_vm1, %v7947_v61, 0.0  ;;  %v4143_v22 = vsel %vm3849_vm2, %v7967_v33, 0.0  ;;  %vm4687_vm3 = vcmp.eq.s32.totalorder %v7854_v44, %v7970_v36 }
  0xaa   : > { %v5109_v41 = vadd.f32 %v4853_v19, %v4271_v54  ;;  %v2723_v9 = vadd.f32 %v2467_v20, %v1885_v11  ;;  %v4981_v8 = vsel %vm4687_vm3, %v7975_v37, 0.0  ;;  %vm5525_vm4 = vcmp.eq.s32.totalorder %v7854_v44, %v7988_v55 }
  0xab   : > { %7078 = vmatpush1.msra.mxu1 %v6916_v50  ;;  %v5819_v62 = vsel %vm5525_vm4, %v7991_v59, 0.0  ;;  %vm6363_vm5 = vcmp.eq.s32.totalorder %v7854_v44, %v7996_v1  ;;  %vm624_vm6 = vcmp.eq.s32.totalorder %v7849_v34, %v8058_v53  ;;  %vm1206_vm7 = vcmp.eq.s32.totalorder %v7849_v34, %v8039_v51 }
  0xac   : > { %v5947_v14 = vadd.f32 %v5691_v63, %v5109_v41  ;;  %v3561_v19 = vadd.f32 %v3305_v38, %v2723_v9  ;;  %v6657_v24 = vsel %vm6363_vm5, %v8005_v2, 0.0  ;;  %v918_v13 = vsel %vm624_vm6, %v8061_v12, 0.0 }
  0xad   : > { %v1500_v42 = vsel %vm1206_vm7, %v8066_v15, 0.0  ;;  %vm2044_vm8 = vcmp.eq.s32.totalorder %v7849_v34, %v8047_v49  ;;  %vm2882_vm9 = vcmp.eq.s32.totalorder %v7849_v34, %v8055_v7  ;;  %vm3720_vm10 = vcmp.eq.s32.totalorder %v7849_v34, %v8090_v5 }
  0xae   : > { %v6785_v3 = vadd.f32 %v6529_v26, %v5947_v14  ;;  %v4399_v20 = vadd.f32 %v4143_v22, %v3561_v19  ;;  %v1756_v54 = vadd.f32 %v1500_v42, %v918_v13  ;;  %v2338_v63 = vsel %vm2044_vm8, %v8071_v16, 0.0 }
  0xaf   : > { %v3176_v11 = vsel %vm2882_vm9, %v8087_v40, 0.0  ;;  %v4014_v50 = vsel %vm3720_vm10, %v8093_v30, 0.0  ;;  %vm4558_vm11 = vcmp.eq.s32.totalorder %v7849_v34, %v8109_v23  ;;  %vm5396_vm12 = vcmp.eq.s32.totalorder %v7849_v34, %v8115_v32 }
  0xb0   : > { %7008 = vmatprep.subr.mxu0 %v6785_v3  ;;  %v5237_v38 = vadd.f32 %v4981_v8, %v4399_v20  ;;  %v2594_v41 = vadd.f32 %v2338_v63, %v1756_v54  ;;  %v4852_v9 = vsel %vm4558_vm11, %v8112_v31, 0.0  ;;  %v5690_v26 = vsel %vm5396_vm12, %v8133_v35, 0.0 }
  0xb1   : > { %vm6234_vm13 = vcmp.eq.s32.totalorder %v7849_v34, %v8136_v43  ;;  %vm752_vm14 = vcmp.eq.s32.totalorder %v7854_v44, %v8058_v53  ;;  %vm1334_vm15 = vcmp.eq.s32.totalorder %v7854_v44, %v8039_v51  ;;  %vm2172_vm0 = vcmp.eq.s32.totalorder %v7854_v44, %v8047_v49 }
  0xb2   : > { %v6075_v22 = vadd.f32 %v5819_v62, %v5237_v38  ;;  %v3432_v14 = vadd.f32 %v3176_v11, %v2594_v41  ;;  %v6528_v8 = vsel %vm6234_vm13, %v8139_v39, 0.0  ;;  %v1046_v19 = vsel %vm752_vm14, %v8061_v12, 0.0 }
  0xb3   : > { %v1628_v13 = vsel %vm1334_vm15, %v8066_v15, 0.0  ;;  %v2466_v42 = vsel %vm2172_vm0, %v8071_v16, 0.0  ;;  %vm3010_vm1 = vcmp.eq.s32.totalorder %v7854_v44, %v8055_v7  ;;  %vm3848_vm2 = vcmp.eq.s32.totalorder %v7854_v44, %v8090_v5 }
  0xb4   : > { %v6913_v3 = vadd.f32 %v6657_v24, %v6075_v22  ;;  %v4270_v20 = vadd.f32 %v4014_v50, %v3432_v14  ;;  %v1884_v54 = vadd.f32 %v1628_v13, %v1046_v19  ;;  %v3304_v62 = vsel %vm3010_vm1, %v8087_v40, 0.0 }
  0xb5   : > { %v4142_v63 = vsel %vm3848_vm2, %v8093_v30, 0.0  ;;  %vm4686_vm3 = vcmp.eq.s32.totalorder %v7854_v44, %v8109_v23  ;;  %vm5524_vm4 = vcmp.eq.s32.totalorder %v7854_v44, %v8115_v32  ;;  %vm6362_vm5 = vcmp.eq.s32.totalorder %v7854_v44, %v8136_v43 }
  0xb6   : > { %7079 = vmatprep.subr.mxu1 %v6913_v3  ;;  %v5108_v11 = vadd.f32 %v4852_v9, %v4270_v20  ;;  %v2722_v38 = vadd.f32 %v2466_v42, %v1884_v54  ;;  %v4980_v24 = vsel %vm4686_vm3, %v8112_v31, 0.0  ;;  %v5818_v50 = vsel %vm5524_vm4, %v8133_v35, 0.0 }
  0xb7   : > { %v6656_v41 = vsel %vm6362_vm5, %v8139_v39, 0.0  ;;  %vm621_vm6 = vcmp.eq.s32.totalorder %v7857_v52, %v7910_v45  ;;  %vm1203_vm7 = vcmp.eq.s32.totalorder %v7857_v52, %v7916_v47  ;;  %vm2041_vm8 = vcmp.eq.s32.totalorder %v7857_v52, %v7937_v57 }
  0xb8   : > { %v5946_v22 = vadd.f32 %v5690_v26, %v5108_v11  ;;  %v3560_v14 = vadd.f32 %v3304_v62, %v2722_v38  ;;  %v915_v9 = vsel %vm621_vm6, %v7913_v46, 0.0  ;;  %v1497_v19 = vsel %vm1203_vm7, %v7919_v48, 0.0 }
  0xb9   : > { %v1753_v13 = vadd.f32 %v1497_v19, %v915_v9  ;;  %v2335_v42 = vsel %vm2041_vm8, %v7940_v58, 0.0  ;;  %vm2879_vm9 = vcmp.eq.s32.totalorder %v7857_v52, %v7944_v60  ;;  %vm3717_vm10 = vcmp.eq.s32.totalorder %v7857_v52, %v7961_v4 }
  0xba   : > { %v6784_v3 = vadd.f32 %v6528_v8, %v5946_v22  ;;  %v4398_v20 = vadd.f32 %v4142_v63, %v3560_v14  ;;  %v3173_v54 = vsel %vm2879_vm9, %v7947_v61, 0.0  ;;  %v4011_v26 = vsel %vm3717_vm10, %v7967_v33, 0.0 }
  0xbb   : > { %v2591_v62 = vadd.f32 %v2335_v42, %v1753_v13  ;;  %vm4555_vm11 = vcmp.eq.s32.totalorder %v7857_v52, %v7970_v36  ;;  %vm5393_vm12 = vcmp.eq.s32.totalorder %v7857_v52, %v7988_v55  ;;  %vm6231_vm13 = vcmp.eq.s32.totalorder %v7857_v52, %v7996_v1 }
  0xbc   : > { %7009 = vmatpush1.msra.mxu0 %v6784_v3  ;;  %v5236_v11 = vadd.f32 %v4980_v24, %v4398_v20  ;;  %v4849_v38 = vsel %vm4555_vm11, %v7975_v37, 0.0  ;;  %v5687_v8 = vsel %vm5393_vm12, %v7991_v59, 0.0  ;;  %v6525_v63 = vsel %vm6231_vm13, %v8005_v2, 0.0 }
  0xbd   : > { %v3429_v22 = vadd.f32 %v3173_v54, %v2591_v62  ;;  %vm749_vm14 = vcmp.eq.s32.totalorder %v7860_v56, %v7910_v45  ;;  %vm1331_vm15 = vcmp.eq.s32.totalorder %v7860_v56, %v7916_v47  ;;  %vm2169_vm0 = vcmp.eq.s32.totalorder %v7860_v56, %v7937_v57 }
  0xbe   : > { %v6074_v14 = vadd.f32 %v5818_v50, %v5236_v11  ;;  %v1043_v9 = vsel %vm749_vm14, %v7913_v46, 0.0  ;;  %v1625_v24 = vsel %vm1331_vm15, %v7919_v48, 0.0  ;;  %v2463_v19 = vsel %vm2169_vm0, %v7940_v58, 0.0 }
  0xbf   : > { %v4267_v13 = vadd.f32 %v4011_v26, %v3429_v22  ;;  %v1881_v42 = vadd.f32 %v1625_v24, %v1043_v9  ;;  %vm3007_vm1 = vcmp.eq.s32.totalorder %v7860_v56, %v7944_v60  ;;  %vm3845_vm2 = vcmp.eq.s32.totalorder %v7860_v56, %v7961_v4 }
  0xc0   : > { %v6912_v3 = vadd.f32 %v6656_v41, %v6074_v14  ;;  %v3301_v20 = vsel %vm3007_vm1, %v7947_v61, 0.0  ;;  %v4139_v54 = vsel %vm3845_vm2, %v7967_v33, 0.0  ;;  %vm4683_vm3 = vcmp.eq.s32.totalorder %v7860_v56, %v7970_v36 }
  0xc1   : > { %v5105_v50 = vadd.f32 %v4849_v38, %v4267_v13  ;;  %v2719_v62 = vadd.f32 %v2463_v19, %v1881_v42  ;;  %v4977_v11 = vsel %vm4683_vm3, %v7975_v37, 0.0  ;;  %vm5521_vm4 = vcmp.eq.s32.totalorder %v7860_v56, %v7988_v55 }
  0xc2   : > { %7080 = vmatpush1.msra.mxu1 %v6912_v3  ;;  %v5815_v26 = vsel %vm5521_vm4, %v7991_v59, 0.0  ;;  %vm6359_vm5 = vcmp.eq.s32.totalorder %v7860_v56, %v7996_v1  ;;  %vm620_vm6 = vcmp.eq.s32.totalorder %v7857_v52, %v8058_v53  ;;  %vm1202_vm7 = vcmp.eq.s32.totalorder %v7857_v52, %v8039_v51 }
  0xc3   : > { %v5943_v41 = vadd.f32 %v5687_v8, %v5105_v50  ;;  %v3557_v38 = vadd.f32 %v3301_v20, %v2719_v62  ;;  %v6653_v22 = vsel %vm6359_vm5, %v8005_v2, 0.0  ;;  %v914_v14 = vsel %vm620_vm6, %v8061_v12, 0.0 }
  0xc4   : > { %v1496_v9 = vsel %vm1202_vm7, %v8066_v15, 0.0  ;;  %vm2040_vm8 = vcmp.eq.s32.totalorder %v7857_v52, %v8047_v49  ;;  %vm2878_vm9 = vcmp.eq.s32.totalorder %v7857_v52, %v8055_v7  ;;  %vm3716_vm10 = vcmp.eq.s32.totalorder %v7857_v52, %v8090_v5 }
  0xc5   : > { %v6781_v24 = vadd.f32 %v6525_v63, %v5943_v41  ;;  %v4395_v19 = vadd.f32 %v4139_v54, %v3557_v38  ;;  %v1752_v13 = vadd.f32 %v1496_v9, %v914_v14  ;;  %v2334_v8 = vsel %vm2040_vm8, %v8071_v16, 0.0 }
  0xc6   : > { %v3172_v42 = vsel %vm2878_vm9, %v8087_v40, 0.0  ;;  %v4010_v3 = vsel %vm3716_vm10, %v8093_v30, 0.0  ;;  %vm4554_vm11 = vcmp.eq.s32.totalorder %v7857_v52, %v8109_v23  ;;  %vm5392_vm12 = vcmp.eq.s32.totalorder %v7857_v52, %v8115_v32 }
  0xc7   : > { %7010 = vmatprep.subr.mxu0 %v6781_v24  ;;  %v5233_v20 = vadd.f32 %v4977_v11, %v4395_v19  ;;  %v2590_v50 = vadd.f32 %v2334_v8, %v1752_v13  ;;  %v4848_v62 = vsel %vm4554_vm11, %v8112_v31, 0.0  ;;  %v5686_v63 = vsel %vm5392_vm12, %v8133_v35, 0.0 }
  0xc8   : > { %vm6230_vm13 = vcmp.eq.s32.totalorder %v7857_v52, %v8136_v43  ;;  %vm748_vm14 = vcmp.eq.s32.totalorder %v7860_v56, %v8058_v53  ;;  %vm1330_vm15 = vcmp.eq.s32.totalorder %v7860_v56, %v8039_v51  ;;  %vm2168_vm0 = vcmp.eq.s32.totalorder %v7860_v56, %v8047_v49 }
  0xc9   : > { %v6071_v54 = vadd.f32 %v5815_v26, %v5233_v20  ;;  %v3428_v41 = vadd.f32 %v3172_v42, %v2590_v50  ;;  %v6524_v11 = vsel %vm6230_vm13, %v8139_v39, 0.0  ;;  %v1042_v38 = vsel %vm748_vm14, %v8061_v12, 0.0 }
  0xca   : > { %v1624_v14 = vsel %vm1330_vm15, %v8066_v15, 0.0  ;;  %v2462_v9 = vsel %vm2168_vm0, %v8071_v16, 0.0  ;;  %vm3006_vm1 = vcmp.eq.s32.totalorder %v7860_v56, %v8055_v7  ;;  %vm3844_vm2 = vcmp.eq.s32.totalorder %v7860_v56, %v8090_v5 }
  0xcb   : > { %v6909_v24 = vadd.f32 %v6653_v22, %v6071_v54  ;;  %v4266_v19 = vadd.f32 %v4010_v3, %v3428_v41  ;;  %v1880_v13 = vadd.f32 %v1624_v14, %v1042_v38  ;;  %v3300_v26 = vsel %vm3006_vm1, %v8087_v40, 0.0 }
  0xcc   : > { %v4138_v8 = vsel %vm3844_vm2, %v8093_v30, 0.0  ;;  %vm4682_vm3 = vcmp.eq.s32.totalorder %v7860_v56, %v8109_v23  ;;  %vm5520_vm4 = vcmp.eq.s32.totalorder %v7860_v56, %v8115_v32  ;;  %vm6358_vm5 = vcmp.eq.s32.totalorder %v7860_v56, %v8136_v43 }
  0xcd   : > { %7081 = vmatprep.subr.mxu1 %v6909_v24  ;;  %v5104_v42 = vadd.f32 %v4848_v62, %v4266_v19  ;;  %v2718_v20 = vadd.f32 %v2462_v9, %v1880_v13  ;;  %v4976_v22 = vsel %vm4682_vm3, %v8112_v31, 0.0  ;;  %v5814_v3 = vsel %vm5520_vm4, %v8133_v35, 0.0 }
  0xce   : > { %v6652_v50 = vsel %vm6358_vm5, %v8139_v39, 0.0  ;;  %v8551_v54 = vadd.s32 %v7809_v10, %v7863_v0  ;;  %v456_v41 = vadd.s32 336, %v7805_v6  ;;  %v8555_v38 = vadd.s32 72, %v7805_v6 }
  0xcf   : > { %v5942_v14 = vadd.f32 %v5686_v63, %v5104_v42  ;;  %v3556_v56 = vadd.f32 %v3300_v26, %v2718_v20  ;;  %v8558_v62 = vadd.s32 328, %v7805_v6  ;;  %v8561_v9 = vadd.s32 64, %v7805_v6 }
  0xd0   : > { %15473 = vst [vmem:[#allocation23_spill] sm:$0xff] %v8551_v54  ;;  %vm617_vm6 = vcmp.eq.s32.totalorder %v8551_v54, %v7910_v45  ;;  %vm1199_vm7 = vcmp.eq.s32.totalorder %v8551_v54, %v7916_v47  ;;  %vm2037_vm8 = vcmp.eq.s32.totalorder %v8551_v54, %v7937_v57  ;;  %vm2875_vm9 = vcmp.eq.s32.totalorder %v8551_v54, %v7944_v60 }
  0xd1   : > { %v6780_v0 = vadd.f32 %v6524_v11, %v5942_v14  ;;  %v4394_v63 = vadd.f32 %v4138_v8, %v3556_v56  ;;  %v911_v24 = vsel %vm617_vm6, %v7913_v46, 0.0  ;;  %v1493_v19 = vsel %vm1199_vm7, %v7919_v48, 0.0 }
  0xd2   : > { %v1749_v13 = vadd.f32 %v1493_v19, %v911_v24  ;;  %v2331_v26 = vsel %vm2037_vm8, %v7940_v58, 0.0  ;;  %v3169_v42 = vsel %vm2875_vm9, %v7947_v61, 0.0  ;;  %vm3713_vm10 = vcmp.eq.s32.totalorder %v8551_v54, %v7961_v4 }
  0xd3   : > { %7011 = vmatpush1.msra.mxu0 %v6780_v0  ;;  %v5232_v20 = vadd.f32 %v4976_v22, %v4394_v63  ;;  %v4007_v52 = vsel %vm3713_vm10, %v7967_v33, 0.0  ;;  %vm4551_vm11 = vcmp.eq.s32.totalorder %v8551_v54, %v7970_v36  ;;  %vm5389_vm12 = vcmp.eq.s32.totalorder %v8551_v54, %v7988_v55 }
  0xd4   : > { %v2587_v56 = vadd.f32 %v2331_v26, %v1749_v13  ;;  %v4845_v11 = vsel %vm4551_vm11, %v7975_v37, 0.0  ;;  %v5683_v8 = vsel %vm5389_vm12, %v7991_v59, 0.0  ;;  %vm6227_vm13 = vcmp.eq.s32.totalorder %v8551_v54, %v7996_v1 }
  0xd5   : > { %v6070_v14 = vadd.f32 %v5814_v3, %v5232_v20  ;;  %v6521_v0 = vsel %vm6227_vm13, %v8005_v2, 0.0  ;;  %v8588_v22 = vadd.s32 %v7809_v10, %v456_v41  ;;  %vm616_vm14 = vcmp.eq.s32.totalorder %v8551_v54, %v8058_v53 }
  0xd6   : > { %v3425_v63 = vadd.f32 %v3169_v42, %v2587_v56  ;;  %v910_v24 = vsel %vm616_vm14, %v8061_v12, 0.0  ;;  %vm1198_vm15 = vcmp.eq.s32.totalorder %v8551_v54, %v8039_v51  ;;  %vm2036_vm0 = vcmp.eq.s32.totalorder %v8551_v54, %v8047_v49 }
  0xd7   : > { %15474 = vst [vmem:[#allocation24_spill] sm:$0xff] %v8588_v22  ;;  %v6908_v19 = vadd.f32 %v6652_v50, %v6070_v14  ;;  %vm745_vm1 = vcmp.eq.s32.totalorder %v8588_v22, %v7910_v45  ;;  %vm1327_vm2 = vcmp.eq.s32.totalorder %v8588_v22, %v7916_v47  ;;  %vm2165_vm3 = vcmp.eq.s32.totalorder %v8588_v22, %v7937_v57 }
  0xd8   : > { %v4263_v3 = vadd.f32 %v4007_v52, %v3425_v63  ;;  %v1039_v41 = vsel %vm745_vm1, %v7913_v46, 0.0  ;;  %v1621_v13 = vsel %vm1327_vm2, %v7919_v48, 0.0  ;;  %v2459_v26 = vsel %vm2165_vm3, %v7940_v58, 0.0 }
  0xd9   : > { %7082 = vmatpush1.msra.mxu1 %v6908_v19  ;;  %v1877_v42 = vadd.f32 %v1621_v13, %v1039_v41  ;;  %vm3003_vm4 = vcmp.eq.s32.totalorder %v8588_v22, %v7944_v60  ;;  %vm3841_vm5 = vcmp.eq.s32.totalorder %v8588_v22, %v7961_v4  ;;  %vm4679_vm6 = vcmp.eq.s32.totalorder %v8588_v22, %v7970_v36 }
  0xda   : > { %v5101_v50 = vadd.f32 %v4845_v11, %v4263_v3  ;;  %v3297_v52 = vsel %vm3003_vm4, %v7947_v61, 0.0  ;;  %v4135_v20 = vsel %vm3841_vm5, %v7967_v33, 0.0  ;;  %v4973_v56 = vsel %vm4679_vm6, %v7975_v37, 0.0 }
  0xdb   : > { %v2715_v14 = vadd.f32 %v2459_v26, %v1877_v42  ;;  %vm5517_vm7 = vcmp.eq.s32.totalorder %v8588_v22, %v7988_v55  ;;  %vm6355_vm8 = vcmp.eq.s32.totalorder %v8588_v22, %v7996_v1  ;;  %v1492_v63 = vsel %vm1198_vm15, %v8066_v15, 0.0 }
  0xdc   : > { %v5939_v19 = vadd.f32 %v5683_v8, %v5101_v50  ;;  %v5811_v11 = vsel %vm5517_vm7, %v7991_v59, 0.0  ;;  %v6649_v3 = vsel %vm6355_vm8, %v8005_v2, 0.0  ;;  %v1748_v41 = vadd.f32 %v1492_v63, %v910_v24 }
  0xdd   : > { %v3553_v13 = vadd.f32 %v3297_v52, %v2715_v14  ;;  %v2330_v26 = vsel %vm2036_vm0, %v8071_v16, 0.0  ;;  %vm2874_vm9 = vcmp.eq.s32.totalorder %v8551_v54, %v8055_v7  ;;  %vm3712_vm10 = vcmp.eq.s32.totalorder %v8551_v54, %v8090_v5 }
  0xde   : > { %v6777_v42 = vadd.f32 %v6521_v0, %v5939_v19  ;;  %v2586_v44 = vadd.f32 %v2330_v26, %v1748_v41  ;;  %v3168_v8 = vsel %vm2874_vm9, %v8087_v40, 0.0  ;;  %v4006_v50 = vsel %vm3712_vm10, %v8093_v30, 0.0 }
  0xdf   : > { %v4391_v34 = vadd.f32 %v4135_v20, %v3553_v13  ;;  %vm4550_vm11 = vcmp.eq.s32.totalorder %v8551_v54, %v8109_v23  ;;  %vm5388_vm12 = vcmp.eq.s32.totalorder %v8551_v54, %v8115_v32  ;;  %vm6226_vm13 = vcmp.eq.s32.totalorder %v8551_v54, %v8136_v43 }
  0xe0   : > { %7012 = vmatprep.subr.mxu0 %v6777_v42  ;;  %v3424_v24 = vadd.f32 %v3168_v8, %v2586_v44  ;;  %v4844_v52 = vsel %vm4550_vm11, %v8112_v31, 0.0  ;;  %v5682_v0 = vsel %vm5388_vm12, %v8133_v35, 0.0  ;;  %v6520_v14 = vsel %vm6226_vm13, %v8139_v39, 0.0 }
  0xe1   : > { %v5229_v63 = vadd.f32 %v4973_v56, %v4391_v34  ;;  %vm744_vm14 = vcmp.eq.s32.totalorder %v8588_v22, %v8058_v53  ;;  %vm1326_vm15 = vcmp.eq.s32.totalorder %v8588_v22, %v8039_v51  ;;  %vm2164_vm0 = vcmp.eq.s32.totalorder %v8588_v22, %v8047_v49 }
  0xe2   : > { %v4262_v20 = vadd.f32 %v4006_v50, %v3424_v24  ;;  %v1038_v19 = vsel %vm744_vm14, %v8061_v12, 0.0  ;;  %v1620_v44 = vsel %vm1326_vm15, %v8066_v15, 0.0  ;;  %v2458_v41 = vsel %vm2164_vm0, %v8071_v16, 0.0 }
  0xe3   : > { %v6067_v13 = vadd.f32 %v5811_v11, %v5229_v63  ;;  %v1876_v26 = vadd.f32 %v1620_v44, %v1038_v19  ;;  %vm3002_vm1 = vcmp.eq.s32.totalorder %v8588_v22, %v8055_v7  ;;  %vm3840_vm2 = vcmp.eq.s32.totalorder %v8588_v22, %v8090_v5 }
  0xe4   : > { %v5100_v34 = vadd.f32 %v4844_v52, %v4262_v20  ;;  %v3296_v56 = vsel %vm3002_vm1, %v8087_v40, 0.0  ;;  %v4134_v42 = vsel %vm3840_vm2, %v8093_v30, 0.0  ;;  %vm4678_vm3 = vcmp.eq.s32.totalorder %v8588_v22, %v8109_v23 }
  0xe5   : > { %v6905_v8 = vadd.f32 %v6649_v3, %v6067_v13  ;;  %v2714_v50 = vadd.f32 %v2458_v41, %v1876_v26  ;;  %v4972_v24 = vsel %vm4678_vm3, %v8112_v31, 0.0  ;;  %vm5516_vm4 = vcmp.eq.s32.totalorder %v8588_v22, %v8115_v32 }
  0xe6   : > { %v5938_v11 = vadd.f32 %v5682_v0, %v5100_v34  ;;  %v5810_v63 = vsel %vm5516_vm4, %v8133_v35, 0.0  ;;  %vm6354_vm5 = vcmp.eq.s32.totalorder %v8588_v22, %v8136_v43  ;;  %v8669_v52 = vadd.s32 %v7809_v10, %v8555_v38 }
  0xe7   : > { %7083 = vmatprep.subr.mxu1 %v6905_v8  ;;  %v3552_v20 = vadd.f32 %v3296_v56, %v2714_v50  ;;  %v6648_v3 = vsel %vm6354_vm5, %v8139_v39, 0.0  ;;  %v8674_v19 = vadd.s32 %v7809_v10, %v8558_v62  ;;  %v8678_v0 = vadd.s32 %v7809_v10, %v8561_v9 }
  0xe8   : > { %15475 = vst [vmem:[#allocation25_spill] sm:$0xff] %v8669_v52  ;;  %v6776_v44 = vadd.f32 %v6520_v14, %v5938_v11  ;;  %vm613_vm6 = vcmp.eq.s32.totalorder %v8669_v52, %v7910_v45  ;;  %vm1195_vm7 = vcmp.eq.s32.totalorder %v8669_v52, %v7916_v47  ;;  %vm2033_vm8 = vcmp.eq.s32.totalorder %v8669_v52, %v7937_v57 }
  0xe9   : > { %15476 = vst [vmem:[#allocation26_spill] sm:$0xff] %v8674_v19  ;;  %15477 = vst [vmem:[#allocation27_spill] sm:$0xff] %v8678_v0  ;;  %v4390_v38 = vadd.f32 %v4134_v42, %v3552_v20  ;;  %v907_v41 = vsel %vm613_vm6, %v7913_v46, 0.0  ;;  %v1489_v62 = vsel %vm1195_vm7, %v7919_v48, 0.0  ;;  %v2327_v13 = vsel %vm2033_vm8, %v7940_v58, 0.0 }
  0xea   : > { %7013 = vmatpush1.msra.mxu0 %v6776_v44  ;;  %v1745_v9 = vadd.f32 %v1489_v62, %v907_v41  ;;  %vm2871_vm9 = vcmp.eq.s32.totalorder %v8669_v52, %v7944_v60  ;;  %vm3709_vm10 = vcmp.eq.s32.totalorder %v8669_v52, %v7961_v4  ;;  %vm4547_vm11 = vcmp.eq.s32.totalorder %v8669_v52, %v7970_v36 }
  0xeb   : > { %v5228_v14 = vadd.f32 %v4972_v24, %v4390_v38  ;;  %v3165_v26 = vsel %vm2871_vm9, %v7947_v61, 0.0  ;;  %v4003_v34 = vsel %vm3709_vm10, %v7967_v33, 0.0  ;;  %v4841_v56 = vsel %vm4547_vm11, %v7975_v37, 0.0 }
  0xec   : > { %v2583_v42 = vadd.f32 %v2327_v13, %v1745_v9  ;;  %vm5385_vm12 = vcmp.eq.s32.totalorder %v8669_v52, %v7988_v55  ;;  %vm6223_vm13 = vcmp.eq.s32.totalorder %v8669_v52, %v7996_v1  ;;  %vm741_vm14 = vcmp.eq.s32.totalorder %v8674_v19, %v7910_v45 }
  0xed   : > { %v6066_v8 = vadd.f32 %v5810_v63, %v5228_v14  ;;  %v5679_v50 = vsel %vm5385_vm12, %v7991_v59, 0.0  ;;  %v6517_v24 = vsel %vm6223_vm13, %v8005_v2, 0.0  ;;  %v1035_v11 = vsel %vm741_vm14, %v7913_v46, 0.0 }
  0xee   : > { %v3421_v20 = vadd.f32 %v3165_v26, %v2583_v42  ;;  %vm1323_vm15 = vcmp.eq.s32.totalorder %v8674_v19, %v7916_v47  ;;  %vm2161_vm0 = vcmp.eq.s32.totalorder %v8674_v19, %v7937_v57  ;;  %vm2999_vm1 = vcmp.eq.s32.totalorder %v8674_v19, %v7944_v60 }
  0xef   : > { %v6904_v44 = vadd.f32 %v6648_v3, %v6066_v8  ;;  %v1617_v38 = vsel %vm1323_vm15, %v7919_v48, 0.0  ;;  %v2455_v63 = vsel %vm2161_vm0, %v7940_v58, 0.0  ;;  %v3293_v41 = vsel %vm2999_vm1, %v7947_v61, 0.0 }
  0xf0   : > { %v4259_v62 = vadd.f32 %v4003_v34, %v3421_v20  ;;  %v1873_v13 = vadd.f32 %v1617_v38, %v1035_v11  ;;  %vm3837_vm2 = vcmp.eq.s32.totalorder %v8674_v19, %v7961_v4  ;;  %vm4675_vm3 = vcmp.eq.s32.totalorder %v8674_v19, %v7970_v36 }
  0xf1   : > { %7084 = vmatpush1.msra.mxu1 %v6904_v44  ;;  %v4131_v9 = vsel %vm3837_vm2, %v7967_v33, 0.0  ;;  %v4969_v14 = vsel %vm4675_vm3, %v7975_v37, 0.0  ;;  %vm5513_vm4 = vcmp.eq.s32.totalorder %v8674_v19, %v7988_v55  ;;  %vm6351_vm5 = vcmp.eq.s32.totalorder %v8674_v19, %v7996_v1 }
  0xf2   : > { %v5097_v3 = vadd.f32 %v4841_v56, %v4259_v62  ;;  %v2711_v26 = vadd.f32 %v2455_v63, %v1873_v13  ;;  %v5807_v34 = vsel %vm5513_vm4, %v7991_v59, 0.0  ;;  %v6645_v42 = vsel %vm6351_vm5, %v8005_v2, 0.0 }
  0xf3   : > { %vm612_vm6 = vcmp.eq.s32.totalorder %v8669_v52, %v8058_v53  ;;  %vm1194_vm7 = vcmp.eq.s32.totalorder %v8669_v52, %v8039_v51  ;;  %vm2032_vm8 = vcmp.eq.s32.totalorder %v8669_v52, %v8047_v49  ;;  %vm2870_vm9 = vcmp.eq.s32.totalorder %v8669_v52, %v8055_v7 }
  0xf4   : > { %v5935_v8 = vadd.f32 %v5679_v50, %v5097_v3  ;;  %v3549_v11 = vadd.f32 %v3293_v41, %v2711_v26  ;;  %v906_v56 = vsel %vm612_vm6, %v8061_v12, 0.0  ;;  %v1488_v20 = vsel %vm1194_vm7, %v8066_v15, 0.0 }
  0xf5   : > { %v1744_v44 = vadd.f32 %v1488_v20, %v906_v56  ;;  %v2326_v38 = vsel %vm2032_vm8, %v8071_v16, 0.0  ;;  %v3164_v63 = vsel %vm2870_vm9, %v8087_v40, 0.0  ;;  %vm3708_vm10 = vcmp.eq.s32.totalorder %v8669_v52, %v8090_v5 }
  0xf6   : > { %v6773_v62 = vadd.f32 %v6517_v24, %v5935_v8  ;;  %v4387_v13 = vadd.f32 %v4131_v9, %v3549_v11  ;;  %v4002_v22 = vsel %vm3708_vm10, %v8093_v30, 0.0  ;;  %vm4546_vm11 = vcmp.eq.s32.totalorder %v8669_v52, %v8109_v23 }
  0xf7   : > { %v2582_v50 = vadd.f32 %v2326_v38, %v1744_v44  ;;  %v4840_v41 = vsel %vm4546_vm11, %v8112_v31, 0.0  ;;  %vm5384_vm12 = vcmp.eq.s32.totalorder %v8669_v52, %v8115_v32  ;;  %vm6222_vm13 = vcmp.eq.s32.totalorder %v8669_v52, %v8136_v43 }
  0xf8   : > { %7014 = vmatprep.subr.mxu0 %v6773_v62  ;;  %v5225_v3 = vadd.f32 %v4969_v14, %v4387_v13  ;;  %v5678_v26 = vsel %vm5384_vm12, %v8133_v35, 0.0  ;;  %v6516_v24 = vsel %vm6222_vm13, %v8139_v39, 0.0  ;;  %vm740_vm14 = vcmp.eq.s32.totalorder %v8674_v19, %v8058_v53 }
  0xf9   : > { %v3420_v9 = vadd.f32 %v3164_v63, %v2582_v50  ;;  %v1034_v8 = vsel %vm740_vm14, %v8061_v12, 0.0  ;;  %vm1322_vm15 = vcmp.eq.s32.totalorder %v8674_v19, %v8039_v51  ;;  %vm2160_vm0 = vcmp.eq.s32.totalorder %v8674_v19, %v8047_v49 }
  0xfa   : > { %v6063_v11 = vadd.f32 %v5807_v34, %v5225_v3  ;;  %v1616_v56 = vsel %vm1322_vm15, %v8066_v15, 0.0  ;;  %v2454_v14 = vsel %vm2160_vm0, %v8071_v16, 0.0  ;;  %vm2998_vm1 = vcmp.eq.s32.totalorder %v8674_v19, %v8055_v7 }
  0xfb   : > { %v4258_v20 = vadd.f32 %v4002_v22, %v3420_v9  ;;  %v1872_v44 = vadd.f32 %v1616_v56, %v1034_v8  ;;  %v3292_v38 = vsel %vm2998_vm1, %v8087_v40, 0.0  ;;  %vm3836_vm2 = vcmp.eq.s32.totalorder %v8674_v19, %v8090_v5 }
  0xfc   : > { %v6901_v63 = vadd.f32 %v6645_v42, %v6063_v11  ;;  %v4130_v62 = vsel %vm3836_vm2, %v8093_v30, 0.0  ;;  %vm4674_vm3 = vcmp.eq.s32.totalorder %v8674_v19, %v8109_v23  ;;  %vm5512_vm4 = vcmp.eq.s32.totalorder %v8674_v19, %v8115_v32 }
  0xfd   : > { %v5096_v34 = vadd.f32 %v4840_v41, %v4258_v20  ;;  %v2710_v13 = vadd.f32 %v2454_v14, %v1872_v44  ;;  %v4968_v50 = vsel %vm4674_vm3, %v8112_v31, 0.0  ;;  %v5806_v22 = vsel %vm5512_vm4, %v8133_v35, 0.0 }
  0xfe   : > { %7085 = vmatprep.subr.mxu1 %v6901_v63  ;;  %vm6350_vm5 = vcmp.eq.s32.totalorder %v8674_v19, %v8136_v43  ;;  %vm609_vm6 = vcmp.eq.s32.totalorder %v8678_v0, %v7910_v45  ;;  %vm1191_vm7 = vcmp.eq.s32.totalorder %v8678_v0, %v7916_v47  ;;  %vm2029_vm8 = vcmp.eq.s32.totalorder %v8678_v0, %v7937_v57 }
  0xff   : > { %v5934_v42 = vadd.f32 %v5678_v26, %v5096_v34  ;;  %v3548_v41 = vadd.f32 %v3292_v38, %v2710_v13  ;;  %v6644_v3 = vsel %vm6350_vm5, %v8139_v39, 0.0  ;;  %v903_v9 = vsel %vm609_vm6, %v7913_v46, 0.0 }
 0x100   : > { %v1485_v8 = vsel %vm1191_vm7, %v7919_v48, 0.0  ;;  %v2323_v11 = vsel %vm2029_vm8, %v7940_v58, 0.0  ;;  %vm2867_vm9 = vcmp.eq.s32.totalorder %v8678_v0, %v7944_v60  ;;  %vm3705_vm10 = vcmp.eq.s32.totalorder %v8678_v0, %v7961_v4 }
 0x101   : > { %v6772_v56 = vadd.f32 %v6516_v24, %v5934_v42  ;;  %v4386_v14 = vadd.f32 %v4130_v62, %v3548_v41  ;;  %v1741_v20 = vadd.f32 %v1485_v8, %v903_v9  ;;  %v3161_v26 = vsel %vm2867_vm9, %v7947_v61, 0.0 }
 0x102   : > { %v3999_v44 = vsel %vm3705_vm10, %v7967_v33, 0.0  ;;  %vm4543_vm11 = vcmp.eq.s32.totalorder %v8678_v0, %v7970_v36  ;;  %vm5381_vm12 = vcmp.eq.s32.totalorder %v8678_v0, %v7988_v55  ;;  %vm6219_vm13 = vcmp.eq.s32.totalorder %v8678_v0, %v7996_v1 }
 0x103   : > { %7015 = vmatpush1.msra.mxu0 %v6772_v56  ;;  %v5224_v38 = vadd.f32 %v4968_v50, %v4386_v14  ;;  %v2579_v63 = vadd.f32 %v2323_v11, %v1741_v20  ;;  %v4837_v24 = vsel %vm4543_vm11, %v7975_v37, 0.0  ;;  %v5675_v62 = vsel %vm5381_vm12, %v7991_v59, 0.0 }
 0x104   : > { %v6513_v34 = vsel %vm6219_vm13, %v8005_v2, 0.0  ;;  %v454_v13 = vadd.s32 320, %v7805_v6  ;;  %vm608_vm14 = vcmp.eq.s32.totalorder %v8678_v0, %v8058_v53  ;;  %vm1190_vm15 = vcmp.eq.s32.totalorder %v8678_v0, %v8039_v51 }
 0x105   : > { %v6062_v42 = vadd.f32 %v5806_v22, %v5224_v38  ;;  %v3417_v41 = vadd.f32 %v3161_v26, %v2579_v63  ;;  %v902_v9 = vsel %vm608_vm14, %v8061_v12, 0.0  ;;  %v1484_v50 = vsel %vm1190_vm15, %v8066_v15, 0.0 }
 0x106   : > { %v8808_v8 = vadd.s32 %v7809_v10, %v454_v13  ;;  %v1740_v11 = vadd.f32 %v1484_v50, %v902_v9  ;;  %vm2028_vm0 = vcmp.eq.s32.totalorder %v8678_v0, %v8047_v49  ;;  %vm2866_vm1 = vcmp.eq.s32.totalorder %v8678_v0, %v8055_v7 }
 0x107   : > { %v6900_v56 = vadd.f32 %v6644_v3, %v6062_v42  ;;  %v4255_v14 = vadd.f32 %v3999_v44, %v3417_v41  ;;  %v2322_v20 = vsel %vm2028_vm0, %v8071_v16, 0.0  ;;  %v3160_v22 = vsel %vm2866_vm1, %v8087_v40, 0.0 }
 0x108   : > { %15478 = vst [vmem:[#allocation28_spill] sm:$0xff] %v8808_v8  ;;  %vm737_vm2 = vcmp.eq.s32.totalorder %v8808_v8, %v7910_v45  ;;  %vm1319_vm3 = vcmp.eq.s32.totalorder %v8808_v8, %v7916_v47  ;;  %vm2157_vm4 = vcmp.eq.s32.totalorder %v8808_v8, %v7937_v57  ;;  %vm2995_vm5 = vcmp.eq.s32.totalorder %v8808_v8, %v7944_v60 }
 0x109   : > { %7086 = vmatpush1.msra.mxu1 %v6900_v56  ;;  %v5093_v26 = vadd.f32 %v4837_v24, %v4255_v14  ;;  %v1031_v3 = vsel %vm737_vm2, %v7913_v46, 0.0  ;;  %v1613_v44 = vsel %vm1319_vm3, %v7919_v48, 0.0  ;;  %v2451_v38 = vsel %vm2157_vm4, %v7940_v58, 0.0 }
 0x10a   : > { %v1869_v63 = vadd.f32 %v1613_v44, %v1031_v3  ;;  %v3289_v13 = vsel %vm2995_vm5, %v7947_v61, 0.0  ;;  %vm3833_vm6 = vcmp.eq.s32.totalorder %v8808_v8, %v7961_v4  ;;  %vm4671_vm7 = vcmp.eq.s32.totalorder %v8808_v8, %v7970_v36 }
 0x10b   : > { %v5931_v42 = vadd.f32 %v5675_v62, %v5093_v26  ;;  %v4127_v41 = vsel %vm3833_vm6, %v7967_v33, 0.0  ;;  %v4965_v24 = vsel %vm4671_vm7, %v7975_v37, 0.0  ;;  %vm5509_vm8 = vcmp.eq.s32.totalorder %v8808_v8, %v7988_v55 }
 0x10c   : > { %v2707_v9 = vadd.f32 %v2451_v38, %v1869_v63  ;;  %v5803_v50 = vsel %vm5509_vm8, %v7991_v59, 0.0  ;;  %vm6347_vm9 = vcmp.eq.s32.totalorder %v8808_v8, %v7996_v1  ;;  %v2578_v56 = vadd.f32 %v2322_v20, %v1740_v11 }
 0x10d   : > { %v6769_v14 = vadd.f32 %v6513_v34, %v5931_v42  ;;  %v6641_v3 = vsel %vm6347_vm9, %v8005_v2, 0.0  ;;  %vm3704_vm10 = vcmp.eq.s32.totalorder %v8678_v0, %v8090_v5  ;;  %vm4542_vm11 = vcmp.eq.s32.totalorder %v8678_v0, %v8109_v23 }
 0x10e   : > { %v3545_v62 = vadd.f32 %v3289_v13, %v2707_v9  ;;  %v3416_v26 = vadd.f32 %v3160_v22, %v2578_v56  ;;  %v3998_v44 = vsel %vm3704_vm10, %v8093_v30, 0.0  ;;  %v4836_v38 = vsel %vm4542_vm11, %v8112_v31, 0.0 }
 0x10f   : > { %7016 = vmatprep.subr.mxu0 %v6769_v14  ;;  %vm5380_vm12 = vcmp.eq.s32.totalorder %v8678_v0, %v8115_v32  ;;  %vm6218_vm13 = vcmp.eq.s32.totalorder %v8678_v0, %v8136_v43  ;;  %vm736_vm14 = vcmp.eq.s32.totalorder %v8808_v8, %v8058_v53  ;;  %vm1318_vm15 = vcmp.eq.s32.totalorder %v8808_v8, %v8039_v51 }
 0x110   : > { %v4383_v34 = vadd.f32 %v4127_v41, %v3545_v62  ;;  %v4254_v11 = vadd.f32 %v3998_v44, %v3416_v26  ;;  %v5674_v20 = vsel %vm5380_vm12, %v8133_v35, 0.0  ;;  %v6512_v22 = vsel %vm6218_vm13, %v8139_v39, 0.0 }
 0x111   : > { %v1030_v63 = vsel %vm736_vm14, %v8061_v12, 0.0  ;;  %v1612_v13 = vsel %vm1318_vm15, %v8066_v15, 0.0  ;;  %vm2156_vm0 = vcmp.eq.s32.totalorder %v8808_v8, %v8047_v49  ;;  %vm2994_vm1 = vcmp.eq.s32.totalorder %v8808_v8, %v8055_v7 }
 0x112   : > { %v5221_v42 = vadd.f32 %v4965_v24, %v4383_v34  ;;  %v5092_v9 = vadd.f32 %v4836_v38, %v4254_v11  ;;  %v1868_v56 = vadd.f32 %v1612_v13, %v1030_v63  ;;  %v2450_v41 = vsel %vm2156_vm0, %v8071_v16, 0.0 }
 0x113   : > { %v3288_v14 = vsel %vm2994_vm1, %v8087_v40, 0.0  ;;  %vm3832_vm2 = vcmp.eq.s32.totalorder %v8808_v8, %v8090_v5  ;;  %vm4670_vm3 = vcmp.eq.s32.totalorder %v8808_v8, %v8109_v23  ;;  %vm5508_vm4 = vcmp.eq.s32.totalorder %v8808_v8, %v8115_v32 }
 0x114   : > { %v6059_v62 = vadd.f32 %v5803_v50, %v5221_v42  ;;  %v5930_v26 = vadd.f32 %v5674_v20, %v5092_v9  ;;  %v2706_v44 = vadd.f32 %v2450_v41, %v1868_v56  ;;  %v4126_v24 = vsel %vm3832_vm2, %v8093_v30, 0.0 }
 0x115   : > { %v4964_v38 = vsel %vm4670_vm3, %v8112_v31, 0.0  ;;  %vm6346_vm5 = vcmp.eq.s32.totalorder %v8808_v8, %v8136_v43  ;;  %v421_v34 = vadd.s32 56, %v7805_v6  ;;  %v5802_v0 = vsel %vm5508_vm4, %v8133_v35, 0.0 }
 0x116   : > { %v6897_v11 = vadd.f32 %v6641_v3, %v6059_v62  ;;  %v6768_v63 = vadd.f32 %v6512_v22, %v5930_v26  ;;  %v3544_v13 = vadd.f32 %v3288_v14, %v2706_v44  ;;  %v6640_v19 = vsel %vm6346_vm5, %v8139_v39, 0.0 }
 0x117   : > { %v8878_v50 = vadd.s32 %v7809_v10, %v421_v34  ;;  %v453_v20 = vadd.s32 312, %v7805_v6  ;;  %v8882_v42 = vadd.s32 48, %v7805_v6  ;;  %v8885_v56 = vadd.s32 304, %v7805_v6 }
 0x118   : > { %7087 = vmatprep.subr.mxu1 %v6897_v11  ;;  %7017 = vmatpush1.msra.mxu0 %v6768_v63  ;;  %v4382_v9 = vadd.f32 %v4126_v24, %v3544_v13  ;;  %v8888_v3 = vadd.s32 40, %v7805_v6  ;;  %v8891_v22 = vadd.s32 296, %v7805_v6  ;;  %v8909_v24 = vadd.s32 32, %v7805_v6 }
 0x119   : > { %vm605_vm6 = vcmp.eq.s32.totalorder %v8878_v50, %v7910_v45  ;;  %vm1187_vm7 = vcmp.eq.s32.totalorder %v8878_v50, %v7916_v47  ;;  %vm2025_vm8 = vcmp.eq.s32.totalorder %v8878_v50, %v7937_v57  ;;  %vm2863_vm9 = vcmp.eq.s32.totalorder %v8878_v50, %v7944_v60 }
 0x11a   : > { %v5220_v41 = vadd.f32 %v4964_v38, %v4382_v9  ;;  %v899_v14 = vsel %vm605_vm6, %v7913_v46, 0.0  ;;  %v1481_v62 = vsel %vm1187_vm7, %v7919_v48, 0.0  ;;  %v2319_v26 = vsel %vm2025_vm8, %v7940_v58, 0.0 }
 0x11b   : > { %v1737_v44 = vadd.f32 %v1481_v62, %v899_v14  ;;  %vm3701_vm10 = vcmp.eq.s32.totalorder %v8878_v50, %v7961_v4  ;;  %vm4539_vm11 = vcmp.eq.s32.totalorder %v8878_v50, %v7970_v36  ;;  %v3157_v11 = vsel %vm2863_vm9, %v7947_v61, 0.0 }
 0x11c   : > { %v6058_v34 = vadd.f32 %v5802_v0, %v5220_v41  ;;  %v3995_v38 = vsel %vm3701_vm10, %v7967_v33, 0.0  ;;  %vm5377_vm12 = vcmp.eq.s32.totalorder %v8878_v50, %v7988_v55  ;;  %v4833_v13 = vsel %vm4539_vm11, %v7975_v37, 0.0 }
 0x11d   : > { %v2575_v63 = vadd.f32 %v2319_v26, %v1737_v44  ;;  %vm6215_vm13 = vcmp.eq.s32.totalorder %v8878_v50, %v7996_v1  ;;  %v8919_v9 = vadd.s32 %v7809_v10, %v453_v20  ;;  %v5671_v62 = vsel %vm5377_vm12, %v7991_v59, 0.0 }
 0x11e   : > { %v6896_v14 = vadd.f32 %v6640_v19, %v6058_v34  ;;  %v6509_v0 = vsel %vm6215_vm13, %v8005_v2, 0.0  ;;  %vm604_vm14 = vcmp.eq.s32.totalorder %v8878_v50, %v8058_v53  ;;  %vm1186_vm4 = vcmp.eq.s32.totalorder %v8878_v50, %v8039_v51 }
 0x11f   : > { %15479 = vst [vmem:[#allocation29_spill] sm:$0xff] %v8919_v9  ;;  %v3413_v41 = vadd.f32 %v3157_v11, %v2575_v63  ;;  %vm733_vm15 = vcmp.eq.s32.totalorder %v8919_v9, %v7910_v45  ;;  %vm1315_vm0 = vcmp.eq.s32.totalorder %v8919_v9, %v7916_v47  ;;  %vm2153_vm1 = vcmp.eq.s32.totalorder %v8919_v9, %v7937_v57 }
 0x120   : > { %7088 = vmatpush1.msra.mxu1 %v6896_v14  ;;  %v1027_v19 = vsel %vm733_vm15, %v7913_v46, 0.0  ;;  %v1609_v20 = vsel %vm1315_vm0, %v7919_v48, 0.0  ;;  %v2447_v26 = vsel %vm2153_vm1, %v7940_v58, 0.0  ;;  %vm2991_vm2 = vcmp.eq.s32.totalorder %v8919_v9, %v7944_v60 }
 0x121   : > { %v4251_v44 = vadd.f32 %v3995_v38, %v3413_v41  ;;  %v1865_v34 = vadd.f32 %v1609_v20, %v1027_v19  ;;  %vm3829_vm3 = vcmp.eq.s32.totalorder %v8919_v9, %v7961_v4  ;;  %v3285_v11 = vsel %vm2991_vm2, %v7947_v61, 0.0 }
 0x122   : > { %v4123_v63 = vsel %vm3829_vm3, %v7967_v33, 0.0  ;;  %vm4667_vm5 = vcmp.eq.s32.totalorder %v8919_v9, %v7970_v36  ;;  %vm5505_vm6 = vcmp.eq.s32.totalorder %v8919_v9, %v7988_v55  ;;  %vm6343_vm7 = vcmp.eq.s32.totalorder %v8919_v9, %v7996_v1 }
 0x123   : > { %v5089_v14 = vadd.f32 %v4833_v13, %v4251_v44  ;;  %v2703_v8 = vadd.f32 %v2447_v26, %v1865_v34  ;;  %v4961_v38 = vsel %vm4667_vm5, %v7975_v37, 0.0  ;;  %v5799_v41 = vsel %vm5505_vm6, %v7991_v59, 0.0 }
 0x124   : > { %v898_v19 = vsel %vm604_vm14, %v8061_v12, 0.0  ;;  %v1480_v20 = vsel %vm1186_vm4, %v8066_v15, 0.0  ;;  %vm2024_vm8 = vcmp.eq.s32.totalorder %v8878_v50, %v8047_v49  ;;  %vm2862_vm9 = vcmp.eq.s32.totalorder %v8878_v50, %v8055_v7 }
 0x125   : > { %v5927_v52 = vadd.f32 %v5671_v62, %v5089_v14  ;;  %v3541_v13 = vadd.f32 %v3285_v11, %v2703_v8  ;;  %v1736_v26 = vadd.f32 %v1480_v20, %v898_v19  ;;  %v2318_v44 = vsel %vm2024_vm8, %v8071_v16, 0.0 }
 0x126   : > { %vm3700_vm10 = vcmp.eq.s32.totalorder %v8878_v50, %v8090_v5  ;;  %vm4538_vm11 = vcmp.eq.s32.totalorder %v8878_v50, %v8109_v23  ;;  %vm5376_vm12 = vcmp.eq.s32.totalorder %v8878_v50, %v8115_v32  ;;  %v3156_v8 = vsel %vm2862_vm9, %v8087_v40, 0.0 }
 0x127   : > { %v6765_v34 = vadd.f32 %v6509_v0, %v5927_v52  ;;  %v4379_v54 = vadd.f32 %v4123_v63, %v3541_v13  ;;  %v2574_v29 = vadd.f32 %v2318_v44, %v1736_v26  ;;  %v6637_v62 = vsel %vm6343_vm7, %v8005_v2, 0.0 }
 0x128   : > { %v3994_v11 = vsel %vm3700_vm10, %v8093_v30, 0.0  ;;  %v4832_v14 = vsel %vm4538_vm11, %v8112_v31, 0.0  ;;  %v5670_v19 = vsel %vm5376_vm12, %v8133_v35, 0.0  ;;  %vm6214_vm13 = vcmp.eq.s32.totalorder %v8878_v50, %v8136_v43 }
 0x129   : > { %7018 = vmatprep.subr.mxu0 %v6765_v34  ;;  %v5217_v20 = vadd.f32 %v4961_v38, %v4379_v54  ;;  %v3412_v28 = vadd.f32 %v3156_v8, %v2574_v29  ;;  %vm732_vm14 = vcmp.eq.s32.totalorder %v8919_v9, %v8058_v53  ;;  %vm1314_vm15 = vcmp.eq.s32.totalorder %v8919_v9, %v8039_v51 }
 0x12a   : > { %v1026_v52 = vsel %vm732_vm14, %v8061_v12, 0.0  ;;  %vm2152_vm0 = vcmp.eq.s32.totalorder %v8919_v9, %v8047_v49  ;;  %vm2990_vm1 = vcmp.eq.s32.totalorder %v8919_v9, %v8055_v7  ;;  %v1608_v29 = vsel %vm1314_vm15, %v8066_v15, 0.0 }
 0x12b   : > { %v6055_v0 = vadd.f32 %v5799_v41, %v5217_v20  ;;  %v4250_v54 = vadd.f32 %v3994_v11, %v3412_v28  ;;  %v2446_v63 = vsel %vm2152_vm0, %v8071_v16, 0.0  ;;  %v6508_v38 = vsel %vm6214_vm13, %v8139_v39, 0.0 }
 0x12c   : > { %v1864_v13 = vadd.f32 %v1608_v29, %v1026_v52  ;;  %vm3828_vm2 = vcmp.eq.s32.totalorder %v8919_v9, %v8090_v5  ;;  %vm4666_vm3 = vcmp.eq.s32.totalorder %v8919_v9, %v8109_v23  ;;  %v3284_v34 = vsel %vm2990_vm1, %v8087_v40, 0.0 }
 0x12d   : > { %v6893_v26 = vadd.f32 %v6637_v62, %v6055_v0  ;;  %v5088_v44 = vadd.f32 %v4832_v14, %v4250_v54  ;;  %v4122_v41 = vsel %vm3828_vm2, %v8093_v30, 0.0  ;;  %v4960_v8 = vsel %vm4666_vm3, %v8112_v31, 0.0 }
 0x12e   : > { %v2702_v28 = vadd.f32 %v2446_v63, %v1864_v13  ;;  %vm5504_vm4 = vcmp.eq.s32.totalorder %v8919_v9, %v8115_v32  ;;  %v8999_v11 = vadd.s32 %v7809_v10, %v8882_v42  ;;  %vm6342_vm5 = vcmp.eq.s32.totalorder %v8919_v9, %v8136_v43 }
 0x12f   : > { %7089 = vmatprep.subr.mxu1 %v6893_v26  ;;  %v5926_v20 = vadd.f32 %v5670_v19, %v5088_v44  ;;  %v5798_v52 = vsel %vm5504_vm4, %v8133_v35, 0.0  ;;  %v9006_v62 = vadd.s32 %v7809_v10, %v8885_v56  ;;  %v6636_v63 = vsel %vm6342_vm5, %v8139_v39, 0.0 }
 0x130   : > { %15480 = vst [vmem:[#allocation30_spill] sm:$0xff] %v8999_v11  ;;  %v3540_v14 = vadd.f32 %v3284_v34, %v2702_v28  ;;  %vm601_vm6 = vcmp.eq.s32.totalorder %v8999_v11, %v7910_v45  ;;  %vm1183_vm7 = vcmp.eq.s32.totalorder %v8999_v11, %v7916_v47  ;;  %vm2021_vm8 = vcmp.eq.s32.totalorder %v8999_v11, %v7937_v57 }
 0x131   : > { %15481 = vst [vmem:[#allocation31_spill] sm:$0xff] %v9006_v62  ;;  %v6764_v42 = vadd.f32 %v6508_v38, %v5926_v20  ;;  %v895_v19 = vsel %vm601_vm6, %v7913_v46, 0.0  ;;  %v1477_v0 = vsel %vm1183_vm7, %v7919_v48, 0.0  ;;  %v2315_v54 = vsel %vm2021_vm8, %v7940_v58, 0.0 }
 0x132   : > { %v4378_v29 = vadd.f32 %v4122_v41, %v3540_v14  ;;  %v1733_v56 = vadd.f32 %v1477_v0, %v895_v19  ;;  %vm2859_vm9 = vcmp.eq.s32.totalorder %v8999_v11, %v7944_v60  ;;  %vm3697_vm10 = vcmp.eq.s32.totalorder %v8999_v11, %v7961_v4 }
 0x133   : > { %7019 = vmatpush1.msra.mxu0 %v6764_v42  ;;  %v3153_v13 = vsel %vm2859_vm9, %v7947_v61, 0.0  ;;  %vm4535_vm11 = vcmp.eq.s32.totalorder %v8999_v11, %v7970_v36  ;;  %vm5373_vm12 = vcmp.eq.s32.totalorder %v8999_v11, %v7988_v55  ;;  %v3991_v44 = vsel %vm3697_vm10, %v7967_v33, 0.0 }
 0x134   : > { %v5216_v38 = vadd.f32 %v4960_v8, %v4378_v29  ;;  %v2571_v26 = vadd.f32 %v2315_v54, %v1733_v56  ;;  %v4829_v34 = vsel %vm4535_vm11, %v7975_v37, 0.0  ;;  %vm6211_vm13 = vcmp.eq.s32.totalorder %v8999_v11, %v7996_v1 }
 0x135   : > { %vm729_vm14 = vcmp.eq.s32.totalorder %v9006_v62, %v7910_v45  ;;  %vm1311_vm15 = vcmp.eq.s32.totalorder %v9006_v62, %v7916_v47  ;;  %vm2149_vm0 = vcmp.eq.s32.totalorder %v9006_v62, %v7937_v57  ;;  %v5667_v8 = vsel %vm5373_vm12, %v7991_v59, 0.0 }
 0x136   : > { %v6054_v41 = vadd.f32 %v5798_v52, %v5216_v38  ;;  %v3409_v28 = vadd.f32 %v3153_v13, %v2571_v26  ;;  %v1023_v20 = vsel %vm729_vm14, %v7913_v46, 0.0  ;;  %v1605_v14 = vsel %vm1311_vm15, %v7919_v48, 0.0 }
 0x137   : > { %v2443_v42 = vsel %vm2149_vm0, %v7940_v58, 0.0  ;;  %vm2987_vm1 = vcmp.eq.s32.totalorder %v9006_v62, %v7944_v60  ;;  %vm3825_vm2 = vcmp.eq.s32.totalorder %v9006_v62, %v7961_v4  ;;  %v6505_v54 = vsel %vm6211_vm13, %v8005_v2, 0.0 }
 0x138   : > { %v6892_v19 = vadd.f32 %v6636_v63, %v6054_v41  ;;  %v4247_v0 = vadd.f32 %v3991_v44, %v3409_v28  ;;  %v1861_v52 = vadd.f32 %v1605_v14, %v1023_v20  ;;  %v3281_v29 = vsel %vm2987_vm1, %v7947_v61, 0.0 }
 0x139   : > { %v4119_v56 = vsel %vm3825_vm2, %v7967_v33, 0.0  ;;  %vm4663_vm3 = vcmp.eq.s32.totalorder %v9006_v62, %v7970_v36  ;;  %vm5501_vm4 = vcmp.eq.s32.totalorder %v9006_v62, %v7988_v55  ;;  %vm6339_vm5 = vcmp.eq.s32.totalorder %v9006_v62, %v7996_v1 }
 0x13a   : > { %7090 = vmatpush1.msra.mxu1 %v6892_v19  ;;  %v5085_v13 = vadd.f32 %v4829_v34, %v4247_v0  ;;  %v2699_v38 = vadd.f32 %v2443_v42, %v1861_v52  ;;  %v4957_v26 = vsel %vm4663_vm3, %v7975_v37, 0.0  ;;  %v5795_v63 = vsel %vm5501_vm4, %v7991_v59, 0.0 }
 0x13b   : > { %vm600_vm6 = vcmp.eq.s32.totalorder %v8999_v11, %v8058_v53  ;;  %vm1182_vm7 = vcmp.eq.s32.totalorder %v8999_v11, %v8039_v51  ;;  %vm2020_vm8 = vcmp.eq.s32.totalorder %v8999_v11, %v8047_v49  ;;  %vm2858_vm9 = vcmp.eq.s32.totalorder %v8999_v11, %v8055_v7 }
 0x13c   : > { %v5923_v44 = vadd.f32 %v5667_v8, %v5085_v13  ;;  %v3537_v41 = vadd.f32 %v3281_v29, %v2699_v38  ;;  %v894_v34 = vsel %vm600_vm6, %v8061_v12, 0.0  ;;  %v1476_v28 = vsel %vm1182_vm7, %v8066_v15, 0.0 }
 0x13d   : > { %v1732_v20 = vadd.f32 %v1476_v28, %v894_v34  ;;  %v2314_v14 = vsel %vm2020_vm8, %v8071_v16, 0.0  ;;  %vm3696_vm10 = vcmp.eq.s32.totalorder %v8999_v11, %v8090_v5  ;;  %v6633_v0 = vsel %vm6339_vm5, %v8005_v2, 0.0 }
 0x13e   : > { %v6761_v42 = vadd.f32 %v6505_v54, %v5923_v44  ;;  %v4375_v19 = vadd.f32 %v4119_v56, %v3537_v41  ;;  %v3152_v8 = vsel %vm2858_vm9, %v8087_v40, 0.0  ;;  %v3990_v29 = vsel %vm3696_vm10, %v8093_v30, 0.0 }
 0x13f   : > { %v2570_v52 = vadd.f32 %v2314_v14, %v1732_v20  ;;  %vm4534_vm11 = vcmp.eq.s32.totalorder %v8999_v11, %v8109_v23  ;;  %vm5372_vm12 = vcmp.eq.s32.totalorder %v8999_v11, %v8115_v32  ;;  %vm6210_vm13 = vcmp.eq.s32.totalorder %v8999_v11, %v8136_v43 }
 0x140   : > { %7020 = vmatprep.subr.mxu0 %v6761_v42  ;;  %v5213_v13 = vadd.f32 %v4957_v26, %v4375_v19  ;;  %v4828_v38 = vsel %vm4534_vm11, %v8112_v31, 0.0  ;;  %v5666_v54 = vsel %vm5372_vm12, %v8133_v35, 0.0  ;;  %vm728_vm14 = vcmp.eq.s32.totalorder %v9006_v62, %v8058_v53 }
 0x141   : > { %v3408_v56 = vadd.f32 %v3152_v8, %v2570_v52  ;;  %vm1310_vm15 = vcmp.eq.s32.totalorder %v9006_v62, %v8039_v51  ;;  %vm2148_vm0 = vcmp.eq.s32.totalorder %v9006_v62, %v8047_v49  ;;  %v1022_v26 = vsel %vm728_vm14, %v8061_v12, 0.0 }
 0x142   : > { %v6051_v44 = vadd.f32 %v5795_v63, %v5213_v13  ;;  %v1604_v41 = vsel %vm1310_vm15, %v8066_v15, 0.0  ;;  %v2442_v34 = vsel %vm2148_vm0, %v8071_v16, 0.0  ;;  %vm2986_vm1 = vcmp.eq.s32.totalorder %v9006_v62, %v8055_v7 }
 0x143   : > { %v4246_v28 = vadd.f32 %v3990_v29, %v3408_v56  ;;  %v1860_v20 = vadd.f32 %v1604_v41, %v1022_v26  ;;  %vm3824_vm2 = vcmp.eq.s32.totalorder %v9006_v62, %v8090_v5  ;;  %v6504_v42 = vsel %vm6210_vm13, %v8139_v39, 0.0 }
 0x144   : > { %v6889_v14 = vadd.f32 %v6633_v0, %v6051_v44  ;;  %v3280_v19 = vsel %vm2986_vm1, %v8087_v40, 0.0  ;;  %vm4662_vm3 = vcmp.eq.s32.totalorder %v9006_v62, %v8109_v23  ;;  %v4118_v52 = vsel %vm3824_vm2, %v8093_v30, 0.0 }
 0x145   : > { %v5084_v63 = vadd.f32 %v4828_v38, %v4246_v28  ;;  %v2698_v8 = vadd.f32 %v2442_v34, %v1860_v20  ;;  %vm5500_vm4 = vcmp.eq.s32.totalorder %v9006_v62, %v8115_v32  ;;  %v4956_v29 = vsel %vm4662_vm3, %v8112_v31, 0.0 }
 0x146   : > { %7091 = vmatprep.subr.mxu1 %v6889_v14  ;;  %v5794_v13 = vsel %vm5500_vm4, %v8133_v35, 0.0  ;;  %vm6338_vm5 = vcmp.eq.s32.totalorder %v9006_v62, %v8136_v43  ;;  %v9106_v0 = vadd.s32 %v7809_v10, %v8888_v3  ;;  %v9111_v26 = vadd.s32 %v7809_v10, %v8891_v22 }
 0x147   : > { %v5922_v56 = vadd.f32 %v5666_v54, %v5084_v63  ;;  %v3536_v38 = vadd.f32 %v3280_v19, %v2698_v8  ;;  %v6632_v44 = vsel %vm6338_vm5, %v8139_v39, 0.0  ;;  %v9128_v20 = vadd.s32 %v7809_v10, %v8909_v24 }
 0x148   : > { %15482 = vst [vmem:[#allocation32_spill] sm:$0xff] %v9106_v0  ;;  %15483 = vst [vmem:[#allocation33_spill] sm:$0xff] %v9111_v26  ;;  %vm597_vm6 = vcmp.eq.s32.totalorder %v9106_v0, %v7910_v45  ;;  %vm1179_vm7 = vcmp.eq.s32.totalorder %v9106_v0, %v7916_v47  ;;  %vm2017_vm8 = vcmp.eq.s32.totalorder %v9106_v0, %v7937_v57 }
 0x149   : > { %vm2855_vm9 = vcmp.eq.s32.totalorder %v9106_v0, %v7944_v60  ;;  %v6760_v3 = vadd.f32 %v6504_v42, %v5922_v56  ;;  %v4374_v54 = vadd.f32 %v4118_v52, %v3536_v38  ;;  %v891_v41 = vsel %vm597_vm6, %v7913_v46, 0.0  ;;  %15484 = vst [vmem:[#allocation34_spill] sm:$0xff] %v9128_v20 }
 0x14a   : > { %v1473_v34 = vsel %vm1179_vm7, %v7919_v48, 0.0  ;;  %v2311_v28 = vsel %vm2017_vm8, %v7940_v58, 0.0  ;;  %vm3693_vm10 = vcmp.eq.s32.totalorder %v9106_v0, %v7961_v4  ;;  %v3149_v19 = vsel %vm2855_vm9, %v7947_v61, 0.0 }
 0x14b   : > { %v1729_v22 = vadd.f32 %v1473_v34, %v891_v41  ;;  %7021 = vmatpush1.msra.mxu0 %v6760_v3  ;;  %v5212_v14 = vadd.f32 %v4956_v29, %v4374_v54  ;;  %vm4531_vm11 = vcmp.eq.s32.totalorder %v9106_v0, %v7970_v36  ;;  %vm5369_vm12 = vcmp.eq.s32.totalorder %v9106_v0, %v7988_v55 }
 0x14c   : > { %v3987_v63 = vsel %vm3693_vm10, %v7967_v33, 0.0  ;;  %v4825_v8 = vsel %vm4531_vm11, %v7975_v37, 0.0  ;;  %v5663_v52 = vsel %vm5369_vm12, %v7991_v59, 0.0  ;;  %vm6207_vm13 = vcmp.eq.s32.totalorder %v9106_v0, %v7996_v1 }
 0x14d   : > { %v2567_v42 = vadd.f32 %v2311_v28, %v1729_v22  ;;  %v6050_v56 = vadd.f32 %v5794_v13, %v5212_v14  ;;  %vm725_vm14 = vcmp.eq.s32.totalorder %v9111_v26, %v7910_v45  ;;  %vm1307_vm15 = vcmp.eq.s32.totalorder %v9111_v26, %v7916_v47 }
 0x14e   : > { %v1019_v29 = vsel %vm725_vm14, %v7913_v46, 0.0  ;;  %v1601_v38 = vsel %vm1307_vm15, %v7919_v48, 0.0  ;;  %vm2145_vm0 = vcmp.eq.s32.totalorder %v9111_v26, %v7937_v57  ;;  %vm2983_vm1 = vcmp.eq.s32.totalorder %v9111_v26, %v7944_v60 }
 0x14f   : > { %v3405_v24 = vadd.f32 %v3149_v19, %v2567_v42  ;;  %v6888_v3 = vadd.f32 %v6632_v44, %v6050_v56  ;;  %v1857_v54 = vadd.f32 %v1601_v38, %v1019_v29  ;;  %v2439_v13 = vsel %vm2145_vm0, %v7940_v58, 0.0 }
 0x150   : > { %v3277_v34 = vsel %vm2983_vm1, %v7947_v61, 0.0  ;;  %vm3821_vm2 = vcmp.eq.s32.totalorder %v9111_v26, %v7961_v4  ;;  %vm4659_vm3 = vcmp.eq.s32.totalorder %v9111_v26, %v7970_v36  ;;  %v6501_v44 = vsel %vm6207_vm13, %v8005_v2, 0.0 }
 0x151   : > { %v4243_v41 = vadd.f32 %v3987_v63, %v3405_v24  ;;  %7092 = vmatpush1.msra.mxu1 %v6888_v3  ;;  %v2695_v22 = vadd.f32 %v2439_v13, %v1857_v54  ;;  %v4115_v28 = vsel %vm3821_vm2, %v7967_v33, 0.0  ;;  %vm5497_vm4 = vcmp.eq.s32.totalorder %v9111_v26, %v7988_v55 }
 0x152   : > { %v4953_v19 = vsel %vm4659_vm3, %v7975_v37, 0.0  ;;  %v5791_v42 = vsel %vm5497_vm4, %v7991_v59, 0.0  ;;  %vm596_vm5 = vcmp.eq.s32.totalorder %v9106_v0, %v8058_v53  ;;  %vm6335_vm6 = vcmp.eq.s32.totalorder %v9111_v26, %v7996_v1 }
 0x153   : > { %v5081_v14 = vadd.f32 %v4825_v8, %v4243_v41  ;;  %v3533_v63 = vadd.f32 %v3277_v34, %v2695_v22  ;;  %v890_v56 = vsel %vm596_vm5, %v8061_v12, 0.0  ;;  %vm1178_vm7 = vcmp.eq.s32.totalorder %v9106_v0, %v8039_v51 }
 0x154   : > { %v1472_v29 = vsel %vm1178_vm7, %v8066_v15, 0.0  ;;  %vm2016_vm8 = vcmp.eq.s32.totalorder %v9106_v0, %v8047_v49  ;;  %vm2854_vm9 = vcmp.eq.s32.totalorder %v9106_v0, %v8055_v7  ;;  %vm3692_vm10 = vcmp.eq.s32.totalorder %v9106_v0, %v8090_v5 }
 0x155   : > { %v5919_v24 = vadd.f32 %v5663_v52, %v5081_v14  ;;  %v4371_v8 = vadd.f32 %v4115_v28, %v3533_v63  ;;  %v1728_v38 = vadd.f32 %v1472_v29, %v890_v56  ;;  %v2310_v3 = vsel %vm2016_vm8, %v8071_v16, 0.0 }
 0x156   : > { %v3148_v54 = vsel %vm2854_vm9, %v8087_v40, 0.0  ;;  %vm4530_vm11 = vcmp.eq.s32.totalorder %v9106_v0, %v8109_v23  ;;  %vm5368_vm12 = vcmp.eq.s32.totalorder %v9106_v0, %v8115_v32  ;;  %v6629_v41 = vsel %vm6335_vm6, %v8005_v2, 0.0 }
 0x157   : > { %v6757_v13 = vadd.f32 %v6501_v44, %v5919_v24  ;;  %v5209_v52 = vadd.f32 %v4953_v19, %v4371_v8  ;;  %v2566_v34 = vadd.f32 %v2310_v3, %v1728_v38  ;;  %v3986_v22 = vsel %vm3692_vm10, %v8093_v30, 0.0 }
 0x158   : > { %v4824_v44 = vsel %vm4530_vm11, %v8112_v31, 0.0  ;;  %v5662_v28 = vsel %vm5368_vm12, %v8133_v35, 0.0  ;;  %vm724_vm13 = vcmp.eq.s32.totalorder %v9111_v26, %v8058_v53  ;;  %vm1306_vm14 = vcmp.eq.s32.totalorder %v9111_v26, %v8039_v51 }
 0x159   : > { %7022 = vmatprep.subr.mxu0 %v6757_v13  ;;  %v6047_v14 = vadd.f32 %v5791_v42, %v5209_v52  ;;  %v3404_v19 = vadd.f32 %v3148_v54, %v2566_v34  ;;  %vm6206_vm15 = vcmp.eq.s32.totalorder %v9106_v0, %v8136_v43  ;;  %v1018_v63 = vsel %vm724_vm13, %v8061_v12, 0.0 }
 0x15a   : > { %v1600_v56 = vsel %vm1306_vm14, %v8066_v15, 0.0  ;;  %vm2144_vm0 = vcmp.eq.s32.totalorder %v9111_v26, %v8047_v49  ;;  %vm2982_vm1 = vcmp.eq.s32.totalorder %v9111_v26, %v8055_v7  ;;  %vm3820_vm2 = vcmp.eq.s32.totalorder %v9111_v26, %v8090_v5 }
 0x15b   : > { %v6885_v24 = vadd.f32 %v6629_v41, %v6047_v14  ;;  %v4242_v29 = vadd.f32 %v3986_v22, %v3404_v19  ;;  %v1856_v42 = vadd.f32 %v1600_v56, %v1018_v63  ;;  %v2438_v8 = vsel %vm2144_vm0, %v8071_v16, 0.0 }
 0x15c   : > { %v6500_v38 = vsel %vm6206_vm15, %v8139_v39, 0.0  ;;  %v3276_v3 = vsel %vm2982_vm1, %v8087_v40, 0.0  ;;  %vm4658_vm3 = vcmp.eq.s32.totalorder %v9111_v26, %v8109_v23  ;;  %vm5496_vm4 = vcmp.eq.s32.totalorder %v9111_v26, %v8115_v32 }
 0x15d   : > { %7093 = vmatprep.subr.mxu1 %v6885_v24  ;;  %v5080_v54 = vadd.f32 %v4824_v44, %v4242_v29  ;;  %v2694_v13 = vadd.f32 %v2438_v8, %v1856_v42  ;;  %v4114_v52 = vsel %vm3820_vm2, %v8093_v30, 0.0  ;;  %v4952_v41 = vsel %vm4658_vm3, %v8112_v31, 0.0 }
 0x15e   : > { %vm6334_vm5 = vcmp.eq.s32.totalorder %v9111_v26, %v8136_v43  ;;  %vm593_vm6 = vcmp.eq.s32.totalorder %v9128_v20, %v7910_v45  ;;  %vm1175_vm7 = vcmp.eq.s32.totalorder %v9128_v20, %v7916_v47  ;;  %vm2013_vm8 = vcmp.eq.s32.totalorder %v9128_v20, %v7937_v57 }
 0x15f   : > { %v5918_v34 = vadd.f32 %v5662_v28, %v5080_v54  ;;  %v3532_v22 = vadd.f32 %v3276_v3, %v2694_v13  ;;  %v5790_v44 = vsel %vm5496_vm4, %v8133_v35, 0.0  ;;  %v887_v14 = vsel %vm593_vm6, %v7913_v46, 0.0 }
 0x160   : > { %v1469_v19 = vsel %vm1175_vm7, %v7919_v48, 0.0  ;;  %v2307_v63 = vsel %vm2013_vm8, %v7940_v58, 0.0  ;;  %vm2851_vm9 = vcmp.eq.s32.totalorder %v9128_v20, %v7944_v60  ;;  %vm3689_vm10 = vcmp.eq.s32.totalorder %v9128_v20, %v7961_v4 }
 0x161   : > { %v6756_v56 = vadd.f32 %v6500_v38, %v5918_v34  ;;  %v4370_v24 = vadd.f32 %v4114_v52, %v3532_v22  ;;  %v6628_v29 = vsel %vm6334_vm5, %v8139_v39, 0.0  ;;  %v1725_v28 = vadd.f32 %v1469_v19, %v887_v14 }
 0x162   : > { %v3145_v42 = vsel %vm2851_vm9, %v7947_v61, 0.0  ;;  %v3983_v8 = vsel %vm3689_vm10, %v7967_v33, 0.0  ;;  %vm4527_vm11 = vcmp.eq.s32.totalorder %v9128_v20, %v7970_v36  ;;  %vm5365_vm12 = vcmp.eq.s32.totalorder %v9128_v20, %v7988_v55 }
 0x163   : > { %7023 = vmatpush1.msra.mxu0 %v6756_v56  ;;  %v5208_v3 = vadd.f32 %v4952_v41, %v4370_v24  ;;  %v2563_v54 = vadd.f32 %v2307_v63, %v1725_v28  ;;  %v4821_v13 = vsel %vm4527_vm11, %v7975_v37, 0.0  ;;  %vm6203_vm13 = vcmp.eq.s32.totalorder %v9128_v20, %v7996_v1 }
 0x164   : > { %v5659_v38 = vsel %vm5365_vm12, %v7991_v59, 0.0  ;;  %v450_v52 = vadd.s32 288, %v7805_v6  ;;  %vm592_vm14 = vcmp.eq.s32.totalorder %v9128_v20, %v8058_v53  ;;  %vm1174_vm15 = vcmp.eq.s32.totalorder %v9128_v20, %v8039_v51 }
 0x165   : > { %v6046_v34 = vadd.f32 %v5790_v44, %v5208_v3  ;;  %v3401_v22 = vadd.f32 %v3145_v42, %v2563_v54  ;;  %v886_v41 = vsel %vm592_vm14, %v8061_v12, 0.0  ;;  %v1468_v14 = vsel %vm1174_vm15, %v8066_v15, 0.0 }
 0x166   : > { %v6497_v19 = vsel %vm6203_vm13, %v8005_v2, 0.0  ;;  %v9251_v63 = vadd.s32 %v7809_v10, %v450_v52  ;;  %v1724_v56 = vadd.f32 %v1468_v14, %v886_v41  ;;  %vm2012_vm0 = vcmp.eq.s32.totalorder %v9128_v20, %v8047_v49 }
 0x167   : > { %v6884_v24 = vadd.f32 %v6628_v29, %v6046_v34  ;;  %v4239_v28 = vadd.f32 %v3983_v8, %v3401_v22  ;;  %v2306_v26 = vsel %vm2012_vm0, %v8071_v16, 0.0  ;;  %vm2850_vm1 = vcmp.eq.s32.totalorder %v9128_v20, %v8055_v7 }
 0x168   : > { %15485 = vst [vmem:[#allocation35_spill] sm:$0xff] %v9251_v63  ;;  %vm721_vm2 = vcmp.eq.s32.totalorder %v9251_v63, %v7910_v45  ;;  %vm1303_vm3 = vcmp.eq.s32.totalorder %v9251_v63, %v7916_v47  ;;  %vm2141_vm4 = vcmp.eq.s32.totalorder %v9251_v63, %v7937_v57  ;;  %vm2979_vm5 = vcmp.eq.s32.totalorder %v9251_v63, %v7944_v60 }
 0x169   : > { %7094 = vmatpush1.msra.mxu1 %v6884_v24  ;;  %v5077_v44 = vadd.f32 %v4821_v13, %v4239_v28  ;;  %v1015_v29 = vsel %vm721_vm2, %v7913_v46, 0.0  ;;  %v1597_v42 = vsel %vm1303_vm3, %v7919_v48, 0.0  ;;  %v2435_v8 = vsel %vm2141_vm4, %v7940_v58, 0.0 }
 0x16a   : > { %v1853_v3 = vadd.f32 %v1597_v42, %v1015_v29  ;;  %vm3817_vm6 = vcmp.eq.s32.totalorder %v9251_v63, %v7961_v4  ;;  %vm4655_vm7 = vcmp.eq.s32.totalorder %v9251_v63, %v7970_v36  ;;  %v3144_v54 = vsel %vm2850_vm1, %v8087_v40, 0.0 }
 0x16b   : > { %v5915_v52 = vadd.f32 %v5659_v38, %v5077_v44  ;;  %v3273_v34 = vsel %vm2979_vm5, %v7947_v61, 0.0  ;;  %v4111_v13 = vsel %vm3817_vm6, %v7967_v33, 0.0  ;;  %vm5493_vm8 = vcmp.eq.s32.totalorder %v9251_v63, %v7988_v55 }
 0x16c   : > { %v2691_v22 = vadd.f32 %v2435_v8, %v1853_v3  ;;  %v4949_v41 = vsel %vm4655_vm7, %v7975_v37, 0.0  ;;  %vm6331_vm9 = vcmp.eq.s32.totalorder %v9251_v63, %v7996_v1  ;;  %v2562_v14 = vadd.f32 %v2306_v26, %v1724_v56 }
 0x16d   : > { %v6753_v24 = vadd.f32 %v6497_v19, %v5915_v52  ;;  %v5787_v28 = vsel %vm5493_vm8, %v7991_v59, 0.0  ;;  %vm3688_vm10 = vcmp.eq.s32.totalorder %v9128_v20, %v8090_v5  ;;  %vm4526_vm11 = vcmp.eq.s32.totalorder %v9128_v20, %v8109_v23 }
 0x16e   : > { %v3529_v38 = vadd.f32 %v3273_v34, %v2691_v22  ;;  %v6625_v44 = vsel %vm6331_vm9, %v8005_v2, 0.0  ;;  %v3400_v29 = vadd.f32 %v3144_v54, %v2562_v14  ;;  %v3982_v42 = vsel %vm3688_vm10, %v8093_v30, 0.0 }
 0x16f   : > { %7024 = vmatprep.subr.mxu0 %v6753_v24  ;;  %v4820_v8 = vsel %vm4526_vm11, %v8112_v31, 0.0  ;;  %vm5364_vm12 = vcmp.eq.s32.totalorder %v9128_v20, %v8115_v32  ;;  %vm720_vm13 = vcmp.eq.s32.totalorder %v9251_v63, %v8058_v53  ;;  %vm1302_vm14 = vcmp.eq.s32.totalorder %v9251_v63, %v8039_v51 }
 0x170   : > { %v4367_v26 = vadd.f32 %v4111_v13, %v3529_v38  ;;  %v4238_v19 = vadd.f32 %v3982_v42, %v3400_v29  ;;  %v5658_v56 = vsel %vm5364_vm12, %v8133_v35, 0.0  ;;  %vm6202_vm15 = vcmp.eq.s32.totalorder %v9128_v20, %v8136_v43 }
 0x171   : > { %v1014_v3 = vsel %vm720_vm13, %v8061_v12, 0.0  ;;  %v1596_v54 = vsel %vm1302_vm14, %v8066_v15, 0.0  ;;  %vm2140_vm0 = vcmp.eq.s32.totalorder %v9251_v63, %v8047_v49  ;;  %vm2978_vm1 = vcmp.eq.s32.totalorder %v9251_v63, %v8055_v7 }
 0x172   : > { %v5205_v52 = vadd.f32 %v4949_v41, %v4367_v26  ;;  %v5076_v34 = vadd.f32 %v4820_v8, %v4238_v19  ;;  %v1852_v22 = vadd.f32 %v1596_v54, %v1014_v3  ;;  %v2434_v13 = vsel %vm2140_vm0, %v8071_v16, 0.0 }
 0x173   : > { %v6496_v14 = vsel %vm6202_vm15, %v8139_v39, 0.0  ;;  %v3272_v24 = vsel %vm2978_vm1, %v8087_v40, 0.0  ;;  %vm3816_vm2 = vcmp.eq.s32.totalorder %v9251_v63, %v8090_v5  ;;  %vm4654_vm3 = vcmp.eq.s32.totalorder %v9251_v63, %v8109_v23 }
 0x174   : > { %v6043_v38 = vadd.f32 %v5787_v28, %v5205_v52  ;;  %v5914_v29 = vadd.f32 %v5658_v56, %v5076_v34  ;;  %v2690_v42 = vadd.f32 %v2434_v13, %v1852_v22  ;;  %vm5492_vm4 = vcmp.eq.s32.totalorder %v9251_v63, %v8115_v32 }
 0x175   : > { %v4110_v41 = vsel %vm3816_vm2, %v8093_v30, 0.0  ;;  %vm6330_vm5 = vcmp.eq.s32.totalorder %v9251_v63, %v8136_v43  ;;  %v417_v8 = vadd.s32 24, %v7805_v6  ;;  %v4948_v54 = vsel %vm4654_vm3, %v8112_v31, 0.0 }
 0x176   : > { %v6881_v26 = vadd.f32 %v6625_v44, %v6043_v38  ;;  %v6752_v19 = vadd.f32 %v6496_v14, %v5914_v29  ;;  %v3528_v3 = vadd.f32 %v3272_v24, %v2690_v42  ;;  %v5786_v20 = vsel %vm5492_vm4, %v8133_v35, 0.0 }
 0x177   : > { %v6624_v28 = vsel %vm6330_vm5, %v8139_v39, 0.0  ;;  %v9321_v56 = vadd.s32 %v7809_v10, %v417_v8  ;;  %v449_v52 = vadd.s32 280, %v7805_v6  ;;  %v9325_v22 = vadd.s32 16, %v7805_v6 }
 0x178   : > { %7095 = vmatprep.subr.mxu1 %v6881_v26  ;;  %7025 = vmatpush1.msra.mxu0 %v6752_v19  ;;  %v4366_v34 = vadd.f32 %v4110_v41, %v3528_v3  ;;  %v9328_v44 = vadd.s32 272, %v7805_v6  ;;  %v9331_v13 = vadd.s32 8, %v7805_v6  ;;  %v9349_v41 = vadd.s32 264, %v7805_v6 }
 0x179   : > { %vm589_vm6 = vcmp.eq.s32.totalorder %v9321_v56, %v7910_v45  ;;  %vm1171_vm7 = vcmp.eq.s32.totalorder %v9321_v56, %v7916_v47  ;;  %vm2009_vm8 = vcmp.eq.s32.totalorder %v9321_v56, %v7937_v57  ;;  %vm2847_vm9 = vcmp.eq.s32.totalorder %v9321_v56, %v7944_v60 }
 0x17a   : > { %v5204_v14 = vadd.f32 %v4948_v54, %v4366_v34  ;;  %v883_v24 = vsel %vm589_vm6, %v7913_v46, 0.0  ;;  %v1465_v38 = vsel %vm1171_vm7, %v7919_v48, 0.0  ;;  %v2303_v29 = vsel %vm2009_vm8, %v7940_v58, 0.0 }
 0x17b   : > { %v1721_v42 = vadd.f32 %v1465_v38, %v883_v24  ;;  %vm3685_vm10 = vcmp.eq.s32.totalorder %v9321_v56, %v7961_v4  ;;  %vm4523_vm11 = vcmp.eq.s32.totalorder %v9321_v56, %v7970_v36  ;;  %v3141_v26 = vsel %vm2847_vm9, %v7947_v61, 0.0 }
 0x17c   : > { %v6042_v8 = vadd.f32 %v5786_v20, %v5204_v14  ;;  %vm5361_vm12 = vcmp.eq.s32.totalorder %v9321_v56, %v7988_v55  ;;  %v9356_v19 = vadd.s32 %v7809_v10, %v7805_v6  ;;  %v3979_v54 = vsel %vm3685_vm10, %v7967_v33, 0.0 }
 0x17d   : > { %v2559_v3 = vadd.f32 %v2303_v29, %v1721_v42  ;;  %v4817_v34 = vsel %vm4523_vm11, %v7975_v37, 0.0  ;;  %v9361_v24 = vadd.s32 %v7809_v10, %v449_v52  ;;  %v5655_v20 = vsel %vm5361_vm12, %v7991_v59, 0.0 }
 0x17e   : > { %15486 = vst [vmem:[#allocation36_spill] sm:$0xff] %v9356_v19  ;;  %v6880_v38 = vadd.f32 %v6624_v28, %v6042_v8  ;;  %vm6199_vm13 = vcmp.eq.s32.totalorder %v9321_v56, %v7996_v1  ;;  %vm588_vm14 = vcmp.eq.s32.totalorder %v9321_v56, %v8058_v53  ;;  %vm1170_vm4 = vcmp.eq.s32.totalorder %v9321_v56, %v8039_v51 }
 0x17f   : > { %v3397_v14 = vadd.f32 %v3141_v26, %v2559_v3  ;;  %vm717_vm15 = vcmp.eq.s32.totalorder %v9361_v24, %v7910_v45  ;;  %vm1299_vm0 = vcmp.eq.s32.totalorder %v9361_v24, %v7916_v47  ;;  %vm2137_vm1 = vcmp.eq.s32.totalorder %v9361_v24, %v7937_v57 }
 0x180   : > { %7096 = vmatpush1.msra.mxu1 %v6880_v38  ;;  %v1011_v28 = vsel %vm717_vm15, %v7913_v46, 0.0  ;;  %v1593_v52 = vsel %vm1299_vm0, %v7919_v48, 0.0  ;;  %v2431_v29 = vsel %vm2137_vm1, %v7940_v58, 0.0  ;;  %vm2975_vm2 = vcmp.eq.s32.totalorder %v9361_v24, %v7944_v60 }
 0x181   : > { %v4235_v42 = vadd.f32 %v3979_v54, %v3397_v14  ;;  %v1849_v8 = vadd.f32 %v1593_v52, %v1011_v28  ;;  %vm3813_vm3 = vcmp.eq.s32.totalorder %v9361_v24, %v7961_v4  ;;  %v6493_v26 = vsel %vm6199_vm13, %v8005_v2, 0.0 }
 0x182   : > { %v3269_v3 = vsel %vm2975_vm2, %v7947_v61, 0.0  ;;  %v4107_v38 = vsel %vm3813_vm3, %v7967_v33, 0.0  ;;  %vm4651_vm5 = vcmp.eq.s32.totalorder %v9361_v24, %v7970_v36  ;;  %vm5489_vm6 = vcmp.eq.s32.totalorder %v9361_v24, %v7988_v55 }
 0x183   : > { %v5073_v63 = vadd.f32 %v4817_v34, %v4235_v42  ;;  %v2687_v0 = vadd.f32 %v2431_v29, %v1849_v8  ;;  %vm6327_vm7 = vcmp.eq.s32.totalorder %v9361_v24, %v7996_v1  ;;  %v4945_v54 = vsel %vm4651_vm5, %v7975_v37, 0.0 }
 0x184   : > { %v882_v14 = vsel %vm588_vm14, %v8061_v12, 0.0  ;;  %v1464_v28 = vsel %vm1170_vm4, %v8066_v15, 0.0  ;;  %vm2008_vm8 = vcmp.eq.s32.totalorder %v9321_v56, %v8047_v49  ;;  %v5783_v8 = vsel %vm5489_vm6, %v7991_v59, 0.0 }
 0x185   : > { %v5911_v34 = vadd.f32 %v5655_v20, %v5073_v63  ;;  %v3525_v52 = vadd.f32 %v3269_v3, %v2687_v0  ;;  %v1720_v29 = vadd.f32 %v1464_v28, %v882_v14  ;;  %v2302_v42 = vsel %vm2008_vm8, %v8071_v16, 0.0 }
 0x186   : > { %vm2846_vm9 = vcmp.eq.s32.totalorder %v9321_v56, %v8055_v7  ;;  %vm3684_vm10 = vcmp.eq.s32.totalorder %v9321_v56, %v8090_v5  ;;  %vm4522_vm11 = vcmp.eq.s32.totalorder %v9321_v56, %v8109_v23  ;;  %v6621_v0 = vsel %vm6327_vm7, %v8005_v2, 0.0 }
 0x187   : > { %v6749_v62 = vadd.f32 %v6493_v26, %v5911_v34  ;;  %v4363_v11 = vadd.f32 %v4107_v38, %v3525_v52  ;;  %v2558_v9 = vadd.f32 %v2302_v42, %v1720_v29  ;;  %v3140_v63 = vsel %vm2846_vm9, %v8087_v40, 0.0 }
 0x188   : > { %v3978_v20 = vsel %vm3684_vm10, %v8093_v30, 0.0  ;;  %v4816_v3 = vsel %vm4522_vm11, %v8112_v31, 0.0  ;;  %vm5360_vm12 = vcmp.eq.s32.totalorder %v9321_v56, %v8115_v32  ;;  %vm6198_vm13 = vcmp.eq.s32.totalorder %v9321_v56, %v8136_v43 }
 0x189   : > { %7026 = vmatprep.subr.mxu0 %v6749_v62  ;;  %v5201_v14 = vadd.f32 %v4945_v54, %v4363_v11  ;;  %v3396_v28 = vadd.f32 %v3140_v63, %v2558_v9  ;;  %vm716_vm14 = vcmp.eq.s32.totalorder %v9361_v24, %v8058_v53  ;;  %vm1298_vm15 = vcmp.eq.s32.totalorder %v9361_v24, %v8039_v51 }
 0x18a   : > { %v1010_v26 = vsel %vm716_vm14, %v8061_v12, 0.0  ;;  %vm2136_vm0 = vcmp.eq.s32.totalorder %v9361_v24, %v8047_v49  ;;  %vm2974_vm1 = vcmp.eq.s32.totalorder %v9361_v24, %v8055_v7  ;;  %v1592_v9 = vsel %vm1298_vm15, %v8066_v15, 0.0 }
 0x18b   : > { %v6039_v62 = vadd.f32 %v5783_v8, %v5201_v14  ;;  %v4234_v11 = vadd.f32 %v3978_v20, %v3396_v28  ;;  %v2430_v38 = vsel %vm2136_vm0, %v8071_v16, 0.0  ;;  %v5654_v54 = vsel %vm5360_vm12, %v8133_v35, 0.0 }
 0x18c   : > { %v1848_v34 = vadd.f32 %v1592_v9, %v1010_v26  ;;  %vm3812_vm2 = vcmp.eq.s32.totalorder %v9361_v24, %v8090_v5  ;;  %vm4650_vm3 = vcmp.eq.s32.totalorder %v9361_v24, %v8109_v23  ;;  %v6492_v42 = vsel %vm6198_vm13, %v8139_v39, 0.0 }
 0x18d   : > { %v6877_v52 = vadd.f32 %v6621_v0, %v6039_v62  ;;  %v5072_v29 = vadd.f32 %v4816_v3, %v4234_v11  ;;  %v3268_v8 = vsel %vm2974_vm1, %v8087_v40, 0.0  ;;  %v4106_v20 = vsel %vm3812_vm2, %v8093_v30, 0.0 }
 0x18e   : > { %v2686_v63 = vadd.f32 %v2430_v38, %v1848_v34  ;;  %v4944_v14 = vsel %vm4650_vm3, %v8112_v31, 0.0  ;;  %v9444_v28 = vadd.s32 %v7809_v10, %v9325_v22  ;;  %vm5488_vm4 = vcmp.eq.s32.totalorder %v9361_v24, %v8115_v32 }
 0x18f   : > { %7097 = vmatprep.subr.mxu1 %v6877_v52  ;;  %v5910_v26 = vadd.f32 %v5654_v54, %v5072_v29  ;;  %vm6326_vm5 = vcmp.eq.s32.totalorder %v9361_v24, %v8136_v43  ;;  %v9452_v0 = vadd.s32 %v7809_v10, %v9328_v44  ;;  %v5782_v54 = vsel %vm5488_vm4, %v8133_v35, 0.0 }
 0x190   : > { %v3524_v3 = vadd.f32 %v3268_v8, %v2686_v63  ;;  %vm585_vm6 = vcmp.eq.s32.totalorder %v9444_v28, %v7910_v45  ;;  %vm1167_vm7 = vcmp.eq.s32.totalorder %v9444_v28, %v7916_v47  ;;  %vm2005_vm8 = vcmp.eq.s32.totalorder %v9444_v28, %v7937_v57 }
 0x191   : > { %15487 = vst [vmem:[#allocation37_spill] sm:$0xff] %v9452_v0  ;;  %v6748_v22 = vadd.f32 %v6492_v42, %v5910_v26  ;;  %v879_v62 = vsel %vm585_vm6, %v7913_v46, 0.0  ;;  %v1461_v11 = vsel %vm1167_vm7, %v7919_v48, 0.0  ;;  %v2299_v9 = vsel %vm2005_vm8, %v7940_v58, 0.0 }
 0x192   : > { %v4362_v38 = vadd.f32 %v4106_v20, %v3524_v3  ;;  %v1717_v44 = vadd.f32 %v1461_v11, %v879_v62  ;;  %vm2843_vm9 = vcmp.eq.s32.totalorder %v9444_v28, %v7944_v60  ;;  %vm3681_vm10 = vcmp.eq.s32.totalorder %v9444_v28, %v7961_v4 }
 0x193   : > { %7027 = vmatpush1.msra.mxu0 %v6748_v22  ;;  %v6620_v34 = vsel %vm6326_vm5, %v8139_v39, 0.0  ;;  %v3137_v52 = vsel %vm2843_vm9, %v7947_v61, 0.0  ;;  %vm4519_vm11 = vcmp.eq.s32.totalorder %v9444_v28, %v7970_v36  ;;  %v3975_v8 = vsel %vm3681_vm10, %v7967_v33, 0.0 }
 0x194   : > { %v5200_v29 = vadd.f32 %v4944_v14, %v4362_v38  ;;  %v2555_v42 = vadd.f32 %v2299_v9, %v1717_v44  ;;  %vm5357_vm12 = vcmp.eq.s32.totalorder %v9444_v28, %v7988_v55  ;;  %v4813_v63 = vsel %vm4519_vm11, %v7975_v37, 0.0 }
 0x195   : > { %vm713_vm13 = vcmp.eq.s32.totalorder %v9452_v0, %v7910_v45  ;;  %vm1295_vm14 = vcmp.eq.s32.totalorder %v9452_v0, %v7916_v47  ;;  %vm2133_vm15 = vcmp.eq.s32.totalorder %v9452_v0, %v7937_v57  ;;  %vm6195_vm0 = vcmp.eq.s32.totalorder %v9444_v28, %v7996_v1 }
 0x196   : > { %v6038_v20 = vadd.f32 %v5782_v54, %v5200_v29  ;;  %v3393_v26 = vadd.f32 %v3137_v52, %v2555_v42  ;;  %v1007_v14 = vsel %vm713_vm13, %v7913_v46, 0.0  ;;  %v1589_v3 = vsel %vm1295_vm14, %v7919_v48, 0.0 }
 0x197   : > { %v2427_v22 = vsel %vm2133_vm15, %v7940_v58, 0.0  ;;  %vm2971_vm1 = vcmp.eq.s32.totalorder %v9452_v0, %v7944_v60  ;;  %vm3809_vm2 = vcmp.eq.s32.totalorder %v9452_v0, %v7961_v4  ;;  %v5651_v9 = vsel %vm5357_vm12, %v7991_v59, 0.0 }
 0x198   : > { %v6876_v62 = vadd.f32 %v6620_v34, %v6038_v20  ;;  %v4231_v11 = vadd.f32 %v3975_v8, %v3393_v26  ;;  %v1845_v38 = vadd.f32 %v1589_v3, %v1007_v14  ;;  %v6489_v44 = vsel %vm6195_vm0, %v8005_v2, 0.0 }
 0x199   : > { %v3265_v54 = vsel %vm2971_vm1, %v7947_v61, 0.0  ;;  %v4103_v52 = vsel %vm3809_vm2, %v7967_v33, 0.0  ;;  %vm4647_vm3 = vcmp.eq.s32.totalorder %v9452_v0, %v7970_v36  ;;  %vm5485_vm4 = vcmp.eq.s32.totalorder %v9452_v0, %v7988_v55 }
 0x19a   : > { %7098 = vmatpush1.msra.mxu1 %v6876_v62  ;;  %v5069_v29 = vadd.f32 %v4813_v63, %v4231_v11  ;;  %v2683_v42 = vadd.f32 %v2427_v22, %v1845_v38  ;;  %vm6323_vm5 = vcmp.eq.s32.totalorder %v9452_v0, %v7996_v1  ;;  %v4941_v34 = vsel %vm4647_vm3, %v7975_v37, 0.0 }
 0x19b   : > { %vm584_vm6 = vcmp.eq.s32.totalorder %v9444_v28, %v8058_v53  ;;  %vm1166_vm7 = vcmp.eq.s32.totalorder %v9444_v28, %v8039_v51  ;;  %vm2004_vm8 = vcmp.eq.s32.totalorder %v9444_v28, %v8047_v49  ;;  %vm2842_vm9 = vcmp.eq.s32.totalorder %v9444_v28, %v8055_v7 }
 0x19c   : > { %v5907_v8 = vadd.f32 %v5651_v9, %v5069_v29  ;;  %v3521_v63 = vadd.f32 %v3265_v54, %v2683_v42  ;;  %v878_v20 = vsel %vm584_vm6, %v8061_v12, 0.0  ;;  %v1460_v26 = vsel %vm1166_vm7, %v8066_v15, 0.0 }
 0x19d   : > { %v1716_v14 = vadd.f32 %v1460_v26, %v878_v20  ;;  %v2298_v3 = vsel %vm2004_vm8, %v8071_v16, 0.0  ;;  %vm3680_vm10 = vcmp.eq.s32.totalorder %v9444_v28, %v8090_v5  ;;  %v5779_v11 = vsel %vm5485_vm4, %v7991_v59, 0.0 }
 0x19e   : > { %v6745_v22 = vadd.f32 %v6489_v44, %v5907_v8  ;;  %v4359_v62 = vadd.f32 %v4103_v52, %v3521_v63  ;;  %v3136_v9 = vsel %vm2842_vm9, %v8087_v40, 0.0  ;;  %v6617_v38 = vsel %vm6323_vm5, %v8005_v2, 0.0 }
 0x19f   : > { %v2554_v54 = vadd.f32 %v2298_v3, %v1716_v14  ;;  %v3974_v29 = vsel %vm3680_vm10, %v8093_v30, 0.0  ;;  %vm4518_vm11 = vcmp.eq.s32.totalorder %v9444_v28, %v8109_v23  ;;  %vm5356_vm12 = vcmp.eq.s32.totalorder %v9444_v28, %v8115_v32 }
 0x1a0   : > { %7028 = vmatprep.subr.mxu0 %v6745_v22  ;;  %v5197_v44 = vadd.f32 %v4941_v34, %v4359_v62  ;;  %v4812_v52 = vsel %vm4518_vm11, %v8112_v31, 0.0  ;;  %vm6194_vm13 = vcmp.eq.s32.totalorder %v9444_v28, %v8136_v43  ;;  %vm712_vm14 = vcmp.eq.s32.totalorder %v9452_v0, %v8058_v53 }
 0x1a1   : > { %v3392_v42 = vadd.f32 %v3136_v9, %v2554_v54  ;;  %vm1294_vm15 = vcmp.eq.s32.totalorder %v9452_v0, %v8039_v51  ;;  %vm2132_vm0 = vcmp.eq.s32.totalorder %v9452_v0, %v8047_v49  ;;  %v1006_v34 = vsel %vm712_vm14, %v8061_v12, 0.0 }
 0x1a2   : > { %v6035_v8 = vadd.f32 %v5779_v11, %v5197_v44  ;;  %v1588_v63 = vsel %vm1294_vm15, %v8066_v15, 0.0  ;;  %v2426_v20 = vsel %vm2132_vm0, %v8071_v16, 0.0  ;;  %vm2970_vm1 = vcmp.eq.s32.totalorder %v9452_v0, %v8055_v7 }
 0x1a3   : > { %v4230_v26 = vadd.f32 %v3974_v29, %v3392_v42  ;;  %v1844_v14 = vadd.f32 %v1588_v63, %v1006_v34  ;;  %vm3808_vm2 = vcmp.eq.s32.totalorder %v9452_v0, %v8090_v5  ;;  %v5650_v22 = vsel %vm5356_vm12, %v8133_v35, 0.0 }
 0x1a4   : > { %v6873_v3 = vadd.f32 %v6617_v38, %v6035_v8  ;;  %v3264_v62 = vsel %vm2970_vm1, %v8087_v40, 0.0  ;;  %vm4646_vm3 = vcmp.eq.s32.totalorder %v9452_v0, %v8109_v23  ;;  %v6488_v9 = vsel %vm6194_vm13, %v8139_v39, 0.0 }
 0x1a5   : > { %v5068_v11 = vadd.f32 %v4812_v52, %v4230_v26  ;;  %v2682_v54 = vadd.f32 %v2426_v20, %v1844_v14  ;;  %vm5484_vm4 = vcmp.eq.s32.totalorder %v9452_v0, %v8115_v32  ;;  %v4102_v38 = vsel %vm3808_vm2, %v8093_v30, 0.0 }
 0x1a6   : > { %7099 = vmatprep.subr.mxu1 %v6873_v3  ;;  %v4940_v29 = vsel %vm4646_vm3, %v8112_v31, 0.0  ;;  %v5778_v44 = vsel %vm5484_vm4, %v8133_v35, 0.0  ;;  %v9566_v42 = vadd.s32 %v7809_v10, %v9331_v13  ;;  %vm6322_vm5 = vcmp.eq.s32.totalorder %v9452_v0, %v8136_v43 }
 0x1a7   : > { %v5906_v52 = vadd.f32 %v5650_v22, %v5068_v11  ;;  %v3520_v8 = vadd.f32 %v3264_v62, %v2682_v54  ;;  %v9572_v34 = vadd.s32 %v7809_v10, %v9349_v41  ;;  %v6616_v41 = vsel %vm6322_vm5, %v8139_v39, 0.0 }
 0x1a8   : > { %15488 = vst [vmem:[#allocation38_spill] sm:$0xff] %v9566_v42  ;;  %vm581_vm6 = vcmp.eq.s32.totalorder %v9566_v42, %v7910_v45  ;;  %vm1163_vm7 = vcmp.eq.s32.totalorder %v9566_v42, %v7916_v47  ;;  %vm2001_vm8 = vcmp.eq.s32.totalorder %v9566_v42, %v7937_v57  ;;  %vm2839_vm9 = vcmp.eq.s32.totalorder %v9566_v42, %v7944_v60 }
 0x1a9   : > { %15489 = vst [vmem:[#allocation39_spill] sm:$0xff] %v9572_v34  ;;  %v6744_v13 = vadd.f32 %v6488_v9, %v5906_v52  ;;  %v4358_v63 = vadd.f32 %v4102_v38, %v3520_v8  ;;  %v875_v20 = vsel %vm581_vm6, %v7913_v46, 0.0  ;;  %v1457_v26 = vsel %vm1163_vm7, %v7919_v48, 0.0 }
 0x1aa   : > { %v1713_v14 = vadd.f32 %v1457_v26, %v875_v20  ;;  %v2295_v3 = vsel %vm2001_vm8, %v7940_v58, 0.0  ;;  %vm3677_vm10 = vcmp.eq.s32.totalorder %v9566_v42, %v7961_v4  ;;  %v3133_v62 = vsel %vm2839_vm9, %v7947_v61, 0.0 }
 0x1ab   : > { %7029 = vmatpush1.msra.mxu0 %v6744_v13  ;;  %v5196_v22 = vadd.f32 %v4940_v29, %v4358_v63  ;;  %vm4515_vm11 = vcmp.eq.s32.totalorder %v9566_v42, %v7970_v36  ;;  %vm5353_vm12 = vcmp.eq.s32.totalorder %v9566_v42, %v7988_v55  ;;  %v3971_v9 = vsel %vm3677_vm10, %v7967_v33, 0.0 }
 0x1ac   : > { %v2551_v11 = vadd.f32 %v2295_v3, %v1713_v14  ;;  %v4809_v54 = vsel %vm4515_vm11, %v7975_v37, 0.0  ;;  %v5647_v38 = vsel %vm5353_vm12, %v7991_v59, 0.0  ;;  %vm6191_vm13 = vcmp.eq.s32.totalorder %v9566_v42, %v7996_v1 }
 0x1ad   : > { %v6034_v52 = vadd.f32 %v5778_v44, %v5196_v22  ;;  %vm709_vm14 = vcmp.eq.s32.totalorder %v9572_v34, %v7910_v45  ;;  %vm1291_vm15 = vcmp.eq.s32.totalorder %v9572_v34, %v7916_v47  ;;  %vm2129_vm0 = vcmp.eq.s32.totalorder %v9572_v34, %v7937_v57 }
 0x1ae   : > { %v3389_v29 = vadd.f32 %v3133_v62, %v2551_v11  ;;  %v1003_v8 = vsel %vm709_vm14, %v7913_v46, 0.0  ;;  %v1585_v13 = vsel %vm1291_vm15, %v7919_v48, 0.0  ;;  %v2423_v44 = vsel %vm2129_vm0, %v7940_v58, 0.0 }
 0x1af   : > { %v6872_v63 = vadd.f32 %v6616_v41, %v6034_v52  ;;  %v1841_v20 = vadd.f32 %v1585_v13, %v1003_v8  ;;  %vm2967_vm1 = vcmp.eq.s32.totalorder %v9572_v34, %v7944_v60  ;;  %vm3805_vm2 = vcmp.eq.s32.totalorder %v9572_v34, %v7961_v4 }
 0x1b0   : > { %v4227_v26 = vadd.f32 %v3971_v9, %v3389_v29  ;;  %v3261_v14 = vsel %vm2967_vm1, %v7947_v61, 0.0  ;;  %vm4643_vm3 = vcmp.eq.s32.totalorder %v9572_v34, %v7970_v36  ;;  %v6485_v41 = vsel %vm6191_vm13, %v8005_v2, 0.0 }
 0x1b1   : > { %7100 = vmatpush1.msra.mxu1 %v6872_v63  ;;  %v2679_v3 = vadd.f32 %v2423_v44, %v1841_v20  ;;  %v4099_v22 = vsel %vm3805_vm2, %v7967_v33, 0.0  ;;  %vm5481_vm4 = vcmp.eq.s32.totalorder %v9572_v34, %v7988_v55  ;;  %v4937_v11 = vsel %vm4643_vm3, %v7975_v37, 0.0 }
 0x1b2   : > { %v5065_v62 = vadd.f32 %v4809_v54, %v4227_v26  ;;  %v5775_v9 = vsel %vm5481_vm4, %v7991_v59, 0.0  ;;  %vm580_vm5 = vcmp.eq.s32.totalorder %v9566_v42, %v8058_v53  ;;  %vm6319_vm6 = vcmp.eq.s32.totalorder %v9572_v34, %v7996_v1 }
 0x1b3   : > { %v3517_v52 = vadd.f32 %v3261_v14, %v2679_v3  ;;  %v874_v29 = vsel %vm580_vm5, %v8061_v12, 0.0  ;;  %vm1162_vm7 = vcmp.eq.s32.totalorder %v9566_v42, %v8039_v51  ;;  %vm577_vm8 = vcmp.eq.s32.totalorder %v9356_v19, %v7910_v45 }
 0x1b4   : > { %v5903_v54 = vadd.f32 %v5647_v38, %v5065_v62  ;;  %v1456_v8 = vsel %vm1162_vm7, %v8066_v15, 0.0  ;;  %vm2000_vm9 = vcmp.eq.s32.totalorder %v9566_v42, %v8047_v49  ;;  %vm2838_vm10 = vcmp.eq.s32.totalorder %v9566_v42, %v8055_v7 }
 0x1b5   : > { %v4355_v13 = vadd.f32 %v4099_v22, %v3517_v52  ;;  %v1712_v63 = vadd.f32 %v1456_v8, %v874_v29  ;;  %v2294_v20 = vsel %vm2000_vm9, %v8071_v16, 0.0  ;;  %v3132_v44 = vsel %vm2838_vm10, %v8087_v40, 0.0 }
 0x1b6   : > { %v6741_v26 = vadd.f32 %v6485_v41, %v5903_v54  ;;  %vm3676_vm11 = vcmp.eq.s32.totalorder %v9566_v42, %v8090_v5  ;;  %vm4514_vm12 = vcmp.eq.s32.totalorder %v9566_v42, %v8109_v23  ;;  %vm5352_vm13 = vcmp.eq.s32.totalorder %v9566_v42, %v8115_v32 }
 0x1b7   : > { %v5193_v38 = vadd.f32 %v4937_v11, %v4355_v13  ;;  %v6613_v14 = vsel %vm6319_vm6, %v8005_v2, 0.0  ;;  %v2550_v3 = vadd.f32 %v2294_v20, %v1712_v63  ;;  %v3970_v22 = vsel %vm3676_vm11, %v8093_v30, 0.0 }
 0x1b8   : > { %7030 = vmatprep.subr.mxu0 %v6741_v26  ;;  %v4808_v41 = vsel %vm4514_vm12, %v8112_v31, 0.0  ;;  %v5646_v62 = vsel %vm5352_vm13, %v8133_v35, 0.0  ;;  %vm708_vm14 = vcmp.eq.s32.totalorder %v9572_v34, %v8058_v53  ;;  %vm1290_vm15 = vcmp.eq.s32.totalorder %v9572_v34, %v8039_v51 }
 0x1b9   : > { %v6031_v11 = vadd.f32 %v5775_v9, %v5193_v38  ;;  %v3388_v52 = vadd.f32 %v3132_v44, %v2550_v3  ;;  %vm6190_vm0 = vcmp.eq.s32.totalorder %v9566_v42, %v8136_v43  ;;  %v1002_v29 = vsel %vm708_vm14, %v8061_v12, 0.0 }
 0x1ba   : > { %v1584_v54 = vsel %vm1290_vm15, %v8066_v15, 0.0  ;;  %vm2128_vm1 = vcmp.eq.s32.totalorder %v9572_v34, %v8047_v49  ;;  %vm2966_vm2 = vcmp.eq.s32.totalorder %v9572_v34, %v8055_v7  ;;  %vm3804_vm3 = vcmp.eq.s32.totalorder %v9572_v34, %v8090_v5 }
 0x1bb   : > { %v6869_v8 = vadd.f32 %v6613_v14, %v6031_v11  ;;  %v4226_v13 = vadd.f32 %v3970_v22, %v3388_v52  ;;  %v1840_v9 = vadd.f32 %v1584_v54, %v1002_v29  ;;  %v2422_v63 = vsel %vm2128_vm1, %v8071_v16, 0.0 }
 0x1bc   : > { %v6484_v20 = vsel %vm6190_vm0, %v8139_v39, 0.0  ;;  %v3260_v44 = vsel %vm2966_vm2, %v8087_v40, 0.0  ;;  %vm4642_vm4 = vcmp.eq.s32.totalorder %v9572_v34, %v8109_v23  ;;  %vm5480_vm5 = vcmp.eq.s32.totalorder %v9572_v34, %v8115_v32 }
 0x1bd   : > { %7101 = vmatprep.subr.mxu1 %v6869_v8  ;;  %v5064_v26 = vadd.f32 %v4808_v41, %v4226_v13  ;;  %v2678_v38 = vadd.f32 %v2422_v63, %v1840_v9  ;;  %v4098_v3 = vsel %vm3804_vm3, %v8093_v30, 0.0  ;;  %v4936_v14 = vsel %vm4642_vm4, %v8112_v31, 0.0 }
 0x1be   : > { %vm6318_vm6 = vcmp.eq.s32.totalorder %v9572_v34, %v8136_v43  ;;  %v871_v22 = vsel %vm577_vm8, %v7913_v46, 0.0  ;;  %vm1159_vm7 = vcmp.eq.s32.totalorder %v9356_v19, %v7916_v47  ;;  %vm1997_vm9 = vcmp.eq.s32.totalorder %v9356_v19, %v7937_v57 }
 0x1bf   : > { %v5902_v41 = vadd.f32 %v5646_v62, %v5064_v26  ;;  %v3516_v11 = vadd.f32 %v3260_v44, %v2678_v38  ;;  %v5774_v52 = vsel %vm5480_vm5, %v8133_v35, 0.0  ;;  %v1453_v29 = vsel %vm1159_vm7, %v7919_v48, 0.0 }
 0x1c0   : > { %v1709_v54 = vadd.f32 %v1453_v29, %v871_v22  ;;  %v2291_v8 = vsel %vm1997_vm9, %v7940_v58, 0.0  ;;  %vm2835_vm10 = vcmp.eq.s32.totalorder %v9356_v19, %v7944_v60  ;;  %vm3673_vm8 = vcmp.eq.s32.totalorder %v9356_v19, %v7961_v4 }
 0x1c1   : > { %v6740_v13 = vadd.f32 %v6484_v20, %v5902_v41  ;;  %v4354_v9 = vadd.f32 %v4098_v3, %v3516_v11  ;;  %v6612_v63 = vsel %vm6318_vm6, %v8139_v39, 0.0  ;;  %v3129_v62 = vsel %vm2835_vm10, %v7947_v61, 0.0 }
 0x1c2   : > { %v2547_v44 = vadd.f32 %v2291_v8, %v1709_v54  ;;  %v3967_v26 = vsel %vm3673_vm8, %v7967_v33, 0.0  ;;  %vm4511_vm11 = vcmp.eq.s32.totalorder %v9356_v19, %v7970_v36  ;;  %vm5349_vm12 = vcmp.eq.s32.totalorder %v9356_v19, %v7988_v55 }
 0x1c3   : > { %7031 = vmatpush1.msra.mxu0 %v6740_v13  ;;  %v5192_v38 = vadd.f32 %v4936_v14, %v4354_v9  ;;  %v4805_v22 = vsel %vm4511_vm11, %v7975_v37, 0.0  ;;  %v5643_v20 = vsel %vm5349_vm12, %v7991_v59, 0.0  ;;  %vm6187_vm13 = vcmp.eq.s32.totalorder %v9356_v19, %v7996_v1 }
 0x1c4   : > { %v3385_v3 = vadd.f32 %v3129_v62, %v2547_v44  ;;  %v446_v41 = vadd.s32 256, %v7805_v6  ;;  %vm576_vm14 = vcmp.eq.s32.totalorder %v9356_v19, %v8058_v53  ;;  %vm1158_vm15 = vcmp.eq.s32.totalorder %v9356_v19, %v8039_v51 }
 0x1c5   : > { %v6030_v11 = vadd.f32 %v5774_v52, %v5192_v38  ;;  %v870_v29 = vsel %vm576_vm14, %v8061_v12, 0.0  ;;  %v1452_v14 = vsel %vm1158_vm15, %v8066_v15, 0.0  ;;  %vm1996_vm0 = vcmp.eq.s32.totalorder %v9356_v19, %v8047_v49 }
 0x1c6   : > { %v4223_v54 = vadd.f32 %v3967_v26, %v3385_v3  ;;  %v6481_v8 = vsel %vm6187_vm13, %v8005_v2, 0.0  ;;  %v9714_v13 = vadd.s32 %v7809_v10, %v446_v41  ;;  %v1708_v9 = vadd.f32 %v1452_v14, %v870_v29 }
 0x1c7   : > { %v6868_v62 = vadd.f32 %v6612_v63, %v6030_v11  ;;  %v2290_v44 = vsel %vm1996_vm0, %v8071_v16, 0.0  ;;  %vm2834_vm1 = vcmp.eq.s32.totalorder %v9356_v19, %v8055_v7  ;;  %vm3672_vm2 = vcmp.eq.s32.totalorder %v9356_v19, %v8090_v5 }
 0x1c8   : > { %15490 = vst [vmem:[#allocation40_spill] sm:$0xff] %v9714_v13  ;;  %v5061_v52 = vadd.f32 %v4805_v22, %v4223_v54  ;;  %vm705_vm3 = vcmp.eq.s32.totalorder %v9714_v13, %v7910_v45  ;;  %vm1287_vm4 = vcmp.eq.s32.totalorder %v9714_v13, %v7916_v47  ;;  %vm2125_vm5 = vcmp.eq.s32.totalorder %v9714_v13, %v7937_v57 }
 0x1c9   : > { %7102 = vmatpush1.msra.mxu1 %v6868_v62  ;;  %v999_v63 = vsel %vm705_vm3, %v7913_v46, 0.0  ;;  %v1581_v26 = vsel %vm1287_vm4, %v7919_v48, 0.0  ;;  %v2419_v38 = vsel %vm2125_vm5, %v7940_v58, 0.0  ;;  %vm2963_vm6 = vcmp.eq.s32.totalorder %v9714_v13, %v7944_v60 }
 0x1ca   : > { %v5899_v22 = vadd.f32 %v5643_v20, %v5061_v52  ;;  %v1837_v3 = vadd.f32 %v1581_v26, %v999_v63  ;;  %vm3801_vm7 = vcmp.eq.s32.totalorder %v9714_v13, %v7961_v4  ;;  %vm4510_vm9 = vcmp.eq.s32.totalorder %v9356_v19, %v8109_v23 }
 0x1cb   : > { %v3257_v41 = vsel %vm2963_vm6, %v7947_v61, 0.0  ;;  %vm4639_vm10 = vcmp.eq.s32.totalorder %v9714_v13, %v7970_v36  ;;  %vm5477_vm8 = vcmp.eq.s32.totalorder %v9714_v13, %v7988_v55  ;;  %vm6315_vm11 = vcmp.eq.s32.totalorder %v9714_v13, %v7996_v1 }
 0x1cc   : > { %v6737_v11 = vadd.f32 %v6481_v8, %v5899_v22  ;;  %v2675_v20 = vadd.f32 %v2419_v38, %v1837_v3  ;;  %v4095_v29 = vsel %vm3801_vm7, %v7967_v33, 0.0  ;;  %v4933_v14 = vsel %vm4639_vm10, %v7975_v37, 0.0 }
 0x1cd   : > { %v5771_v54 = vsel %vm5477_vm8, %v7991_v59, 0.0  ;;  %v2546_v62 = vadd.f32 %v2290_v44, %v1708_v9  ;;  %v3128_v52 = vsel %vm2834_vm1, %v8087_v40, 0.0  ;;  %v6609_v26 = vsel %vm6315_vm11, %v8005_v2, 0.0 }
 0x1ce   : > { %7032 = vmatprep.subr.mxu0 %v6737_v11  ;;  %v3513_v63 = vadd.f32 %v3257_v41, %v2675_v20  ;;  %v3966_v8 = vsel %vm3672_vm2, %v8093_v30, 0.0  ;;  %v4804_v38 = vsel %vm4510_vm9, %v8112_v31, 0.0  ;;  %vm5348_vm12 = vcmp.eq.s32.totalorder %v9356_v19, %v8115_v32 }
 0x1cf   : > { %v3384_v9 = vadd.f32 %v3128_v52, %v2546_v62  ;;  %vm6186_vm13 = vcmp.eq.s32.totalorder %v9356_v19, %v8136_v43  ;;  %vm704_vm14 = vcmp.eq.s32.totalorder %v9714_v13, %v8058_v53  ;;  %vm1286_vm15 = vcmp.eq.s32.totalorder %v9714_v13, %v8039_v51 }
 0x1d0   : > { %v4351_v44 = vadd.f32 %v4095_v29, %v3513_v63  ;;  %v998_v22 = vsel %vm704_vm14, %v8061_v12, 0.0  ;;  %vm2124_vm0 = vcmp.eq.s32.totalorder %v9714_v13, %v8047_v49  ;;  %v1580_v41 = vsel %vm1286_vm15, %v8066_v15, 0.0 }
 0x1d1   : > { %v4222_v3 = vadd.f32 %v3966_v8, %v3384_v9  ;;  %v2418_v11 = vsel %vm2124_vm0, %v8071_v16, 0.0  ;;  %vm2962_vm1 = vcmp.eq.s32.totalorder %v9714_v13, %v8055_v7  ;;  %v5642_v62 = vsel %vm5348_vm12, %v8133_v35, 0.0 }
 0x1d2   : > { %v5189_v20 = vadd.f32 %v4933_v14, %v4351_v44  ;;  %v1836_v29 = vadd.f32 %v1580_v41, %v998_v22  ;;  %vm3800_vm2 = vcmp.eq.s32.totalorder %v9714_v13, %v8090_v5  ;;  %v6480_v63 = vsel %vm6186_vm13, %v8139_v39, 0.0 }
 0x1d3   : > { %v5060_v52 = vadd.f32 %v4804_v38, %v4222_v3  ;;  %v3256_v19 = vsel %vm2962_vm1, %v8087_v40, 0.0  ;;  %vm4638_vm3 = vcmp.eq.s32.totalorder %v9714_v13, %v8109_v23  ;;  %v4094_v34 = vsel %vm3800_vm2, %v8093_v30, 0.0 }
 0x1d4   : > { %v6027_v8 = vadd.f32 %v5771_v54, %v5189_v20  ;;  %v2674_v9 = vadd.f32 %v2418_v11, %v1836_v29  ;;  %vm5476_vm4 = vcmp.eq.s32.totalorder %v9714_v13, %v8115_v32  ;;  %vm6314_vm5 = vcmp.eq.s32.totalorder %v9714_v13, %v8136_v43 }
 0x1d5   : > { %v5898_v14 = vadd.f32 %v5642_v62, %v5060_v52  ;;  %v445_v38 = vadd.s32 248, %v7805_v6  ;;  %v477_v44 = vadd.s32 504, %v7805_v6  ;;  %v4932_v41 = vsel %vm4638_vm3, %v8112_v31, 0.0 }
 0x1d6   : > { %v6865_v22 = vadd.f32 %v6609_v26, %v6027_v8  ;;  %v3512_v3 = vadd.f32 %v3256_v19, %v2674_v9  ;;  %v444_v54 = vadd.s32 240, %v7805_v6  ;;  %v5770_v20 = vsel %vm5476_vm4, %v8133_v35, 0.0 }
 0x1d7   : > { %v6736_v11 = vadd.f32 %v6480_v63, %v5898_v14  ;;  %v6608_v29 = vsel %vm6314_vm5, %v8139_v39, 0.0  ;;  %v9793_v62 = vadd.s32 %v7809_v10, %v445_v38  ;;  %v9796_v13 = vadd.s32 %v7809_v10, %v477_v44 }
 0x1d8   : > { %7103 = vmatprep.subr.mxu1 %v6865_v22  ;;  %v4350_v52 = vadd.f32 %v4094_v34, %v3512_v3  ;;  %v9799_v26 = vadd.s32 %v7809_v10, %v444_v54  ;;  %v9802_v19 = vadd.s32 496, %v7805_v6  ;;  %v9820_v38 = vadd.s32 232, %v7805_v6 }
 0x1d9   : > { %15491 = vst [vmem:[#allocation41_spill] sm:$0xff] %v9793_v62  ;;  %15492 = vst [vmem:[#allocation42_spill] sm:$0xff] %v9796_v13  ;;  %7033 = vmatpush1.msra.mxu0 %v6736_v11  ;;  %vm701_vm6 = vcmp.eq.s32.totalorder %v9793_v62, %v7910_v45  ;;  %vm1283_vm7 = vcmp.eq.s32.totalorder %v9793_v62, %v7916_v47  ;;  %vm2121_vm9 = vcmp.eq.s32.totalorder %v9793_v62, %v7937_v57 }
 0x1da   : > { %15493 = vst [vmem:[#allocation43_spill] sm:$0xff] %v9799_v26  ;;  %vm2959_vm10 = vcmp.eq.s32.totalorder %v9793_v62, %v7944_v60  ;;  %v5188_v34 = vadd.f32 %v4932_v41, %v4350_v52  ;;  %v995_v63 = vsel %vm701_vm6, %v7913_v46, 0.0  ;;  %v1577_v8 = vsel %vm1283_vm7, %v7919_v48, 0.0 }
 0x1db   : > { %v2415_v9 = vsel %vm2121_vm9, %v7940_v58, 0.0  ;;  %v1833_v14 = vadd.f32 %v1577_v8, %v995_v63  ;;  %vm3797_vm8 = vcmp.eq.s32.totalorder %v9793_v62, %v7961_v4  ;;  %vm4635_vm11 = vcmp.eq.s32.totalorder %v9793_v62, %v7970_v36 }
 0x1dc   : > { %v6026_v44 = vadd.f32 %v5770_v20, %v5188_v34  ;;  %v3253_v22 = vsel %vm2959_vm10, %v7947_v61, 0.0  ;;  %v4091_v3 = vsel %vm3797_vm8, %v7967_v33, 0.0  ;;  %v9825_v41 = vadd.s32 488, %v7805_v6 }
 0x1dd   : > { %v2671_v54 = vadd.f32 %v2415_v9, %v1833_v14  ;;  %v4929_v11 = vsel %vm4635_vm11, %v7975_v37, 0.0  ;;  %vm5473_vm12 = vcmp.eq.s32.totalorder %v9793_v62, %v7988_v55  ;;  %vm829_vm13 = vcmp.eq.s32.totalorder %v9796_v13, %v7910_v45 }
 0x1de   : > { %v6864_v52 = vadd.f32 %v6608_v29, %v6026_v44  ;;  %vm6311_vm14 = vcmp.eq.s32.totalorder %v9793_v62, %v7996_v1  ;;  %v1123_v20 = vsel %vm829_vm13, %v7913_v46, 0.0  ;;  %vm1411_vm15 = vcmp.eq.s32.totalorder %v9796_v13, %v7916_v47 }
 0x1df   : > { %v3509_v34 = vadd.f32 %v3253_v22, %v2671_v54  ;;  %v1705_v63 = vsel %vm1411_vm15, %v7919_v48, 0.0  ;;  %vm2249_vm0 = vcmp.eq.s32.totalorder %v9796_v13, %v7937_v57  ;;  %vm3087_vm1 = vcmp.eq.s32.totalorder %v9796_v13, %v7944_v60 }
 0x1e0   : > { %7104 = vmatpush1.msra.mxu1 %v6864_v52  ;;  %v5767_v29 = vsel %vm5473_vm12, %v7991_v59, 0.0  ;;  %v1961_v8 = vadd.f32 %v1705_v63, %v1123_v20  ;;  %v2543_v9 = vsel %vm2249_vm0, %v7940_v58, 0.0  ;;  %vm3925_vm2 = vcmp.eq.s32.totalorder %v9796_v13, %v7961_v4 }
 0x1e1   : > { %v4347_v14 = vadd.f32 %v4091_v3, %v3509_v34  ;;  %v6605_v44 = vsel %vm6311_vm14, %v8005_v2, 0.0  ;;  %v3381_v22 = vsel %vm3087_vm1, %v7947_v61, 0.0  ;;  %vm4763_vm3 = vcmp.eq.s32.totalorder %v9796_v13, %v7970_v36 }
 0x1e2   : > { %v2799_v54 = vadd.f32 %v2543_v9, %v1961_v8  ;;  %v4219_v42 = vsel %vm3925_vm2, %v7967_v33, 0.0  ;;  %v5057_v52 = vsel %vm4763_vm3, %v7975_v37, 0.0  ;;  %vm5601_vm4 = vcmp.eq.s32.totalorder %v9796_v13, %v7988_v55 }
 0x1e3   : > { %v5185_v20 = vadd.f32 %v4929_v11, %v4347_v14  ;;  %vm6439_vm5 = vcmp.eq.s32.totalorder %v9796_v13, %v7996_v1  ;;  %vm700_vm6 = vcmp.eq.s32.totalorder %v9793_v62, %v8058_v53  ;;  %vm1282_vm7 = vcmp.eq.s32.totalorder %v9793_v62, %v8039_v51 }
 0x1e4   : > { %v3637_v3 = vadd.f32 %v3381_v22, %v2799_v54  ;;  %v994_v34 = vsel %vm700_vm6, %v8061_v12, 0.0  ;;  %v1576_v63 = vsel %vm1282_vm7, %v8066_v15, 0.0  ;;  %vm2120_vm9 = vcmp.eq.s32.totalorder %v9793_v62, %v8047_v49 }
 0x1e5   : > { %v6023_v8 = vadd.f32 %v5767_v29, %v5185_v20  ;;  %v1832_v9 = vadd.f32 %v1576_v63, %v994_v34  ;;  %v2414_v11 = vsel %vm2120_vm9, %v8071_v16, 0.0  ;;  %vm2958_vm10 = vcmp.eq.s32.totalorder %v9793_v62, %v8055_v7 }
 0x1e6   : > { %v4475_v14 = vadd.f32 %v4219_v42, %v3637_v3  ;;  %v3252_v0 = vsel %vm2958_vm10, %v8087_v40, 0.0  ;;  %vm3796_vm8 = vcmp.eq.s32.totalorder %v9793_v62, %v8090_v5  ;;  %vm4634_vm11 = vcmp.eq.s32.totalorder %v9793_v62, %v8109_v23 }
 0x1e7   : > { %v6861_v22 = vadd.f32 %v6605_v44, %v6023_v8  ;;  %v5895_v29 = vsel %vm5601_vm4, %v7991_v59, 0.0  ;;  %v6733_v54 = vsel %vm6439_vm5, %v8005_v2, 0.0  ;;  %v2670_v42 = vadd.f32 %v2414_v11, %v1832_v9 }
 0x1e8   : > { %v5313_v20 = vadd.f32 %v5057_v52, %v4475_v14  ;;  %v4090_v3 = vsel %vm3796_vm8, %v8093_v30, 0.0  ;;  %vm5472_vm12 = vcmp.eq.s32.totalorder %v9793_v62, %v8115_v32  ;;  %vm828_vm13 = vcmp.eq.s32.totalorder %v9796_v13, %v8058_v53 }
 0x1e9   : > { %7034 = vmatprep.subr.mxu0 %v6861_v22  ;;  %v3508_v44 = vadd.f32 %v3252_v0, %v2670_v42  ;;  %v4928_v34 = vsel %vm4634_vm11, %v8112_v31, 0.0  ;;  %vm6310_vm14 = vcmp.eq.s32.totalorder %v9793_v62, %v8136_v43  ;;  %v1122_v63 = vsel %vm828_vm13, %v8061_v12, 0.0 }
 0x1ea   : > { %v6151_v8 = vadd.f32 %v5895_v29, %v5313_v20  ;;  %vm1410_vm15 = vcmp.eq.s32.totalorder %v9796_v13, %v8039_v51  ;;  %vm2248_vm0 = vcmp.eq.s32.totalorder %v9796_v13, %v8047_v49  ;;  %vm3086_vm1 = vcmp.eq.s32.totalorder %v9796_v13, %v8055_v7 }
 0x1eb   : > { %v4346_v52 = vadd.f32 %v4090_v3, %v3508_v44  ;;  %v5766_v0 = vsel %vm5472_vm12, %v8133_v35, 0.0  ;;  %v1704_v9 = vsel %vm1410_vm15, %v8066_v15, 0.0  ;;  %v2542_v11 = vsel %vm2248_vm0, %v8071_v16, 0.0 }
 0x1ec   : > { %v6989_v14 = vadd.f32 %v6733_v54, %v6151_v8  ;;  %v1960_v22 = vadd.f32 %v1704_v9, %v1122_v63  ;;  %vm3924_vm2 = vcmp.eq.s32.totalorder %v9796_v13, %v8090_v5  ;;  %vm4762_vm3 = vcmp.eq.s32.totalorder %v9796_v13, %v8109_v23 }
 0x1ed   : > { %v5184_v29 = vadd.f32 %v4928_v34, %v4346_v52  ;;  %v6604_v42 = vsel %vm6310_vm14, %v8139_v39, 0.0  ;;  %v3380_v20 = vsel %vm3086_vm1, %v8087_v40, 0.0  ;;  %v4218_v3 = vsel %vm3924_vm2, %v8093_v30, 0.0 }
 0x1ee   : > { %7105 = vmatprep.subr.mxu1 %v6989_v14  ;;  %v2798_v44 = vadd.f32 %v2542_v11, %v1960_v22  ;;  %v5056_v62 = vsel %vm4762_vm3, %v8112_v31, 0.0  ;;  %vm5600_vm4 = vcmp.eq.s32.totalorder %v9796_v13, %v8115_v32  ;;  %vm697_vm5 = vcmp.eq.s32.totalorder %v9799_v26, %v7910_v45 }
 0x1ef   : > { %v6022_v54 = vadd.f32 %v5766_v0, %v5184_v29  ;;  %vm6438_vm6 = vcmp.eq.s32.totalorder %v9796_v13, %v8136_v43  ;;  %v991_v34 = vsel %vm697_vm5, %v7913_v46, 0.0  ;;  %vm1279_vm7 = vcmp.eq.s32.totalorder %v9799_v26, %v7916_v47 }
 0x1f0   : > { %v3636_v63 = vadd.f32 %v3380_v20, %v2798_v44  ;;  %v1573_v8 = vsel %vm1279_vm7, %v7919_v48, 0.0  ;;  %vm2117_vm9 = vcmp.eq.s32.totalorder %v9799_v26, %v7937_v57  ;;  %vm2955_vm10 = vcmp.eq.s32.totalorder %v9799_v26, %v7944_v60 }
 0x1f1   : > { %v6860_v52 = vadd.f32 %v6604_v42, %v6022_v54  ;;  %v1829_v9 = vadd.f32 %v1573_v8, %v991_v34  ;;  %v2411_v0 = vsel %vm2117_vm9, %v7940_v58, 0.0  ;;  %v3249_v11 = vsel %vm2955_vm10, %v7947_v61, 0.0 }
 0x1f2   : > { %v4474_v14 = vadd.f32 %v4218_v3, %v3636_v63  ;;  %vm3793_vm8 = vcmp.eq.s32.totalorder %v9799_v26, %v7961_v4  ;;  %vm4631_vm11 = vcmp.eq.s32.totalorder %v9799_v26, %v7970_v36  ;;  %vm5469_vm12 = vcmp.eq.s32.totalorder %v9799_v26, %v7988_v55 }
 0x1f3   : > { %7035 = vmatpush2.msra.mxu0 %v6860_v52  ;;  %v5894_v22 = vsel %vm5600_vm4, %v8133_v35, 0.0  ;;  %v6732_v29 = vsel %vm6438_vm6, %v8139_v39, 0.0  ;;  %v2667_v42 = vadd.f32 %v2411_v0, %v1829_v9  ;;  %v4087_v20 = vsel %vm3793_vm8, %v7967_v33, 0.0 }
 0x1f4   : > { %v5312_v3 = vadd.f32 %v5056_v62, %v4474_v14  ;;  %v4925_v44 = vsel %vm4631_vm11, %v7975_v37, 0.0  ;;  %v5763_v54 = vsel %vm5469_vm12, %v7991_v59, 0.0  ;;  %v9941_v34 = vadd.s32 %v7809_v10, %v9802_v19 }
 0x1f5   : > { %v3505_v63 = vadd.f32 %v3249_v11, %v2667_v42  ;;  %vm6307_vm13 = vcmp.eq.s32.totalorder %v9799_v26, %v7996_v1  ;;  %vm696_vm14 = vcmp.eq.s32.totalorder %v9799_v26, %v8058_v53  ;;  %vm1278_vm15 = vcmp.eq.s32.totalorder %v9799_v26, %v8039_v51 }
 0x1f6   : > { %15494 = vst [vmem:[#allocation44_spill] sm:$0xff] %v9941_v34  ;;  %v6150_v8 = vadd.f32 %v5894_v22, %v5312_v3  ;;  %vm825_vm0 = vcmp.eq.s32.totalorder %v9941_v34, %v7910_v45  ;;  %vm1407_vm1 = vcmp.eq.s32.totalorder %v9941_v34, %v7916_v47  ;;  %vm2245_vm2 = vcmp.eq.s32.totalorder %v9941_v34, %v7937_v57 }
 0x1f7   : > { %v4343_v62 = vadd.f32 %v4087_v20, %v3505_v63  ;;  %v1119_v19 = vsel %vm825_vm0, %v7913_v46, 0.0  ;;  %v1701_v52 = vsel %vm1407_vm1, %v7919_v48, 0.0  ;;  %v2539_v9 = vsel %vm2245_vm2, %v7940_v58, 0.0 }
 0x1f8   : > { %v6988_v0 = vadd.f32 %v6732_v29, %v6150_v8  ;;  %v1957_v11 = vadd.f32 %v1701_v52, %v1119_v19  ;;  %vm3083_vm3 = vcmp.eq.s32.totalorder %v9941_v34, %v7944_v60  ;;  %vm3921_vm4 = vcmp.eq.s32.totalorder %v9941_v34, %v7961_v4 }
 0x1f9   : > { %v5181_v14 = vadd.f32 %v4925_v44, %v4343_v62  ;;  %v3377_v22 = vsel %vm3083_vm3, %v7947_v61, 0.0  ;;  %vm4759_vm5 = vcmp.eq.s32.totalorder %v9941_v34, %v7970_v36  ;;  %v990_v42 = vsel %vm696_vm14, %v8061_v12, 0.0 }
 0x1fa   : > { %7106 = vmatpush2.msra.mxu1 %v6988_v0  ;;  %v6601_v29 = vsel %vm6307_vm13, %v8005_v2, 0.0  ;;  %v2795_v20 = vadd.f32 %v2539_v9, %v1957_v11  ;;  %v4215_v3 = vsel %vm3921_vm4, %v7967_v33, 0.0  ;;  %v5053_v44 = vsel %vm4759_vm5, %v7975_v37, 0.0 }
 0x1fb   : > { %v6019_v63 = vadd.f32 %v5763_v54, %v5181_v14  ;;  %vm5597_vm6 = vcmp.eq.s32.totalorder %v9941_v34, %v7988_v55  ;;  %vm6435_vm7 = vcmp.eq.s32.totalorder %v9941_v34, %v7996_v1  ;;  %v1572_v8 = vsel %vm1278_vm15, %v8066_v15, 0.0 }
 0x1fc   : > { %v3633_v62 = vadd.f32 %v3377_v22, %v2795_v20  ;;  %v1828_v19 = vadd.f32 %v1572_v8, %v990_v42  ;;  %vm2116_vm9 = vcmp.eq.s32.totalorder %v9799_v26, %v8047_v49  ;;  %vm2954_vm10 = vcmp.eq.s32.totalorder %v9799_v26, %v8055_v7 }
 0x1fd   : > { %v6857_v54 = vadd.f32 %v6601_v29, %v6019_v63  ;;  %v2410_v52 = vsel %vm2116_vm9, %v8071_v16, 0.0  ;;  %v3248_v9 = vsel %vm2954_vm10, %v8087_v40, 0.0  ;;  %vm3792_vm8 = vcmp.eq.s32.totalorder %v9799_v26, %v8090_v5 }
 0x1fe   : > { %v4471_v0 = vadd.f32 %v4215_v3, %v3633_v62  ;;  %v5891_v11 = vsel %vm5597_vm6, %v7991_v59, 0.0  ;;  %v2666_v14 = vadd.f32 %v2410_v52, %v1828_v19  ;;  %vm4630_vm11 = vcmp.eq.s32.totalorder %v9799_v26, %v8109_v23 }
 0x1ff   : > { %7036 = vmatprep.subr.mxu0 %v6857_v54  ;;  %v6729_v22 = vsel %vm6435_vm7, %v8005_v2, 0.0  ;;  %v4086_v42 = vsel %vm3792_vm8, %v8093_v30, 0.0  ;;  %v4924_v29 = vsel %vm4630_vm11, %v8112_v31, 0.0  ;;  %vm824_vm12 = vcmp.eq.s32.totalorder %v9941_v34, %v8058_v53 }
 0x200   : > { %v5309_v20 = vadd.f32 %v5053_v44, %v4471_v0  ;;  %v3504_v63 = vadd.f32 %v3248_v9, %v2666_v14  ;;  %vm5468_vm13 = vcmp.eq.s32.totalorder %v9799_v26, %v8115_v32  ;;  %vm6306_vm14 = vcmp.eq.s32.totalorder %v9799_v26, %v8136_v43 }
 0x201   : > { %v1118_v3 = vsel %vm824_vm12, %v8061_v12, 0.0  ;;  %vm1406_vm15 = vcmp.eq.s32.totalorder %v9941_v34, %v8039_v51  ;;  %vm2244_vm0 = vcmp.eq.s32.totalorder %v9941_v34, %v8047_v49  ;;  %vm3082_vm1 = vcmp.eq.s32.totalorder %v9941_v34, %v8055_v7 }
 0x202   : > { %v6147_v8 = vadd.f32 %v5891_v11, %v5309_v20  ;;  %v4342_v44 = vadd.f32 %v4086_v42, %v3504_v63  ;;  %v1700_v62 = vsel %vm1406_vm15, %v8066_v15, 0.0  ;;  %v2538_v19 = vsel %vm2244_vm0, %v8071_v16, 0.0 }
 0x203   : > { %v5762_v54 = vsel %vm5468_vm13, %v8133_v35, 0.0  ;;  %v1956_v52 = vadd.f32 %v1700_v62, %v1118_v3  ;;  %vm3920_vm2 = vcmp.eq.s32.totalorder %v9941_v34, %v8090_v5  ;;  %vm4758_vm3 = vcmp.eq.s32.totalorder %v9941_v34, %v8109_v23 }
 0x204   : > { %v6985_v9 = vadd.f32 %v6729_v22, %v6147_v8  ;;  %v5180_v0 = vadd.f32 %v4924_v29, %v4342_v44  ;;  %v6600_v14 = vsel %vm6306_vm14, %v8139_v39, 0.0  ;;  %v3376_v11 = vsel %vm3082_vm1, %v8087_v40, 0.0 }
 0x205   : > { %v2794_v42 = vadd.f32 %v2538_v19, %v1956_v52  ;;  %v4214_v20 = vsel %vm3920_vm2, %v8093_v30, 0.0  ;;  %v5052_v63 = vsel %vm4758_vm3, %v8112_v31, 0.0  ;;  %v10023_v3 = vadd.s32 %v7809_v10, %v9820_v38 }
 0x206   : > { %7107 = vmatprep.subr.mxu1 %v6985_v9  ;;  %v6018_v62 = vadd.f32 %v5762_v54, %v5180_v0  ;;  %vm5596_vm4 = vcmp.eq.s32.totalorder %v9941_v34, %v8115_v32  ;;  %vm6434_vm5 = vcmp.eq.s32.totalorder %v9941_v34, %v8136_v43  ;;  %v10031_v22 = vadd.s32 %v7809_v10, %v9825_v41 }
 0x207   : > { %15495 = vst [vmem:[#allocation45_spill] sm:$0xff] %v10023_v3  ;;  %v3632_v29 = vadd.f32 %v3376_v11, %v2794_v42  ;;  %vm693_vm6 = vcmp.eq.s32.totalorder %v10023_v3, %v7910_v45  ;;  %vm1275_vm7 = vcmp.eq.s32.totalorder %v10023_v3, %v7916_v47  ;;  %vm2113_vm9 = vcmp.eq.s32.totalorder %v10023_v3, %v7937_v57 }
 0x208   : > { %15496 = vst [vmem:[#allocation46_spill] sm:$0xff] %v10031_v22  ;;  %v6856_v38 = vadd.f32 %v6600_v14, %v6018_v62  ;;  %v987_v8 = vsel %vm693_vm6, %v7913_v46, 0.0  ;;  %v1569_v44 = vsel %vm1275_vm7, %v7919_v48, 0.0  ;;  %v2407_v19 = vsel %vm2113_vm9, %v7940_v58, 0.0 }
 0x209   : > { %v4470_v54 = vadd.f32 %v4214_v20, %v3632_v29  ;;  %v1825_v41 = vadd.f32 %v1569_v44, %v987_v8  ;;  %vm2951_vm10 = vcmp.eq.s32.totalorder %v10023_v3, %v7944_v60  ;;  %vm3789_vm8 = vcmp.eq.s32.totalorder %v10023_v3, %v7961_v4 }
 0x20a   : > { %7037 = vmatpush2.msra.mxu0 %v6856_v38  ;;  %v5890_v52 = vsel %vm5596_vm4, %v8133_v35, 0.0  ;;  %v6728_v9 = vsel %vm6434_vm5, %v8139_v39, 0.0  ;;  %v3245_v0 = vsel %vm2951_vm10, %v7947_v61, 0.0  ;;  %vm4627_vm11 = vcmp.eq.s32.totalorder %v10023_v3, %v7970_v36 }
 0x20b   : > { %v5308_v14 = vadd.f32 %v5052_v63, %v4470_v54  ;;  %v2663_v11 = vadd.f32 %v2407_v19, %v1825_v41  ;;  %v4083_v42 = vsel %vm3789_vm8, %v7967_v33, 0.0  ;;  %vm5465_vm12 = vcmp.eq.s32.totalorder %v10023_v3, %v7988_v55 }
 0x20c   : > { %v4921_v20 = vsel %vm4627_vm11, %v7975_v37, 0.0  ;;  %vm821_vm13 = vcmp.eq.s32.totalorder %v10031_v22, %v7910_v45  ;;  %vm1403_vm14 = vcmp.eq.s32.totalorder %v10031_v22, %v7916_v47  ;;  %vm2241_vm15 = vcmp.eq.s32.totalorder %v10031_v22, %v7937_v57 }
 0x20d   : > { %v6146_v62 = vadd.f32 %v5890_v52, %v5308_v14  ;;  %v3501_v29 = vadd.f32 %v3245_v0, %v2663_v11  ;;  %vm6303_vm0 = vcmp.eq.s32.totalorder %v10023_v3, %v7996_v1  ;;  %v1115_v63 = vsel %vm821_vm13, %v7913_v46, 0.0 }
 0x20e   : > { %v1697_v38 = vsel %vm1403_vm14, %v7919_v48, 0.0  ;;  %v2535_v8 = vsel %vm2241_vm15, %v7940_v58, 0.0  ;;  %vm3079_vm1 = vcmp.eq.s32.totalorder %v10031_v22, %v7944_v60  ;;  %vm3917_vm2 = vcmp.eq.s32.totalorder %v10031_v22, %v7961_v4 }
 0x20f   : > { %v6984_v44 = vadd.f32 %v6728_v9, %v6146_v62  ;;  %v4339_v19 = vadd.f32 %v4083_v42, %v3501_v29  ;;  %v5759_v54 = vsel %vm5465_vm12, %v7991_v59, 0.0  ;;  %v1953_v41 = vadd.f32 %v1697_v38, %v1115_v63 }
 0x210   : > { %v6597_v52 = vsel %vm6303_vm0, %v8005_v2, 0.0  ;;  %v3373_v0 = vsel %vm3079_vm1, %v7947_v61, 0.0  ;;  %v4211_v14 = vsel %vm3917_vm2, %v7967_v33, 0.0  ;;  %vm4755_vm3 = vcmp.eq.s32.totalorder %v10031_v22, %v7970_v36 }
 0x211   : > { %7108 = vmatpush2.msra.mxu1 %v6984_v44  ;;  %v5177_v11 = vadd.f32 %v4921_v20, %v4339_v19  ;;  %v2791_v34 = vadd.f32 %v2535_v8, %v1953_v41  ;;  %vm5593_vm4 = vcmp.eq.s32.totalorder %v10031_v22, %v7988_v55  ;;  %vm6431_vm5 = vcmp.eq.s32.totalorder %v10031_v22, %v7996_v1 }
 0x212   : > { %v5049_v9 = vsel %vm4755_vm3, %v7975_v37, 0.0  ;;  %vm692_vm6 = vcmp.eq.s32.totalorder %v10023_v3, %v8058_v53  ;;  %vm1274_vm7 = vcmp.eq.s32.totalorder %v10023_v3, %v8039_v51  ;;  %vm2112_vm9 = vcmp.eq.s32.totalorder %v10023_v3, %v8047_v49 }
 0x213   : > { %v6015_v42 = vadd.f32 %v5759_v54, %v5177_v11  ;;  %v3629_v20 = vadd.f32 %v3373_v0, %v2791_v34  ;;  %v986_v62 = vsel %vm692_vm6, %v8061_v12, 0.0  ;;  %v1568_v29 = vsel %vm1274_vm7, %v8066_v15, 0.0 }
 0x214   : > { %v1824_v63 = vadd.f32 %v1568_v29, %v986_v62  ;;  %v2406_v38 = vsel %vm2112_vm9, %v8071_v16, 0.0  ;;  %vm2950_vm10 = vcmp.eq.s32.totalorder %v10023_v3, %v8055_v7  ;;  %vm3788_vm8 = vcmp.eq.s32.totalorder %v10023_v3, %v8090_v5 }
 0x215   : > { %v6853_v8 = vadd.f32 %v6597_v52, %v6015_v42  ;;  %v4467_v44 = vadd.f32 %v4211_v14, %v3629_v20  ;;  %v5887_v34 = vsel %vm5593_vm4, %v7991_v59, 0.0  ;;  %v3244_v19 = vsel %vm2950_vm10, %v8087_v40, 0.0 }
 0x216   : > { %v6725_v54 = vsel %vm6431_vm5, %v8005_v2, 0.0  ;;  %v2662_v41 = vadd.f32 %v2406_v38, %v1824_v63  ;;  %v4082_v0 = vsel %vm3788_vm8, %v8093_v30, 0.0  ;;  %vm4626_vm11 = vcmp.eq.s32.totalorder %v10023_v3, %v8109_v23 }
 0x217   : > { %7038 = vmatprep.subr.mxu0 %v6853_v8  ;;  %v5305_v52 = vadd.f32 %v5049_v9, %v4467_v44  ;;  %v4920_v14 = vsel %vm4626_vm11, %v8112_v31, 0.0  ;;  %vm5464_vm12 = vcmp.eq.s32.totalorder %v10023_v3, %v8115_v32  ;;  %vm6302_vm13 = vcmp.eq.s32.totalorder %v10023_v3, %v8136_v43 }
 0x218   : > { %v3500_v11 = vadd.f32 %v3244_v19, %v2662_v41  ;;  %vm820_vm14 = vcmp.eq.s32.totalorder %v10031_v22, %v8058_v53  ;;  %vm1402_vm15 = vcmp.eq.s32.totalorder %v10031_v22, %v8039_v51  ;;  %vm2240_vm0 = vcmp.eq.s32.totalorder %v10031_v22, %v8047_v49 }
 0x219   : > { %v6143_v42 = vadd.f32 %v5887_v34, %v5305_v52  ;;  %v1114_v9 = vsel %vm820_vm14, %v8061_v12, 0.0  ;;  %v1696_v20 = vsel %vm1402_vm15, %v8066_v15, 0.0  ;;  %v2534_v62 = vsel %vm2240_vm0, %v8071_v16, 0.0 }
 0x21a   : > { %v4338_v29 = vadd.f32 %v4082_v0, %v3500_v11  ;;  %v1952_v63 = vadd.f32 %v1696_v20, %v1114_v9  ;;  %vm3078_vm1 = vcmp.eq.s32.totalorder %v10031_v22, %v8055_v7  ;;  %vm3916_vm2 = vcmp.eq.s32.totalorder %v10031_v22, %v8090_v5 }
 0x21b   : > { %v6981_v38 = vadd.f32 %v6725_v54, %v6143_v42  ;;  %v5758_v8 = vsel %vm5464_vm12, %v8133_v35, 0.0  ;;  %v3372_v44 = vsel %vm3078_vm1, %v8087_v40, 0.0  ;;  %vm4754_vm3 = vcmp.eq.s32.totalorder %v10031_v22, %v8109_v23 }
 0x21c   : > { %v5176_v34 = vadd.f32 %v4920_v14, %v4338_v29  ;;  %v6596_v19 = vsel %vm6302_vm13, %v8139_v39, 0.0  ;;  %v2790_v41 = vadd.f32 %v2534_v62, %v1952_v63  ;;  %vm5592_vm4 = vcmp.eq.s32.totalorder %v10031_v22, %v8115_v32 }
 0x21d   : > { %7109 = vmatprep.subr.mxu1 %v6981_v38  ;;  %v4210_v54 = vsel %vm3916_vm2, %v8093_v30, 0.0  ;;  %vm6430_vm5 = vcmp.eq.s32.totalorder %v10031_v22, %v8136_v43  ;;  %v442_v0 = vadd.s32 224, %v7805_v6  ;;  %v474_v52 = vadd.s32 480, %v7805_v6 }
 0x21e   : > { %v6014_v14 = vadd.f32 %v5758_v8, %v5176_v34  ;;  %v3628_v11 = vadd.f32 %v3372_v44, %v2790_v41  ;;  %v5048_v42 = vsel %vm4754_vm3, %v8112_v31, 0.0  ;;  %v5886_v9 = vsel %vm5592_vm4, %v8133_v35, 0.0 }
 0x21f   : > { %v6724_v20 = vsel %vm6430_vm5, %v8139_v39, 0.0  ;;  %v10149_v62 = vadd.s32 %v7809_v10, %v442_v0  ;;  %v10152_v29 = vadd.s32 %v7809_v10, %v474_v52  ;;  %v441_v63 = vadd.s32 216, %v7805_v6 }
 0x220   : > { %v6852_v38 = vadd.f32 %v6596_v19, %v6014_v14  ;;  %v4466_v22 = vadd.f32 %v4210_v54, %v3628_v11  ;;  %v10156_v3 = vadd.s32 472, %v7805_v6  ;;  %v10159_v8 = vadd.s32 208, %v7805_v6 }
 0x221   : > { %15497 = vst [vmem:[#allocation47_spill] sm:$0xff] %v10149_v62  ;;  %15498 = vst [vmem:[#allocation48_spill] sm:$0xff] %v10152_v29  ;;  %vm689_vm6 = vcmp.eq.s32.totalorder %v10149_v62, %v7910_v45  ;;  %vm1271_vm7 = vcmp.eq.s32.totalorder %v10149_v62, %v7916_v47  ;;  %vm2109_vm9 = vcmp.eq.s32.totalorder %v10149_v62, %v7937_v57  ;;  %v10182_v11 = vadd.s32 464, %v7805_v6 }
 0x222   : > { %vm2947_vm10 = vcmp.eq.s32.totalorder %v10149_v62, %v7944_v60  ;;  %7039 = vmatpush2.msra.mxu0 %v6852_v38  ;;  %v5304_v44 = vadd.f32 %v5048_v42, %v4466_v22  ;;  %v983_v34 = vsel %vm689_vm6, %v7913_v46, 0.0  ;;  %v1565_v19 = vsel %vm1271_vm7, %v7919_v48, 0.0 }
 0x223   : > { %v2403_v41 = vsel %vm2109_vm9, %v7940_v58, 0.0  ;;  %v1821_v54 = vadd.f32 %v1565_v19, %v983_v34  ;;  %vm3785_vm8 = vcmp.eq.s32.totalorder %v10149_v62, %v7961_v4  ;;  %vm4623_vm11 = vcmp.eq.s32.totalorder %v10149_v62, %v7970_v36 }
 0x224   : > { %v10177_v0 = vadd.s32 %v7809_v10, %v441_v63  ;;  %v6142_v52 = vadd.f32 %v5886_v9, %v5304_v44  ;;  %v3241_v14 = vsel %vm2947_vm10, %v7947_v61, 0.0  ;;  %v4079_v22 = vsel %vm3785_vm8, %v7967_v33, 0.0 }
 0x225   : > { %v2659_v42 = vadd.f32 %v2403_v41, %v1821_v54  ;;  %v4917_v38 = vsel %vm4623_vm11, %v7975_v37, 0.0  ;;  %vm5461_vm12 = vcmp.eq.s32.totalorder %v10149_v62, %v7988_v55  ;;  %vm817_vm13 = vcmp.eq.s32.totalorder %v10152_v29, %v7910_v45 }
 0x226   : > { %15499 = vst [vmem:[#allocation49_spill] sm:$0xff] %v10177_v0  ;;  %v6980_v34 = vadd.f32 %v6724_v20, %v6142_v52  ;;  %vm6299_vm14 = vcmp.eq.s32.totalorder %v10149_v62, %v7996_v1  ;;  %v1111_v9 = vsel %vm817_vm13, %v7913_v46, 0.0  ;;  %vm1399_vm15 = vcmp.eq.s32.totalorder %v10152_v29, %v7916_v47 }
 0x227   : > { %v3497_v63 = vadd.f32 %v3241_v14, %v2659_v42  ;;  %v1693_v44 = vsel %vm1399_vm15, %v7919_v48, 0.0  ;;  %vm2237_vm0 = vcmp.eq.s32.totalorder %v10152_v29, %v7937_v57  ;;  %vm3075_vm1 = vcmp.eq.s32.totalorder %v10152_v29, %v7944_v60 }
 0x228   : > { %7110 = vmatpush2.msra.mxu1 %v6980_v34  ;;  %v5755_v20 = vsel %vm5461_vm12, %v7991_v59, 0.0  ;;  %v1949_v19 = vadd.f32 %v1693_v44, %v1111_v9  ;;  %v2531_v41 = vsel %vm2237_vm0, %v7940_v58, 0.0  ;;  %vm3913_vm2 = vcmp.eq.s32.totalorder %v10152_v29, %v7961_v4 }
 0x229   : > { %v4335_v54 = vadd.f32 %v4079_v22, %v3497_v63  ;;  %v6593_v52 = vsel %vm6299_vm14, %v8005_v2, 0.0  ;;  %v3369_v14 = vsel %vm3075_vm1, %v7947_v61, 0.0  ;;  %vm4751_vm3 = vcmp.eq.s32.totalorder %v10152_v29, %v7970_v36 }
 0x22a   : > { %v2787_v42 = vadd.f32 %v2531_v41, %v1949_v19  ;;  %v4207_v26 = vsel %vm3913_vm2, %v7967_v33, 0.0  ;;  %v5045_v34 = vsel %vm4751_vm3, %v7975_v37, 0.0  ;;  %vm5589_vm4 = vcmp.eq.s32.totalorder %v10152_v29, %v7988_v55 }
 0x22b   : > { %v5173_v9 = vadd.f32 %v4917_v38, %v4335_v54  ;;  %vm6427_vm5 = vcmp.eq.s32.totalorder %v10152_v29, %v7996_v1  ;;  %vm688_vm6 = vcmp.eq.s32.totalorder %v10149_v62, %v8058_v53  ;;  %vm1270_vm7 = vcmp.eq.s32.totalorder %v10149_v62, %v8039_v51 }
 0x22c   : > { %v3625_v22 = vadd.f32 %v3369_v14, %v2787_v42  ;;  %v982_v63 = vsel %vm688_vm6, %v8061_v12, 0.0  ;;  %v1564_v44 = vsel %vm1270_vm7, %v8066_v15, 0.0  ;;  %vm2108_vm9 = vcmp.eq.s32.totalorder %v10149_v62, %v8047_v49 }
 0x22d   : > { %v6011_v19 = vadd.f32 %v5755_v20, %v5173_v9  ;;  %v1820_v41 = vadd.f32 %v1564_v44, %v982_v63  ;;  %v2402_v38 = vsel %vm2108_vm9, %v8071_v16, 0.0  ;;  %vm2946_vm10 = vcmp.eq.s32.totalorder %v10149_v62, %v8055_v7 }
 0x22e   : > { %v4463_v54 = vadd.f32 %v4207_v26, %v3625_v22  ;;  %v3240_v13 = vsel %vm2946_vm10, %v8087_v40, 0.0  ;;  %vm3784_vm8 = vcmp.eq.s32.totalorder %v10149_v62, %v8090_v5  ;;  %vm4622_vm11 = vcmp.eq.s32.totalorder %v10149_v62, %v8109_v23 }
 0x22f   : > { %v6849_v14 = vadd.f32 %v6593_v52, %v6011_v19  ;;  %v5883_v20 = vsel %vm5589_vm4, %v7991_v59, 0.0  ;;  %v6721_v42 = vsel %vm6427_vm5, %v8005_v2, 0.0  ;;  %v2658_v26 = vadd.f32 %v2402_v38, %v1820_v41 }
 0x230   : > { %v5301_v9 = vadd.f32 %v5045_v34, %v4463_v54  ;;  %v4078_v22 = vsel %vm3784_vm8, %v8093_v30, 0.0  ;;  %vm5460_vm12 = vcmp.eq.s32.totalorder %v10149_v62, %v8115_v32  ;;  %vm816_vm13 = vcmp.eq.s32.totalorder %v10152_v29, %v8058_v53 }
 0x231   : > { %7040 = vmatprep.subr.mxu0 %v6849_v14  ;;  %v3496_v52 = vadd.f32 %v3240_v13, %v2658_v26  ;;  %v4916_v63 = vsel %vm4622_vm11, %v8112_v31, 0.0  ;;  %vm6298_vm14 = vcmp.eq.s32.totalorder %v10149_v62, %v8136_v43  ;;  %v1110_v44 = vsel %vm816_vm13, %v8061_v12, 0.0 }
 0x232   : > { %v6139_v19 = vadd.f32 %v5883_v20, %v5301_v9  ;;  %vm1398_vm15 = vcmp.eq.s32.totalorder %v10152_v29, %v8039_v51  ;;  %vm2236_vm0 = vcmp.eq.s32.totalorder %v10152_v29, %v8047_v49  ;;  %vm3074_vm1 = vcmp.eq.s32.totalorder %v10152_v29, %v8055_v7 }
 0x233   : > { %v4334_v34 = vadd.f32 %v4078_v22, %v3496_v52  ;;  %v5754_v13 = vsel %vm5460_vm12, %v8133_v35, 0.0  ;;  %v1692_v41 = vsel %vm1398_vm15, %v8066_v15, 0.0  ;;  %v2530_v38 = vsel %vm2236_vm0, %v8071_v16, 0.0 }
 0x234   : > { %v6977_v54 = vadd.f32 %v6721_v42, %v6139_v19  ;;  %v1948_v14 = vadd.f32 %v1692_v41, %v1110_v44  ;;  %vm3912_vm2 = vcmp.eq.s32.totalorder %v10152_v29, %v8090_v5  ;;  %vm4750_vm3 = vcmp.eq.s32.totalorder %v10152_v29, %v8109_v23 }
 0x235   : > { %v5172_v20 = vadd.f32 %v4916_v63, %v4334_v34  ;;  %v6592_v26 = vsel %vm6298_vm14, %v8139_v39, 0.0  ;;  %v3368_v9 = vsel %vm3074_vm1, %v8087_v40, 0.0  ;;  %v4206_v22 = vsel %vm3912_vm2, %v8093_v30, 0.0 }
 0x236   : > { %7111 = vmatprep.subr.mxu1 %v6977_v54  ;;  %v2786_v52 = vadd.f32 %v2530_v38, %v1948_v14  ;;  %v5044_v62 = vsel %vm4750_vm3, %v8112_v31, 0.0  ;;  %vm5588_vm4 = vcmp.eq.s32.totalorder %v10152_v29, %v8115_v32  ;;  %vm685_vm5 = vcmp.eq.s32.totalorder %v10177_v0, %v7910_v45 }
 0x237   : > { %v6010_v42 = vadd.f32 %v5754_v13, %v5172_v20  ;;  %vm6426_vm6 = vcmp.eq.s32.totalorder %v10152_v29, %v8136_v43  ;;  %v979_v63 = vsel %vm685_vm5, %v7913_v46, 0.0  ;;  %vm1267_vm7 = vcmp.eq.s32.totalorder %v10177_v0, %v7916_v47 }
 0x238   : > { %v3624_v44 = vadd.f32 %v3368_v9, %v2786_v52  ;;  %v1561_v19 = vsel %vm1267_vm7, %v7919_v48, 0.0  ;;  %vm2105_vm9 = vcmp.eq.s32.totalorder %v10177_v0, %v7937_v57  ;;  %vm2943_vm10 = vcmp.eq.s32.totalorder %v10177_v0, %v7944_v60 }
 0x239   : > { %v6848_v34 = vadd.f32 %v6592_v26, %v6010_v42  ;;  %v1817_v41 = vadd.f32 %v1561_v19, %v979_v63  ;;  %v2399_v13 = vsel %vm2105_vm9, %v7940_v58, 0.0  ;;  %v3237_v38 = vsel %vm2943_vm10, %v7947_v61, 0.0 }
 0x23a   : > { %v4462_v54 = vadd.f32 %v4206_v22, %v3624_v44  ;;  %vm3781_vm8 = vcmp.eq.s32.totalorder %v10177_v0, %v7961_v4  ;;  %vm4619_vm11 = vcmp.eq.s32.totalorder %v10177_v0, %v7970_v36  ;;  %vm5457_vm12 = vcmp.eq.s32.totalorder %v10177_v0, %v7988_v55 }
 0x23b   : > { %7041 = vmatpush2.msra.mxu0 %v6848_v34  ;;  %v5882_v14 = vsel %vm5588_vm4, %v8133_v35, 0.0  ;;  %v6720_v20 = vsel %vm6426_vm6, %v8139_v39, 0.0  ;;  %v2655_v26 = vadd.f32 %v2399_v13, %v1817_v41  ;;  %v4075_v9 = vsel %vm3781_vm8, %v7967_v33, 0.0 }
 0x23c   : > { %v5300_v22 = vadd.f32 %v5044_v62, %v4462_v54  ;;  %v4913_v52 = vsel %vm4619_vm11, %v7975_v37, 0.0  ;;  %v5751_v42 = vsel %vm5457_vm12, %v7991_v59, 0.0  ;;  %v10298_v63 = vadd.s32 %v7809_v10, %v10156_v3 }
 0x23d   : > { %v3493_v44 = vadd.f32 %v3237_v38, %v2655_v26  ;;  %vm6295_vm13 = vcmp.eq.s32.totalorder %v10177_v0, %v7996_v1  ;;  %vm684_vm14 = vcmp.eq.s32.totalorder %v10177_v0, %v8058_v53  ;;  %vm1266_vm15 = vcmp.eq.s32.totalorder %v10177_v0, %v8039_v51 }
 0x23e   : > { %15500 = vst [vmem:[#allocation50_spill] sm:$0xff] %v10298_v63  ;;  %v6138_v19 = vadd.f32 %v5882_v14, %v5300_v22  ;;  %vm813_vm0 = vcmp.eq.s32.totalorder %v10298_v63, %v7910_v45  ;;  %vm1395_vm1 = vcmp.eq.s32.totalorder %v10298_v63, %v7916_v47  ;;  %vm2233_vm2 = vcmp.eq.s32.totalorder %v10298_v63, %v7937_v57 }
 0x23f   : > { %v4331_v3 = vadd.f32 %v4075_v9, %v3493_v44  ;;  %v1107_v62 = vsel %vm813_vm0, %v7913_v46, 0.0  ;;  %v1689_v34 = vsel %vm1395_vm1, %v7919_v48, 0.0  ;;  %v2527_v41 = vsel %vm2233_vm2, %v7940_v58, 0.0 }
 0x240   : > { %v6976_v13 = vadd.f32 %v6720_v20, %v6138_v19  ;;  %v1945_v38 = vadd.f32 %v1689_v34, %v1107_v62  ;;  %vm3071_vm3 = vcmp.eq.s32.totalorder %v10298_v63, %v7944_v60  ;;  %vm3909_vm4 = vcmp.eq.s32.totalorder %v10298_v63, %v7961_v4 }
 0x241   : > { %v5169_v54 = vadd.f32 %v4913_v52, %v4331_v3  ;;  %v3365_v14 = vsel %vm3071_vm3, %v7947_v61, 0.0  ;;  %vm4747_vm5 = vcmp.eq.s32.totalorder %v10298_v63, %v7970_v36  ;;  %v978_v26 = vsel %vm684_vm14, %v8061_v12, 0.0 }
 0x242   : > { %7112 = vmatpush2.msra.mxu1 %v6976_v13  ;;  %v6589_v20 = vsel %vm6295_vm13, %v8005_v2, 0.0  ;;  %v2783_v9 = vadd.f32 %v2527_v41, %v1945_v38  ;;  %v4203_v22 = vsel %vm3909_vm4, %v7967_v33, 0.0  ;;  %v5041_v52 = vsel %vm4747_vm5, %v7975_v37, 0.0 }
 0x243   : > { %v6007_v44 = vadd.f32 %v5751_v42, %v5169_v54  ;;  %vm5585_vm6 = vcmp.eq.s32.totalorder %v10298_v63, %v7988_v55  ;;  %vm6423_vm7 = vcmp.eq.s32.totalorder %v10298_v63, %v7996_v1  ;;  %v1560_v19 = vsel %vm1266_vm15, %v8066_v15, 0.0 }
 0x244   : > { %v3621_v3 = vadd.f32 %v3365_v14, %v2783_v9  ;;  %v1816_v62 = vadd.f32 %v1560_v19, %v978_v26  ;;  %vm2104_vm9 = vcmp.eq.s32.totalorder %v10177_v0, %v8047_v49  ;;  %vm2942_vm10 = vcmp.eq.s32.totalorder %v10177_v0, %v8055_v7 }
 0x245   : > { %v6845_v42 = vadd.f32 %v6589_v20, %v6007_v44  ;;  %v2398_v34 = vsel %vm2104_vm9, %v8071_v16, 0.0  ;;  %v3236_v41 = vsel %vm2942_vm10, %v8087_v40, 0.0  ;;  %vm3780_vm8 = vcmp.eq.s32.totalorder %v10177_v0, %v8090_v5 }
 0x246   : > { %v4459_v13 = vadd.f32 %v4203_v22, %v3621_v3  ;;  %v5879_v38 = vsel %vm5585_vm6, %v7991_v59, 0.0  ;;  %v2654_v54 = vadd.f32 %v2398_v34, %v1816_v62  ;;  %vm4618_vm11 = vcmp.eq.s32.totalorder %v10177_v0, %v8109_v23 }
 0x247   : > { %7042 = vmatprep.subr.mxu0 %v6845_v42  ;;  %v6717_v14 = vsel %vm6423_vm7, %v8005_v2, 0.0  ;;  %v4074_v26 = vsel %vm3780_vm8, %v8093_v30, 0.0  ;;  %v4912_v20 = vsel %vm4618_vm11, %v8112_v31, 0.0  ;;  %vm812_vm12 = vcmp.eq.s32.totalorder %v10298_v63, %v8058_v53 }
 0x248   : > { %v5297_v9 = vadd.f32 %v5041_v52, %v4459_v13  ;;  %v3492_v44 = vadd.f32 %v3236_v41, %v2654_v54  ;;  %vm5456_vm13 = vcmp.eq.s32.totalorder %v10177_v0, %v8115_v32  ;;  %vm6294_vm14 = vcmp.eq.s32.totalorder %v10177_v0, %v8136_v43 }
 0x249   : > { %v1106_v22 = vsel %vm812_vm12, %v8061_v12, 0.0  ;;  %vm1394_vm15 = vcmp.eq.s32.totalorder %v10298_v63, %v8039_v51  ;;  %vm2232_vm0 = vcmp.eq.s32.totalorder %v10298_v63, %v8047_v49  ;;  %vm3070_vm1 = vcmp.eq.s32.totalorder %v10298_v63, %v8055_v7 }
 0x24a   : > { %v6135_v19 = vadd.f32 %v5879_v38, %v5297_v9  ;;  %v4330_v52 = vadd.f32 %v4074_v26, %v3492_v44  ;;  %v1688_v3 = vsel %vm1394_vm15, %v8066_v15, 0.0  ;;  %v2526_v62 = vsel %vm2232_vm0, %v8071_v16, 0.0 }
 0x24b   : > { %v5750_v42 = vsel %vm5456_vm13, %v8133_v35, 0.0  ;;  %v1944_v34 = vadd.f32 %v1688_v3, %v1106_v22  ;;  %vm3908_vm2 = vcmp.eq.s32.totalorder %v10298_v63, %v8090_v5  ;;  %vm4746_vm3 = vcmp.eq.s32.totalorder %v10298_v63, %v8109_v23 }
 0x24c   : > { %v6973_v41 = vadd.f32 %v6717_v14, %v6135_v19  ;;  %v5168_v13 = vadd.f32 %v4912_v20, %v4330_v52  ;;  %v6588_v54 = vsel %vm6294_vm14, %v8139_v39, 0.0  ;;  %v3364_v38 = vsel %vm3070_vm1, %v8087_v40, 0.0 }
 0x24d   : > { %v2782_v26 = vadd.f32 %v2526_v62, %v1944_v34  ;;  %v4202_v9 = vsel %vm3908_vm2, %v8093_v30, 0.0  ;;  %v5040_v44 = vsel %vm4746_vm3, %v8112_v31, 0.0  ;;  %v10380_v22 = vadd.s32 %v7809_v10, %v10159_v8 }
 0x24e   : > { %7113 = vmatprep.subr.mxu1 %v6973_v41  ;;  %v6006_v3 = vadd.f32 %v5750_v42, %v5168_v13  ;;  %vm5584_vm4 = vcmp.eq.s32.totalorder %v10298_v63, %v8115_v32  ;;  %vm6422_vm5 = vcmp.eq.s32.totalorder %v10298_v63, %v8136_v43  ;;  %v10388_v14 = vadd.s32 %v7809_v10, %v10182_v11 }
 0x24f   : > { %15501 = vst [vmem:[#allocation51_spill] sm:$0xff] %v10380_v22  ;;  %v3620_v20 = vadd.f32 %v3364_v38, %v2782_v26  ;;  %vm681_vm6 = vcmp.eq.s32.totalorder %v10380_v22, %v7910_v45  ;;  %vm1263_vm7 = vcmp.eq.s32.totalorder %v10380_v22, %v7916_v47  ;;  %vm2101_vm9 = vcmp.eq.s32.totalorder %v10380_v22, %v7937_v57 }
 0x250   : > { %15502 = vst [vmem:[#allocation52_spill] sm:$0xff] %v10388_v14  ;;  %v6844_v8 = vadd.f32 %v6588_v54, %v6006_v3  ;;  %v975_v19 = vsel %vm681_vm6, %v7913_v46, 0.0  ;;  %v1557_v52 = vsel %vm1263_vm7, %v7919_v48, 0.0  ;;  %v2395_v62 = vsel %vm2101_vm9, %v7940_v58, 0.0 }
 0x251   : > { %v4458_v42 = vadd.f32 %v4202_v9, %v3620_v20  ;;  %v1813_v11 = vadd.f32 %v1557_v52, %v975_v19  ;;  %vm2939_vm10 = vcmp.eq.s32.totalorder %v10380_v22, %v7944_v60  ;;  %vm3777_vm8 = vcmp.eq.s32.totalorder %v10380_v22, %v7961_v4 }
 0x252   : > { %7043 = vmatpush2.msra.mxu0 %v6844_v8  ;;  %v5878_v34 = vsel %vm5584_vm4, %v8133_v35, 0.0  ;;  %v6716_v41 = vsel %vm6422_vm5, %v8139_v39, 0.0  ;;  %v3233_v13 = vsel %vm2939_vm10, %v7947_v61, 0.0  ;;  %vm4615_vm11 = vcmp.eq.s32.totalorder %v10380_v22, %v7970_v36 }
 0x253   : > { %v5296_v54 = vadd.f32 %v5040_v44, %v4458_v42  ;;  %v2651_v38 = vadd.f32 %v2395_v62, %v1813_v11  ;;  %v4071_v26 = vsel %vm3777_vm8, %v7967_v33, 0.0  ;;  %vm5453_vm12 = vcmp.eq.s32.totalorder %v10380_v22, %v7988_v55 }
 0x254   : > { %v4909_v9 = vsel %vm4615_vm11, %v7975_v37, 0.0  ;;  %vm809_vm13 = vcmp.eq.s32.totalorder %v10388_v14, %v7910_v45  ;;  %vm1391_vm14 = vcmp.eq.s32.totalorder %v10388_v14, %v7916_v47  ;;  %vm2229_vm15 = vcmp.eq.s32.totalorder %v10388_v14, %v7937_v57 }
 0x255   : > { %v6134_v3 = vadd.f32 %v5878_v34, %v5296_v54  ;;  %v3489_v20 = vadd.f32 %v3233_v13, %v2651_v38  ;;  %vm6291_vm0 = vcmp.eq.s32.totalorder %v10380_v22, %v7996_v1  ;;  %v1103_v44 = vsel %vm809_vm13, %v7913_v46, 0.0 }
 0x256   : > { %v1685_v8 = vsel %vm1391_vm14, %v7919_v48, 0.0  ;;  %v2523_v19 = vsel %vm2229_vm15, %v7940_v58, 0.0  ;;  %vm3067_vm1 = vcmp.eq.s32.totalorder %v10388_v14, %v7944_v60  ;;  %vm3905_vm2 = vcmp.eq.s32.totalorder %v10388_v14, %v7961_v4 }
 0x257   : > { %v6972_v52 = vadd.f32 %v6716_v41, %v6134_v3  ;;  %v4327_v62 = vadd.f32 %v4071_v26, %v3489_v20  ;;  %v5747_v42 = vsel %vm5453_vm12, %v7991_v59, 0.0  ;;  %v1941_v11 = vadd.f32 %v1685_v8, %v1103_v44 }
 0x258   : > { %v6585_v34 = vsel %vm6291_vm0, %v8005_v2, 0.0  ;;  %v3361_v13 = vsel %vm3067_vm1, %v7947_v61, 0.0  ;;  %v4199_v54 = vsel %vm3905_vm2, %v7967_v33, 0.0  ;;  %vm4743_vm3 = vcmp.eq.s32.totalorder %v10388_v14, %v7970_v36 }
 0x259   : > { %7114 = vmatpush2.msra.mxu1 %v6972_v52  ;;  %v5165_v38 = vadd.f32 %v4909_v9, %v4327_v62  ;;  %v2779_v63 = vadd.f32 %v2523_v19, %v1941_v11  ;;  %vm5581_vm4 = vcmp.eq.s32.totalorder %v10388_v14, %v7988_v55  ;;  %vm6419_vm5 = vcmp.eq.s32.totalorder %v10388_v14, %v7996_v1 }
 0x25a   : > { %v5037_v41 = vsel %vm4743_vm3, %v7975_v37, 0.0  ;;  %vm680_vm6 = vcmp.eq.s32.totalorder %v10380_v22, %v8058_v53  ;;  %vm1262_vm7 = vcmp.eq.s32.totalorder %v10380_v22, %v8039_v51  ;;  %vm2100_vm9 = vcmp.eq.s32.totalorder %v10380_v22, %v8047_v49 }
 0x25b   : > { %v6003_v26 = vadd.f32 %v5747_v42, %v5165_v38  ;;  %v3617_v9 = vadd.f32 %v3361_v13, %v2779_v63  ;;  %v974_v3 = vsel %vm680_vm6, %v8061_v12, 0.0  ;;  %v1556_v20 = vsel %vm1262_vm7, %v8066_v15, 0.0 }
 0x25c   : > { %v1812_v44 = vadd.f32 %v1556_v20, %v974_v3  ;;  %v2394_v8 = vsel %vm2100_vm9, %v8071_v16, 0.0  ;;  %vm2938_vm10 = vcmp.eq.s32.totalorder %v10380_v22, %v8055_v7  ;;  %vm3776_vm8 = vcmp.eq.s32.totalorder %v10380_v22, %v8090_v5 }
 0x25d   : > { %v6841_v19 = vadd.f32 %v6585_v34, %v6003_v26  ;;  %v4455_v52 = vadd.f32 %v4199_v54, %v3617_v9  ;;  %v5875_v63 = vsel %vm5581_vm4, %v7991_v59, 0.0  ;;  %v3232_v62 = vsel %vm2938_vm10, %v8087_v40, 0.0 }
 0x25e   : > { %v6713_v42 = vsel %vm6419_vm5, %v8005_v2, 0.0  ;;  %v2650_v11 = vadd.f32 %v2394_v8, %v1812_v44  ;;  %v4070_v13 = vsel %vm3776_vm8, %v8093_v30, 0.0  ;;  %vm4614_vm11 = vcmp.eq.s32.totalorder %v10380_v22, %v8109_v23 }
 0x25f   : > { %7044 = vmatprep.subr.mxu0 %v6841_v19  ;;  %v5293_v34 = vadd.f32 %v5037_v41, %v4455_v52  ;;  %v4908_v54 = vsel %vm4614_vm11, %v8112_v31, 0.0  ;;  %vm5452_vm12 = vcmp.eq.s32.totalorder %v10380_v22, %v8115_v32  ;;  %vm6290_vm13 = vcmp.eq.s32.totalorder %v10380_v22, %v8136_v43 }
 0x260   : > { %v3488_v38 = vadd.f32 %v3232_v62, %v2650_v11  ;;  %vm808_vm14 = vcmp.eq.s32.totalorder %v10388_v14, %v8058_v53  ;;  %vm1390_vm15 = vcmp.eq.s32.totalorder %v10388_v14, %v8039_v51  ;;  %vm2228_vm0 = vcmp.eq.s32.totalorder %v10388_v14, %v8047_v49 }
 0x261   : > { %v6131_v26 = vadd.f32 %v5875_v63, %v5293_v34  ;;  %v1102_v41 = vsel %vm808_vm14, %v8061_v12, 0.0  ;;  %v1684_v9 = vsel %vm1390_vm15, %v8066_v15, 0.0  ;;  %v2522_v3 = vsel %vm2228_vm0, %v8071_v16, 0.0 }
 0x262   : > { %v4326_v20 = vadd.f32 %v4070_v13, %v3488_v38  ;;  %v1940_v44 = vadd.f32 %v1684_v9, %v1102_v41  ;;  %vm3066_vm1 = vcmp.eq.s32.totalorder %v10388_v14, %v8055_v7  ;;  %vm3904_vm2 = vcmp.eq.s32.totalorder %v10388_v14, %v8090_v5 }
 0x263   : > { %v6969_v8 = vadd.f32 %v6713_v42, %v6131_v26  ;;  %v5746_v19 = vsel %vm5452_vm12, %v8133_v35, 0.0  ;;  %v3360_v52 = vsel %vm3066_vm1, %v8087_v40, 0.0  ;;  %vm4742_vm3 = vcmp.eq.s32.totalorder %v10388_v14, %v8109_v23 }
 0x264   : > { %v5164_v63 = vadd.f32 %v4908_v54, %v4326_v20  ;;  %v6584_v62 = vsel %vm6290_vm13, %v8139_v39, 0.0  ;;  %v2778_v11 = vadd.f32 %v2522_v3, %v1940_v44  ;;  %vm5580_vm4 = vcmp.eq.s32.totalorder %v10388_v14, %v8115_v32 }
 0x265   : > { %7115 = vmatprep.subr.mxu1 %v6969_v8  ;;  %v4198_v42 = vsel %vm3904_vm2, %v8093_v30, 0.0  ;;  %vm6418_vm5 = vcmp.eq.s32.totalorder %v10388_v14, %v8136_v43  ;;  %v439_v13 = vadd.s32 200, %v7805_v6  ;;  %v471_v34 = vadd.s32 456, %v7805_v6 }
 0x266   : > { %v6002_v54 = vadd.f32 %v5746_v19, %v5164_v63  ;;  %v3616_v38 = vadd.f32 %v3360_v52, %v2778_v11  ;;  %v5036_v26 = vsel %vm4742_vm3, %v8112_v31, 0.0  ;;  %v5874_v41 = vsel %vm5580_vm4, %v8133_v35, 0.0 }
 0x267   : > { %v6712_v9 = vsel %vm6418_vm5, %v8139_v39, 0.0  ;;  %v10506_v3 = vadd.s32 %v7809_v10, %v439_v13  ;;  %v10509_v20 = vadd.s32 %v7809_v10, %v471_v34  ;;  %v438_v44 = vadd.s32 192, %v7805_v6 }
 0x268   : > { %v6840_v8 = vadd.f32 %v6584_v62, %v6002_v54  ;;  %v4454_v14 = vadd.f32 %v4198_v42, %v3616_v38  ;;  %v10513_v22 = vadd.s32 448, %v7805_v6  ;;  %v10516_v19 = vadd.s32 184, %v7805_v6 }
 0x269   : > { %15503 = vst [vmem:[#allocation53_spill] sm:$0xff] %v10506_v3  ;;  %15504 = vst [vmem:[#allocation54_spill] sm:$0xff] %v10509_v20  ;;  %vm677_vm6 = vcmp.eq.s32.totalorder %v10506_v3, %v7910_v45  ;;  %vm1259_vm7 = vcmp.eq.s32.totalorder %v10506_v3, %v7916_v47  ;;  %vm2097_vm9 = vcmp.eq.s32.totalorder %v10506_v3, %v7937_v57  ;;  %v10539_v38 = vadd.s32 440, %v7805_v6 }
 0x26a   : > { %vm2935_vm10 = vcmp.eq.s32.totalorder %v10506_v3, %v7944_v60  ;;  %7045 = vmatpush2.msra.mxu0 %v6840_v8  ;;  %v5292_v52 = vadd.f32 %v5036_v26, %v4454_v14  ;;  %v971_v63 = vsel %vm677_vm6, %v7913_v46, 0.0  ;;  %v1553_v62 = vsel %vm1259_vm7, %v7919_v48, 0.0 }
 0x26b   : > { %v2391_v11 = vsel %vm2097_vm9, %v7940_v58, 0.0  ;;  %v1809_v42 = vadd.f32 %v1553_v62, %v971_v63  ;;  %vm3773_vm8 = vcmp.eq.s32.totalorder %v10506_v3, %v7961_v4  ;;  %vm4611_vm11 = vcmp.eq.s32.totalorder %v10506_v3, %v7970_v36 }
 0x26c   : > { %v10534_v13 = vadd.s32 %v7809_v10, %v438_v44  ;;  %v6130_v34 = vadd.f32 %v5874_v41, %v5292_v52  ;;  %v3229_v54 = vsel %vm2935_vm10, %v7947_v61, 0.0  ;;  %v4067_v14 = vsel %vm3773_vm8, %v7967_v33, 0.0 }
 0x26d   : > { %v2647_v26 = vadd.f32 %v2391_v11, %v1809_v42  ;;  %v4905_v8 = vsel %vm4611_vm11, %v7975_v37, 0.0  ;;  %vm5449_vm12 = vcmp.eq.s32.totalorder %v10506_v3, %v7988_v55  ;;  %vm805_vm13 = vcmp.eq.s32.totalorder %v10509_v20, %v7910_v45 }
 0x26e   : > { %15505 = vst [vmem:[#allocation55_spill] sm:$0xff] %v10534_v13  ;;  %v6968_v63 = vadd.f32 %v6712_v9, %v6130_v34  ;;  %vm6287_vm14 = vcmp.eq.s32.totalorder %v10506_v3, %v7996_v1  ;;  %v1099_v41 = vsel %vm805_vm13, %v7913_v46, 0.0  ;;  %vm1387_vm15 = vcmp.eq.s32.totalorder %v10509_v20, %v7916_v47 }
 0x26f   : > { %v3485_v44 = vadd.f32 %v3229_v54, %v2647_v26  ;;  %v1681_v52 = vsel %vm1387_vm15, %v7919_v48, 0.0  ;;  %vm2225_vm0 = vcmp.eq.s32.totalorder %v10509_v20, %v7937_v57  ;;  %vm3063_vm1 = vcmp.eq.s32.totalorder %v10509_v20, %v7944_v60 }
 0x270   : > { %7116 = vmatpush2.msra.mxu1 %v6968_v63  ;;  %v5743_v9 = vsel %vm5449_vm12, %v7991_v59, 0.0  ;;  %v1937_v62 = vadd.f32 %v1681_v52, %v1099_v41  ;;  %v2519_v11 = vsel %vm2225_vm0, %v7940_v58, 0.0  ;;  %vm3901_vm2 = vcmp.eq.s32.totalorder %v10509_v20, %v7961_v4 }
 0x271   : > { %v4323_v42 = vadd.f32 %v4067_v14, %v3485_v44  ;;  %v6581_v34 = vsel %vm6287_vm14, %v8005_v2, 0.0  ;;  %v3357_v54 = vsel %vm3063_vm1, %v7947_v61, 0.0  ;;  %vm4739_vm3 = vcmp.eq.s32.totalorder %v10509_v20, %v7970_v36 }
 0x272   : > { %v2775_v26 = vadd.f32 %v2519_v11, %v1937_v62  ;;  %v4195_v0 = vsel %vm3901_vm2, %v7967_v33, 0.0  ;;  %v5033_v63 = vsel %vm4739_vm3, %v7975_v37, 0.0  ;;  %vm5577_vm4 = vcmp.eq.s32.totalorder %v10509_v20, %v7988_v55 }
 0x273   : > { %v5161_v41 = vadd.f32 %v4905_v8, %v4323_v42  ;;  %vm6415_vm5 = vcmp.eq.s32.totalorder %v10509_v20, %v7996_v1  ;;  %vm676_vm6 = vcmp.eq.s32.totalorder %v10506_v3, %v8058_v53  ;;  %vm1258_vm7 = vcmp.eq.s32.totalorder %v10506_v3, %v8039_v51 }
 0x274   : > { %v3613_v14 = vadd.f32 %v3357_v54, %v2775_v26  ;;  %v970_v44 = vsel %vm676_vm6, %v8061_v12, 0.0  ;;  %v1552_v52 = vsel %vm1258_vm7, %v8066_v15, 0.0  ;;  %vm2096_vm9 = vcmp.eq.s32.totalorder %v10506_v3, %v8047_v49 }
 0x275   : > { %v5999_v62 = vadd.f32 %v5743_v9, %v5161_v41  ;;  %v1808_v11 = vadd.f32 %v1552_v52, %v970_v44  ;;  %v2390_v8 = vsel %vm2096_vm9, %v8071_v16, 0.0  ;;  %vm2934_vm10 = vcmp.eq.s32.totalorder %v10506_v3, %v8055_v7 }
 0x276   : > { %v4451_v42 = vadd.f32 %v4195_v0, %v3613_v14  ;;  %v3228_v29 = vsel %vm2934_vm10, %v8087_v40, 0.0  ;;  %vm3772_vm8 = vcmp.eq.s32.totalorder %v10506_v3, %v8090_v5  ;;  %vm4610_vm11 = vcmp.eq.s32.totalorder %v10506_v3, %v8109_v23 }
 0x277   : > { %v6837_v54 = vadd.f32 %v6581_v34, %v5999_v62  ;;  %v5871_v9 = vsel %vm5577_vm4, %v7991_v59, 0.0  ;;  %v6709_v26 = vsel %vm6415_vm5, %v8005_v2, 0.0  ;;  %v2646_v0 = vadd.f32 %v2390_v8, %v1808_v11 }
 0x278   : > { %v5289_v41 = vadd.f32 %v5033_v63, %v4451_v42  ;;  %v4066_v14 = vsel %vm3772_vm8, %v8093_v30, 0.0  ;;  %vm5448_vm12 = vcmp.eq.s32.totalorder %v10506_v3, %v8115_v32  ;;  %vm804_vm13 = vcmp.eq.s32.totalorder %v10509_v20, %v8058_v53 }
 0x279   : > { %7046 = vmatprep.subr.mxu0 %v6837_v54  ;;  %v3484_v34 = vadd.f32 %v3228_v29, %v2646_v0  ;;  %v4904_v44 = vsel %vm4610_vm11, %v8112_v31, 0.0  ;;  %vm6286_vm14 = vcmp.eq.s32.totalorder %v10506_v3, %v8136_v43  ;;  %v1098_v52 = vsel %vm804_vm13, %v8061_v12, 0.0 }
 0x27a   : > { %v6127_v62 = vadd.f32 %v5871_v9, %v5289_v41  ;;  %vm1386_vm15 = vcmp.eq.s32.totalorder %v10509_v20, %v8039_v51  ;;  %vm2224_vm0 = vcmp.eq.s32.totalorder %v10509_v20, %v8047_v49  ;;  %vm3062_vm1 = vcmp.eq.s32.totalorder %v10509_v20, %v8055_v7 }
 0x27b   : > { %v4322_v63 = vadd.f32 %v4066_v14, %v3484_v34  ;;  %v5742_v29 = vsel %vm5448_vm12, %v8133_v35, 0.0  ;;  %v1680_v11 = vsel %vm1386_vm15, %v8066_v15, 0.0  ;;  %v2518_v8 = vsel %vm2224_vm0, %v8071_v16, 0.0 }
 0x27c   : > { %v6965_v42 = vadd.f32 %v6709_v26, %v6127_v62  ;;  %v1936_v54 = vadd.f32 %v1680_v11, %v1098_v52  ;;  %vm3900_vm2 = vcmp.eq.s32.totalorder %v10509_v20, %v8090_v5  ;;  %vm4738_vm3 = vcmp.eq.s32.totalorder %v10509_v20, %v8109_v23 }
 0x27d   : > { %v5160_v9 = vadd.f32 %v4904_v44, %v4322_v63  ;;  %v6580_v0 = vsel %vm6286_vm14, %v8139_v39, 0.0  ;;  %v3356_v41 = vsel %vm3062_vm1, %v8087_v40, 0.0  ;;  %v4194_v14 = vsel %vm3900_vm2, %v8093_v30, 0.0 }
 0x27e   : > { %7117 = vmatprep.subr.mxu1 %v6965_v42  ;;  %v2774_v34 = vadd.f32 %v2518_v8, %v1936_v54  ;;  %v5032_v3 = vsel %vm4738_vm3, %v8112_v31, 0.0  ;;  %vm5576_vm4 = vcmp.eq.s32.totalorder %v10509_v20, %v8115_v32  ;;  %vm673_vm5 = vcmp.eq.s32.totalorder %v10534_v13, %v7910_v45 }
 0x27f   : > { %v5998_v26 = vadd.f32 %v5742_v29, %v5160_v9  ;;  %vm6414_vm6 = vcmp.eq.s32.totalorder %v10509_v20, %v8136_v43  ;;  %v967_v44 = vsel %vm673_vm5, %v7913_v46, 0.0  ;;  %vm1255_vm7 = vcmp.eq.s32.totalorder %v10534_v13, %v7916_v47 }
 0x280   : > { %v3612_v52 = vadd.f32 %v3356_v41, %v2774_v34  ;;  %v1549_v62 = vsel %vm1255_vm7, %v7919_v48, 0.0  ;;  %vm2093_vm9 = vcmp.eq.s32.totalorder %v10534_v13, %v7937_v57  ;;  %vm2931_vm10 = vcmp.eq.s32.totalorder %v10534_v13, %v7944_v60 }
 0x281   : > { %v6836_v63 = vadd.f32 %v6580_v0, %v5998_v26  ;;  %v1805_v11 = vadd.f32 %v1549_v62, %v967_v44  ;;  %v2387_v29 = vsel %vm2093_vm9, %v7940_v58, 0.0  ;;  %v3225_v8 = vsel %vm2931_vm10, %v7947_v61, 0.0 }
 0x282   : > { %v4450_v42 = vadd.f32 %v4194_v14, %v3612_v52  ;;  %vm3769_vm8 = vcmp.eq.s32.totalorder %v10534_v13, %v7961_v4  ;;  %vm4607_vm11 = vcmp.eq.s32.totalorder %v10534_v13, %v7970_v36  ;;  %vm5445_vm12 = vcmp.eq.s32.totalorder %v10534_v13, %v7988_v55 }
 0x283   : > { %7047 = vmatpush2.msra.mxu0 %v6836_v63  ;;  %v5870_v54 = vsel %vm5576_vm4, %v8133_v35, 0.0  ;;  %v6708_v9 = vsel %vm6414_vm6, %v8139_v39, 0.0  ;;  %v2643_v0 = vadd.f32 %v2387_v29, %v1805_v11  ;;  %v4063_v41 = vsel %vm3769_vm8, %v7967_v33, 0.0 }
 0x284   : > { %v5288_v14 = vadd.f32 %v5032_v3, %v4450_v42  ;;  %v4901_v34 = vsel %vm4607_vm11, %v7975_v37, 0.0  ;;  %v5739_v26 = vsel %vm5445_vm12, %v7991_v59, 0.0  ;;  %v10655_v44 = vadd.s32 %v7809_v10, %v10513_v22 }
 0x285   : > { %v3481_v52 = vadd.f32 %v3225_v8, %v2643_v0  ;;  %vm6283_vm13 = vcmp.eq.s32.totalorder %v10534_v13, %v7996_v1  ;;  %vm672_vm14 = vcmp.eq.s32.totalorder %v10534_v13, %v8058_v53  ;;  %vm1254_vm15 = vcmp.eq.s32.totalorder %v10534_v13, %v8039_v51 }
 0x286   : > { %15506 = vst [vmem:[#allocation56_spill] sm:$0xff] %v10655_v44  ;;  %v6126_v62 = vadd.f32 %v5870_v54, %v5288_v14  ;;  %vm801_vm0 = vcmp.eq.s32.totalorder %v10655_v44, %v7910_v45  ;;  %vm1383_vm1 = vcmp.eq.s32.totalorder %v10655_v44, %v7916_v47  ;;  %vm2221_vm2 = vcmp.eq.s32.totalorder %v10655_v44, %v7937_v57 }
 0x287   : > { %v4319_v22 = vadd.f32 %v4063_v41, %v3481_v52  ;;  %v1095_v3 = vsel %vm801_vm0, %v7913_v46, 0.0  ;;  %v1677_v63 = vsel %vm1383_vm1, %v7919_v48, 0.0  ;;  %v2515_v11 = vsel %vm2221_vm2, %v7940_v58, 0.0 }
 0x288   : > { %v6964_v29 = vadd.f32 %v6708_v9, %v6126_v62  ;;  %v1933_v8 = vadd.f32 %v1677_v63, %v1095_v3  ;;  %vm3059_vm3 = vcmp.eq.s32.totalorder %v10655_v44, %v7944_v60  ;;  %vm3897_vm4 = vcmp.eq.s32.totalorder %v10655_v44, %v7961_v4 }
 0x289   : > { %v5157_v42 = vadd.f32 %v4901_v34, %v4319_v22  ;;  %v3353_v54 = vsel %vm3059_vm3, %v7947_v61, 0.0  ;;  %vm4735_vm5 = vcmp.eq.s32.totalorder %v10655_v44, %v7970_v36  ;;  %v966_v0 = vsel %vm672_vm14, %v8061_v12, 0.0 }
 0x28a   : > { %7118 = vmatpush2.msra.mxu1 %v6964_v29  ;;  %v6577_v9 = vsel %vm6283_vm13, %v8005_v2, 0.0  ;;  %v2771_v41 = vadd.f32 %v2515_v11, %v1933_v8  ;;  %v4191_v14 = vsel %vm3897_vm4, %v7967_v33, 0.0  ;;  %v5029_v34 = vsel %vm4735_vm5, %v7975_v37, 0.0 }
 0x28b   : > { %v5995_v52 = vadd.f32 %v5739_v26, %v5157_v42  ;;  %vm5573_vm6 = vcmp.eq.s32.totalorder %v10655_v44, %v7988_v55  ;;  %vm6411_vm7 = vcmp.eq.s32.totalorder %v10655_v44, %v7996_v1  ;;  %v1548_v62 = vsel %vm1254_vm15, %v8066_v15, 0.0 }
 0x28c   : > { %v3609_v22 = vadd.f32 %v3353_v54, %v2771_v41  ;;  %v1804_v3 = vadd.f32 %v1548_v62, %v966_v0  ;;  %vm2092_vm9 = vcmp.eq.s32.totalorder %v10534_v13, %v8047_v49  ;;  %vm2930_vm10 = vcmp.eq.s32.totalorder %v10534_v13, %v8055_v7 }
 0x28d   : > { %v6833_v26 = vadd.f32 %v6577_v9, %v5995_v52  ;;  %v2386_v63 = vsel %vm2092_vm9, %v8071_v16, 0.0  ;;  %v3224_v11 = vsel %vm2930_vm10, %v8087_v40, 0.0  ;;  %vm3768_vm8 = vcmp.eq.s32.totalorder %v10534_v13, %v8090_v5 }
 0x28e   : > { %v4447_v29 = vadd.f32 %v4191_v14, %v3609_v22  ;;  %v5867_v8 = vsel %vm5573_vm6, %v7991_v59, 0.0  ;;  %v2642_v42 = vadd.f32 %v2386_v63, %v1804_v3  ;;  %vm4606_vm11 = vcmp.eq.s32.totalorder %v10534_v13, %v8109_v23 }
 0x28f   : > { %7048 = vmatprep.subr.mxu0 %v6833_v26  ;;  %v6705_v54 = vsel %vm6411_vm7, %v8005_v2, 0.0  ;;  %v4062_v0 = vsel %vm3768_vm8, %v8093_v30, 0.0  ;;  %v4900_v9 = vsel %vm4606_vm11, %v8112_v31, 0.0  ;;  %vm800_vm12 = vcmp.eq.s32.totalorder %v10655_v44, %v8058_v53 }
 0x290   : > { %v5285_v41 = vadd.f32 %v5029_v34, %v4447_v29  ;;  %v3480_v52 = vadd.f32 %v3224_v11, %v2642_v42  ;;  %vm5444_vm13 = vcmp.eq.s32.totalorder %v10534_v13, %v8115_v32  ;;  %vm6282_vm14 = vcmp.eq.s32.totalorder %v10534_v13, %v8136_v43 }
 0x291   : > { %v1094_v14 = vsel %vm800_vm12, %v8061_v12, 0.0  ;;  %vm1382_vm15 = vcmp.eq.s32.totalorder %v10655_v44, %v8039_v51  ;;  %vm2220_vm0 = vcmp.eq.s32.totalorder %v10655_v44, %v8047_v49  ;;  %vm3058_vm1 = vcmp.eq.s32.totalorder %v10655_v44, %v8055_v7 }
 0x292   : > { %v6123_v62 = vadd.f32 %v5867_v8, %v5285_v41  ;;  %v4318_v34 = vadd.f32 %v4062_v0, %v3480_v52  ;;  %v1676_v22 = vsel %vm1382_vm15, %v8066_v15, 0.0  ;;  %v2514_v3 = vsel %vm2220_vm0, %v8071_v16, 0.0 }
 0x293   : > { %v5738_v26 = vsel %vm5444_vm13, %v8133_v35, 0.0  ;;  %v1932_v63 = vadd.f32 %v1676_v22, %v1094_v14  ;;  %vm3896_vm2 = vcmp.eq.s32.totalorder %v10655_v44, %v8090_v5  ;;  %vm4734_vm3 = vcmp.eq.s32.totalorder %v10655_v44, %v8109_v23 }
 0x294   : > { %v6961_v11 = vadd.f32 %v6705_v54, %v6123_v62  ;;  %v5156_v29 = vadd.f32 %v4900_v9, %v4318_v34  ;;  %v6576_v42 = vsel %vm6282_vm14, %v8139_v39, 0.0  ;;  %v3352_v8 = vsel %vm3058_vm1, %v8087_v40, 0.0 }
 0x295   : > { %v2770_v0 = vadd.f32 %v2514_v3, %v1932_v63  ;;  %v4190_v41 = vsel %vm3896_vm2, %v8093_v30, 0.0  ;;  %v5028_v52 = vsel %vm4734_vm3, %v8112_v31, 0.0  ;;  %v10737_v14 = vadd.s32 %v7809_v10, %v10516_v19 }
 0x296   : > { %7119 = vmatprep.subr.mxu1 %v6961_v11  ;;  %v5994_v22 = vadd.f32 %v5738_v26, %v5156_v29  ;;  %vm5572_vm4 = vcmp.eq.s32.totalorder %v10655_v44, %v8115_v32  ;;  %vm6410_vm5 = vcmp.eq.s32.totalorder %v10655_v44, %v8136_v43  ;;  %v10745_v54 = vadd.s32 %v7809_v10, %v10539_v38 }
 0x297   : > { %15507 = vst [vmem:[#allocation57_spill] sm:$0xff] %v10737_v14  ;;  %v3608_v9 = vadd.f32 %v3352_v8, %v2770_v0  ;;  %vm669_vm6 = vcmp.eq.s32.totalorder %v10737_v14, %v7910_v45  ;;  %vm1251_vm7 = vcmp.eq.s32.totalorder %v10737_v14, %v7916_v47  ;;  %vm2089_vm9 = vcmp.eq.s32.totalorder %v10737_v14, %v7937_v57 }
 0x298   : > { %15508 = vst [vmem:[#allocation58_spill] sm:$0xff] %v10745_v54  ;;  %v6832_v19 = vadd.f32 %v6576_v42, %v5994_v22  ;;  %v963_v62 = vsel %vm669_vm6, %v7913_v46, 0.0  ;;  %v1545_v34 = vsel %vm1251_vm7, %v7919_v48, 0.0  ;;  %v2383_v3 = vsel %vm2089_vm9, %v7940_v58, 0.0 }
 0x299   : > { %v4446_v26 = vadd.f32 %v4190_v41, %v3608_v9  ;;  %v1801_v38 = vadd.f32 %v1545_v34, %v963_v62  ;;  %vm2927_vm10 = vcmp.eq.s32.totalorder %v10737_v14, %v7944_v60  ;;  %vm3765_vm8 = vcmp.eq.s32.totalorder %v10737_v14, %v7961_v4 }
 0x29a   : > { %7049 = vmatpush2.msra.mxu0 %v6832_v19  ;;  %v5866_v63 = vsel %vm5572_vm4, %v8133_v35, 0.0  ;;  %v6704_v11 = vsel %vm6410_vm5, %v8139_v39, 0.0  ;;  %v3221_v29 = vsel %vm2927_vm10, %v7947_v61, 0.0  ;;  %vm4603_vm11 = vcmp.eq.s32.totalorder %v10737_v14, %v7970_v36 }
 0x29b   : > { %v5284_v42 = vadd.f32 %v5028_v52, %v4446_v26  ;;  %v2639_v8 = vadd.f32 %v2383_v3, %v1801_v38  ;;  %v4059_v0 = vsel %vm3765_vm8, %v7967_v33, 0.0  ;;  %vm5441_vm12 = vcmp.eq.s32.totalorder %v10737_v14, %v7988_v55 }
 0x29c   : > { %v4897_v41 = vsel %vm4603_vm11, %v7975_v37, 0.0  ;;  %vm797_vm13 = vcmp.eq.s32.totalorder %v10745_v54, %v7910_v45  ;;  %vm1379_vm14 = vcmp.eq.s32.totalorder %v10745_v54, %v7916_v47  ;;  %vm2217_vm15 = vcmp.eq.s32.totalorder %v10745_v54, %v7937_v57 }
 0x29d   : > { %v6122_v22 = vadd.f32 %v5866_v63, %v5284_v42  ;;  %v3477_v9 = vadd.f32 %v3221_v29, %v2639_v8  ;;  %vm6279_vm0 = vcmp.eq.s32.totalorder %v10737_v14, %v7996_v1  ;;  %v1091_v52 = vsel %vm797_vm13, %v7913_v46, 0.0 }
 0x29e   : > { %v1673_v19 = vsel %vm1379_vm14, %v7919_v48, 0.0  ;;  %v2511_v62 = vsel %vm2217_vm15, %v7940_v58, 0.0  ;;  %vm3055_vm1 = vcmp.eq.s32.totalorder %v10745_v54, %v7944_v60  ;;  %vm3893_vm2 = vcmp.eq.s32.totalorder %v10745_v54, %v7961_v4 }
 0x29f   : > { %v6960_v34 = vadd.f32 %v6704_v11, %v6122_v22  ;;  %v4315_v3 = vadd.f32 %v4059_v0, %v3477_v9  ;;  %v5735_v26 = vsel %vm5441_vm12, %v7991_v59, 0.0  ;;  %v1929_v38 = vadd.f32 %v1673_v19, %v1091_v52 }
 0x2a0   : > { %v6573_v63 = vsel %vm6279_vm0, %v8005_v2, 0.0  ;;  %v3349_v29 = vsel %vm3055_vm1, %v7947_v61, 0.0  ;;  %v4187_v42 = vsel %vm3893_vm2, %v7967_v33, 0.0  ;;  %vm4731_vm3 = vcmp.eq.s32.totalorder %v10745_v54, %v7970_v36 }
 0x2a1   : > { %7120 = vmatpush2.msra.mxu1 %v6960_v34  ;;  %v5153_v8 = vadd.f32 %v4897_v41, %v4315_v3  ;;  %v2767_v44 = vadd.f32 %v2511_v62, %v1929_v38  ;;  %vm5569_vm4 = vcmp.eq.s32.totalorder %v10745_v54, %v7988_v55  ;;  %vm6407_vm5 = vcmp.eq.s32.totalorder %v10745_v54, %v7996_v1 }
 0x2a2   : > { %v5025_v11 = vsel %vm4731_vm3, %v7975_v37, 0.0  ;;  %vm668_vm6 = vcmp.eq.s32.totalorder %v10737_v14, %v8058_v53  ;;  %vm1250_vm7 = vcmp.eq.s32.totalorder %v10737_v14, %v8039_v51  ;;  %vm2088_vm9 = vcmp.eq.s32.totalorder %v10737_v14, %v8047_v49 }
 0x2a3   : > { %v5991_v0 = vadd.f32 %v5735_v26, %v5153_v8  ;;  %v3605_v41 = vadd.f32 %v3349_v29, %v2767_v44  ;;  %v962_v22 = vsel %vm668_vm6, %v8061_v12, 0.0  ;;  %v1544_v9 = vsel %vm1250_vm7, %v8066_v15, 0.0 }
 0x2a4   : > { %v1800_v52 = vadd.f32 %v1544_v9, %v962_v22  ;;  %v2382_v19 = vsel %vm2088_vm9, %v8071_v16, 0.0  ;;  %vm2926_vm10 = vcmp.eq.s32.totalorder %v10737_v14, %v8055_v7  ;;  %vm3764_vm8 = vcmp.eq.s32.totalorder %v10737_v14, %v8090_v5 }
 0x2a5   : > { %v6829_v62 = vadd.f32 %v6573_v63, %v5991_v0  ;;  %v4443_v34 = vadd.f32 %v4187_v42, %v3605_v41  ;;  %v5863_v44 = vsel %vm5569_vm4, %v7991_v59, 0.0  ;;  %v3220_v3 = vsel %vm2926_vm10, %v8087_v40, 0.0 }
 0x2a6   : > { %v6701_v26 = vsel %vm6407_vm5, %v8005_v2, 0.0  ;;  %v2638_v38 = vadd.f32 %v2382_v19, %v1800_v52  ;;  %v4058_v29 = vsel %vm3764_vm8, %v8093_v30, 0.0  ;;  %vm4602_vm11 = vcmp.eq.s32.totalorder %v10737_v14, %v8109_v23 }
 0x2a7   : > { %7050 = vmatprep.subr.mxu0 %v6829_v62  ;;  %v5281_v63 = vadd.f32 %v5025_v11, %v4443_v34  ;;  %v4896_v42 = vsel %vm4602_vm11, %v8112_v31, 0.0  ;;  %vm5440_vm12 = vcmp.eq.s32.totalorder %v10737_v14, %v8115_v32  ;;  %vm6278_vm13 = vcmp.eq.s32.totalorder %v10737_v14, %v8136_v43 }
 0x2a8   : > { %v3476_v8 = vadd.f32 %v3220_v3, %v2638_v38  ;;  %vm796_vm14 = vcmp.eq.s32.totalorder %v10745_v54, %v8058_v53  ;;  %vm1378_vm15 = vcmp.eq.s32.totalorder %v10745_v54, %v8039_v51  ;;  %vm2216_vm0 = vcmp.eq.s32.totalorder %v10745_v54, %v8047_v49 }
 0x2a9   : > { %v6119_v0 = vadd.f32 %v5863_v44, %v5281_v63  ;;  %v1090_v11 = vsel %vm796_vm14, %v8061_v12, 0.0  ;;  %v1672_v41 = vsel %vm1378_vm15, %v8066_v15, 0.0  ;;  %v2510_v22 = vsel %vm2216_vm0, %v8071_v16, 0.0 }
 0x2aa   : > { %v4314_v9 = vadd.f32 %v4058_v29, %v3476_v8  ;;  %v1928_v52 = vadd.f32 %v1672_v41, %v1090_v11  ;;  %vm3054_vm1 = vcmp.eq.s32.totalorder %v10745_v54, %v8055_v7  ;;  %vm3892_vm2 = vcmp.eq.s32.totalorder %v10745_v54, %v8090_v5 }
 0x2ab   : > { %v6957_v19 = vadd.f32 %v6701_v26, %v6119_v0  ;;  %v5734_v62 = vsel %vm5440_vm12, %v8133_v35, 0.0  ;;  %v3348_v34 = vsel %vm3054_vm1, %v8087_v40, 0.0  ;;  %vm4730_vm3 = vcmp.eq.s32.totalorder %v10745_v54, %v8109_v23 }
 0x2ac   : > { %v5152_v44 = vadd.f32 %v4896_v42, %v4314_v9  ;;  %v6572_v3 = vsel %vm6278_vm13, %v8139_v39, 0.0  ;;  %v2766_v38 = vadd.f32 %v2510_v22, %v1928_v52  ;;  %vm5568_vm4 = vcmp.eq.s32.totalorder %v10745_v54, %v8115_v32 }
 0x2ad   : > { %7121 = vmatprep.subr.mxu1 %v6957_v19  ;;  %v4186_v26 = vsel %vm3892_vm2, %v8093_v30, 0.0  ;;  %vm6406_vm5 = vcmp.eq.s32.totalorder %v10745_v54, %v8136_v43  ;;  %v436_v29 = vadd.s32 176, %v7805_v6  ;;  %v468_v63 = vadd.s32 432, %v7805_v6 }
 0x2ae   : > { %v5990_v42 = vadd.f32 %v5734_v62, %v5152_v44  ;;  %v3604_v8 = vadd.f32 %v3348_v34, %v2766_v38  ;;  %v5024_v0 = vsel %vm4730_vm3, %v8112_v31, 0.0  ;;  %v5862_v11 = vsel %vm5568_vm4, %v8133_v35, 0.0 }
 0x2af   : > { %v6700_v41 = vsel %vm6406_vm5, %v8139_v39, 0.0  ;;  %v10863_v22 = vadd.s32 %v7809_v10, %v436_v29  ;;  %v10866_v9 = vadd.s32 %v7809_v10, %v468_v63  ;;  %v435_v52 = vadd.s32 168, %v7805_v6 }
 0x2b0   : > { %v6828_v19 = vadd.f32 %v6572_v3, %v5990_v42  ;;  %v4442_v54 = vadd.f32 %v4186_v26, %v3604_v8  ;;  %v10870_v14 = vadd.s32 424, %v7805_v6  ;;  %v10873_v62 = vadd.s32 160, %v7805_v6 }
 0x2b1   : > { %15509 = vst [vmem:[#allocation59_spill] sm:$0xff] %v10863_v22  ;;  %15510 = vst [vmem:[#allocation60_spill] sm:$0xff] %v10866_v9  ;;  %vm665_vm6 = vcmp.eq.s32.totalorder %v10863_v22, %v7910_v45  ;;  %vm1247_vm7 = vcmp.eq.s32.totalorder %v10863_v22, %v7916_v47  ;;  %vm2085_vm9 = vcmp.eq.s32.totalorder %v10863_v22, %v7937_v57  ;;  %v10896_v8 = vadd.s32 416, %v7805_v6 }
 0x2b2   : > { %vm2923_vm10 = vcmp.eq.s32.totalorder %v10863_v22, %v7944_v60  ;;  %7051 = vmatpush2.msra.mxu0 %v6828_v19  ;;  %v5280_v34 = vadd.f32 %v5024_v0, %v4442_v54  ;;  %v959_v44 = vsel %vm665_vm6, %v7913_v46, 0.0  ;;  %v1541_v3 = vsel %vm1247_vm7, %v7919_v48, 0.0 }
 0x2b3   : > { %v2379_v38 = vsel %vm2085_vm9, %v7940_v58, 0.0  ;;  %v1797_v26 = vadd.f32 %v1541_v3, %v959_v44  ;;  %vm3761_vm8 = vcmp.eq.s32.totalorder %v10863_v22, %v7961_v4  ;;  %vm4599_vm11 = vcmp.eq.s32.totalorder %v10863_v22, %v7970_v36 }
 0x2b4   : > { %v10891_v29 = vadd.s32 %v7809_v10, %v435_v52  ;;  %v6118_v63 = vadd.f32 %v5862_v11, %v5280_v34  ;;  %v3217_v42 = vsel %vm2923_vm10, %v7947_v61, 0.0  ;;  %v4055_v54 = vsel %vm3761_vm8, %v7967_v33, 0.0 }
 0x2b5   : > { %v2635_v0 = vadd.f32 %v2379_v38, %v1797_v26  ;;  %v4893_v19 = vsel %vm4599_vm11, %v7975_v37, 0.0  ;;  %vm5437_vm12 = vcmp.eq.s32.totalorder %v10863_v22, %v7988_v55  ;;  %vm793_vm13 = vcmp.eq.s32.totalorder %v10866_v9, %v7910_v45 }
 0x2b6   : > { %15511 = vst [vmem:[#allocation61_spill] sm:$0xff] %v10891_v29  ;;  %v6956_v44 = vadd.f32 %v6700_v41, %v6118_v63  ;;  %vm6275_vm14 = vcmp.eq.s32.totalorder %v10863_v22, %v7996_v1  ;;  %v1087_v11 = vsel %vm793_vm13, %v7913_v46, 0.0  ;;  %vm1375_vm15 = vcmp.eq.s32.totalorder %v10866_v9, %v7916_v47 }
 0x2b7   : > { %v3473_v52 = vadd.f32 %v3217_v42, %v2635_v0  ;;  %v1669_v34 = vsel %vm1375_vm15, %v7919_v48, 0.0  ;;  %vm2213_vm0 = vcmp.eq.s32.totalorder %v10866_v9, %v7937_v57  ;;  %vm3051_vm1 = vcmp.eq.s32.totalorder %v10866_v9, %v7944_v60 }
 0x2b8   : > { %7122 = vmatpush2.msra.mxu1 %v6956_v44  ;;  %v5731_v41 = vsel %vm5437_vm12, %v7991_v59, 0.0  ;;  %v1925_v3 = vadd.f32 %v1669_v34, %v1087_v11  ;;  %v2507_v38 = vsel %vm2213_vm0, %v7940_v58, 0.0  ;;  %vm3889_vm2 = vcmp.eq.s32.totalorder %v10866_v9, %v7961_v4 }
 0x2b9   : > { %v4311_v26 = vadd.f32 %v4055_v54, %v3473_v52  ;;  %v6569_v63 = vsel %vm6275_vm14, %v8005_v2, 0.0  ;;  %v3345_v42 = vsel %vm3051_vm1, %v7947_v61, 0.0  ;;  %vm4727_vm3 = vcmp.eq.s32.totalorder %v10866_v9, %v7970_v36 }
 0x2ba   : > { %v2763_v0 = vadd.f32 %v2507_v38, %v1925_v3  ;;  %v4183_v13 = vsel %vm3889_vm2, %v7967_v33, 0.0  ;;  %v5021_v44 = vsel %vm4727_vm3, %v7975_v37, 0.0  ;;  %vm5565_vm4 = vcmp.eq.s32.totalorder %v10866_v9, %v7988_v55 }
 0x2bb   : > { %v5149_v11 = vadd.f32 %v4893_v19, %v4311_v26  ;;  %vm6403_vm5 = vcmp.eq.s32.totalorder %v10866_v9, %v7996_v1  ;;  %vm664_vm6 = vcmp.eq.s32.totalorder %v10863_v22, %v8058_v53  ;;  %vm1246_vm7 = vcmp.eq.s32.totalorder %v10863_v22, %v8039_v51 }
 0x2bc   : > { %v3601_v54 = vadd.f32 %v3345_v42, %v2763_v0  ;;  %v958_v52 = vsel %vm664_vm6, %v8061_v12, 0.0  ;;  %v1540_v34 = vsel %vm1246_vm7, %v8066_v15, 0.0  ;;  %vm2084_vm9 = vcmp.eq.s32.totalorder %v10863_v22, %v8047_v49 }
 0x2bd   : > { %v5987_v3 = vadd.f32 %v5731_v41, %v5149_v11  ;;  %v1796_v38 = vadd.f32 %v1540_v34, %v958_v52  ;;  %v2378_v19 = vsel %vm2084_vm9, %v8071_v16, 0.0  ;;  %vm2922_vm10 = vcmp.eq.s32.totalorder %v10863_v22, %v8055_v7 }
 0x2be   : > { %v4439_v26 = vadd.f32 %v4183_v13, %v3601_v54  ;;  %v3216_v20 = vsel %vm2922_vm10, %v8087_v40, 0.0  ;;  %vm3760_vm8 = vcmp.eq.s32.totalorder %v10863_v22, %v8090_v5  ;;  %vm4598_vm11 = vcmp.eq.s32.totalorder %v10863_v22, %v8109_v23 }
 0x2bf   : > { %v6825_v42 = vadd.f32 %v6569_v63, %v5987_v3  ;;  %v5859_v41 = vsel %vm5565_vm4, %v7991_v59, 0.0  ;;  %v6697_v0 = vsel %vm6403_vm5, %v8005_v2, 0.0  ;;  %v2634_v13 = vadd.f32 %v2378_v19, %v1796_v38 }
 0x2c0   : > { %v5277_v11 = vadd.f32 %v5021_v44, %v4439_v26  ;;  %v4054_v54 = vsel %vm3760_vm8, %v8093_v30, 0.0  ;;  %vm5436_vm12 = vcmp.eq.s32.totalorder %v10863_v22, %v8115_v32  ;;  %vm792_vm13 = vcmp.eq.s32.totalorder %v10866_v9, %v8058_v53 }
 0x2c1   : > { %7052 = vmatprep.subr.mxu0 %v6825_v42  ;;  %v3472_v63 = vadd.f32 %v3216_v20, %v2634_v13  ;;  %v4892_v52 = vsel %vm4598_vm11, %v8112_v31, 0.0  ;;  %vm6274_vm14 = vcmp.eq.s32.totalorder %v10863_v22, %v8136_v43  ;;  %v1086_v34 = vsel %vm792_vm13, %v8061_v12, 0.0 }
 0x2c2   : > { %v6115_v3 = vadd.f32 %v5859_v41, %v5277_v11  ;;  %vm1374_vm15 = vcmp.eq.s32.totalorder %v10866_v9, %v8039_v51  ;;  %vm2212_vm0 = vcmp.eq.s32.totalorder %v10866_v9, %v8047_v49  ;;  %vm3050_vm1 = vcmp.eq.s32.totalorder %v10866_v9, %v8055_v7 }
 0x2c3   : > { %v4310_v44 = vadd.f32 %v4054_v54, %v3472_v63  ;;  %v5730_v20 = vsel %vm5436_vm12, %v8133_v35, 0.0  ;;  %v1668_v38 = vsel %vm1374_vm15, %v8066_v15, 0.0  ;;  %v2506_v19 = vsel %vm2212_vm0, %v8071_v16, 0.0 }
 0x2c4   : > { %v6953_v26 = vadd.f32 %v6697_v0, %v6115_v3  ;;  %v1924_v42 = vadd.f32 %v1668_v38, %v1086_v34  ;;  %vm3888_vm2 = vcmp.eq.s32.totalorder %v10866_v9, %v8090_v5  ;;  %vm4726_vm3 = vcmp.eq.s32.totalorder %v10866_v9, %v8109_v23 }
 0x2c5   : > { %v5148_v41 = vadd.f32 %v4892_v52, %v4310_v44  ;;  %v6568_v13 = vsel %vm6274_vm14, %v8139_v39, 0.0  ;;  %v3344_v11 = vsel %vm3050_vm1, %v8087_v40, 0.0  ;;  %v4182_v54 = vsel %vm3888_vm2, %v8093_v30, 0.0 }
 0x2c6   : > { %7123 = vmatprep.subr.mxu1 %v6953_v26  ;;  %v2762_v63 = vadd.f32 %v2506_v19, %v1924_v42  ;;  %v5020_v22 = vsel %vm4726_vm3, %v8112_v31, 0.0  ;;  %vm5564_vm4 = vcmp.eq.s32.totalorder %v10866_v9, %v8115_v32  ;;  %vm661_vm5 = vcmp.eq.s32.totalorder %v10891_v29, %v7910_v45 }
 0x2c7   : > { %v5986_v0 = vadd.f32 %v5730_v20, %v5148_v41  ;;  %vm6402_vm6 = vcmp.eq.s32.totalorder %v10866_v9, %v8136_v43  ;;  %v955_v52 = vsel %vm661_vm5, %v7913_v46, 0.0  ;;  %vm1243_vm7 = vcmp.eq.s32.totalorder %v10891_v29, %v7916_v47 }
 0x2c8   : > { %v3600_v34 = vadd.f32 %v3344_v11, %v2762_v63  ;;  %v1537_v3 = vsel %vm1243_vm7, %v7919_v48, 0.0  ;;  %vm2081_vm9 = vcmp.eq.s32.totalorder %v10891_v29, %v7937_v57  ;;  %vm2919_vm10 = vcmp.eq.s32.totalorder %v10891_v29, %v7944_v60 }
 0x2c9   : > { %v6824_v44 = vadd.f32 %v6568_v13, %v5986_v0  ;;  %v1793_v38 = vadd.f32 %v1537_v3, %v955_v52  ;;  %v2375_v20 = vsel %vm2081_vm9, %v7940_v58, 0.0  ;;  %v3213_v19 = vsel %vm2919_vm10, %v7947_v61, 0.0 }
 0x2ca   : > { %v4438_v26 = vadd.f32 %v4182_v54, %v3600_v34  ;;  %vm3757_vm8 = vcmp.eq.s32.totalorder %v10891_v29, %v7961_v4  ;;  %vm4595_vm11 = vcmp.eq.s32.totalorder %v10891_v29, %v7970_v36  ;;  %vm5433_vm12 = vcmp.eq.s32.totalorder %v10891_v29, %v7988_v55 }
 0x2cb   : > { %7053 = vmatpush2.msra.mxu0 %v6824_v44  ;;  %v5858_v42 = vsel %vm5564_vm4, %v8133_v35, 0.0  ;;  %v6696_v41 = vsel %vm6402_vm6, %v8139_v39, 0.0  ;;  %v2631_v13 = vadd.f32 %v2375_v20, %v1793_v38  ;;  %v4051_v11 = vsel %vm3757_vm8, %v7967_v33, 0.0 }
 0x2cc   : > { %v5276_v54 = vadd.f32 %v5020_v22, %v4438_v26  ;;  %v4889_v63 = vsel %vm4595_vm11, %v7975_v37, 0.0  ;;  %v5727_v0 = vsel %vm5433_vm12, %v7991_v59, 0.0  ;;  %v11012_v52 = vadd.s32 %v7809_v10, %v10870_v14 }
 0x2cd   : > { %v3469_v34 = vadd.f32 %v3213_v19, %v2631_v13  ;;  %vm6271_vm13 = vcmp.eq.s32.totalorder %v10891_v29, %v7996_v1  ;;  %vm660_vm14 = vcmp.eq.s32.totalorder %v10891_v29, %v8058_v53  ;;  %vm1242_vm15 = vcmp.eq.s32.totalorder %v10891_v29, %v8039_v51 }
 0x2ce   : > { %15512 = vst [vmem:[#allocation62_spill] sm:$0xff] %v11012_v52  ;;  %v6114_v3 = vadd.f32 %v5858_v42, %v5276_v54  ;;  %vm789_vm0 = vcmp.eq.s32.totalorder %v11012_v52, %v7910_v45  ;;  %vm1371_vm1 = vcmp.eq.s32.totalorder %v11012_v52, %v7916_v47  ;;  %vm2209_vm2 = vcmp.eq.s32.totalorder %v11012_v52, %v7937_v57 }
 0x2cf   : > { %v4307_v14 = vadd.f32 %v4051_v11, %v3469_v34  ;;  %v1083_v22 = vsel %vm789_vm0, %v7913_v46, 0.0  ;;  %v1665_v44 = vsel %vm1371_vm1, %v7919_v48, 0.0  ;;  %v2503_v38 = vsel %vm2209_vm2, %v7940_v58, 0.0 }
 0x2d0   : > { %v6952_v20 = vadd.f32 %v6696_v41, %v6114_v3  ;;  %v1921_v19 = vadd.f32 %v1665_v44, %v1083_v22  ;;  %vm3047_vm3 = vcmp.eq.s32.totalorder %v11012_v52, %v7944_v60  ;;  %vm3885_vm4 = vcmp.eq.s32.totalorder %v11012_v52, %v7961_v4 }
 0x2d1   : > { %v5145_v26 = vadd.f32 %v4889_v63, %v4307_v14  ;;  %v3341_v42 = vsel %vm3047_vm3, %v7947_v61, 0.0  ;;  %vm4723_vm5 = vcmp.eq.s32.totalorder %v11012_v52, %v7970_v36  ;;  %v954_v13 = vsel %vm660_vm14, %v8061_v12, 0.0 }
 0x2d2   : > { %7124 = vmatpush2.msra.mxu1 %v6952_v20  ;;  %v6565_v41 = vsel %vm6271_vm13, %v8005_v2, 0.0  ;;  %v2759_v11 = vadd.f32 %v2503_v38, %v1921_v19  ;;  %v4179_v54 = vsel %vm3885_vm4, %v7967_v33, 0.0  ;;  %v5017_v63 = vsel %vm4723_vm5, %v7975_v37, 0.0 }
 0x2d3   : > { %v5983_v34 = vadd.f32 %v5727_v0, %v5145_v26  ;;  %vm5561_vm6 = vcmp.eq.s32.totalorder %v11012_v52, %v7988_v55  ;;  %vm6399_vm7 = vcmp.eq.s32.totalorder %v11012_v52, %v7996_v1  ;;  %v1536_v3 = vsel %vm1242_vm15, %v8066_v15, 0.0 }
 0x2d4   : > { %v3597_v14 = vadd.f32 %v3341_v42, %v2759_v11  ;;  %v1792_v22 = vadd.f32 %v1536_v3, %v954_v13  ;;  %vm2080_vm9 = vcmp.eq.s32.totalorder %v10891_v29, %v8047_v49  ;;  %vm2918_vm10 = vcmp.eq.s32.totalorder %v10891_v29, %v8055_v7 }
 0x2d5   : > { %v6821_v0 = vadd.f32 %v6565_v41, %v5983_v34  ;;  %v2374_v44 = vsel %vm2080_vm9, %v8071_v16, 0.0  ;;  %v3212_v38 = vsel %vm2918_vm10, %v8087_v40, 0.0  ;;  %vm3756_vm8 = vcmp.eq.s32.totalorder %v10891_v29, %v8090_v5 }
 0x2d6   : > { %v4435_v20 = vadd.f32 %v4179_v54, %v3597_v14  ;;  %v5855_v19 = vsel %vm5561_vm6, %v7991_v59, 0.0  ;;  %v2630_v26 = vadd.f32 %v2374_v44, %v1792_v22  ;;  %vm4594_vm11 = vcmp.eq.s32.totalorder %v10891_v29, %v8109_v23 }
 0x2d7   : > { %7054 = vmatprep.subr.mxu0 %v6821_v0  ;;  %v6693_v42 = vsel %vm6399_vm7, %v8005_v2, 0.0  ;;  %v4050_v13 = vsel %vm3756_vm8, %v8093_v30, 0.0  ;;  %v4888_v41 = vsel %vm4594_vm11, %v8112_v31, 0.0  ;;  %vm788_vm12 = vcmp.eq.s32.totalorder %v11012_v52, %v8058_v53 }
 0x2d8   : > { %v5273_v11 = vadd.f32 %v5017_v63, %v4435_v20  ;;  %v3468_v34 = vadd.f32 %v3212_v38, %v2630_v26  ;;  %vm5432_vm13 = vcmp.eq.s32.totalorder %v10891_v29, %v8115_v32  ;;  %vm6270_vm14 = vcmp.eq.s32.totalorder %v10891_v29, %v8136_v43 }
 0x2d9   : > { %v1082_v54 = vsel %vm788_vm12, %v8061_v12, 0.0  ;;  %vm1370_vm15 = vcmp.eq.s32.totalorder %v11012_v52, %v8039_v51  ;;  %vm2208_vm0 = vcmp.eq.s32.totalorder %v11012_v52, %v8047_v49  ;;  %vm3046_vm1 = vcmp.eq.s32.totalorder %v11012_v52, %v8055_v7 }
 0x2da   : > { %v6111_v3 = vadd.f32 %v5855_v19, %v5273_v11  ;;  %v4306_v63 = vadd.f32 %v4050_v13, %v3468_v34  ;;  %v1664_v14 = vsel %vm1370_vm15, %v8066_v15, 0.0  ;;  %v2502_v22 = vsel %vm2208_vm0, %v8071_v16, 0.0 }
 0x2db   : > { %v5726_v0 = vsel %vm5432_vm13, %v8133_v35, 0.0  ;;  %v1920_v44 = vadd.f32 %v1664_v14, %v1082_v54  ;;  %vm3884_vm2 = vcmp.eq.s32.totalorder %v11012_v52, %v8090_v5  ;;  %vm4722_vm3 = vcmp.eq.s32.totalorder %v11012_v52, %v8109_v23 }
 0x2dc   : > { %v6949_v38 = vadd.f32 %v6693_v42, %v6111_v3  ;;  %v5144_v20 = vadd.f32 %v4888_v41, %v4306_v63  ;;  %v6564_v26 = vsel %vm6270_vm14, %v8139_v39, 0.0  ;;  %v3340_v19 = vsel %vm3046_vm1, %v8087_v40, 0.0 }
 0x2dd   : > { %v2758_v13 = vadd.f32 %v2502_v22, %v1920_v44  ;;  %v4178_v11 = vsel %vm3884_vm2, %v8093_v30, 0.0  ;;  %v5016_v34 = vsel %vm4722_vm3, %v8112_v31, 0.0  ;;  %v11094_v54 = vadd.s32 %v7809_v10, %v10873_v62 }
 0x2de   : > { %7125 = vmatprep.subr.mxu1 %v6949_v38  ;;  %v5982_v14 = vadd.f32 %v5726_v0, %v5144_v20  ;;  %vm5560_vm4 = vcmp.eq.s32.totalorder %v11012_v52, %v8115_v32  ;;  %vm6398_vm5 = vcmp.eq.s32.totalorder %v11012_v52, %v8136_v43  ;;  %v11102_v42 = vadd.s32 %v7809_v10, %v10896_v8 }
 0x2df   : > { %15513 = vst [vmem:[#allocation63_spill] sm:$0xff] %v11094_v54  ;;  %v3596_v41 = vadd.f32 %v3340_v19, %v2758_v13  ;;  %vm657_vm6 = vcmp.eq.s32.totalorder %v11094_v54, %v7910_v45  ;;  %vm1239_vm7 = vcmp.eq.s32.totalorder %v11094_v54, %v7916_v47  ;;  %vm2077_vm9 = vcmp.eq.s32.totalorder %v11094_v54, %v7937_v57 }
 0x2e0   : > { %15514 = vst [vmem:[#allocation64_spill] sm:$0xff] %v11102_v42  ;;  %v6820_v62 = vadd.f32 %v6564_v26, %v5982_v14  ;;  %v951_v3 = vsel %vm657_vm6, %v7913_v46, 0.0  ;;  %v1533_v63 = vsel %vm1239_vm7, %v7919_v48, 0.0  ;;  %v2371_v22 = vsel %vm2077_vm9, %v7940_v58, 0.0 }
 0x2e1   : > { %v4434_v0 = vadd.f32 %v4178_v11, %v3596_v41  ;;  %v1789_v8 = vadd.f32 %v1533_v63, %v951_v3  ;;  %vm2915_vm10 = vcmp.eq.s32.totalorder %v11094_v54, %v7944_v60  ;;  %vm3753_vm8 = vcmp.eq.s32.totalorder %v11094_v54, %v7961_v4 }
 0x2e2   : > { %7055 = vmatpush2.msra.mxu0 %v6820_v62  ;;  %v5854_v44 = vsel %vm5560_vm4, %v8133_v35, 0.0  ;;  %v6692_v38 = vsel %vm6398_vm5, %v8139_v39, 0.0  ;;  %v3209_v20 = vsel %vm2915_vm10, %v7947_v61, 0.0  ;;  %vm4591_vm11 = vcmp.eq.s32.totalorder %v11094_v54, %v7970_v36 }
 0x2e3   : > { %v5272_v26 = vadd.f32 %v5016_v34, %v4434_v0  ;;  %v2627_v19 = vadd.f32 %v2371_v22, %v1789_v8  ;;  %v4047_v13 = vsel %vm3753_vm8, %v7967_v33, 0.0  ;;  %vm5429_vm12 = vcmp.eq.s32.totalorder %v11094_v54, %v7988_v55 }
 0x2e4   : > { %v4885_v11 = vsel %vm4591_vm11, %v7975_v37, 0.0  ;;  %vm785_vm13 = vcmp.eq.s32.totalorder %v11102_v42, %v7910_v45  ;;  %vm1367_vm14 = vcmp.eq.s32.totalorder %v11102_v42, %v7916_v47  ;;  %vm2205_vm15 = vcmp.eq.s32.totalorder %v11102_v42, %v7937_v57 }
 0x2e5   : > { %v6110_v14 = vadd.f32 %v5854_v44, %v5272_v26  ;;  %v3465_v41 = vadd.f32 %v3209_v20, %v2627_v19  ;;  %vm6267_vm0 = vcmp.eq.s32.totalorder %v11094_v54, %v7996_v1  ;;  %v1079_v34 = vsel %vm785_vm13, %v7913_v46, 0.0 }
 0x2e6   : > { %v1661_v62 = vsel %vm1367_vm14, %v7919_v48, 0.0  ;;  %v2499_v3 = vsel %vm2205_vm15, %v7940_v58, 0.0  ;;  %vm3043_vm1 = vcmp.eq.s32.totalorder %v11102_v42, %v7944_v60  ;;  %vm3881_vm2 = vcmp.eq.s32.totalorder %v11102_v42, %v7961_v4 }
 0x2e7   : > { %v6948_v63 = vadd.f32 %v6692_v38, %v6110_v14  ;;  %v4303_v22 = vadd.f32 %v4047_v13, %v3465_v41  ;;  %v5723_v0 = vsel %vm5429_vm12, %v7991_v59, 0.0  ;;  %v1917_v8 = vadd.f32 %v1661_v62, %v1079_v34 }
 0x2e8   : > { %v6561_v44 = vsel %vm6267_vm0, %v8005_v2, 0.0  ;;  %v3337_v20 = vsel %vm3043_vm1, %v7947_v61, 0.0  ;;  %v4175_v26 = vsel %vm3881_vm2, %v7967_v33, 0.0  ;;  %vm4719_vm3 = vcmp.eq.s32.totalorder %v11102_v42, %v7970_v36 }
 0x2e9   : > { %7126 = vmatpush2.msra.mxu1 %v6948_v63  ;;  %v5141_v19 = vadd.f32 %v4885_v11, %v4303_v22  ;;  %v2755_v52 = vadd.f32 %v2499_v3, %v1917_v8  ;;  %vm5557_vm4 = vcmp.eq.s32.totalorder %v11102_v42, %v7988_v55  ;;  %vm6395_vm5 = vcmp.eq.s32.totalorder %v11102_v42, %v7996_v1 }
 0x2ea   : > { %v5013_v38 = vsel %vm4719_vm3, %v7975_v37, 0.0  ;;  %vm656_vm6 = vcmp.eq.s32.totalorder %v11094_v54, %v8058_v53  ;;  %vm1238_vm7 = vcmp.eq.s32.totalorder %v11094_v54, %v8039_v51  ;;  %vm2076_vm9 = vcmp.eq.s32.totalorder %v11094_v54, %v8047_v49 }
 0x2eb   : > { %v5979_v13 = vadd.f32 %v5723_v0, %v5141_v19  ;;  %v3593_v11 = vadd.f32 %v3337_v20, %v2755_v52  ;;  %v950_v14 = vsel %vm656_vm6, %v8061_v12, 0.0  ;;  %v1532_v41 = vsel %vm1238_vm7, %v8066_v15, 0.0 }
 0x2ec   : > { %v1788_v34 = vadd.f32 %v1532_v41, %v950_v14  ;;  %v2370_v62 = vsel %vm2076_vm9, %v8071_v16, 0.0  ;;  %vm2914_vm10 = vcmp.eq.s32.totalorder %v11094_v54, %v8055_v7  ;;  %vm3752_vm8 = vcmp.eq.s32.totalorder %v11094_v54, %v8090_v5 }
 0x2ed   : > { %v6817_v3 = vadd.f32 %v6561_v44, %v5979_v13  ;;  %v4431_v63 = vadd.f32 %v4175_v26, %v3593_v11  ;;  %v5851_v52 = vsel %vm5557_vm4, %v7991_v59, 0.0  ;;  %v3208_v22 = vsel %vm2914_vm10, %v8087_v40, 0.0 }
 0x2ee   : > { %v6689_v0 = vsel %vm6395_vm5, %v8005_v2, 0.0  ;;  %v2626_v8 = vadd.f32 %v2370_v62, %v1788_v34  ;;  %v4046_v20 = vsel %vm3752_vm8, %v8093_v30, 0.0  ;;  %vm4590_vm11 = vcmp.eq.s32.totalorder %v11094_v54, %v8109_v23 }
 0x2ef   : > { %7056 = vmatprep.subr.mxu0 %v6817_v3  ;;  %v5269_v44 = vadd.f32 %v5013_v38, %v4431_v63  ;;  %v4884_v26 = vsel %vm4590_vm11, %v8112_v31, 0.0  ;;  %vm5428_vm12 = vcmp.eq.s32.totalorder %v11094_v54, %v8115_v32  ;;  %vm6266_vm13 = vcmp.eq.s32.totalorder %v11094_v54, %v8136_v43 }
 0x2f0   : > { %v3464_v19 = vadd.f32 %v3208_v22, %v2626_v8  ;;  %vm784_vm14 = vcmp.eq.s32.totalorder %v11102_v42, %v8058_v53  ;;  %vm1366_vm15 = vcmp.eq.s32.totalorder %v11102_v42, %v8039_v51  ;;  %vm2204_vm0 = vcmp.eq.s32.totalorder %v11102_v42, %v8047_v49 }
 0x2f1   : > { %v6107_v13 = vadd.f32 %v5851_v52, %v5269_v44  ;;  %v1078_v38 = vsel %vm784_vm14, %v8061_v12, 0.0  ;;  %v1660_v11 = vsel %vm1366_vm15, %v8066_v15, 0.0  ;;  %v2498_v14 = vsel %vm2204_vm0, %v8071_v16, 0.0 }
 0x2f2   : > { %v4302_v41 = vadd.f32 %v4046_v20, %v3464_v19  ;;  %v1916_v34 = vadd.f32 %v1660_v11, %v1078_v38  ;;  %vm3042_vm1 = vcmp.eq.s32.totalorder %v11102_v42, %v8055_v7  ;;  %vm3880_vm2 = vcmp.eq.s32.totalorder %v11102_v42, %v8090_v5 }
 0x2f3   : > { %v6945_v62 = vadd.f32 %v6689_v0, %v6107_v13  ;;  %v5722_v3 = vsel %vm5428_vm12, %v8133_v35, 0.0  ;;  %v3336_v63 = vsel %vm3042_vm1, %v8087_v40, 0.0  ;;  %vm4718_vm3 = vcmp.eq.s32.totalorder %v11102_v42, %v8109_v23 }
 0x2f4   : > { %v5140_v52 = vadd.f32 %v4884_v26, %v4302_v41  ;;  %v6560_v22 = vsel %vm6266_vm13, %v8139_v39, 0.0  ;;  %v2754_v8 = vadd.f32 %v2498_v14, %v1916_v34  ;;  %vm5556_vm4 = vcmp.eq.s32.totalorder %v11102_v42, %v8115_v32 }
 0x2f5   : > { %7127 = vmatprep.subr.mxu1 %v6945_v62  ;;  %v4174_v0 = vsel %vm3880_vm2, %v8093_v30, 0.0  ;;  %vm6394_vm5 = vcmp.eq.s32.totalorder %v11102_v42, %v8136_v43  ;;  %v433_v20 = vadd.s32 152, %v7805_v6  ;;  %v465_v44 = vadd.s32 408, %v7805_v6 }
 0x2f6   : > { %v5978_v26 = vadd.f32 %v5722_v3, %v5140_v52  ;;  %v3592_v19 = vadd.f32 %v3336_v63, %v2754_v8  ;;  %v5012_v13 = vsel %vm4718_vm3, %v8112_v31, 0.0  ;;  %v5850_v38 = vsel %vm5556_vm4, %v8133_v35, 0.0 }
 0x2f7   : > { %v6688_v11 = vsel %vm6394_vm5, %v8139_v39, 0.0  ;;  %v11220_v14 = vadd.s32 %v7809_v10, %v433_v20  ;;  %v11223_v41 = vadd.s32 %v7809_v10, %v465_v44  ;;  %v432_v34 = vadd.s32 144, %v7805_v6 }
 0x2f8   : > { %v6816_v62 = vadd.f32 %v6560_v22, %v5978_v26  ;;  %v4430_v42 = vadd.f32 %v4174_v0, %v3592_v19  ;;  %v11227_v54 = vadd.s32 400, %v7805_v6  ;;  %v11230_v3 = vadd.s32 136, %v7805_v6 }
 0x2f9   : > { %15515 = vst [vmem:[#allocation65_spill] sm:$0xff] %v11220_v14  ;;  %vm653_vm6 = vcmp.eq.s32.totalorder %v11220_v14, %v7910_v45  ;;  %vm1235_vm7 = vcmp.eq.s32.totalorder %v11220_v14, %v7916_v47  ;;  %vm2073_vm9 = vcmp.eq.s32.totalorder %v11220_v14, %v7937_v57  ;;  %vm2911_vm10 = vcmp.eq.s32.totalorder %v11220_v14, %v7944_v60 }
 0x2fa   : > { %7057 = vmatpush2.msra.mxu0 %v6816_v62  ;;  %v5268_v63 = vadd.f32 %v5012_v13, %v4430_v42  ;;  %v947_v52 = vsel %vm653_vm6, %v7913_v46, 0.0  ;;  %v1529_v22 = vsel %vm1235_vm7, %v7919_v48, 0.0  ;;  %v2367_v8 = vsel %vm2073_vm9, %v7940_v58, 0.0 }
 0x2fb   : > { %v1785_v0 = vadd.f32 %v1529_v22, %v947_v52  ;;  %vm3749_vm8 = vcmp.eq.s32.totalorder %v11220_v14, %v7961_v4  ;;  %vm4587_vm11 = vcmp.eq.s32.totalorder %v11220_v14, %v7970_v36  ;;  %v11248_v20 = vadd.s32 %v7809_v10, %v432_v34 }
 0x2fc   : > { %v6106_v44 = vadd.f32 %v5850_v38, %v5268_v63  ;;  %v3205_v26 = vsel %vm2911_vm10, %v7947_v61, 0.0  ;;  %v4043_v42 = vsel %vm3749_vm8, %v7967_v33, 0.0  ;;  %v11253_v19 = vadd.s32 392, %v7805_v6 }
 0x2fd   : > { %15516 = vst [vmem:[#allocation66_spill] sm:$0xff] %v11248_v20  ;;  %v2623_v13 = vadd.f32 %v2367_v8, %v1785_v0  ;;  %v4881_v62 = vsel %vm4587_vm11, %v7975_v37, 0.0  ;;  %vm5425_vm12 = vcmp.eq.s32.totalorder %v11220_v14, %v7988_v55  ;;  %vm781_vm13 = vcmp.eq.s32.totalorder %v11223_v41, %v7910_v45 }
 0x2fe   : > { %v6944_v52 = vadd.f32 %v6688_v11, %v6106_v44  ;;  %vm6263_vm14 = vcmp.eq.s32.totalorder %v11220_v14, %v7996_v1  ;;  %v1075_v38 = vsel %vm781_vm13, %v7913_v46, 0.0  ;;  %vm1363_vm15 = vcmp.eq.s32.totalorder %v11223_v41, %v7916_v47 }
 0x2ff   : > { %v3461_v34 = vadd.f32 %v3205_v26, %v2623_v13  ;;  %v1657_v63 = vsel %vm1363_vm15, %v7919_v48, 0.0  ;;  %vm2201_vm0 = vcmp.eq.s32.totalorder %v11223_v41, %v7937_v57  ;;  %vm3039_vm1 = vcmp.eq.s32.totalorder %v11223_v41, %v7944_v60 }
 0x300   : > { %7128 = vmatpush2.msra.mxu1 %v6944_v52  ;;  %v5719_v11 = vsel %vm5425_vm12, %v7991_v59, 0.0  ;;  %v1913_v22 = vadd.f32 %v1657_v63, %v1075_v38  ;;  %v2495_v8 = vsel %vm2201_vm0, %v7940_v58, 0.0  ;;  %vm3877_vm2 = vcmp.eq.s32.totalorder %v11223_v41, %v7961_v4 }
 0x301   : > { %v4299_v0 = vadd.f32 %v4043_v42, %v3461_v34  ;;  %v6557_v44 = vsel %vm6263_vm14, %v8005_v2, 0.0  ;;  %v3333_v26 = vsel %vm3039_vm1, %v7947_v61, 0.0  ;;  %vm4715_vm3 = vcmp.eq.s32.totalorder %v11223_v41, %v7970_v36 }
 0x302   : > { %v2751_v13 = vadd.f32 %v2495_v8, %v1913_v22  ;;  %v4171_v29 = vsel %vm3877_vm2, %v7967_v33, 0.0  ;;  %v5009_v52 = vsel %vm4715_vm3, %v7975_v37, 0.0  ;;  %vm5553_vm4 = vcmp.eq.s32.totalorder %v11223_v41, %v7988_v55 }
 0x303   : > { %v5137_v38 = vadd.f32 %v4881_v62, %v4299_v0  ;;  %vm6391_vm5 = vcmp.eq.s32.totalorder %v11223_v41, %v7996_v1  ;;  %vm652_vm6 = vcmp.eq.s32.totalorder %v11220_v14, %v8058_v53  ;;  %vm1234_vm7 = vcmp.eq.s32.totalorder %v11220_v14, %v8039_v51 }
 0x304   : > { %v3589_v42 = vadd.f32 %v3333_v26, %v2751_v13  ;;  %v946_v34 = vsel %vm652_vm6, %v8061_v12, 0.0  ;;  %v1528_v63 = vsel %vm1234_vm7, %v8066_v15, 0.0  ;;  %vm2072_vm9 = vcmp.eq.s32.totalorder %v11220_v14, %v8047_v49 }
 0x305   : > { %v5975_v22 = vadd.f32 %v5719_v11, %v5137_v38  ;;  %v1784_v8 = vadd.f32 %v1528_v63, %v946_v34  ;;  %v2366_v62 = vsel %vm2072_vm9, %v8071_v16, 0.0  ;;  %vm2910_vm10 = vcmp.eq.s32.totalorder %v11220_v14, %v8055_v7 }
 0x306   : > { %v4427_v0 = vadd.f32 %v4171_v29, %v3589_v42  ;;  %v3204_v9 = vsel %vm2910_vm10, %v8087_v40, 0.0  ;;  %vm3748_vm8 = vcmp.eq.s32.totalorder %v11220_v14, %v8090_v5  ;;  %vm4586_vm11 = vcmp.eq.s32.totalorder %v11220_v14, %v8109_v23 }
 0x307   : > { %v6813_v26 = vadd.f32 %v6557_v44, %v5975_v22  ;;  %v5847_v11 = vsel %vm5553_vm4, %v7991_v59, 0.0  ;;  %v6685_v13 = vsel %vm6391_vm5, %v8005_v2, 0.0  ;;  %v2622_v29 = vadd.f32 %v2366_v62, %v1784_v8 }
 0x308   : > { %v5265_v38 = vadd.f32 %v5009_v52, %v4427_v0  ;;  %v4042_v42 = vsel %vm3748_vm8, %v8093_v30, 0.0  ;;  %vm5424_vm12 = vcmp.eq.s32.totalorder %v11220_v14, %v8115_v32  ;;  %vm780_vm13 = vcmp.eq.s32.totalorder %v11223_v41, %v8058_v53 }
 0x309   : > { %7058 = vmatprep.subr.mxu0 %v6813_v26  ;;  %v3460_v44 = vadd.f32 %v3204_v9, %v2622_v29  ;;  %v4880_v34 = vsel %vm4586_vm11, %v8112_v31, 0.0  ;;  %vm6262_vm14 = vcmp.eq.s32.totalorder %v11220_v14, %v8136_v43  ;;  %v1074_v63 = vsel %vm780_vm13, %v8061_v12, 0.0 }
 0x30a   : > { %v6103_v22 = vadd.f32 %v5847_v11, %v5265_v38  ;;  %vm1362_vm15 = vcmp.eq.s32.totalorder %v11223_v41, %v8039_v51  ;;  %vm2200_vm0 = vcmp.eq.s32.totalorder %v11223_v41, %v8047_v49  ;;  %vm3038_vm1 = vcmp.eq.s32.totalorder %v11223_v41, %v8055_v7 }
 0x30b   : > { %v4298_v52 = vadd.f32 %v4042_v42, %v3460_v44  ;;  %v5718_v9 = vsel %vm5424_vm12, %v8133_v35, 0.0  ;;  %v1656_v8 = vsel %vm1362_vm15, %v8066_v15, 0.0  ;;  %v2494_v62 = vsel %vm2200_vm0, %v8071_v16, 0.0 }
 0x30c   : > { %v6941_v0 = vadd.f32 %v6685_v13, %v6103_v22  ;;  %v1912_v26 = vadd.f32 %v1656_v8, %v1074_v63  ;;  %vm3876_vm2 = vcmp.eq.s32.totalorder %v11223_v41, %v8090_v5  ;;  %vm4714_vm3 = vcmp.eq.s32.totalorder %v11223_v41, %v8109_v23 }
 0x30d   : > { %v5136_v11 = vadd.f32 %v4880_v34, %v4298_v52  ;;  %v6556_v29 = vsel %vm6262_vm14, %v8139_v39, 0.0  ;;  %v3332_v38 = vsel %vm3038_vm1, %v8087_v40, 0.0  ;;  %v4170_v42 = vsel %vm3876_vm2, %v8093_v30, 0.0 }
 0x30e   : > { %7129 = vmatprep.subr.mxu1 %v6941_v0  ;;  %v2750_v44 = vadd.f32 %v2494_v62, %v1912_v26  ;;  %v5008_v14 = vsel %vm4714_vm3, %v8112_v31, 0.0  ;;  %vm5552_vm4 = vcmp.eq.s32.totalorder %v11223_v41, %v8115_v32  ;;  %vm649_vm5 = vcmp.eq.s32.totalorder %v11248_v20, %v7910_v45 }
 0x30f   : > { %v5974_v13 = vadd.f32 %v5718_v9, %v5136_v11  ;;  %vm6390_vm6 = vcmp.eq.s32.totalorder %v11223_v41, %v8136_v43  ;;  %v943_v34 = vsel %vm649_vm5, %v7913_v46, 0.0  ;;  %vm1231_vm7 = vcmp.eq.s32.totalorder %v11248_v20, %v7916_v47 }
 0x310   : > { %v3588_v63 = vadd.f32 %v3332_v38, %v2750_v44  ;;  %v1525_v22 = vsel %vm1231_vm7, %v7919_v48, 0.0  ;;  %vm2069_vm9 = vcmp.eq.s32.totalorder %v11248_v20, %v7937_v57  ;;  %vm2907_vm10 = vcmp.eq.s32.totalorder %v11248_v20, %v7944_v60 }
 0x311   : > { %v6812_v52 = vadd.f32 %v6556_v29, %v5974_v13  ;;  %v1781_v8 = vadd.f32 %v1525_v22, %v943_v34  ;;  %v2363_v9 = vsel %vm2069_vm9, %v7940_v58, 0.0  ;;  %v3201_v62 = vsel %vm2907_vm10, %v7947_v61, 0.0 }
 0x312   : > { %v4426_v0 = vadd.f32 %v4170_v42, %v3588_v63  ;;  %vm3745_vm8 = vcmp.eq.s32.totalorder %v11248_v20, %v7961_v4  ;;  %vm4583_vm11 = vcmp.eq.s32.totalorder %v11248_v20, %v7970_v36  ;;  %vm5421_vm12 = vcmp.eq.s32.totalorder %v11248_v20, %v7988_v55 }
 0x313   : > { %7059 = vmatpush2.msra.mxu0 %v6812_v52  ;;  %v5846_v26 = vsel %vm5552_vm4, %v8133_v35, 0.0  ;;  %v6684_v11 = vsel %vm6390_vm6, %v8139_v39, 0.0  ;;  %v2619_v29 = vadd.f32 %v2363_v9, %v1781_v8  ;;  %v4039_v38 = vsel %vm3745_vm8, %v7967_v33, 0.0 }
 0x314   : > { %v5264_v42 = vadd.f32 %v5008_v14, %v4426_v0  ;;  %v4877_v44 = vsel %vm4583_vm11, %v7975_v37, 0.0  ;;  %v5715_v13 = vsel %vm5421_vm12, %v7991_v59, 0.0  ;;  %v11369_v34 = vadd.s32 %v7809_v10, %v11227_v54 }
 0x315   : > { %v3457_v63 = vadd.f32 %v3201_v62, %v2619_v29  ;;  %vm6259_vm13 = vcmp.eq.s32.totalorder %v11248_v20, %v7996_v1  ;;  %vm648_vm14 = vcmp.eq.s32.totalorder %v11248_v20, %v8058_v53  ;;  %vm1230_vm15 = vcmp.eq.s32.totalorder %v11248_v20, %v8039_v51 }
 0x316   : > { %15517 = vst [vmem:[#allocation67_spill] sm:$0xff] %v11369_v34  ;;  %v6102_v22 = vadd.f32 %v5846_v26, %v5264_v42  ;;  %vm777_vm0 = vcmp.eq.s32.totalorder %v11369_v34, %v7910_v45  ;;  %vm1359_vm1 = vcmp.eq.s32.totalorder %v11369_v34, %v7916_v47  ;;  %vm2197_vm2 = vcmp.eq.s32.totalorder %v11369_v34, %v7937_v57 }
 0x317   : > { %v4295_v54 = vadd.f32 %v4039_v38, %v3457_v63  ;;  %v1071_v14 = vsel %vm777_vm0, %v7913_v46, 0.0  ;;  %v1653_v52 = vsel %vm1359_vm1, %v7919_v48, 0.0  ;;  %v2491_v8 = vsel %vm2197_vm2, %v7940_v58, 0.0 }
 0x318   : > { %v6940_v9 = vadd.f32 %v6684_v11, %v6102_v22  ;;  %v1909_v62 = vadd.f32 %v1653_v52, %v1071_v14  ;;  %vm3035_vm3 = vcmp.eq.s32.totalorder %v11369_v34, %v7944_v60  ;;  %vm3873_vm4 = vcmp.eq.s32.totalorder %v11369_v34, %v7961_v4 }
 0x319   : > { %v5133_v0 = vadd.f32 %v4877_v44, %v4295_v54  ;;  %v3329_v26 = vsel %vm3035_vm3, %v7947_v61, 0.0  ;;  %vm4711_vm5 = vcmp.eq.s32.totalorder %v11369_v34, %v7970_v36  ;;  %v942_v29 = vsel %vm648_vm14, %v8061_v12, 0.0 }
 0x31a   : > { %7130 = vmatpush2.msra.mxu1 %v6940_v9  ;;  %v6553_v11 = vsel %vm6259_vm13, %v8005_v2, 0.0  ;;  %v2747_v38 = vadd.f32 %v2491_v8, %v1909_v62  ;;  %v4167_v42 = vsel %vm3873_vm4, %v7967_v33, 0.0  ;;  %v5005_v44 = vsel %vm4711_vm5, %v7975_v37, 0.0 }
 0x31b   : > { %v5971_v63 = vadd.f32 %v5715_v13, %v5133_v0  ;;  %vm5549_vm6 = vcmp.eq.s32.totalorder %v11369_v34, %v7988_v55  ;;  %vm6387_vm7 = vcmp.eq.s32.totalorder %v11369_v34, %v7996_v1  ;;  %v1524_v22 = vsel %vm1230_vm15, %v8066_v15, 0.0 }
 0x31c   : > { %v3585_v54 = vadd.f32 %v3329_v26, %v2747_v38  ;;  %v1780_v14 = vadd.f32 %v1524_v22, %v942_v29  ;;  %vm2068_vm9 = vcmp.eq.s32.totalorder %v11248_v20, %v8047_v49  ;;  %vm2906_vm10 = vcmp.eq.s32.totalorder %v11248_v20, %v8055_v7 }
 0x31d   : > { %v6809_v13 = vadd.f32 %v6553_v11, %v5971_v63  ;;  %v2362_v52 = vsel %vm2068_vm9, %v8071_v16, 0.0  ;;  %v3200_v8 = vsel %vm2906_vm10, %v8087_v40, 0.0  ;;  %vm3744_vm8 = vcmp.eq.s32.totalorder %v11248_v20, %v8090_v5 }
 0x31e   : > { %v4423_v9 = vadd.f32 %v4167_v42, %v3585_v54  ;;  %v5843_v62 = vsel %vm5549_vm6, %v7991_v59, 0.0  ;;  %v2618_v0 = vadd.f32 %v2362_v52, %v1780_v14  ;;  %vm4582_vm11 = vcmp.eq.s32.totalorder %v11248_v20, %v8109_v23 }
 0x31f   : > { %7060 = vmatprep.subr.mxu0 %v6809_v13  ;;  %v6681_v26 = vsel %vm6387_vm7, %v8005_v2, 0.0  ;;  %v4038_v29 = vsel %vm3744_vm8, %v8093_v30, 0.0  ;;  %v4876_v11 = vsel %vm4582_vm11, %v8112_v31, 0.0  ;;  %vm776_vm12 = vcmp.eq.s32.totalorder %v11369_v34, %v8058_v53 }
 0x320   : > { %v5261_v38 = vadd.f32 %v5005_v44, %v4423_v9  ;;  %v3456_v63 = vadd.f32 %v3200_v8, %v2618_v0  ;;  %vm5420_vm13 = vcmp.eq.s32.totalorder %v11248_v20, %v8115_v32  ;;  %vm6258_vm14 = vcmp.eq.s32.totalorder %v11248_v20, %v8136_v43 }
 0x321   : > { %v1070_v42 = vsel %vm776_vm12, %v8061_v12, 0.0  ;;  %vm1358_vm15 = vcmp.eq.s32.totalorder %v11369_v34, %v8039_v51  ;;  %vm2196_vm0 = vcmp.eq.s32.totalorder %v11369_v34, %v8047_v49  ;;  %vm3034_vm1 = vcmp.eq.s32.totalorder %v11369_v34, %v8055_v7 }
 0x322   : > { %v6099_v22 = vadd.f32 %v5843_v62, %v5261_v38  ;;  %v4294_v44 = vadd.f32 %v4038_v29, %v3456_v63  ;;  %v1652_v54 = vsel %vm1358_vm15, %v8066_v15, 0.0  ;;  %v2490_v14 = vsel %vm2196_vm0, %v8071_v16, 0.0 }
 0x323   : > { %v5714_v13 = vsel %vm5420_vm13, %v8133_v35, 0.0  ;;  %v1908_v52 = vadd.f32 %v1652_v54, %v1070_v42  ;;  %vm3872_vm2 = vcmp.eq.s32.totalorder %v11369_v34, %v8090_v5  ;;  %vm4710_vm3 = vcmp.eq.s32.totalorder %v11369_v34, %v8109_v23 }
 0x324   : > { %v6937_v8 = vadd.f32 %v6681_v26, %v6099_v22  ;;  %v5132_v9 = vadd.f32 %v4876_v11, %v4294_v44  ;;  %v6552_v0 = vsel %vm6258_vm14, %v8139_v39, 0.0  ;;  %v3328_v62 = vsel %vm3034_vm1, %v8087_v40, 0.0 }
 0x325   : > { %v2746_v29 = vadd.f32 %v2490_v14, %v1908_v52  ;;  %v4166_v38 = vsel %vm3872_vm2, %v8093_v30, 0.0  ;;  %v5004_v63 = vsel %vm4710_vm3, %v8112_v31, 0.0  ;;  %v11451_v42 = vadd.s32 %v7809_v10, %v11230_v3 }
 0x326   : > { %7131 = vmatprep.subr.mxu1 %v6937_v8  ;;  %v5970_v54 = vadd.f32 %v5714_v13, %v5132_v9  ;;  %vm5548_vm4 = vcmp.eq.s32.totalorder %v11369_v34, %v8115_v32  ;;  %vm6386_vm5 = vcmp.eq.s32.totalorder %v11369_v34, %v8136_v43  ;;  %v11459_v26 = vadd.s32 %v7809_v10, %v11253_v19 }
 0x327   : > { %15518 = vst [vmem:[#allocation68_spill] sm:$0xff] %v11451_v42  ;;  %v3584_v11 = vadd.f32 %v3328_v62, %v2746_v29  ;;  %vm645_vm6 = vcmp.eq.s32.totalorder %v11451_v42, %v7910_v45  ;;  %vm1227_vm7 = vcmp.eq.s32.totalorder %v11451_v42, %v7916_v47  ;;  %vm2065_vm9 = vcmp.eq.s32.totalorder %v11451_v42, %v7937_v57 }
 0x328   : > { %v6808_v3 = vadd.f32 %v6552_v0, %v5970_v54  ;;  %v939_v22 = vsel %vm645_vm6, %v7913_v46, 0.0  ;;  %v1521_v44 = vsel %vm1227_vm7, %v7919_v48, 0.0  ;;  %v2359_v14 = vsel %vm2065_vm9, %v7940_v58, 0.0 }
 0x329   : > { %v4422_v13 = vadd.f32 %v4166_v38, %v3584_v11  ;;  %v1777_v19 = vadd.f32 %v1521_v44, %v939_v22  ;;  %vm2903_vm10 = vcmp.eq.s32.totalorder %v11451_v42, %v7944_v60  ;;  %vm3741_vm8 = vcmp.eq.s32.totalorder %v11451_v42, %v7961_v4 }
 0x32a   : > { %7061 = vmatpush2.msra.mxu0 %v6808_v3  ;;  %v5842_v52 = vsel %vm5548_vm4, %v8133_v35, 0.0  ;;  %v6680_v8 = vsel %vm6386_vm5, %v8139_v39, 0.0  ;;  %v3197_v9 = vsel %vm2903_vm10, %v7947_v61, 0.0  ;;  %vm4579_vm11 = vcmp.eq.s32.totalorder %v11451_v42, %v7970_v36 }
 0x32b   : > { %v5260_v0 = vadd.f32 %v5004_v63, %v4422_v13  ;;  %v2615_v62 = vadd.f32 %v2359_v14, %v1777_v19  ;;  %v4035_v29 = vsel %vm3741_vm8, %v7967_v33, 0.0  ;;  %vm5417_vm12 = vcmp.eq.s32.totalorder %v11451_v42, %v7988_v55 }
 0x32c   : > { %v4873_v38 = vsel %vm4579_vm11, %v7975_v37, 0.0  ;;  %vm773_vm13 = vcmp.eq.s32.totalorder %v11459_v26, %v7910_v45  ;;  %vm1355_vm14 = vcmp.eq.s32.totalorder %v11459_v26, %v7916_v47  ;;  %vm2193_vm15 = vcmp.eq.s32.totalorder %v11459_v26, %v7937_v57 }
 0x32d   : > { %v6098_v54 = vadd.f32 %v5842_v52, %v5260_v0  ;;  %v3453_v11 = vadd.f32 %v3197_v9, %v2615_v62  ;;  %vm6255_vm0 = vcmp.eq.s32.totalorder %v11451_v42, %v7996_v1  ;;  %v1067_v63 = vsel %vm773_vm13, %v7913_v46, 0.0 }
 0x32e   : > { %v1649_v3 = vsel %vm1355_vm14, %v7919_v48, 0.0  ;;  %v2487_v22 = vsel %vm2193_vm15, %v7940_v58, 0.0  ;;  %vm3031_vm1 = vcmp.eq.s32.totalorder %v11459_v26, %v7944_v60  ;;  %vm3869_vm2 = vcmp.eq.s32.totalorder %v11459_v26, %v7961_v4 }
 0x32f   : > { %v6936_v44 = vadd.f32 %v6680_v8, %v6098_v54  ;;  %v4291_v14 = vadd.f32 %v4035_v29, %v3453_v11  ;;  %v5711_v13 = vsel %vm5417_vm12, %v7991_v59, 0.0  ;;  %v1905_v19 = vadd.f32 %v1649_v3, %v1067_v63 }
 0x330   : > { %v6549_v52 = vsel %vm6255_vm0, %v8005_v2, 0.0  ;;  %v3325_v9 = vsel %vm3031_vm1, %v7947_v61, 0.0  ;;  %v4163_v0 = vsel %vm3869_vm2, %v7967_v33, 0.0  ;;  %vm4707_vm3 = vcmp.eq.s32.totalorder %v11459_v26, %v7970_v36 }
 0x331   : > { %7132 = vmatpush2.msra.mxu1 %v6936_v44  ;;  %v5129_v62 = vadd.f32 %v4873_v38, %v4291_v14  ;;  %v2743_v34 = vadd.f32 %v2487_v22, %v1905_v19  ;;  %vm5545_vm4 = vcmp.eq.s32.totalorder %v11459_v26, %v7988_v55  ;;  %vm6383_vm5 = vcmp.eq.s32.totalorder %v11459_v26, %v7996_v1 }
 0x332   : > { %v5001_v8 = vsel %vm4707_vm3, %v7975_v37, 0.0  ;;  %vm644_vm6 = vcmp.eq.s32.totalorder %v11451_v42, %v8058_v53  ;;  %vm1226_vm7 = vcmp.eq.s32.totalorder %v11451_v42, %v8039_v51  ;;  %vm2064_vm9 = vcmp.eq.s32.totalorder %v11451_v42, %v8047_v49 }
 0x333   : > { %v5967_v29 = vadd.f32 %v5711_v13, %v5129_v62  ;;  %v3581_v38 = vadd.f32 %v3325_v9, %v2743_v34  ;;  %v938_v54 = vsel %vm644_vm6, %v8061_v12, 0.0  ;;  %v1520_v11 = vsel %vm1226_vm7, %v8066_v15, 0.0 }
 0x334   : > { %v1776_v63 = vadd.f32 %v1520_v11, %v938_v54  ;;  %v2358_v3 = vsel %vm2064_vm9, %v8071_v16, 0.0  ;;  %vm2902_vm10 = vcmp.eq.s32.totalorder %v11451_v42, %v8055_v7  ;;  %vm3740_vm8 = vcmp.eq.s32.totalorder %v11451_v42, %v8090_v5 }
 0x335   : > { %v6805_v22 = vadd.f32 %v6549_v52, %v5967_v29  ;;  %v4419_v44 = vadd.f32 %v4163_v0, %v3581_v38  ;;  %v5839_v34 = vsel %vm5545_vm4, %v7991_v59, 0.0  ;;  %v3196_v14 = vsel %vm2902_vm10, %v8087_v40, 0.0 }
 0x336   : > { %v6677_v13 = vsel %vm6383_vm5, %v8005_v2, 0.0  ;;  %v2614_v19 = vadd.f32 %v2358_v3, %v1776_v63  ;;  %v4034_v9 = vsel %vm3740_vm8, %v8093_v30, 0.0  ;;  %vm4578_vm11 = vcmp.eq.s32.totalorder %v11451_v42, %v8109_v23 }
 0x337   : > { %7062 = vmatprep.subr.mxu0 %v6805_v22  ;;  %v5257_v52 = vadd.f32 %v5001_v8, %v4419_v44  ;;  %v4872_v0 = vsel %vm4578_vm11, %v8112_v31, 0.0  ;;  %vm5416_vm12 = vcmp.eq.s32.totalorder %v11451_v42, %v8115_v32  ;;  %vm6254_vm13 = vcmp.eq.s32.totalorder %v11451_v42, %v8136_v43 }
 0x338   : > { %v3452_v62 = vadd.f32 %v3196_v14, %v2614_v19  ;;  %vm772_vm14 = vcmp.eq.s32.totalorder %v11459_v26, %v8058_v53  ;;  %vm1354_vm15 = vcmp.eq.s32.totalorder %v11459_v26, %v8039_v51  ;;  %vm2192_vm0 = vcmp.eq.s32.totalorder %v11459_v26, %v8047_v49 }
 0x339   : > { %v6095_v8 = vadd.f32 %v5839_v34, %v5257_v52  ;;  %v1066_v29 = vsel %vm772_vm14, %v8061_v12, 0.0  ;;  %v1648_v38 = vsel %vm1354_vm15, %v8066_v15, 0.0  ;;  %v2486_v54 = vsel %vm2192_vm0, %v8071_v16, 0.0  ;;  %v11561_v34 = vld [vmem:[%s7798_s14] sm:$0xff] }
 0x33a   : > { %v4290_v11 = vadd.f32 %v4034_v9, %v3452_v62  ;;  %v1904_v63 = vadd.f32 %v1648_v38, %v1066_v29  ;;  %vm3030_vm1 = vcmp.eq.s32.totalorder %v11459_v26, %v8055_v7  ;;  %vm3868_vm2 = vcmp.eq.s32.totalorder %v11459_v26, %v8090_v5  ;;  %v11568_v9 = vld [vmem:[%s7798_s14 + $0x8] sm:$0xff] }
 0x33b   : > { %v6933_v3 = vadd.f32 %v6677_v13, %v6095_v8  ;;  %v5710_v22 = vsel %vm5416_vm12, %v8133_v35, 0.0  ;;  %v3324_v44 = vsel %vm3030_vm1, %v8087_v40, 0.0  ;;  %vm4706_vm3 = vcmp.eq.s32.totalorder %v11459_v26, %v8109_v23 }
 0x33c   : > { %v5128_v14 = vadd.f32 %v4872_v0, %v4290_v11  ;;  %v2742_v19 = vadd.f32 %v2486_v54, %v1904_v63  ;;  %vm5544_vm4 = vcmp.eq.s32.totalorder %v11459_v26, %v8115_v32  ;;  %v6548_v13 = vsel %vm6254_vm13, %v8139_v39, 0.0 }
 0x33d   : > { %7133 = vmatprep.subr.mxu1 %v6933_v3  ;;  %v4162_v52 = vsel %vm3868_vm2, %v8093_v30, 0.0  ;;  %v430_v62 = vadd.s32 128, %v7805_v6  ;;  %v462_v0 = vadd.s32 384, %v7805_v6  ;;  %v11579_v38 = vcombine.high %v11561_v34, %v11561_v34 }
 0x33e   : > { %v5966_v8 = vadd.f32 %v5710_v22, %v5128_v14  ;;  %v3580_v29 = vadd.f32 %v3324_v44, %v2742_v19  ;;  %v5000_v54 = vsel %vm4706_vm3, %v8112_v31, 0.0  ;;  %v5838_v11 = vsel %vm5544_vm4, %v8133_v35, 0.0 }
 0x33f   : > { %v11584_v63 = vadd.s32 %v7809_v10, %v430_v62  ;;  %v11588_v3 = vcombine.high %v11568_v9, %v11568_v9  ;;  %vm6382_vm5 = vcmp.eq.s32.totalorder %v11459_v26, %v8136_v43  ;;  %v11593_v6 = vadd.s32 %v7809_v10, %v462_v0  ;;  %7066 = vmatprep.mubr.f32.mxu0 %v11579_v38 }
 0x340   : > { %v6804_v42 = vadd.f32 %v6548_v13, %v5966_v8  ;;  %v4418_v20 = vadd.f32 %v4162_v52, %v3580_v29  ;;  %v6676_v19 = vsel %vm6382_vm5, %v8139_v39, 0.0 }
 0x341   : > { %vm641_vm6 = vcmp.eq.s32.totalorder %v11584_v63, %v7910_v45  ;;  %vm1223_vm7 = vcmp.eq.s32.totalorder %v11584_v63, %v7916_v47  ;;  %vm2061_vm9 = vcmp.eq.s32.totalorder %v11584_v63, %v7937_v57  ;;  %vm2899_vm10 = vcmp.eq.s32.totalorder %v11584_v63, %v7944_v60  ;;  %7137 = vmatprep.mubr.f32.mxu1 %v11588_v3 }
 0x342   : > { %7063 = vmatpush2.msra.mxu0 %v6804_v42  ;;  %v5256_v22 = vadd.f32 %v5000_v54, %v4418_v20  ;;  %v935_v10 = vsel %vm641_vm6, %v7913_v46, 0.0  ;;  %v1517_v44 = vsel %vm1223_vm7, %v7919_v48, 0.0  ;;  %v2355_v14 = vsel %vm2061_vm9, %v7940_v58, 0.0 }
 0x343   : > { %v1773_v13 = vadd.f32 %v1517_v44, %v935_v10  ;;  %vm3737_vm8 = vcmp.eq.s32.totalorder %v11584_v63, %v7961_v4  ;;  %vm4575_vm11 = vcmp.eq.s32.totalorder %v11584_v63, %v7970_v36  ;;  %v3193_v62 = vsel %vm2899_vm10, %v7947_v61, 0.0 }
 0x344   : > { %v6094_v52 = vadd.f32 %v5838_v11, %v5256_v22  ;;  %v4031_v20 = vsel %vm3737_vm8, %v7967_v33, 0.0  ;;  %v4869_v0 = vsel %vm4575_vm11, %v7975_v37, 0.0  ;;  %vm5413_vm12 = vcmp.eq.s32.totalorder %v11584_v63, %v7988_v55 }
 0x345   : > { %v2611_v42 = vadd.f32 %v2355_v14, %v1773_v13  ;;  %vm769_vm13 = vcmp.eq.s32.totalorder %v11593_v6, %v7910_v45  ;;  %vm6251_vm14 = vcmp.eq.s32.totalorder %v11584_v63, %v7996_v1  ;;  %vm1351_vm15 = vcmp.eq.s32.totalorder %v11593_v6, %v7916_v47 }
 0x346   : > { %v6932_v8 = vadd.f32 %v6676_v19, %v6094_v52  ;;  %v1063_v29 = vsel %vm769_vm13, %v7913_v46, 0.0  ;;  %v1645_v11 = vsel %vm1351_vm15, %v7919_v48, 0.0  ;;  %vm2189_vm0 = vcmp.eq.s32.totalorder %v11593_v6, %v7937_v57 }
 0x347   : > { %v3449_v54 = vadd.f32 %v3193_v62, %v2611_v42  ;;  %vm3027_vm1 = vcmp.eq.s32.totalorder %v11593_v6, %v7944_v60  ;;  %v5707_v45 = vsel %vm5413_vm12, %v7991_v59, 0.0  ;;  %v1901_v22 = vadd.f32 %v1645_v11, %v1063_v29 }
 0x348   : > { %7134 = vmatpush2.msra.mxu1 %v6932_v8  ;;  %v2483_v10 = vsel %vm2189_vm0, %v7940_v58, 0.0  ;;  %vm3865_vm2 = vcmp.eq.s32.totalorder %v11593_v6, %v7961_v4  ;;  %v6545_v47 = vsel %vm6251_vm14, %v8005_v2, 0.0  ;;  %v3321_v48 = vsel %vm3027_vm1, %v7947_v61, 0.0 }
 0x349   : > { %v4287_v46 = vadd.f32 %v4031_v20, %v3449_v54  ;;  %vm4703_vm3 = vcmp.eq.s32.totalorder %v11593_v6, %v7970_v36  ;;  %v2739_v57 = vadd.f32 %v2483_v10, %v1901_v22  ;;  %v4159_v60 = vsel %vm3865_vm2, %v7967_v33, 0.0  ;;  %v272_v36 = vld [vmem:[%s7788_s4 + $0x8] sm:$0x77] }
 0x34a   : > { %v4997_v44 = vsel %vm4703_vm3, %v7975_v37, 0.0  ;;  %vm5541_vm4 = vcmp.eq.s32.totalorder %v11593_v6, %v7988_v55  ;;  %vm6379_vm5 = vcmp.eq.s32.totalorder %v11593_v6, %v7996_v1  ;;  %vm640_vm6 = vcmp.eq.s32.totalorder %v11584_v63, %v8058_v53  ;;  %v276_v22 = vld [vmem:[%s7793_s20 + $0x8] sm:$0x77] }
 0x34b   : > { %v5125_v58 = vadd.f32 %v4869_v0, %v4287_v46  ;;  %vm1222_vm7 = vcmp.eq.s32.totalorder %v11584_v63, %v8039_v51  ;;  %v3577_v61 = vadd.f32 %v3321_v48, %v2739_v57  ;;  %v934_v4 = vsel %vm640_vm6, %v8061_v12, 0.0 }
 0x34c   : > { %v1516_v33 = vsel %vm1222_vm7, %v8066_v15, 0.0  ;;  %vm2060_vm9 = vcmp.eq.s32.totalorder %v11584_v63, %v8047_v49  ;;  %vm2898_vm10 = vcmp.eq.s32.totalorder %v11584_v63, %v8055_v7  ;;  %vm3736_vm8 = vcmp.eq.s32.totalorder %v11584_v63, %v8090_v5 }
 0x34d   : > { %v5963_v37 = vadd.f32 %v5707_v45, %v5125_v58  ;;  %v1772_v14 = vadd.f32 %v1516_v33, %v934_v4  ;;  %v2354_v19 = vsel %vm2060_vm9, %v8071_v16, 0.0  ;;  %v4415_v13 = vadd.f32 %v4159_v60, %v3577_v61 }
 0x34e   : > { %v3192_v52 = vsel %vm2898_vm10, %v8087_v40, 0.0  ;;  %vm4574_vm11 = vcmp.eq.s32.totalorder %v11584_v63, %v8109_v23  ;;  %v5835_v20 = vsel %vm5541_vm4, %v7991_v59, 0.0  ;;  %v274_v0 = vcvt.s32.f32 %v272_v36 }
 0x34f   : > { %v6801_v62 = vadd.f32 %v6545_v47, %v5963_v37  ;;  %v2610_v42 = vadd.f32 %v2354_v19, %v1772_v14  ;;  %v5253_v8 = vadd.f32 %v4997_v44, %v4415_v13  ;;  %v6673_v29 = vsel %vm6379_vm5, %v8005_v2, 0.0 }
 0x350   : > { %v4030_v54 = vsel %vm3736_vm8, %v8093_v30, 0.0  ;;  %vm768_vm12 = vcmp.eq.s32.totalorder %v11593_v6, %v8058_v53  ;;  %v4868_v45 = vsel %vm4574_vm11, %v8112_v31, 0.0  ;;  %vm5412_vm13 = vcmp.eq.s32.totalorder %v11584_v63, %v8115_v32 }
 0x351   : > { %7064 = vmatprep.subr.mxu0 %v6801_v62  ;;  %v3448_v11 = vadd.f32 %v3192_v52, %v2610_v42  ;;  %v1062_v55 = vsel %vm768_vm12, %v8061_v12, 0.0  ;;  %v6091_v59 = vadd.f32 %v5835_v20, %v5253_v8  ;;  %vm1350_vm14 = vcmp.eq.s32.totalorder %v11593_v6, %v8039_v51 }
 0x352   : > { %vm2188_vm15 = vcmp.eq.s32.totalorder %v11593_v6, %v8047_v49  ;;  %vm3026_vm0 = vcmp.eq.s32.totalorder %v11593_v6, %v8055_v7  ;;  %vm6250_vm1 = vcmp.eq.s32.totalorder %v11584_v63, %v8136_v43  ;;  %v1644_v2 = vsel %vm1350_vm14, %v8066_v15, 0.0 }
 0x353   : > { %v4286_v1 = vadd.f32 %v4030_v54, %v3448_v11  ;;  %v2482_v53 = vsel %vm2188_vm15, %v8071_v16, 0.0  ;;  %v6929_v12 = vadd.f32 %v6673_v29, %v6091_v59  ;;  %v5706_v10 = vsel %vm5412_vm13, %v8133_v35, 0.0 }
 0x354   : > { %v1900_v46 = vadd.f32 %v1644_v2, %v1062_v55  ;;  %vm3864_vm2 = vcmp.eq.s32.totalorder %v11593_v6, %v8090_v5  ;;  %v3320_v49 = vsel %vm3026_vm0, %v8087_v40, 0.0  ;;  %v6544_v7 = vsel %vm6250_vm1, %v8139_v39, 0.0 }
 0x355   : > { %v5124_v51 = vadd.f32 %v4868_v45, %v4286_v1  ;;  %7135 = vmatprep.subr.mxu1 %v6929_v12  ;;  %vm4702_vm3 = vcmp.eq.s32.totalorder %v11593_v6, %v8109_v23  ;;  %v278_v15 = vadd.f32 %v276_v22, %v274_v0  ;;  %v4158_v48 = vsel %vm3864_vm2, %v8093_v30, 0.0 }
 0x356   : > { %v2738_v47 = vadd.f32 %v2482_v53, %v1900_v46  ;;  %vm5540_vm4 = vcmp.eq.s32.totalorder %v11593_v6, %v8115_v32  ;;  %v4996_v44 = vsel %vm4702_vm3, %v8112_v31, 0.0  ;;  %vm6378_vm5 = vcmp.eq.s32.totalorder %v11593_v6, %v8136_v43 }
 0x357   : > { %v5962_v16 = vadd.f32 %v5706_v10, %v5124_v51  ;;  %v280_v60 = vfloor.f32 %v278_v15  ;;  %v5834_v23 = vsel %vm5540_vm4, %v8133_v35, 0.0  ;;  %v6672_v4 = vsel %vm6378_vm5, %v8139_v39, 0.0 }
 0x358   : > { %v3576_v57 = vadd.f32 %v3320_v49, %v2738_v47 }
 0x359   : > { %v6800_v5 = vadd.f32 %v6544_v7, %v5962_v16  ;;  %v7463_v58 = vtrunc.f32 %v280_v60 }
 0x35a   : > { %v4414_v40 = vadd.f32 %v4158_v48, %v3576_v57 }
 0x35b   : > { %7065 = vmatpush2.msra.mxu0 %v6800_v5  ;;  %v7464_v30 = vcvt.f32.s32 %v7463_v58 }
 0x35c   : > { %v5252_v61 = vadd.f32 %v4996_v44, %v4414_v40  ;;  %7067 = vmatmul.mubr.f32.vlgmr.msra.gmra.mxu0 %v11561_v34 }
 0x35d   : > { %7208 = vmatprep.mubr.f32.mxu0 %v11579_v38  ;;  %v284_v33 = vadd.s32 1, %v7464_v30  ;;  %vm287_vm6 = vcmp.gt.s32.totalorder %v7464_v30, 0 }
 0x35e   : > { %v6090_v32 = vadd.f32 %v5834_v23, %v5252_v61  ;;  %v288_v31 = vsel %vm287_vm6, %v7464_v30, 0 }
 0x35f   : > { %vm291_vm7 = vcmp.lt.s32.totalorder %v288_v31, 7  ;;  %vm295_vm9 = vcmp.gt.s32.totalorder %v284_v33, 0  ;;  %vm303_vm10 = vcmp.lt.s32.totalorder %v288_v31, 15 }
 0x360   : > { %v6928_v36 = vadd.f32 %v6672_v4, %v6090_v32  ;;  %v292_v43 = vsel %vm291_vm7, %v288_v31, 7  ;;  %v296_v37 = vsel %vm295_vm9, %v284_v33, 0  ;;  %v304_v14 = vsel %vm303_vm10, %v288_v31, 15 }
 0x361   : > { %vm299_vm8 = vcmp.lt.s32.totalorder %v296_v37, 7  ;;  %vm307_vm11 = vcmp.lt.s32.totalorder %v296_v37, 15  ;;  %v326_v35 = vmul.u32 16, %v292_v43  ;;  %v337_v38 = vrot.slane %v304_v14, 6 }
 0x362   : > { %7136 = vmatpush2.msra.mxu1 %v6928_v36  ;;  %v300_v39 = vsel %vm299_vm8, %v296_v37, 7  ;;  %v308_v34 = vsel %vm307_vm11, %v296_v37, 15  ;;  %v322_v62 = vmul.u32 128, %v292_v43 }
 0x363   : > { %7138 = vmatmul.mubr.f32.vlgmr.msra.gmra.mxu1 %v11568_v9  ;;  %v310_v19 = vcvt.s32.f32 %v300_v39  ;;  %v314_v13 = vcvt.s32.f32 %v308_v34  ;;  %v328_v52 = vmul.u32 16, %v300_v39  ;;  %v324_v20 = vmul.u32 128, %v300_v39 }
 0x364   : > { %7279 = vmatprep.mubr.f32.mxu1 %v11588_v3  ;;  %v331_v42 = vrot.slane %v326_v35, 5  ;;  %v391_v0 = vrot.slane %v308_v34, 6  ;;  %v338_v45 = vrot.slane %v337_v38, 4 }
 0x365   : > { %v312_v8 = vsub.f32 %v310_v19, %v278_v15  ;;  %v316_v29 = vsub.f32 %v314_v13, %v278_v15  ;;  %v369_v54 = vrot.slane %v328_v52, 5  ;;  %v15519_v13 = vld [vmem:[#allocation15_spill] sm:$0xff] }
 0x366   : > { %v332_v11 = vrot.slane %v331_v42, 4  ;;  %v392_v55 = vrot.slane %v391_v0, 4  ;;  %v15520_v0 = vld [vmem:[#allocation14_spill] sm:$0xff] }
 0x367   : > { %v318_v59 = vsub.f32 1.0, %v312_v8  ;;  %v320_v9 = vsub.f32 1.0, %v316_v29  ;;  %v344_v1 = vrot.slane %v312_v8, 7  ;;  %v350_v2 = vrot.slane %v312_v8, 6 }
 0x368   : > { %v334_v53 = vadd.s32 %v332_v11, %v322_v62  ;;  %v356_v22 = vadd.s32 %v332_v11, %v324_v20  ;;  %v370_v12 = vrot.slane %v369_v54, 4 }
 0x369   : > { %v348_v10 = vmul.f32 %v344_v1, %v316_v29  ;;  %v362_v46 = vrot.slane %v318_v59, 6  ;;  %v376_v3 = vrot.slane %v318_v59, 7  ;;  %v396_v51 = vmul.f32 %v344_v1, %v320_v9 }
 0x36a   : > { %v11706_v49 = vadd.s32 %v338_v45, %v334_v53  ;;  %v11708_v7 = vadd.s32 %v356_v22, %v338_v45  ;;  %v372_v47 = vadd.s32 %v370_v12, %v322_v62  ;;  %v384_v15 = vadd.s32 %v370_v12, %v324_v20 }
 0x36b   : > { %v11710_v16 = vmul.f32 %v350_v2, %v348_v10  ;;  %v11712_v48 = vmul.f32 %v362_v46, %v348_v10  ;;  %v380_v57 = vmul.f32 %v376_v3, %v316_v29  ;;  %v11714_v60 = vadd.s32 %v392_v55, %v334_v53 }
 0x36c   : > { %v11716_v5 = vadd.s32 %v372_v47, %v338_v45  ;;  %v11718_v44 = vadd.s32 %v384_v15, %v338_v45  ;;  %v11720_v40 = vmul.f32 %v396_v51, %v350_v2  ;;  %v11722_v58 = vadd.s32 %v392_v55, %v356_v22 }
 0x36d   : > { %v11724_v23 = vmul.f32 %v380_v57, %v350_v2  ;;  %v11726_v61 = vmul.f32 %v380_v57, %v362_v46  ;;  %v11728_v30 = vmul.f32 %v396_v51, %v362_v46  ;;  %v11730_v4 = vadd.s32 %v392_v55, %v372_v47 }
 0x36e   : > { %v406_v32 = vmul.f32 %v376_v3, %v320_v9  ;;  %v11732_v33 = vadd.s32 %v392_v55, %v384_v15  ;;  %v555_v31 = vrot.slane %v11706_v49, %v7817_v17  ;;  %v559_v36 = vrot.slane %v11706_v49, %v7820_v18 }
 0x36f   : > { %v849_v43 = vrot.slane %v11710_v16, %v7829_v21  ;;  %v1137_v37 = vrot.slane %v11708_v7, %v7817_v17  ;;  %v1141_v14 = vrot.slane %v11708_v7, %v7820_v18  ;;  %v1431_v35 = vrot.slane %v11712_v48, %v7829_v21 }
 0x370   : > { %v11746_v39 = vmul.f32 %v406_v32, %v350_v2  ;;  %v11748_v34 = vmul.f32 %v406_v32, %v362_v46  ;;  %v11751_v38 = vrot.slane %v559_v36, %v7817_v17  ;;  %v1975_v19 = vrot.slane %v11716_v5, %v7817_v17 }
 0x371   : > { %v11756_v52 = vrot.slane %v849_v43, %v15519_v13  ;;  %v11759_v62 = vrot.slane %v1141_v14, %v7817_v17  ;;  %v11762_v20 = vrot.slane %v1431_v35, %v15519_v13  ;;  %v1979_v42 = vrot.slane %v11716_v5, %v7820_v18 }
 0x372   : > { %vm639_vm12 = vcmp.eq.s32.totalorder %v15520_v0, %v11751_v38  ;;  %v2265_v8 = vrot.slane %v11724_v23, %v15519_v13  ;;  %v2269_v29 = vrot.slane %v11724_v23, %v7829_v21  ;;  %v2813_v54 = vrot.slane %v11718_v44, %v7817_v17 }
 0x373   : > { %v933_v11 = vsel %vm639_vm12, %v11756_v52, 0.0  ;;  %vm1221_vm13 = vcmp.eq.s32.totalorder %v15520_v0, %v11759_v62  ;;  %v11778_v45 = vrot.slane %v1979_v42, %v7817_v17  ;;  %v2817_v55 = vrot.slane %v11718_v44, %v7820_v18 }
 0x374   : > { %v1515_v59 = vsel %vm1221_vm13, %v11762_v20, 0.0  ;;  %v11784_v9 = vrot.slane %v2269_v29, %v15519_v13  ;;  %v3107_v1 = vrot.slane %v11726_v61, %v7829_v21  ;;  %v3655_v2 = vrot.slane %v11714_v60, %v7820_v18 }
 0x375   : > { %v1771_v53 = vadd.f32 %v1515_v59, %v933_v11  ;;  %vm2059_vm14 = vcmp.eq.s32.totalorder %v15520_v0, %v11778_v45  ;;  %v11793_v22 = vrot.slane %v2817_v55, %v7817_v17  ;;  %v3945_v12 = vrot.slane %v11720_v40, %v7829_v21 }
 0x376   : > { %v2353_v10 = vsel %vm2059_vm14, %v11784_v9, 0.0  ;;  %v11799_v46 = vrot.slane %v3107_v1, %v15519_v13  ;;  %v11802_v3 = vrot.slane %v3655_v2, %v7817_v17  ;;  %v4493_v51 = vrot.slane %v11722_v58, %v7820_v18 }
 0x377   : > { %v2609_v47 = vadd.f32 %v2353_v10, %v1771_v53  ;;  %vm2897_vm15 = vcmp.eq.s32.totalorder %v15520_v0, %v11793_v22  ;;  %v11809_v15 = vrot.slane %v3945_v12, %v15519_v13  ;;  %v4783_v57 = vrot.slane %v11728_v30, %v7829_v21  ;;  %v15521_v12 = vld [vmem:[#allocation16_spill] sm:$0xff] }
 0x378   : > { %v3191_v32 = vsel %vm2897_vm15, %v11799_v46, 0.0  ;;  %vm3735_vm0 = vcmp.eq.s32.totalorder %v15520_v0, %v11802_v3  ;;  %v11817_v36 = vrot.slane %v4493_v51, %v7817_v17  ;;  %v5331_v43 = vrot.slane %v11730_v4, %v7820_v18 }
 0x379   : > { %v3447_v14 = vadd.f32 %v3191_v32, %v2609_v47  ;;  %v4029_v35 = vsel %vm3735_vm0, %v11809_v15, 0.0  ;;  %v11823_v42 = vrot.slane %v4783_v57, %v15519_v13  ;;  %v5621_v29 = vrot.slane %v11746_v39, %v7829_v21 }
 0x37a   : > { %vm4573_vm1 = vcmp.eq.s32.totalorder %v15520_v0, %v11817_v36  ;;  %v11830_v11 = vrot.slane %v5331_v43, %v7817_v17  ;;  %v6169_v55 = vrot.slane %v11732_v33, %v7820_v18  ;;  %v6459_v59 = vrot.slane %v11748_v34, %v7829_v21 }
 0x37b   : > { %v4285_v1 = vadd.f32 %v4029_v35, %v3447_v14  ;;  %v4867_v2 = vsel %vm4573_vm1, %v11823_v42, 0.0  ;;  %v11838_v53 = vrot.slane %v5621_v29, %v15519_v13  ;;  %vm767_vm2 = vcmp.eq.s32.totalorder %v15521_v12, %v11751_v38 }
 0x37c   : > { %vm5411_vm3 = vcmp.eq.s32.totalorder %v15520_v0, %v11830_v11  ;;  %v11845_v10 = vrot.slane %v6169_v55, %v7817_v17  ;;  %v11848_v18 = vrot.slane %v6459_v59, %v15519_v13  ;;  %v1061_v21 = vsel %vm767_vm2, %v11756_v52, 0.0 }
 0x37d   : > { %v5123_v51 = vadd.f32 %v4867_v2, %v4285_v1  ;;  %v5705_v47 = vsel %vm5411_vm3, %v11838_v53, 0.0  ;;  %vm1349_vm4 = vcmp.eq.s32.totalorder %v15521_v12, %v11759_v62  ;;  %vm2187_vm5 = vcmp.eq.s32.totalorder %v15521_v12, %v11778_v45 }
 0x37e   : > { %vm6249_vm6 = vcmp.eq.s32.totalorder %v15520_v0, %v11845_v10  ;;  %v1643_v57 = vsel %vm1349_vm4, %v11762_v20, 0.0  ;;  %v2481_v32 = vsel %vm2187_vm5, %v11784_v9, 0.0  ;;  %vm3025_vm7 = vcmp.eq.s32.totalorder %v15521_v12, %v11793_v22 }
 0x37f   : > { %v5961_v43 = vadd.f32 %v5705_v47, %v5123_v51  ;;  %v6543_v14 = vsel %vm6249_vm6, %v11848_v18, 0.0  ;;  %v1899_v35 = vadd.f32 %v1643_v57, %v1061_v21  ;;  %v3319_v29 = vsel %vm3025_vm7, %v11799_v46, 0.0 }
 0x380   : > { %vm3863_vm9 = vcmp.eq.s32.totalorder %v15521_v12, %v11802_v3  ;;  %vm4701_vm10 = vcmp.eq.s32.totalorder %v15521_v12, %v11817_v36  ;;  %vm5539_vm8 = vcmp.eq.s32.totalorder %v15521_v12, %v11830_v11  ;;  %vm6377_vm11 = vcmp.eq.s32.totalorder %v15521_v12, %v11845_v10 }
 0x381   : > { %v6799_v55 = vadd.f32 %v6543_v14, %v5961_v43  ;;  %v2737_v59 = vadd.f32 %v2481_v32, %v1899_v35  ;;  %v4157_v1 = vsel %vm3863_vm9, %v11809_v15, 0.0  ;;  %v4995_v2 = vsel %vm4701_vm10, %v11823_v42, 0.0 }
 0x382   : > { %v5833_v21 = vsel %vm5539_vm8, %v11838_v53, 0.0  ;;  %v6671_v51 = vsel %vm6377_vm11, %v11848_v18, 0.0  ;;  %v11880_v47 = vrot.slane %v555_v31, %v7817_v17  ;;  %v845_v57 = vrot.slane %v11710_v16, %v15519_v13 }
 0x383   : > { %7144 = vmatprep.subr.mxu0 %v6799_v55  ;;  %v3575_v43 = vadd.f32 %v3319_v29, %v2737_v59  ;;  %v11888_v32 = vrot.slane %v1137_v37, %v7817_v17  ;;  %v1427_v14 = vrot.slane %v11712_v48, %v15519_v13  ;;  %v11896_v49 = vrot.slane %v1975_v19, %v7817_v17 }
 0x384   : > { %vm638_vm12 = vcmp.eq.s32.totalorder %v15520_v0, %v11880_v47  ;;  %v11901_v16 = vrot.slane %v845_v57, %v15519_v13  ;;  %v11907_v7 = vrot.slane %v2265_v8, %v15519_v13  ;;  %v11913_v48 = vrot.slane %v2813_v54, %v7817_v17 }
 0x385   : > { %v4413_v5 = vadd.f32 %v4157_v1, %v3575_v43  ;;  %vm1220_vm13 = vcmp.eq.s32.totalorder %v15520_v0, %v11888_v32  ;;  %v11918_v31 = vrot.slane %v1427_v14, %v15519_v13  ;;  %vm2058_vm14 = vcmp.eq.s32.totalorder %v15520_v0, %v11896_v49 }
 0x386   : > { %v932_v23 = vsel %vm638_vm12, %v11901_v16, 0.0  ;;  %v2352_v37 = vsel %vm2058_vm14, %v11907_v7, 0.0  ;;  %vm2896_vm15 = vcmp.eq.s32.totalorder %v15520_v0, %v11913_v48  ;;  %v3103_v44 = vrot.slane %v11726_v61, %v15519_v13 }
 0x387   : > { %v5251_v19 = vadd.f32 %v4995_v2, %v4413_v5  ;;  %v1514_v8 = vsel %vm1220_vm13, %v11918_v31, 0.0  ;;  %v3651_v54 = vrot.slane %v11714_v60, %v7817_v17  ;;  %v3941_v35 = vrot.slane %v11720_v40, %v15519_v13 }
 0x388   : > { %v1770_v29 = vadd.f32 %v1514_v8, %v932_v23  ;;  %v11934_v55 = vrot.slane %v3103_v44, %v15519_v13  ;;  %v4489_v59 = vrot.slane %v11722_v58, %v7817_v17  ;;  %v4779_v1 = vrot.slane %v11728_v30, %v15519_v13 }
 0x389   : > { %v6089_v61 = vadd.f32 %v5833_v21, %v5251_v19  ;;  %v11941_v2 = vrot.slane %v3651_v54, %v7817_v17  ;;  %v11944_v57 = vrot.slane %v3941_v35, %v15519_v13  ;;  %v5327_v60 = vrot.slane %v11730_v4, %v7817_v17 }
 0x38a   : > { %v2608_v40 = vadd.f32 %v2352_v37, %v1770_v29  ;;  %v3190_v43 = vsel %vm2896_vm15, %v11934_v55, 0.0  ;;  %v11950_v14 = vrot.slane %v4489_v59, %v7817_v17  ;;  %v11953_v58 = vrot.slane %v4779_v1, %v15519_v13 }
 0x38b   : > { %v6927_v30 = vadd.f32 %v6671_v51, %v6089_v61  ;;  %vm3734_vm0 = vcmp.eq.s32.totalorder %v15520_v0, %v11941_v2  ;;  %v11958_v21 = vrot.slane %v5327_v60, %v7817_v17  ;;  %v5617_v5 = vrot.slane %v11746_v39, %v15519_v13 }
 0x38c   : > { %v3446_v4 = vadd.f32 %v3190_v43, %v2608_v40  ;;  %v4028_v23 = vsel %vm3734_vm0, %v11944_v57, 0.0  ;;  %vm4572_vm1 = vcmp.eq.s32.totalorder %v15520_v0, %v11950_v14  ;;  %v6165_v37 = vrot.slane %v11732_v33, %v7817_v17 }
 0x38d   : > { %7215 = vmatprep.subr.mxu1 %v6927_v30  ;;  %v4866_v51 = vsel %vm4572_vm1, %v11953_v58, 0.0  ;;  %vm5410_vm2 = vcmp.eq.s32.totalorder %v15520_v0, %v11958_v21  ;;  %v11971_v44 = vrot.slane %v5617_v5, %v15519_v13  ;;  %v6455_v39 = vrot.slane %v11748_v34, %v15519_v13 }
 0x38e   : > { %v4284_v19 = vadd.f32 %v4028_v23, %v3446_v4  ;;  %v11976_v8 = vrot.slane %v6165_v37, %v7817_v17  ;;  %vm766_vm3 = vcmp.eq.s32.totalorder %v15521_v12, %v11880_v47  ;;  %vm1348_vm4 = vcmp.eq.s32.totalorder %v15521_v12, %v11888_v32 }
 0x38f   : > { %v5704_v33 = vsel %vm5410_vm2, %v11971_v44, 0.0  ;;  %v11984_v54 = vrot.slane %v6455_v39, %v15519_v13  ;;  %v1060_v35 = vsel %vm766_vm3, %v11901_v16, 0.0  ;;  %v1642_v29 = vsel %vm1348_vm4, %v11918_v31, 0.0 }
 0x390   : > { %v5122_v34 = vadd.f32 %v4866_v51, %v4284_v19  ;;  %vm6248_vm5 = vcmp.eq.s32.totalorder %v15520_v0, %v11976_v8  ;;  %v1898_v17 = vadd.f32 %v1642_v29, %v1060_v35  ;;  %vm2186_vm6 = vcmp.eq.s32.totalorder %v15521_v12, %v11896_v49 }
 0x391   : > { %v6542_v59 = vsel %vm6248_vm5, %v11984_v54, 0.0  ;;  %v2480_v1 = vsel %vm2186_vm6, %v11907_v7, 0.0  ;;  %vm3024_vm7 = vcmp.eq.s32.totalorder %v15521_v12, %v11913_v48  ;;  %vm3862_vm9 = vcmp.eq.s32.totalorder %v15521_v12, %v11941_v2 }
 0x392   : > { %v5960_v13 = vadd.f32 %v5704_v33, %v5122_v34  ;;  %v2736_v61 = vadd.f32 %v2480_v1, %v1898_v17  ;;  %v3318_v60 = vsel %vm3024_vm7, %v11934_v55, 0.0  ;;  %v4156_v0 = vsel %vm3862_vm9, %v11944_v57, 0.0 }
 0x393   : > { %vm4700_vm10 = vcmp.eq.s32.totalorder %v15521_v12, %v11950_v14  ;;  %vm635_vm8 = vcmp.eq.s32.totalorder %v7836_v25, %v11751_v38  ;;  %vm5538_vm11 = vcmp.eq.s32.totalorder %v15521_v12, %v11958_v21  ;;  %vm6376_vm12 = vcmp.eq.s32.totalorder %v15521_v12, %v11976_v8 }
 0x394   : > { %v6798_v40 = vadd.f32 %v6542_v59, %v5960_v13  ;;  %v3574_v43 = vadd.f32 %v3318_v60, %v2736_v61  ;;  %v4994_v30 = vsel %vm4700_vm10, %v11953_v58, 0.0  ;;  %v929_v5 = vsel %vm635_vm8, %v11756_v52, 0.0 }
 0x395   : > { %vm1217_vm13 = vcmp.eq.s32.totalorder %v7836_v25, %v11759_v62  ;;  %vm2055_vm14 = vcmp.eq.s32.totalorder %v7836_v25, %v11778_v45  ;;  %vm2893_vm15 = vcmp.eq.s32.totalorder %v7836_v25, %v11793_v22  ;;  %v5832_v12 = vsel %vm5538_vm11, %v11971_v44, 0.0 }
 0x396   : > { %7145 = vmatpush1.msra.mxu0 %v6798_v40  ;;  %v4412_v4 = vadd.f32 %v4156_v0, %v3574_v43  ;;  %v1511_v23 = vsel %vm1217_vm13, %v11762_v20, 0.0  ;;  %v2349_v37 = vsel %vm2055_vm14, %v11784_v9, 0.0  ;;  %vm3731_vm0 = vcmp.eq.s32.totalorder %v7836_v25, %v11802_v3 }
 0x397   : > { %v1767_v51 = vadd.f32 %v1511_v23, %v929_v5  ;;  %vm4569_vm1 = vcmp.eq.s32.totalorder %v7836_v25, %v11817_v36  ;;  %v6670_v19 = vsel %vm6376_vm12, %v11984_v54, 0.0  ;;  %v3187_v33 = vsel %vm2893_vm15, %v11799_v46, 0.0 }
 0x398   : > { %v5250_v39 = vadd.f32 %v4994_v30, %v4412_v4  ;;  %v4025_v35 = vsel %vm3731_vm0, %v11809_v15, 0.0  ;;  %v4863_v34 = vsel %vm4569_vm1, %v11823_v42, 0.0  ;;  %vm5407_vm2 = vcmp.eq.s32.totalorder %v7836_v25, %v11830_v11 }
 0x399   : > { %v2605_v29 = vadd.f32 %v2349_v37, %v1767_v51  ;;  %vm763_vm3 = vcmp.eq.s32.totalorder %v7839_v27, %v11751_v38  ;;  %vm6245_vm4 = vcmp.eq.s32.totalorder %v7836_v25, %v11845_v10  ;;  %vm1345_vm5 = vcmp.eq.s32.totalorder %v7839_v27, %v11759_v62 }
 0x39a   : > { %v6088_v17 = vadd.f32 %v5832_v12, %v5250_v39  ;;  %v1057_v59 = vsel %vm763_vm3, %v11756_v52, 0.0  ;;  %v1639_v13 = vsel %vm1345_vm5, %v11762_v20, 0.0  ;;  %vm2183_vm6 = vcmp.eq.s32.totalorder %v7839_v27, %v11778_v45 }
 0x39b   : > { %v3443_v1 = vadd.f32 %v3187_v33, %v2605_v29  ;;  %vm3021_vm7 = vcmp.eq.s32.totalorder %v7839_v27, %v11793_v22  ;;  %v5701_v60 = vsel %vm5407_vm2, %v11838_v53, 0.0  ;;  %v1895_v0 = vadd.f32 %v1639_v13, %v1057_v59 }
 0x39c   : > { %v6926_v61 = vadd.f32 %v6670_v19, %v6088_v17  ;;  %v2477_v40 = vsel %vm2183_vm6, %v11784_v9, 0.0  ;;  %v3315_v30 = vsel %vm3021_vm7, %v11799_v46, 0.0  ;;  %vm3859_vm9 = vcmp.eq.s32.totalorder %v7839_v27, %v11802_v3 }
 0x39d   : > { %v4281_v43 = vadd.f32 %v4025_v35, %v3443_v1  ;;  %vm4697_vm10 = vcmp.eq.s32.totalorder %v7839_v27, %v11817_v36  ;;  %v6539_v5 = vsel %vm6245_vm4, %v11848_v18, 0.0  ;;  %v2733_v4 = vadd.f32 %v2477_v40, %v1895_v0 }
 0x39e   : > { %7216 = vmatpush1.msra.mxu1 %v6926_v61  ;;  %v4153_v23 = vsel %vm3859_vm9, %v11809_v15, 0.0  ;;  %vm5535_vm8 = vcmp.eq.s32.totalorder %v7839_v27, %v11830_v11  ;;  %v4991_v12 = vsel %vm4697_vm10, %v11823_v42, 0.0  ;;  %vm634_vm11 = vcmp.eq.s32.totalorder %v7836_v25, %v11880_v47 }
 0x39f   : > { %v5119_v37 = vadd.f32 %v4863_v34, %v4281_v43  ;;  %vm1216_vm12 = vcmp.eq.s32.totalorder %v7836_v25, %v11888_v32  ;;  %v3571_v51 = vadd.f32 %v3315_v30, %v2733_v4  ;;  %vm6373_vm13 = vcmp.eq.s32.totalorder %v7839_v27, %v11845_v10 }
 0x3a0   : > { %v928_v39 = vsel %vm634_vm11, %v11901_v16, 0.0  ;;  %v1510_v19 = vsel %vm1216_vm12, %v11918_v31, 0.0  ;;  %vm2054_vm14 = vcmp.eq.s32.totalorder %v7836_v25, %v11896_v49  ;;  %vm2892_vm15 = vcmp.eq.s32.totalorder %v7836_v25, %v11913_v48 }
 0x3a1   : > { %v5957_v33 = vadd.f32 %v5701_v60, %v5119_v37  ;;  %v1766_v35 = vadd.f32 %v1510_v19, %v928_v39  ;;  %v4409_v29 = vadd.f32 %v4153_v23, %v3571_v51  ;;  %v2348_v34 = vsel %vm2054_vm14, %v11907_v7, 0.0 }
 0x3a2   : > { %v3186_v17 = vsel %vm2892_vm15, %v11934_v55, 0.0  ;;  %vm3730_vm0 = vcmp.eq.s32.totalorder %v7836_v25, %v11941_v2  ;;  %v5829_v1 = vsel %vm5535_vm8, %v11838_v53, 0.0  ;;  %vm4568_vm1 = vcmp.eq.s32.totalorder %v7836_v25, %v11950_v14 }
 0x3a3   : > { %v6795_v59 = vadd.f32 %v6539_v5, %v5957_v33  ;;  %v2604_v13 = vadd.f32 %v2348_v34, %v1766_v35  ;;  %v5247_v61 = vadd.f32 %v4991_v12, %v4409_v29  ;;  %v6667_v60 = vsel %vm6373_vm13, %v11848_v18, 0.0 }
 0x3a4   : > { %v4024_v0 = vsel %vm3730_vm0, %v11944_v57, 0.0  ;;  %v4862_v40 = vsel %vm4568_vm1, %v11953_v58, 0.0  ;;  %vm5406_vm2 = vcmp.eq.s32.totalorder %v7836_v25, %v11958_v21  ;;  %vm6244_vm3 = vcmp.eq.s32.totalorder %v7836_v25, %v11976_v8 }
 0x3a5   : > { %7146 = vmatprep.subr.mxu0 %v6795_v59  ;;  %v3442_v43 = vadd.f32 %v3186_v17, %v2604_v13  ;;  %vm762_vm4 = vcmp.eq.s32.totalorder %v7839_v27, %v11880_v47  ;;  %v6085_v30 = vadd.f32 %v5829_v1, %v5247_v61  ;;  %vm1344_vm5 = vcmp.eq.s32.totalorder %v7839_v27, %v11888_v32  ;;  %v15522_v59 = vld [vmem:[#allocation17_spill] sm:$0xff] }
 0x3a6   : > { %v1056_v5 = vsel %vm762_vm4, %v11901_v16, 0.0  ;;  %vm2182_vm6 = vcmp.eq.s32.totalorder %v7839_v27, %v11896_v49  ;;  %v1638_v23 = vsel %vm1344_vm5, %v11918_v31, 0.0  ;;  %vm3020_vm7 = vcmp.eq.s32.totalorder %v7839_v27, %v11913_v48 }
 0x3a7   : > { %v4280_v4 = vadd.f32 %v4024_v0, %v3442_v43  ;;  %v2476_v37 = vsel %vm2182_vm6, %v11907_v7, 0.0  ;;  %v6923_v25 = vadd.f32 %v6667_v60, %v6085_v30  ;;  %v5700_v12 = vsel %vm5406_vm2, %v11971_v44, 0.0 }
 0x3a8   : > { %v1894_v51 = vadd.f32 %v1638_v23, %v1056_v5  ;;  %vm3858_vm9 = vcmp.eq.s32.totalorder %v7839_v27, %v11941_v2  ;;  %v6538_v19 = vsel %vm6244_vm3, %v11984_v54, 0.0  ;;  %v3314_v33 = vsel %vm3020_vm7, %v11934_v55, 0.0 }
 0x3a9   : > { %v5118_v39 = vadd.f32 %v4862_v40, %v4280_v4  ;;  %vm4696_vm10 = vcmp.eq.s32.totalorder %v7839_v27, %v11950_v14  ;;  %7217 = vmatprep.subr.mxu1 %v6923_v25  ;;  %v4152_v29 = vsel %vm3858_vm9, %v11944_v57, 0.0  ;;  %vm5534_vm8 = vcmp.eq.s32.totalorder %v7839_v27, %v11958_v21 }
 0x3aa   : > { %v2732_v35 = vadd.f32 %v2476_v37, %v1894_v51  ;;  %v4990_v34 = vsel %vm4696_vm10, %v11953_v58, 0.0  ;;  %vm6372_vm11 = vcmp.eq.s32.totalorder %v7839_v27, %v11976_v8  ;;  %vm631_vm12 = vcmp.eq.s32.totalorder %v15522_v59, %v11751_v38  ;;  %v15523_v51 = vld [vmem:[#allocation18_spill] sm:$0xff] }
 0x3ab   : > { %v5956_v17 = vadd.f32 %v5700_v12, %v5118_v39  ;;  %vm1213_vm13 = vcmp.eq.s32.totalorder %v15522_v59, %v11759_v62  ;;  %v925_v13 = vsel %vm631_vm12, %v11756_v52, 0.0  ;;  %vm2051_vm14 = vcmp.eq.s32.totalorder %v15522_v59, %v11778_v45 }
 0x3ac   : > { %v3570_v1 = vadd.f32 %v3314_v33, %v2732_v35  ;;  %v1507_v61 = vsel %vm1213_vm13, %v11762_v20, 0.0  ;;  %v2345_v40 = vsel %vm2051_vm14, %v11784_v9, 0.0  ;;  %vm2889_vm15 = vcmp.eq.s32.totalorder %v15522_v59, %v11793_v22 }
 0x3ad   : > { %v6794_v60 = vadd.f32 %v6538_v19, %v5956_v17  ;;  %v1763_v0 = vadd.f32 %v1507_v61, %v925_v13  ;;  %v3183_v30 = vsel %vm2889_vm15, %v11799_v46, 0.0  ;;  %vm3727_vm0 = vcmp.eq.s32.totalorder %v15522_v59, %v11802_v3 }
 0x3ae   : > { %v4408_v43 = vadd.f32 %v4152_v29, %v3570_v1  ;;  %vm4565_vm1 = vcmp.eq.s32.totalorder %v15522_v59, %v11817_v36  ;;  %v5828_v5 = vsel %vm5534_vm8, %v11971_v44, 0.0  ;;  %v6666_v4 = vsel %vm6372_vm11, %v11984_v54, 0.0 }
 0x3af   : > { %7147 = vmatpush1.msra.mxu0 %v6794_v60  ;;  %v2601_v23 = vadd.f32 %v2345_v40, %v1763_v0  ;;  %v4021_v37 = vsel %vm3727_vm0, %v11809_v15, 0.0  ;;  %v4859_v12 = vsel %vm4565_vm1, %v11823_v42, 0.0  ;;  %vm5403_vm2 = vcmp.eq.s32.totalorder %v15522_v59, %v11830_v11 }
 0x3b0   : > { %v5246_v25 = vadd.f32 %v4990_v34, %v4408_v43  ;;  %vm759_vm3 = vcmp.eq.s32.totalorder %v15523_v51, %v11751_v38  ;;  %vm6241_vm4 = vcmp.eq.s32.totalorder %v15522_v59, %v11845_v10  ;;  %vm1341_vm5 = vcmp.eq.s32.totalorder %v15523_v51, %v11759_v62 }
 0x3b1   : > { %v3439_v39 = vadd.f32 %v3183_v30, %v2601_v23  ;;  %v1053_v19 = vsel %vm759_vm3, %v11756_v52, 0.0  ;;  %v1635_v33 = vsel %vm1341_vm5, %v11762_v20, 0.0  ;;  %vm2179_vm6 = vcmp.eq.s32.totalorder %v15523_v51, %v11778_v45 }
 0x3b2   : > { %v6084_v27 = vadd.f32 %v5828_v5, %v5246_v25  ;;  %vm3017_vm7 = vcmp.eq.s32.totalorder %v15523_v51, %v11793_v22  ;;  %v5697_v29 = vsel %vm5403_vm2, %v11838_v53, 0.0  ;;  %v1891_v34 = vadd.f32 %v1635_v33, %v1053_v19 }
 0x3b3   : > { %v4277_v35 = vadd.f32 %v4021_v37, %v3439_v39  ;;  %v2473_v17 = vsel %vm2179_vm6, %v11784_v9, 0.0  ;;  %v3311_v13 = vsel %vm3017_vm7, %v11799_v46, 0.0  ;;  %vm3855_vm9 = vcmp.eq.s32.totalorder %v15523_v51, %v11802_v3 }
 0x3b4   : > { %v6922_v1 = vadd.f32 %v6666_v4, %v6084_v27  ;;  %vm4693_vm10 = vcmp.eq.s32.totalorder %v15523_v51, %v11817_v36  ;;  %v6535_v60 = vsel %vm6241_vm4, %v11848_v18, 0.0  ;;  %v2729_v0 = vadd.f32 %v2473_v17, %v1891_v34 }
 0x3b5   : > { %v5115_v61 = vadd.f32 %v4859_v12, %v4277_v35  ;;  %vm5531_vm8 = vcmp.eq.s32.totalorder %v15523_v51, %v11830_v11  ;;  %v4149_v40 = vsel %vm3855_vm9, %v11809_v15, 0.0  ;;  %v4987_v43 = vsel %vm4693_vm10, %v11823_v42, 0.0 }
 0x3b6   : > { %7218 = vmatpush1.msra.mxu1 %v6922_v1  ;;  %vm630_vm11 = vcmp.eq.s32.totalorder %v15522_v59, %v11880_v47  ;;  %vm1212_vm12 = vcmp.eq.s32.totalorder %v15522_v59, %v11888_v32  ;;  %v3567_v5 = vadd.f32 %v3311_v13, %v2729_v0  ;;  %vm6369_vm13 = vcmp.eq.s32.totalorder %v15523_v51, %v11845_v10 }
 0x3b7   : > { %v5953_v30 = vadd.f32 %v5697_v29, %v5115_v61  ;;  %v924_v4 = vsel %vm630_vm11, %v11901_v16, 0.0  ;;  %v1506_v23 = vsel %vm1212_vm12, %v11918_v31, 0.0  ;;  %vm2050_vm14 = vcmp.eq.s32.totalorder %v15522_v59, %v11896_v49 }
 0x3b8   : > { %vm2888_vm15 = vcmp.eq.s32.totalorder %v15522_v59, %v11913_v48  ;;  %vm3726_vm0 = vcmp.eq.s32.totalorder %v15522_v59, %v11941_v2  ;;  %v4405_v25 = vadd.f32 %v4149_v40, %v3567_v5  ;;  %v1762_v12 = vadd.f32 %v1506_v23, %v924_v4 }
 0x3b9   : > { %v6791_v37 = vadd.f32 %v6535_v60, %v5953_v30  ;;  %v2344_v39 = vsel %vm2050_vm14, %v11907_v7, 0.0  ;;  %v5825_v19 = vsel %vm5531_vm8, %v11838_v53, 0.0  ;;  %v6663_v27 = vsel %vm6369_vm13, %v11848_v18, 0.0 }
 0x3ba   : > { %v3182_v33 = vsel %vm2888_vm15, %v11934_v55, 0.0  ;;  %vm4564_vm1 = vcmp.eq.s32.totalorder %v15522_v59, %v11950_v14  ;;  %v5243_v35 = vadd.f32 %v4987_v43, %v4405_v25  ;;  %v2600_v29 = vadd.f32 %v2344_v39, %v1762_v12  ;;  %v15524_v39 = vld [vmem:[#allocation19_spill] sm:$0xff] }
 0x3bb   : > { %7148 = vmatprep.subr.mxu0 %v6791_v37  ;;  %v4020_v34 = vsel %vm3726_vm0, %v11944_v57, 0.0  ;;  %vm5402_vm2 = vcmp.eq.s32.totalorder %v15522_v59, %v11958_v21  ;;  %v4858_v17 = vsel %vm4564_vm1, %v11953_v58, 0.0  ;;  %vm758_vm3 = vcmp.eq.s32.totalorder %v15523_v51, %v11880_v47 }
 0x3bc   : > { %vm1340_vm4 = vcmp.eq.s32.totalorder %v15523_v51, %v11888_v32  ;;  %vm2178_vm5 = vcmp.eq.s32.totalorder %v15523_v51, %v11896_v49  ;;  %v6081_v1 = vadd.f32 %v5825_v19, %v5243_v35  ;;  %v3438_v13 = vadd.f32 %v3182_v33, %v2600_v29 }
 0x3bd   : > { %vm6240_vm6 = vcmp.eq.s32.totalorder %v15522_v59, %v11976_v8  ;;  %v1052_v61 = vsel %vm758_vm3, %v11901_v16, 0.0  ;;  %v1634_v60 = vsel %vm1340_vm4, %v11918_v31, 0.0  ;;  %v2472_v0 = vsel %vm2178_vm5, %v11907_v7, 0.0 }
 0x3be   : > { %vm3016_vm7 = vcmp.eq.s32.totalorder %v15523_v51, %v11913_v48  ;;  %vm3854_vm9 = vcmp.eq.s32.totalorder %v15523_v51, %v11941_v2  ;;  %v6919_v40 = vadd.f32 %v6663_v27, %v6081_v1  ;;  %v4276_v43 = vadd.f32 %v4020_v34, %v3438_v13 }
 0x3bf   : > { %v5696_v30 = vsel %vm5402_vm2, %v11971_v44, 0.0  ;;  %v1890_v5 = vadd.f32 %v1634_v60, %v1052_v61  ;;  %v6534_v4 = vsel %vm6240_vm6, %v11984_v54, 0.0  ;;  %v3310_v59 = vsel %vm3016_vm7, %v11934_v55, 0.0 }
 0x3c0   : > { %v4148_v23 = vsel %vm3854_vm9, %v11944_v57, 0.0  ;;  %vm4692_vm10 = vcmp.eq.s32.totalorder %v15523_v51, %v11950_v14  ;;  %7219 = vmatprep.subr.mxu1 %v6919_v40  ;;  %v5114_v37 = vadd.f32 %v4858_v17, %v4276_v43  ;;  %vm5530_vm8 = vcmp.eq.s32.totalorder %v15523_v51, %v11958_v21 }
 0x3c1   : > { %v2728_v25 = vadd.f32 %v2472_v0, %v1890_v5  ;;  %vm6368_vm11 = vcmp.eq.s32.totalorder %v15523_v51, %v11976_v8  ;;  %v4986_v12 = vsel %vm4692_vm10, %v11953_v58, 0.0  ;;  %vm627_vm12 = vcmp.eq.s32.totalorder %v15524_v39, %v11751_v38  ;;  %v15525_v51 = vld [vmem:[#allocation20_spill] sm:$0xff] }
 0x3c2   : > { %vm1209_vm13 = vcmp.eq.s32.totalorder %v15524_v39, %v11759_v62  ;;  %vm2047_vm14 = vcmp.eq.s32.totalorder %v15524_v39, %v11778_v45  ;;  %v5952_v19 = vadd.f32 %v5696_v30, %v5114_v37  ;;  %v921_v33 = vsel %vm627_vm12, %v11756_v52, 0.0 }
 0x3c3   : > { %v3566_v27 = vadd.f32 %v3310_v59, %v2728_v25  ;;  %v1503_v35 = vsel %vm1209_vm13, %v11762_v20, 0.0  ;;  %v2341_v34 = vsel %vm2047_vm14, %v11784_v9, 0.0  ;;  %vm2885_vm15 = vcmp.eq.s32.totalorder %v15524_v39, %v11793_v22 }
 0x3c4   : > { %v1759_v29 = vadd.f32 %v1503_v35, %v921_v33  ;;  %vm3723_vm0 = vcmp.eq.s32.totalorder %v15524_v39, %v11802_v3  ;;  %v6790_v17 = vadd.f32 %v6534_v4, %v5952_v19  ;;  %v5824_v13 = vsel %vm5530_vm8, %v11971_v44, 0.0 }
 0x3c5   : > { %v4404_v1 = vadd.f32 %v4148_v23, %v3566_v27  ;;  %v3179_v61 = vsel %vm2885_vm15, %v11799_v46, 0.0  ;;  %v6662_v60 = vsel %vm6368_vm11, %v11984_v54, 0.0  ;;  %v4017_v40 = vsel %vm3723_vm0, %v11809_v15, 0.0 }
 0x3c6   : > { %v2597_v0 = vadd.f32 %v2341_v34, %v1759_v29  ;;  %vm4561_vm1 = vcmp.eq.s32.totalorder %v15524_v39, %v11817_v36  ;;  %7149 = vmatpush1.msra.mxu0 %v6790_v17  ;;  %vm5399_vm2 = vcmp.eq.s32.totalorder %v15524_v39, %v11830_v11  ;;  %vm6237_vm3 = vcmp.eq.s32.totalorder %v15524_v39, %v11845_v10 }
 0x3c7   : > { %v5242_v43 = vadd.f32 %v4986_v12, %v4404_v1  ;;  %v4855_v30 = vsel %vm4561_vm1, %v11823_v42, 0.0  ;;  %vm755_vm4 = vcmp.eq.s32.totalorder %v15525_v51, %v11751_v38  ;;  %vm1337_vm5 = vcmp.eq.s32.totalorder %v15525_v51, %v11759_v62 }
 0x3c8   : > { %v3435_v5 = vadd.f32 %v3179_v61, %v2597_v0  ;;  %vm2175_vm6 = vcmp.eq.s32.totalorder %v15525_v51, %v11778_v45  ;;  %v1049_v59 = vsel %vm755_vm4, %v11756_v52, 0.0  ;;  %v1631_v23 = vsel %vm1337_vm5, %v11762_v20, 0.0 }
 0x3c9   : > { %v6080_v4 = vadd.f32 %v5824_v13, %v5242_v43  ;;  %v2469_v37 = vsel %vm2175_vm6, %v11784_v9, 0.0  ;;  %v1887_v12 = vadd.f32 %v1631_v23, %v1049_v59  ;;  %vm3013_vm7 = vcmp.eq.s32.totalorder %v15525_v51, %v11793_v22 }
 0x3ca   : > { %v4273_v25 = vadd.f32 %v4017_v40, %v3435_v5  ;;  %vm3851_vm9 = vcmp.eq.s32.totalorder %v15525_v51, %v11802_v3  ;;  %v5693_v27 = vsel %vm5399_vm2, %v11838_v53, 0.0  ;;  %v3307_v33 = vsel %vm3013_vm7, %v11799_v46, 0.0 }
 0x3cb   : > { %v6918_v19 = vadd.f32 %v6662_v60, %v6080_v4  ;;  %vm4689_vm10 = vcmp.eq.s32.totalorder %v15525_v51, %v11817_v36  ;;  %v6531_v29 = vsel %vm6237_vm3, %v11848_v18, 0.0  ;;  %v2725_v34 = vadd.f32 %v2469_v37, %v1887_v12 }
 0x3cc   : > { %v5111_v35 = vadd.f32 %v4855_v30, %v4273_v25  ;;  %v4145_v17 = vsel %vm3851_vm9, %v11809_v15, 0.0  ;;  %v4983_v1 = vsel %vm4689_vm10, %v11823_v42, 0.0  ;;  %vm5527_vm8 = vcmp.eq.s32.totalorder %v15525_v51, %v11830_v11 }
 0x3cd   : > { %7220 = vmatpush1.msra.mxu1 %v6918_v19  ;;  %vm626_vm11 = vcmp.eq.s32.totalorder %v15524_v39, %v11880_v47  ;;  %vm1208_vm12 = vcmp.eq.s32.totalorder %v15524_v39, %v11888_v32  ;;  %v3563_v61 = vadd.f32 %v3307_v33, %v2725_v34  ;;  %vm6365_vm13 = vcmp.eq.s32.totalorder %v15525_v51, %v11845_v10 }
 0x3ce   : > { %v5949_v13 = vadd.f32 %v5693_v27, %v5111_v35  ;;  %v920_v60 = vsel %vm626_vm11, %v11901_v16, 0.0  ;;  %v1502_v0 = vsel %vm1208_vm12, %v11918_v31, 0.0  ;;  %vm2046_vm14 = vcmp.eq.s32.totalorder %v15524_v39, %v11896_v49 }
 0x3cf   : > { %vm2884_vm15 = vcmp.eq.s32.totalorder %v15524_v39, %v11913_v48  ;;  %vm3722_vm0 = vcmp.eq.s32.totalorder %v15524_v39, %v11941_v2  ;;  %v4401_v43 = vadd.f32 %v4145_v17, %v3563_v61  ;;  %v1758_v30 = vadd.f32 %v1502_v0, %v920_v60 }
 0x3d0   : > { %v6787_v40 = vadd.f32 %v6531_v29, %v5949_v13  ;;  %v2340_v5 = vsel %vm2046_vm14, %v11907_v7, 0.0  ;;  %v5821_v4 = vsel %vm5527_vm8, %v11838_v53, 0.0  ;;  %v6659_v59 = vsel %vm6365_vm13, %v11848_v18, 0.0 }
 0x3d1   : > { %v3178_v23 = vsel %vm2884_vm15, %v11934_v55, 0.0  ;;  %vm4560_vm1 = vcmp.eq.s32.totalorder %v15524_v39, %v11950_v14  ;;  %v5239_v37 = vadd.f32 %v4983_v1, %v4401_v43  ;;  %v2596_v25 = vadd.f32 %v2340_v5, %v1758_v30  ;;  %v15526_v5 = vld [vmem:[#allocation21_spill] sm:$0xff] }
 0x3d2   : > { %7150 = vmatprep.subr.mxu0 %v6787_v40  ;;  %v4016_v12 = vsel %vm3722_vm0, %v11944_v57, 0.0  ;;  %vm5398_vm2 = vcmp.eq.s32.totalorder %v15524_v39, %v11958_v21  ;;  %v4854_v19 = vsel %vm4560_vm1, %v11953_v58, 0.0  ;;  %vm754_vm3 = vcmp.eq.s32.totalorder %v15525_v51, %v11880_v47 }
 0x3d3   : > { %vm1336_vm4 = vcmp.eq.s32.totalorder %v15525_v51, %v11888_v32  ;;  %vm2174_vm5 = vcmp.eq.s32.totalorder %v15525_v51, %v11896_v49  ;;  %v6077_v27 = vadd.f32 %v5821_v4, %v5239_v37  ;;  %v3434_v33 = vadd.f32 %v3178_v23, %v2596_v25 }
 0x3d4   : > { %vm6236_vm6 = vcmp.eq.s32.totalorder %v15524_v39, %v11976_v8  ;;  %v1048_v35 = vsel %vm754_vm3, %v11901_v16, 0.0  ;;  %v1630_v29 = vsel %vm1336_vm4, %v11918_v31, 0.0  ;;  %v2468_v34 = vsel %vm2174_vm5, %v11907_v7, 0.0 }
 0x3d5   : > { %vm3012_vm7 = vcmp.eq.s32.totalorder %v15525_v51, %v11913_v48  ;;  %vm3850_vm9 = vcmp.eq.s32.totalorder %v15525_v51, %v11941_v2  ;;  %v6915_v17 = vadd.f32 %v6659_v59, %v6077_v27  ;;  %v4272_v1 = vadd.f32 %v4016_v12, %v3434_v33 }
 0x3d6   : > { %v5692_v13 = vsel %vm5398_vm2, %v11971_v44, 0.0  ;;  %v1886_v61 = vadd.f32 %v1630_v29, %v1048_v35  ;;  %v6530_v60 = vsel %vm6236_vm6, %v11984_v54, 0.0  ;;  %v3306_v39 = vsel %vm3012_vm7, %v11934_v55, 0.0 }
 0x3d7   : > { %v4144_v0 = vsel %vm3850_vm9, %v11944_v57, 0.0  ;;  %vm4688_vm10 = vcmp.eq.s32.totalorder %v15525_v51, %v11950_v14  ;;  %7221 = vmatprep.subr.mxu1 %v6915_v17  ;;  %v5110_v40 = vadd.f32 %v4854_v19, %v4272_v1  ;;  %vm5526_vm8 = vcmp.eq.s32.totalorder %v15525_v51, %v11958_v21 }
 0x3d8   : > { %v2724_v43 = vadd.f32 %v2468_v34, %v1886_v61  ;;  %vm6364_vm11 = vcmp.eq.s32.totalorder %v15525_v51, %v11976_v8  ;;  %v4982_v30 = vsel %vm4688_vm10, %v11953_v58, 0.0  ;;  %vm623_vm12 = vcmp.eq.s32.totalorder %v15526_v5, %v11751_v38  ;;  %v15527_v51 = vld [vmem:[#allocation22_spill] sm:$0xff] }
 0x3d9   : > { %vm1205_vm13 = vcmp.eq.s32.totalorder %v15526_v5, %v11759_v62  ;;  %vm2043_vm14 = vcmp.eq.s32.totalorder %v15526_v5, %v11778_v45  ;;  %v5948_v4 = vadd.f32 %v5692_v13, %v5110_v40  ;;  %v917_v23 = vsel %vm623_vm12, %v11756_v52, 0.0 }
 0x3da   : > { %v3562_v59 = vadd.f32 %v3306_v39, %v2724_v43  ;;  %v1499_v37 = vsel %vm1205_vm13, %v11762_v20, 0.0  ;;  %v2337_v12 = vsel %vm2043_vm14, %v11784_v9, 0.0  ;;  %vm2881_vm15 = vcmp.eq.s32.totalorder %v15526_v5, %v11793_v22 }
 0x3db   : > { %v1755_v25 = vadd.f32 %v1499_v37, %v917_v23  ;;  %vm3719_vm0 = vcmp.eq.s32.totalorder %v15526_v5, %v11802_v3  ;;  %v6786_v19 = vadd.f32 %v6530_v60, %v5948_v4  ;;  %v5820_v33 = vsel %vm5526_vm8, %v11971_v44, 0.0 }
 0x3dc   : > { %v4400_v27 = vadd.f32 %v4144_v0, %v3562_v59  ;;  %v3175_v35 = vsel %vm2881_vm15, %v11799_v46, 0.0  ;;  %v6658_v29 = vsel %vm6364_vm11, %v11984_v54, 0.0  ;;  %v4013_v17 = vsel %vm3719_vm0, %v11809_v15, 0.0 }
 0x3dd   : > { %v2593_v34 = vadd.f32 %v2337_v12, %v1755_v25  ;;  %vm4557_vm1 = vcmp.eq.s32.totalorder %v15526_v5, %v11817_v36  ;;  %7151 = vmatpush1.msra.mxu0 %v6786_v19  ;;  %vm5395_vm2 = vcmp.eq.s32.totalorder %v15526_v5, %v11830_v11  ;;  %vm6233_vm3 = vcmp.eq.s32.totalorder %v15526_v5, %v11845_v10 }
 0x3de   : > { %v5238_v1 = vadd.f32 %v4982_v30, %v4400_v27  ;;  %v4851_v13 = vsel %vm4557_vm1, %v11823_v42, 0.0  ;;  %vm751_vm4 = vcmp.eq.s32.totalorder %v15527_v51, %v11751_v38  ;;  %vm1333_vm5 = vcmp.eq.s32.totalorder %v15527_v51, %v11759_v62 }
 0x3df   : > { %v3431_v61 = vadd.f32 %v3175_v35, %v2593_v34  ;;  %vm2171_vm6 = vcmp.eq.s32.totalorder %v15527_v51, %v11778_v45  ;;  %v1045_v39 = vsel %vm751_vm4, %v11756_v52, 0.0  ;;  %v1627_v0 = vsel %vm1333_vm5, %v11762_v20, 0.0 }
 0x3e0   : > { %v6076_v60 = vadd.f32 %v5820_v33, %v5238_v1  ;;  %v2465_v40 = vsel %vm2171_vm6, %v11784_v9, 0.0  ;;  %v1883_v30 = vadd.f32 %v1627_v0, %v1045_v39  ;;  %vm3009_vm7 = vcmp.eq.s32.totalorder %v15527_v51, %v11793_v22 }
 0x3e1   : > { %v4269_v43 = vadd.f32 %v4013_v17, %v3431_v61  ;;  %vm3847_vm9 = vcmp.eq.s32.totalorder %v15527_v51, %v11802_v3  ;;  %v5689_v59 = vsel %vm5395_vm2, %v11838_v53, 0.0  ;;  %v3303_v23 = vsel %vm3009_vm7, %v11799_v46, 0.0 }
 0x3e2   : > { %v6914_v4 = vadd.f32 %v6658_v29, %v6076_v60  ;;  %vm4685_vm10 = vcmp.eq.s32.totalorder %v15527_v51, %v11817_v36  ;;  %v6527_v25 = vsel %vm6233_vm3, %v11848_v18, 0.0  ;;  %v2721_v12 = vadd.f32 %v2465_v40, %v1883_v30 }
 0x3e3   : > { %v5107_v37 = vadd.f32 %v4851_v13, %v4269_v43  ;;  %v4141_v19 = vsel %vm3847_vm9, %v11809_v15, 0.0  ;;  %v4979_v27 = vsel %vm4685_vm10, %v11823_v42, 0.0  ;;  %vm5523_vm8 = vcmp.eq.s32.totalorder %v15527_v51, %v11830_v11 }
 0x3e4   : > { %7222 = vmatpush1.msra.mxu1 %v6914_v4  ;;  %vm622_vm11 = vcmp.eq.s32.totalorder %v15526_v5, %v11880_v47  ;;  %vm1204_vm12 = vcmp.eq.s32.totalorder %v15526_v5, %v11888_v32  ;;  %v3559_v35 = vadd.f32 %v3303_v23, %v2721_v12  ;;  %vm6361_vm13 = vcmp.eq.s32.totalorder %v15527_v51, %v11845_v10 }
 0x3e5   : > { %v5945_v33 = vadd.f32 %v5689_v59, %v5107_v37  ;;  %v916_v29 = vsel %vm622_vm11, %v11901_v16, 0.0  ;;  %v1498_v34 = vsel %vm1204_vm12, %v11918_v31, 0.0  ;;  %vm2042_vm14 = vcmp.eq.s32.totalorder %v15526_v5, %v11896_v49 }
 0x3e6   : > { %vm2880_vm15 = vcmp.eq.s32.totalorder %v15526_v5, %v11913_v48  ;;  %vm3718_vm0 = vcmp.eq.s32.totalorder %v15526_v5, %v11941_v2  ;;  %v4397_v1 = vadd.f32 %v4141_v19, %v3559_v35  ;;  %v1754_v13 = vadd.f32 %v1498_v34, %v916_v29 }
 0x3e7   : > { %v6783_v17 = vadd.f32 %v6527_v25, %v5945_v33  ;;  %v2336_v61 = vsel %vm2042_vm14, %v11907_v7, 0.0  ;;  %v5817_v60 = vsel %vm5523_vm8, %v11838_v53, 0.0  ;;  %v6655_v39 = vsel %vm6361_vm13, %v11848_v18, 0.0 }
 0x3e8   : > { %v3174_v0 = vsel %vm2880_vm15, %v11934_v55, 0.0  ;;  %vm4556_vm1 = vcmp.eq.s32.totalorder %v15526_v5, %v11950_v14  ;;  %v5235_v40 = vadd.f32 %v4979_v27, %v4397_v1  ;;  %v2592_v43 = vadd.f32 %v2336_v61, %v1754_v13  ;;  %v15528_v61 = vld [vmem:[#allocation23_spill] sm:$0xff] }
 0x3e9   : > { %7152 = vmatprep.subr.mxu0 %v6783_v17  ;;  %v4012_v30 = vsel %vm3718_vm0, %v11944_v57, 0.0  ;;  %vm5394_vm2 = vcmp.eq.s32.totalorder %v15526_v5, %v11958_v21  ;;  %v4850_v4 = vsel %vm4556_vm1, %v11953_v58, 0.0  ;;  %vm750_vm3 = vcmp.eq.s32.totalorder %v15527_v51, %v11880_v47 }
 0x3ea   : > { %vm1332_vm4 = vcmp.eq.s32.totalorder %v15527_v51, %v11888_v32  ;;  %vm2170_vm5 = vcmp.eq.s32.totalorder %v15527_v51, %v11896_v49  ;;  %v6073_v59 = vadd.f32 %v5817_v60, %v5235_v40  ;;  %v3430_v23 = vadd.f32 %v3174_v0, %v2592_v43 }
 0x3eb   : > { %vm6232_vm6 = vcmp.eq.s32.totalorder %v15526_v5, %v11976_v8  ;;  %v1044_v37 = vsel %vm750_vm3, %v11901_v16, 0.0  ;;  %v1626_v25 = vsel %vm1332_vm4, %v11918_v31, 0.0  ;;  %v2464_v12 = vsel %vm2170_vm5, %v11907_v7, 0.0 }
 0x3ec   : > { %vm3008_vm7 = vcmp.eq.s32.totalorder %v15527_v51, %v11913_v48  ;;  %vm3846_vm9 = vcmp.eq.s32.totalorder %v15527_v51, %v11941_v2  ;;  %v6911_v19 = vadd.f32 %v6655_v39, %v6073_v59  ;;  %v4268_v27 = vadd.f32 %v4012_v30, %v3430_v23 }
 0x3ed   : > { %v5688_v33 = vsel %vm5394_vm2, %v11971_v44, 0.0  ;;  %v1882_v35 = vadd.f32 %v1626_v25, %v1044_v37  ;;  %v6526_v29 = vsel %vm6232_vm6, %v11984_v54, 0.0  ;;  %v3302_v5 = vsel %vm3008_vm7, %v11934_v55, 0.0 }
 0x3ee   : > { %v4140_v34 = vsel %vm3846_vm9, %v11944_v57, 0.0  ;;  %vm4684_vm10 = vcmp.eq.s32.totalorder %v15527_v51, %v11950_v14  ;;  %7223 = vmatprep.subr.mxu1 %v6911_v19  ;;  %v5106_v17 = vadd.f32 %v4850_v4, %v4268_v27  ;;  %vm5522_vm8 = vcmp.eq.s32.totalorder %v15527_v51, %v11958_v21 }
 0x3ef   : > { %v2720_v1 = vadd.f32 %v2464_v12, %v1882_v35  ;;  %vm6360_vm11 = vcmp.eq.s32.totalorder %v15527_v51, %v11976_v8  ;;  %v4978_v13 = vsel %vm4684_vm10, %v11953_v58, 0.0  ;;  %vm619_vm12 = vcmp.eq.s32.totalorder %v15528_v61, %v11751_v38  ;;  %v15529_v51 = vld [vmem:[#allocation24_spill] sm:$0xff] }
 0x3f0   : > { %vm1201_vm13 = vcmp.eq.s32.totalorder %v15528_v61, %v11759_v62  ;;  %vm2039_vm14 = vcmp.eq.s32.totalorder %v15528_v61, %v11778_v45  ;;  %v5944_v60 = vadd.f32 %v5688_v33, %v5106_v17  ;;  %v913_v0 = vsel %vm619_vm12, %v11756_v52, 0.0 }
 0x3f1   : > { %v3558_v39 = vadd.f32 %v3302_v5, %v2720_v1  ;;  %v1495_v40 = vsel %vm1201_vm13, %v11762_v20, 0.0  ;;  %v2333_v30 = vsel %vm2039_vm14, %v11784_v9, 0.0  ;;  %vm2877_vm15 = vcmp.eq.s32.totalorder %v15528_v61, %v11793_v22 }
 0x3f2   : > { %v1751_v43 = vadd.f32 %v1495_v40, %v913_v0  ;;  %vm3715_vm0 = vcmp.eq.s32.totalorder %v15528_v61, %v11802_v3  ;;  %v6782_v4 = vadd.f32 %v6526_v29, %v5944_v60  ;;  %v5816_v23 = vsel %vm5522_vm8, %v11971_v44, 0.0 }
 0x3f3   : > { %v4396_v59 = vadd.f32 %v4140_v34, %v3558_v39  ;;  %v3171_v37 = vsel %vm2877_vm15, %v11799_v46, 0.0  ;;  %v6654_v25 = vsel %vm6360_vm11, %v11984_v54, 0.0  ;;  %v4009_v19 = vsel %vm3715_vm0, %v11809_v15, 0.0 }
 0x3f4   : > { %v2589_v12 = vadd.f32 %v2333_v30, %v1751_v43  ;;  %vm4553_vm1 = vcmp.eq.s32.totalorder %v15528_v61, %v11817_v36  ;;  %7153 = vmatpush1.msra.mxu0 %v6782_v4  ;;  %vm5391_vm2 = vcmp.eq.s32.totalorder %v15528_v61, %v11830_v11  ;;  %vm6229_vm3 = vcmp.eq.s32.totalorder %v15528_v61, %v11845_v10 }
 0x3f5   : > { %v5234_v27 = vadd.f32 %v4978_v13, %v4396_v59  ;;  %v4847_v33 = vsel %vm4553_vm1, %v11823_v42, 0.0  ;;  %vm747_vm4 = vcmp.eq.s32.totalorder %v15529_v51, %v11751_v38  ;;  %vm1329_vm5 = vcmp.eq.s32.totalorder %v15529_v51, %v11759_v62 }
 0x3f6   : > { %v3427_v35 = vadd.f32 %v3171_v37, %v2589_v12  ;;  %vm2167_vm6 = vcmp.eq.s32.totalorder %v15529_v51, %v11778_v45  ;;  %v1041_v5 = vsel %vm747_vm4, %v11756_v52, 0.0  ;;  %v1623_v34 = vsel %vm1329_vm5, %v11762_v20, 0.0 }
 0x3f7   : > { %v6072_v29 = vadd.f32 %v5816_v23, %v5234_v27  ;;  %v2461_v17 = vsel %vm2167_vm6, %v11784_v9, 0.0  ;;  %v1879_v13 = vadd.f32 %v1623_v34, %v1041_v5  ;;  %vm3005_vm7 = vcmp.eq.s32.totalorder %v15529_v51, %v11793_v22 }
 0x3f8   : > { %v4265_v1 = vadd.f32 %v4009_v19, %v3427_v35  ;;  %vm3843_vm9 = vcmp.eq.s32.totalorder %v15529_v51, %v11802_v3  ;;  %v5685_v39 = vsel %vm5391_vm2, %v11838_v53, 0.0  ;;  %v3299_v0 = vsel %vm3005_vm7, %v11799_v46, 0.0 }
 0x3f9   : > { %v6910_v60 = vadd.f32 %v6654_v25, %v6072_v29  ;;  %vm4681_vm10 = vcmp.eq.s32.totalorder %v15529_v51, %v11817_v36  ;;  %v6523_v43 = vsel %vm6229_vm3, %v11848_v18, 0.0  ;;  %v2717_v30 = vadd.f32 %v2461_v17, %v1879_v13 }
 0x3fa   : > { %v5103_v40 = vadd.f32 %v4847_v33, %v4265_v1  ;;  %v4137_v4 = vsel %vm3843_vm9, %v11809_v15, 0.0  ;;  %v4975_v59 = vsel %vm4681_vm10, %v11823_v42, 0.0  ;;  %vm5519_vm8 = vcmp.eq.s32.totalorder %v15529_v51, %v11830_v11 }
 0x3fb   : > { %7224 = vmatpush1.msra.mxu1 %v6910_v60  ;;  %vm618_vm11 = vcmp.eq.s32.totalorder %v15528_v61, %v11880_v47  ;;  %vm1200_vm12 = vcmp.eq.s32.totalorder %v15528_v61, %v11888_v32  ;;  %v3555_v37 = vadd.f32 %v3299_v0, %v2717_v30  ;;  %vm6357_vm13 = vcmp.eq.s32.totalorder %v15529_v51, %v11845_v10 }
 0x3fc   : > { %v5941_v23 = vadd.f32 %v5685_v39, %v5103_v40  ;;  %v912_v25 = vsel %vm618_vm11, %v11901_v16, 0.0  ;;  %v1494_v12 = vsel %vm1200_vm12, %v11918_v31, 0.0  ;;  %vm2038_vm14 = vcmp.eq.s32.totalorder %v15528_v61, %v11896_v49 }
 0x3fd   : > { %vm2876_vm15 = vcmp.eq.s32.totalorder %v15528_v61, %v11913_v48  ;;  %vm3714_vm0 = vcmp.eq.s32.totalorder %v15528_v61, %v11941_v2  ;;  %v4393_v27 = vadd.f32 %v4137_v4, %v3555_v37  ;;  %v1750_v33 = vadd.f32 %v1494_v12, %v912_v25 }
 0x3fe   : > { %v6779_v19 = vadd.f32 %v6523_v43, %v5941_v23  ;;  %v2332_v35 = vsel %vm2038_vm14, %v11907_v7, 0.0  ;;  %v5813_v29 = vsel %vm5519_vm8, %v11838_v53, 0.0  ;;  %v6651_v5 = vsel %vm6357_vm13, %v11848_v18, 0.0 }
 0x3ff   : > { %v3170_v34 = vsel %vm2876_vm15, %v11934_v55, 0.0  ;;  %vm4552_vm1 = vcmp.eq.s32.totalorder %v15528_v61, %v11950_v14  ;;  %v5231_v17 = vadd.f32 %v4975_v59, %v4393_v27  ;;  %v2588_v1 = vadd.f32 %v2332_v35, %v1750_v33  ;;  %v15530_v35 = vld [vmem:[#allocation25_spill] sm:$0xff] }
 0x400   : > { %7154 = vmatprep.subr.mxu0 %v6779_v19  ;;  %v4008_v13 = vsel %vm3714_vm0, %v11944_v57, 0.0  ;;  %vm5390_vm2 = vcmp.eq.s32.totalorder %v15528_v61, %v11958_v21  ;;  %v4846_v60 = vsel %vm4552_vm1, %v11953_v58, 0.0  ;;  %vm746_vm3 = vcmp.eq.s32.totalorder %v15529_v51, %v11880_v47 }
 0x401   : > { %vm1328_vm4 = vcmp.eq.s32.totalorder %v15529_v51, %v11888_v32  ;;  %vm2166_vm5 = vcmp.eq.s32.totalorder %v15529_v51, %v11896_v49  ;;  %v6069_v39 = vadd.f32 %v5813_v29, %v5231_v17  ;;  %v3426_v0 = vadd.f32 %v3170_v34, %v2588_v1 }
 0x402   : > { %vm6228_vm6 = vcmp.eq.s32.totalorder %v15528_v61, %v11976_v8  ;;  %v1040_v40 = vsel %vm746_vm3, %v11901_v16, 0.0  ;;  %v1622_v43 = vsel %vm1328_vm4, %v11918_v31, 0.0  ;;  %v2460_v30 = vsel %vm2166_vm5, %v11907_v7, 0.0 }
 0x403   : > { %vm3004_vm7 = vcmp.eq.s32.totalorder %v15529_v51, %v11913_v48  ;;  %vm3842_vm9 = vcmp.eq.s32.totalorder %v15529_v51, %v11941_v2  ;;  %v6907_v4 = vadd.f32 %v6651_v5, %v6069_v39  ;;  %v4264_v59 = vadd.f32 %v4008_v13, %v3426_v0 }
 0x404   : > { %v5684_v23 = vsel %vm5390_vm2, %v11971_v44, 0.0  ;;  %v1878_v37 = vadd.f32 %v1622_v43, %v1040_v40  ;;  %v6522_v25 = vsel %vm6228_vm6, %v11984_v54, 0.0  ;;  %v3298_v61 = vsel %vm3004_vm7, %v11934_v55, 0.0 }
 0x405   : > { %v4136_v12 = vsel %vm3842_vm9, %v11944_v57, 0.0  ;;  %vm4680_vm10 = vcmp.eq.s32.totalorder %v15529_v51, %v11950_v14  ;;  %7225 = vmatprep.subr.mxu1 %v6907_v4  ;;  %v5102_v19 = vadd.f32 %v4846_v60, %v4264_v59  ;;  %vm5518_vm8 = vcmp.eq.s32.totalorder %v15529_v51, %v11958_v21 }
 0x406   : > { %v2716_v27 = vadd.f32 %v2460_v30, %v1878_v37  ;;  %vm6356_vm11 = vcmp.eq.s32.totalorder %v15529_v51, %v11976_v8  ;;  %v4974_v33 = vsel %vm4680_vm10, %v11953_v58, 0.0  ;;  %vm615_vm12 = vcmp.eq.s32.totalorder %v15530_v35, %v11751_v38  ;;  %v15531_v51 = vld [vmem:[#allocation26_spill] sm:$0xff] }
 0x407   : > { %vm1197_vm13 = vcmp.eq.s32.totalorder %v15530_v35, %v11759_v62  ;;  %vm2035_vm14 = vcmp.eq.s32.totalorder %v15530_v35, %v11778_v45  ;;  %v5940_v29 = vadd.f32 %v5684_v23, %v5102_v19  ;;  %v909_v34 = vsel %vm615_vm12, %v11756_v52, 0.0 }
 0x408   : > { %v3554_v5 = vadd.f32 %v3298_v61, %v2716_v27  ;;  %v1491_v17 = vsel %vm1197_vm13, %v11762_v20, 0.0  ;;  %v2329_v13 = vsel %vm2035_vm14, %v11784_v9, 0.0  ;;  %vm2873_vm15 = vcmp.eq.s32.totalorder %v15530_v35, %v11793_v22 }
 0x409   : > { %v1747_v1 = vadd.f32 %v1491_v17, %v909_v34  ;;  %vm3711_vm0 = vcmp.eq.s32.totalorder %v15530_v35, %v11802_v3  ;;  %v6778_v60 = vadd.f32 %v6522_v25, %v5940_v29  ;;  %v5812_v0 = vsel %vm5518_vm8, %v11971_v44, 0.0 }
 0x40a   : > { %v4392_v39 = vadd.f32 %v4136_v12, %v3554_v5  ;;  %v3167_v40 = vsel %vm2873_vm15, %v11799_v46, 0.0  ;;  %v6650_v43 = vsel %vm6356_vm11, %v11984_v54, 0.0  ;;  %v4005_v4 = vsel %vm3711_vm0, %v11809_v15, 0.0 }
 0x40b   : > { %v2585_v30 = vadd.f32 %v2329_v13, %v1747_v1  ;;  %vm4549_vm1 = vcmp.eq.s32.totalorder %v15530_v35, %v11817_v36  ;;  %7155 = vmatpush1.msra.mxu0 %v6778_v60  ;;  %vm5387_vm2 = vcmp.eq.s32.totalorder %v15530_v35, %v11830_v11  ;;  %vm6225_vm3 = vcmp.eq.s32.totalorder %v15530_v35, %v11845_v10 }
 0x40c   : > { %v5230_v59 = vadd.f32 %v4974_v33, %v4392_v39  ;;  %v4843_v23 = vsel %vm4549_vm1, %v11823_v42, 0.0  ;;  %vm743_vm4 = vcmp.eq.s32.totalorder %v15531_v51, %v11751_v38  ;;  %vm1325_vm5 = vcmp.eq.s32.totalorder %v15531_v51, %v11759_v62 }
 0x40d   : > { %v3423_v37 = vadd.f32 %v3167_v40, %v2585_v30  ;;  %vm2163_vm6 = vcmp.eq.s32.totalorder %v15531_v51, %v11778_v45  ;;  %v1037_v61 = vsel %vm743_vm4, %v11756_v52, 0.0  ;;  %v1619_v12 = vsel %vm1325_vm5, %v11762_v20, 0.0 }
 0x40e   : > { %v6068_v25 = vadd.f32 %v5812_v0, %v5230_v59  ;;  %v2457_v19 = vsel %vm2163_vm6, %v11784_v9, 0.0  ;;  %v1875_v33 = vadd.f32 %v1619_v12, %v1037_v61  ;;  %vm3001_vm7 = vcmp.eq.s32.totalorder %v15531_v51, %v11793_v22 }
 0x40f   : > { %v4261_v27 = vadd.f32 %v4005_v4, %v3423_v37  ;;  %vm3839_vm9 = vcmp.eq.s32.totalorder %v15531_v51, %v11802_v3  ;;  %v5681_v5 = vsel %vm5387_vm2, %v11838_v53, 0.0  ;;  %v3295_v34 = vsel %vm3001_vm7, %v11799_v46, 0.0 }
 0x410   : > { %v6906_v29 = vadd.f32 %v6650_v43, %v6068_v25  ;;  %vm4677_vm10 = vcmp.eq.s32.totalorder %v15531_v51, %v11817_v36  ;;  %v6519_v1 = vsel %vm6225_vm3, %v11848_v18, 0.0  ;;  %v2713_v13 = vadd.f32 %v2457_v19, %v1875_v33 }
 0x411   : > { %v5099_v17 = vadd.f32 %v4843_v23, %v4261_v27  ;;  %v4133_v60 = vsel %vm3839_vm9, %v11809_v15, 0.0  ;;  %v4971_v39 = vsel %vm4677_vm10, %v11823_v42, 0.0  ;;  %vm5515_vm8 = vcmp.eq.s32.totalorder %v15531_v51, %v11830_v11 }
 0x412   : > { %7226 = vmatpush1.msra.mxu1 %v6906_v29  ;;  %vm614_vm11 = vcmp.eq.s32.totalorder %v15530_v35, %v11880_v47  ;;  %vm1196_vm12 = vcmp.eq.s32.totalorder %v15530_v35, %v11888_v32  ;;  %v3551_v40 = vadd.f32 %v3295_v34, %v2713_v13  ;;  %vm6353_vm13 = vcmp.eq.s32.totalorder %v15531_v51, %v11845_v10 }
 0x413   : > { %v5937_v0 = vadd.f32 %v5681_v5, %v5099_v17  ;;  %v908_v43 = vsel %vm614_vm11, %v11901_v16, 0.0  ;;  %v1490_v30 = vsel %vm1196_vm12, %v11918_v31, 0.0  ;;  %vm2034_vm14 = vcmp.eq.s32.totalorder %v15530_v35, %v11896_v49 }
 0x414   : > { %vm2872_vm15 = vcmp.eq.s32.totalorder %v15530_v35, %v11913_v48  ;;  %vm3710_vm0 = vcmp.eq.s32.totalorder %v15530_v35, %v11941_v2  ;;  %v4389_v59 = vadd.f32 %v4133_v60, %v3551_v40  ;;  %v1746_v23 = vadd.f32 %v1490_v30, %v908_v43 }
 0x415   : > { %v6775_v4 = vadd.f32 %v6519_v1, %v5937_v0  ;;  %v2328_v37 = vsel %vm2034_vm14, %v11907_v7, 0.0  ;;  %v5809_v25 = vsel %vm5515_vm8, %v11838_v53, 0.0  ;;  %v6647_v61 = vsel %vm6353_vm13, %v11848_v18, 0.0 }
 0x416   : > { %v3166_v12 = vsel %vm2872_vm15, %v11934_v55, 0.0  ;;  %vm4548_vm1 = vcmp.eq.s32.totalorder %v15530_v35, %v11950_v14  ;;  %v5227_v19 = vadd.f32 %v4971_v39, %v4389_v59  ;;  %v2584_v27 = vadd.f32 %v2328_v37, %v1746_v23  ;;  %v15532_v37 = vld [vmem:[#allocation27_spill] sm:$0xff] }
 0x417   : > { %7156 = vmatprep.subr.mxu0 %v6775_v4  ;;  %v4004_v33 = vsel %vm3710_vm0, %v11944_v57, 0.0  ;;  %vm5386_vm2 = vcmp.eq.s32.totalorder %v15530_v35, %v11958_v21  ;;  %v4842_v29 = vsel %vm4548_vm1, %v11953_v58, 0.0  ;;  %vm742_vm3 = vcmp.eq.s32.totalorder %v15531_v51, %v11880_v47 }
 0x418   : > { %vm1324_vm4 = vcmp.eq.s32.totalorder %v15531_v51, %v11888_v32  ;;  %vm2162_vm5 = vcmp.eq.s32.totalorder %v15531_v51, %v11896_v49  ;;  %v6065_v5 = vadd.f32 %v5809_v25, %v5227_v19  ;;  %v3422_v34 = vadd.f32 %v3166_v12, %v2584_v27 }
 0x419   : > { %vm6224_vm6 = vcmp.eq.s32.totalorder %v15530_v35, %v11976_v8  ;;  %v1036_v17 = vsel %vm742_vm3, %v11901_v16, 0.0  ;;  %v1618_v1 = vsel %vm1324_vm4, %v11918_v31, 0.0  ;;  %v2456_v13 = vsel %vm2162_vm5, %v11907_v7, 0.0 }
 0x41a   : > { %vm3000_vm7 = vcmp.eq.s32.totalorder %v15531_v51, %v11913_v48  ;;  %vm3838_vm9 = vcmp.eq.s32.totalorder %v15531_v51, %v11941_v2  ;;  %v6903_v60 = vadd.f32 %v6647_v61, %v6065_v5  ;;  %v4260_v39 = vadd.f32 %v4004_v33, %v3422_v34 }
 0x41b   : > { %v5680_v0 = vsel %vm5386_vm2, %v11971_v44, 0.0  ;;  %v1874_v40 = vadd.f32 %v1618_v1, %v1036_v17  ;;  %v6518_v43 = vsel %vm6224_vm6, %v11984_v54, 0.0  ;;  %v3294_v35 = vsel %vm3000_vm7, %v11934_v55, 0.0 }
 0x41c   : > { %v4132_v30 = vsel %vm3838_vm9, %v11944_v57, 0.0  ;;  %vm4676_vm10 = vcmp.eq.s32.totalorder %v15531_v51, %v11950_v14  ;;  %7227 = vmatprep.subr.mxu1 %v6903_v60  ;;  %v5098_v4 = vadd.f32 %v4842_v29, %v4260_v39  ;;  %vm5514_vm8 = vcmp.eq.s32.totalorder %v15531_v51, %v11958_v21 }
 0x41d   : > { %v2712_v59 = vadd.f32 %v2456_v13, %v1874_v40  ;;  %vm6352_vm11 = vcmp.eq.s32.totalorder %v15531_v51, %v11976_v8  ;;  %v4970_v23 = vsel %vm4676_vm10, %v11953_v58, 0.0  ;;  %vm611_vm12 = vcmp.eq.s32.totalorder %v15532_v37, %v11751_v38  ;;  %v15533_v51 = vld [vmem:[#allocation28_spill] sm:$0xff] }
 0x41e   : > { %vm1193_vm13 = vcmp.eq.s32.totalorder %v15532_v37, %v11759_v62  ;;  %vm2031_vm14 = vcmp.eq.s32.totalorder %v15532_v37, %v11778_v45  ;;  %v5936_v25 = vadd.f32 %v5680_v0, %v5098_v4  ;;  %v905_v12 = vsel %vm611_vm12, %v11756_v52, 0.0 }
 0x41f   : > { %v3550_v61 = vadd.f32 %v3294_v35, %v2712_v59  ;;  %v1487_v19 = vsel %vm1193_vm13, %v11762_v20, 0.0  ;;  %v2325_v33 = vsel %vm2031_vm14, %v11784_v9, 0.0  ;;  %vm2869_vm15 = vcmp.eq.s32.totalorder %v15532_v37, %v11793_v22 }
 0x420   : > { %v1743_v27 = vadd.f32 %v1487_v19, %v905_v12  ;;  %vm3707_vm0 = vcmp.eq.s32.totalorder %v15532_v37, %v11802_v3  ;;  %v6774_v29 = vadd.f32 %v6518_v43, %v5936_v25  ;;  %v5808_v34 = vsel %vm5514_vm8, %v11971_v44, 0.0 }
 0x421   : > { %v4388_v5 = vadd.f32 %v4132_v30, %v3550_v61  ;;  %v3163_v17 = vsel %vm2869_vm15, %v11799_v46, 0.0  ;;  %v6646_v1 = vsel %vm6352_vm11, %v11984_v54, 0.0  ;;  %v4001_v60 = vsel %vm3707_vm0, %v11809_v15, 0.0 }
 0x422   : > { %v2581_v13 = vadd.f32 %v2325_v33, %v1743_v27  ;;  %vm4545_vm1 = vcmp.eq.s32.totalorder %v15532_v37, %v11817_v36  ;;  %7157 = vmatpush1.msra.mxu0 %v6774_v29  ;;  %vm5383_vm2 = vcmp.eq.s32.totalorder %v15532_v37, %v11830_v11  ;;  %vm6221_vm3 = vcmp.eq.s32.totalorder %v15532_v37, %v11845_v10 }
 0x423   : > { %v5226_v39 = vadd.f32 %v4970_v23, %v4388_v5  ;;  %v4839_v0 = vsel %vm4545_vm1, %v11823_v42, 0.0  ;;  %vm739_vm4 = vcmp.eq.s32.totalorder %v15533_v51, %v11751_v38  ;;  %vm1321_vm5 = vcmp.eq.s32.totalorder %v15533_v51, %v11759_v62 }
 0x424   : > { %v3419_v40 = vadd.f32 %v3163_v17, %v2581_v13  ;;  %vm2159_vm6 = vcmp.eq.s32.totalorder %v15533_v51, %v11778_v45  ;;  %v1033_v35 = vsel %vm739_vm4, %v11756_v52, 0.0  ;;  %v1615_v30 = vsel %vm1321_vm5, %v11762_v20, 0.0 }
 0x425   : > { %v6064_v43 = vadd.f32 %v5808_v34, %v5226_v39  ;;  %v2453_v4 = vsel %vm2159_vm6, %v11784_v9, 0.0  ;;  %v1871_v23 = vadd.f32 %v1615_v30, %v1033_v35  ;;  %vm2997_vm7 = vcmp.eq.s32.totalorder %v15533_v51, %v11793_v22 }
 0x426   : > { %v4257_v59 = vadd.f32 %v4001_v60, %v3419_v40  ;;  %vm3835_vm9 = vcmp.eq.s32.totalorder %v15533_v51, %v11802_v3  ;;  %v5677_v61 = vsel %vm5383_vm2, %v11838_v53, 0.0  ;;  %v3291_v12 = vsel %vm2997_vm7, %v11799_v46, 0.0 }
 0x427   : > { %v6902_v25 = vadd.f32 %v6646_v1, %v6064_v43  ;;  %vm4673_vm10 = vcmp.eq.s32.totalorder %v15533_v51, %v11817_v36  ;;  %v6515_v27 = vsel %vm6221_vm3, %v11848_v18, 0.0  ;;  %v2709_v33 = vadd.f32 %v2453_v4, %v1871_v23 }
 0x428   : > { %v5095_v19 = vadd.f32 %v4839_v0, %v4257_v59  ;;  %v4129_v29 = vsel %vm3835_vm9, %v11809_v15, 0.0  ;;  %v4967_v5 = vsel %vm4673_vm10, %v11823_v42, 0.0  ;;  %vm5511_vm8 = vcmp.eq.s32.totalorder %v15533_v51, %v11830_v11 }
 0x429   : > { %7228 = vmatpush1.msra.mxu1 %v6902_v25  ;;  %vm610_vm11 = vcmp.eq.s32.totalorder %v15532_v37, %v11880_v47  ;;  %vm1192_vm12 = vcmp.eq.s32.totalorder %v15532_v37, %v11888_v32  ;;  %v3547_v17 = vadd.f32 %v3291_v12, %v2709_v33  ;;  %vm6349_vm13 = vcmp.eq.s32.totalorder %v15533_v51, %v11845_v10 }
 0x42a   : > { %v5933_v34 = vadd.f32 %v5677_v61, %v5095_v19  ;;  %v904_v1 = vsel %vm610_vm11, %v11901_v16, 0.0  ;;  %v1486_v13 = vsel %vm1192_vm12, %v11918_v31, 0.0  ;;  %vm2030_vm14 = vcmp.eq.s32.totalorder %v15532_v37, %v11896_v49 }
 0x42b   : > { %vm2868_vm15 = vcmp.eq.s32.totalorder %v15532_v37, %v11913_v48  ;;  %vm3706_vm0 = vcmp.eq.s32.totalorder %v15532_v37, %v11941_v2  ;;  %v4385_v39 = vadd.f32 %v4129_v29, %v3547_v17  ;;  %v1742_v0 = vadd.f32 %v1486_v13, %v904_v1 }
 0x42c   : > { %v6771_v60 = vadd.f32 %v6515_v27, %v5933_v34  ;;  %v2324_v40 = vsel %vm2030_vm14, %v11907_v7, 0.0  ;;  %v5805_v43 = vsel %vm5511_vm8, %v11838_v53, 0.0  ;;  %v6643_v35 = vsel %vm6349_vm13, %v11848_v18, 0.0 }
 0x42d   : > { %v3162_v30 = vsel %vm2868_vm15, %v11934_v55, 0.0  ;;  %vm4544_vm1 = vcmp.eq.s32.totalorder %v15532_v37, %v11950_v14  ;;  %v5223_v4 = vadd.f32 %v4967_v5, %v4385_v39  ;;  %v2580_v59 = vadd.f32 %v2324_v40, %v1742_v0 }
 0x42e   : > { %7158 = vmatprep.subr.mxu0 %v6771_v60  ;;  %v4000_v23 = vsel %vm3706_vm0, %v11944_v57, 0.0  ;;  %vm5382_vm2 = vcmp.eq.s32.totalorder %v15532_v37, %v11958_v21  ;;  %v4838_v25 = vsel %vm4544_vm1, %v11953_v58, 0.0  ;;  %vm738_vm3 = vcmp.eq.s32.totalorder %v15533_v51, %v11880_v47 }
 0x42f   : > { %vm1320_vm4 = vcmp.eq.s32.totalorder %v15533_v51, %v11888_v32  ;;  %vm2158_vm5 = vcmp.eq.s32.totalorder %v15533_v51, %v11896_v49  ;;  %v6061_v61 = vadd.f32 %v5805_v43, %v5223_v4  ;;  %v3418_v12 = vadd.f32 %v3162_v30, %v2580_v59 }
 0x430   : > { %vm6220_vm6 = vcmp.eq.s32.totalorder %v15532_v37, %v11976_v8  ;;  %v1032_v19 = vsel %vm738_vm3, %v11901_v16, 0.0  ;;  %v1614_v27 = vsel %vm1320_vm4, %v11918_v31, 0.0  ;;  %v2452_v33 = vsel %vm2158_vm5, %v11907_v7, 0.0 }
 0x431   : > { %vm2996_vm7 = vcmp.eq.s32.totalorder %v15533_v51, %v11913_v48  ;;  %vm3834_vm9 = vcmp.eq.s32.totalorder %v15533_v51, %v11941_v2  ;;  %v6899_v29 = vadd.f32 %v6643_v35, %v6061_v61  ;;  %v4256_v5 = vadd.f32 %v4000_v23, %v3418_v12 }
 0x432   : > { %v5676_v34 = vsel %vm5382_vm2, %v11971_v44, 0.0  ;;  %v1870_v17 = vadd.f32 %v1614_v27, %v1032_v19  ;;  %v6514_v1 = vsel %vm6220_vm6, %v11984_v54, 0.0  ;;  %v3290_v37 = vsel %vm2996_vm7, %v11934_v55, 0.0 }
 0x433   : > { %v4128_v13 = vsel %vm3834_vm9, %v11944_v57, 0.0  ;;  %vm4672_vm10 = vcmp.eq.s32.totalorder %v15533_v51, %v11950_v14  ;;  %7229 = vmatprep.subr.mxu1 %v6899_v29  ;;  %v5094_v60 = vadd.f32 %v4838_v25, %v4256_v5  ;;  %vm5510_vm8 = vcmp.eq.s32.totalorder %v15533_v51, %v11958_v21 }
 0x434   : > { %v2708_v39 = vadd.f32 %v2452_v33, %v1870_v17  ;;  %vm6348_vm11 = vcmp.eq.s32.totalorder %v15533_v51, %v11976_v8  ;;  %v4966_v0 = vsel %vm4672_vm10, %v11953_v58, 0.0  ;;  %vm607_vm12 = vcmp.eq.s32.totalorder %v8878_v50, %v11751_v38  ;;  %v15534_v51 = vld [vmem:[#allocation29_spill] sm:$0xff] }
 0x435   : > { %vm1189_vm13 = vcmp.eq.s32.totalorder %v8878_v50, %v11759_v62  ;;  %vm2027_vm14 = vcmp.eq.s32.totalorder %v8878_v50, %v11778_v45  ;;  %v5932_v40 = vadd.f32 %v5676_v34, %v5094_v60  ;;  %v901_v35 = vsel %vm607_vm12, %v11756_v52, 0.0 }
 0x436   : > { %v3546_v43 = vadd.f32 %v3290_v37, %v2708_v39  ;;  %v1483_v30 = vsel %vm1189_vm13, %v11762_v20, 0.0  ;;  %v2321_v59 = vsel %vm2027_vm14, %v11784_v9, 0.0  ;;  %vm2865_vm15 = vcmp.eq.s32.totalorder %v8878_v50, %v11793_v22 }
 0x437   : > { %v1739_v4 = vadd.f32 %v1483_v30, %v901_v35  ;;  %vm3703_vm0 = vcmp.eq.s32.totalorder %v8878_v50, %v11802_v3  ;;  %v6770_v23 = vadd.f32 %v6514_v1, %v5932_v40  ;;  %v5804_v61 = vsel %vm5510_vm8, %v11971_v44, 0.0 }
 0x438   : > { %v4384_v25 = vadd.f32 %v4128_v13, %v3546_v43  ;;  %v3159_v12 = vsel %vm2865_vm15, %v11799_v46, 0.0  ;;  %v6642_v19 = vsel %vm6348_vm11, %v11984_v54, 0.0  ;;  %v3997_v33 = vsel %vm3703_vm0, %v11809_v15, 0.0 }
 0x439   : > { %v2577_v27 = vadd.f32 %v2321_v59, %v1739_v4  ;;  %vm4541_vm1 = vcmp.eq.s32.totalorder %v8878_v50, %v11817_v36  ;;  %7159 = vmatpush1.msra.mxu0 %v6770_v23  ;;  %vm5379_vm2 = vcmp.eq.s32.totalorder %v8878_v50, %v11830_v11  ;;  %vm6217_vm3 = vcmp.eq.s32.totalorder %v8878_v50, %v11845_v10 }
 0x43a   : > { %v5222_v29 = vadd.f32 %v4966_v0, %v4384_v25  ;;  %v4835_v5 = vsel %vm4541_vm1, %v11823_v42, 0.0  ;;  %vm735_vm4 = vcmp.eq.s32.totalorder %v15534_v51, %v11751_v38  ;;  %vm1317_vm5 = vcmp.eq.s32.totalorder %v15534_v51, %v11759_v62 }
 0x43b   : > { %v3415_v34 = vadd.f32 %v3159_v12, %v2577_v27  ;;  %vm2155_vm6 = vcmp.eq.s32.totalorder %v15534_v51, %v11778_v45  ;;  %v1029_v1 = vsel %vm735_vm4, %v11756_v52, 0.0  ;;  %v1611_v37 = vsel %vm1317_vm5, %v11762_v20, 0.0 }
 0x43c   : > { %v6060_v17 = vadd.f32 %v5804_v61, %v5222_v29  ;;  %v2449_v13 = vsel %vm2155_vm6, %v11784_v9, 0.0  ;;  %v1867_v39 = vadd.f32 %v1611_v37, %v1029_v1  ;;  %vm2993_vm7 = vcmp.eq.s32.totalorder %v15534_v51, %v11793_v22 }
 0x43d   : > { %v4253_v60 = vadd.f32 %v3997_v33, %v3415_v34  ;;  %vm3831_vm9 = vcmp.eq.s32.totalorder %v15534_v51, %v11802_v3  ;;  %v5673_v40 = vsel %vm5379_vm2, %v11838_v53, 0.0  ;;  %v3287_v43 = vsel %vm2993_vm7, %v11799_v46, 0.0 }
 0x43e   : > { %v6898_v0 = vadd.f32 %v6642_v19, %v6060_v17  ;;  %vm4669_vm10 = vcmp.eq.s32.totalorder %v15534_v51, %v11817_v36  ;;  %v6511_v30 = vsel %vm6217_vm3, %v11848_v18, 0.0  ;;  %v2705_v4 = vadd.f32 %v2449_v13, %v1867_v39 }
 0x43f   : > { %v5091_v35 = vadd.f32 %v4835_v5, %v4253_v60  ;;  %v4125_v59 = vsel %vm3831_vm9, %v11809_v15, 0.0  ;;  %v4963_v23 = vsel %vm4669_vm10, %v11823_v42, 0.0  ;;  %vm5507_vm8 = vcmp.eq.s32.totalorder %v15534_v51, %v11830_v11 }
 0x440   : > { %7230 = vmatpush1.msra.mxu1 %v6898_v0  ;;  %vm606_vm11 = vcmp.eq.s32.totalorder %v8878_v50, %v11880_v47  ;;  %vm1188_vm12 = vcmp.eq.s32.totalorder %v8878_v50, %v11888_v32  ;;  %v3543_v61 = vadd.f32 %v3287_v43, %v2705_v4  ;;  %vm6345_vm13 = vcmp.eq.s32.totalorder %v15534_v51, %v11845_v10 }
 0x441   : > { %v5929_v25 = vadd.f32 %v5673_v40, %v5091_v35  ;;  %v900_v12 = vsel %vm606_vm11, %v11901_v16, 0.0  ;;  %v1482_v19 = vsel %vm1188_vm12, %v11918_v31, 0.0  ;;  %vm2026_vm14 = vcmp.eq.s32.totalorder %v8878_v50, %v11896_v49 }
 0x442   : > { %vm2864_vm15 = vcmp.eq.s32.totalorder %v8878_v50, %v11913_v48  ;;  %vm3702_vm0 = vcmp.eq.s32.totalorder %v8878_v50, %v11941_v2  ;;  %v4381_v33 = vadd.f32 %v4125_v59, %v3543_v61  ;;  %v1738_v29 = vadd.f32 %v1482_v19, %v900_v12 }
 0x443   : > { %v6767_v27 = vadd.f32 %v6511_v30, %v5929_v25  ;;  %v2320_v5 = vsel %vm2026_vm14, %v11907_v7, 0.0  ;;  %v5801_v34 = vsel %vm5507_vm8, %v11838_v53, 0.0  ;;  %v6639_v17 = vsel %vm6345_vm13, %v11848_v18, 0.0 }
 0x444   : > { %v3158_v1 = vsel %vm2864_vm15, %v11934_v55, 0.0  ;;  %vm4540_vm1 = vcmp.eq.s32.totalorder %v8878_v50, %v11950_v14  ;;  %v5219_v37 = vadd.f32 %v4963_v23, %v4381_v33  ;;  %v2576_v13 = vadd.f32 %v2320_v5, %v1738_v29  ;;  %v15535_v29 = vld [vmem:[#allocation30_spill] sm:$0xff] }
 0x445   : > { %7160 = vmatprep.subr.mxu0 %v6767_v27  ;;  %v3996_v60 = vsel %vm3702_vm0, %v11944_v57, 0.0  ;;  %vm5378_vm2 = vcmp.eq.s32.totalorder %v8878_v50, %v11958_v21  ;;  %v4834_v39 = vsel %vm4540_vm1, %v11953_v58, 0.0  ;;  %vm734_vm3 = vcmp.eq.s32.totalorder %v15534_v51, %v11880_v47 }
 0x446   : > { %vm1316_vm4 = vcmp.eq.s32.totalorder %v15534_v51, %v11888_v32  ;;  %vm2154_vm5 = vcmp.eq.s32.totalorder %v15534_v51, %v11896_v49  ;;  %v6057_v0 = vadd.f32 %v5801_v34, %v5219_v37  ;;  %v3414_v40 = vadd.f32 %v3158_v1, %v2576_v13 }
 0x447   : > { %vm6216_vm6 = vcmp.eq.s32.totalorder %v8878_v50, %v11976_v8  ;;  %v1028_v43 = vsel %vm734_vm3, %v11901_v16, 0.0  ;;  %v1610_v35 = vsel %vm1316_vm4, %v11918_v31, 0.0  ;;  %v2448_v30 = vsel %vm2154_vm5, %v11907_v7, 0.0 }
 0x448   : > { %vm2992_vm7 = vcmp.eq.s32.totalorder %v15534_v51, %v11913_v48  ;;  %vm3830_vm9 = vcmp.eq.s32.totalorder %v15534_v51, %v11941_v2  ;;  %v6895_v4 = vadd.f32 %v6639_v17, %v6057_v0  ;;  %v4252_v59 = vadd.f32 %v3996_v60, %v3414_v40 }
 0x449   : > { %v5672_v23 = vsel %vm5378_vm2, %v11971_v44, 0.0  ;;  %v1866_v25 = vadd.f32 %v1610_v35, %v1028_v43  ;;  %v6510_v61 = vsel %vm6216_vm6, %v11984_v54, 0.0  ;;  %v3286_v50 = vsel %vm2992_vm7, %v11934_v55, 0.0 }
 0x44a   : > { %v4124_v12 = vsel %vm3830_vm9, %v11944_v57, 0.0  ;;  %vm4668_vm10 = vcmp.eq.s32.totalorder %v15534_v51, %v11950_v14  ;;  %7231 = vmatprep.subr.mxu1 %v6895_v4  ;;  %v5090_v19 = vadd.f32 %v4834_v39, %v4252_v59  ;;  %vm5506_vm8 = vcmp.eq.s32.totalorder %v15534_v51, %v11958_v21 }
 0x44b   : > { %v2704_v27 = vadd.f32 %v2448_v30, %v1866_v25  ;;  %vm6344_vm11 = vcmp.eq.s32.totalorder %v15534_v51, %v11976_v8  ;;  %v4962_v33 = vsel %vm4668_vm10, %v11953_v58, 0.0  ;;  %vm603_vm12 = vcmp.eq.s32.totalorder %v15535_v29, %v11751_v38  ;;  %v15536_v51 = vld [vmem:[#allocation31_spill] sm:$0xff] }
 0x44c   : > { %vm1185_vm13 = vcmp.eq.s32.totalorder %v15535_v29, %v11759_v62  ;;  %vm2023_vm14 = vcmp.eq.s32.totalorder %v15535_v29, %v11778_v45  ;;  %v5928_v5 = vadd.f32 %v5672_v23, %v5090_v19  ;;  %v897_v17 = vsel %vm603_vm12, %v11756_v52, 0.0 }
 0x44d   : > { %v3542_v34 = vadd.f32 %v3286_v50, %v2704_v27  ;;  %v1479_v1 = vsel %vm1185_vm13, %v11762_v20, 0.0  ;;  %v2317_v13 = vsel %vm2023_vm14, %v11784_v9, 0.0  ;;  %vm2861_vm15 = vcmp.eq.s32.totalorder %v15535_v29, %v11793_v22 }
 0x44e   : > { %v1735_v37 = vadd.f32 %v1479_v1, %v897_v17  ;;  %vm3699_vm0 = vcmp.eq.s32.totalorder %v15535_v29, %v11802_v3  ;;  %v6766_v60 = vadd.f32 %v6510_v61, %v5928_v5  ;;  %v5800_v0 = vsel %vm5506_vm8, %v11971_v44, 0.0 }
 0x44f   : > { %v4380_v39 = vadd.f32 %v4124_v12, %v3542_v34  ;;  %v3155_v40 = vsel %vm2861_vm15, %v11799_v46, 0.0  ;;  %v6638_v43 = vsel %vm6344_vm11, %v11984_v54, 0.0  ;;  %v3993_v30 = vsel %vm3699_vm0, %v11809_v15, 0.0 }
 0x450   : > { %v2573_v35 = vadd.f32 %v2317_v13, %v1735_v37  ;;  %vm4537_vm1 = vcmp.eq.s32.totalorder %v15535_v29, %v11817_v36  ;;  %7161 = vmatpush1.msra.mxu0 %v6766_v60  ;;  %vm5375_vm2 = vcmp.eq.s32.totalorder %v15535_v29, %v11830_v11  ;;  %vm6213_vm3 = vcmp.eq.s32.totalorder %v15535_v29, %v11845_v10 }
 0x451   : > { %v5218_v4 = vadd.f32 %v4962_v33, %v4380_v39  ;;  %v4831_v59 = vsel %vm4537_vm1, %v11823_v42, 0.0  ;;  %vm731_vm4 = vcmp.eq.s32.totalorder %v15536_v51, %v11751_v38  ;;  %vm1313_vm5 = vcmp.eq.s32.totalorder %v15536_v51, %v11759_v62 }
 0x452   : > { %v3411_v23 = vadd.f32 %v3155_v40, %v2573_v35  ;;  %vm2151_vm6 = vcmp.eq.s32.totalorder %v15536_v51, %v11778_v45  ;;  %v1025_v61 = vsel %vm731_vm4, %v11756_v52, 0.0  ;;  %v1607_v50 = vsel %vm1313_vm5, %v11762_v20, 0.0 }
 0x453   : > { %v6056_v25 = vadd.f32 %v5800_v0, %v5218_v4  ;;  %v2445_v12 = vsel %vm2151_vm6, %v11784_v9, 0.0  ;;  %v1863_v27 = vadd.f32 %v1607_v50, %v1025_v61  ;;  %vm2989_vm7 = vcmp.eq.s32.totalorder %v15536_v51, %v11793_v22 }
 0x454   : > { %v4249_v19 = vadd.f32 %v3993_v30, %v3411_v23  ;;  %vm3827_vm9 = vcmp.eq.s32.totalorder %v15536_v51, %v11802_v3  ;;  %v5669_v5 = vsel %vm5375_vm2, %v11838_v53, 0.0  ;;  %v3283_v34 = vsel %vm2989_vm7, %v11799_v46, 0.0 }
 0x455   : > { %v6894_v33 = vadd.f32 %v6638_v43, %v6056_v25  ;;  %vm4665_vm10 = vcmp.eq.s32.totalorder %v15536_v51, %v11817_v36  ;;  %v6507_v1 = vsel %vm6213_vm3, %v11848_v18, 0.0  ;;  %v2701_v37 = vadd.f32 %v2445_v12, %v1863_v27 }
 0x456   : > { %v5087_v17 = vadd.f32 %v4831_v59, %v4249_v19  ;;  %v4121_v13 = vsel %vm3827_vm9, %v11809_v15, 0.0  ;;  %v4959_v60 = vsel %vm4665_vm10, %v11823_v42, 0.0  ;;  %vm5503_vm8 = vcmp.eq.s32.totalorder %v15536_v51, %v11830_v11 }
 0x457   : > { %7232 = vmatpush1.msra.mxu1 %v6894_v33  ;;  %vm602_vm11 = vcmp.eq.s32.totalorder %v15535_v29, %v11880_v47  ;;  %vm1184_vm12 = vcmp.eq.s32.totalorder %v15535_v29, %v11888_v32  ;;  %v3539_v0 = vadd.f32 %v3283_v34, %v2701_v37  ;;  %vm6341_vm13 = vcmp.eq.s32.totalorder %v15536_v51, %v11845_v10 }
 0x458   : > { %v5925_v39 = vadd.f32 %v5669_v5, %v5087_v17  ;;  %v896_v40 = vsel %vm602_vm11, %v11901_v16, 0.0  ;;  %v1478_v43 = vsel %vm1184_vm12, %v11918_v31, 0.0  ;;  %vm2022_vm14 = vcmp.eq.s32.totalorder %v15535_v29, %v11896_v49 }
 0x459   : > { %vm2860_vm15 = vcmp.eq.s32.totalorder %v15535_v29, %v11913_v48  ;;  %vm3698_vm0 = vcmp.eq.s32.totalorder %v15535_v29, %v11941_v2  ;;  %v4377_v30 = vadd.f32 %v4121_v13, %v3539_v0  ;;  %v1734_v4 = vadd.f32 %v1478_v43, %v896_v40 }
 0x45a   : > { %v6763_v35 = vadd.f32 %v6507_v1, %v5925_v39  ;;  %v2316_v59 = vsel %vm2022_vm14, %v11907_v7, 0.0  ;;  %v5797_v23 = vsel %vm5503_vm8, %v11838_v53, 0.0  ;;  %v6635_v25 = vsel %vm6341_vm13, %v11848_v18, 0.0 }
 0x45b   : > { %v3154_v61 = vsel %vm2860_vm15, %v11934_v55, 0.0  ;;  %vm4536_vm1 = vcmp.eq.s32.totalorder %v15535_v29, %v11950_v14  ;;  %v5215_v50 = vadd.f32 %v4959_v60, %v4377_v30  ;;  %v2572_v12 = vadd.f32 %v2316_v59, %v1734_v4  ;;  %v15537_v4 = vld [vmem:[#allocation32_spill] sm:$0xff] }
 0x45c   : > { %7162 = vmatprep.subr.mxu0 %v6763_v35  ;;  %v3992_v19 = vsel %vm3698_vm0, %v11944_v57, 0.0  ;;  %vm5374_vm2 = vcmp.eq.s32.totalorder %v15535_v29, %v11958_v21  ;;  %v4830_v27 = vsel %vm4536_vm1, %v11953_v58, 0.0  ;;  %vm730_vm3 = vcmp.eq.s32.totalorder %v15536_v51, %v11880_v47 }
 0x45d   : > { %vm1312_vm4 = vcmp.eq.s32.totalorder %v15536_v51, %v11888_v32  ;;  %vm2150_vm5 = vcmp.eq.s32.totalorder %v15536_v51, %v11896_v49  ;;  %v6053_v33 = vadd.f32 %v5797_v23, %v5215_v50  ;;  %v3410_v5 = vadd.f32 %v3154_v61, %v2572_v12 }
 0x45e   : > { %vm6212_vm6 = vcmp.eq.s32.totalorder %v15535_v29, %v11976_v8  ;;  %v1024_v34 = vsel %vm730_vm3, %v11901_v16, 0.0  ;;  %v1606_v17 = vsel %vm1312_vm4, %v11918_v31, 0.0  ;;  %v2444_v1 = vsel %vm2150_vm5, %v11907_v7, 0.0 }
 0x45f   : > { %vm2988_vm7 = vcmp.eq.s32.totalorder %v15536_v51, %v11913_v48  ;;  %vm3826_vm9 = vcmp.eq.s32.totalorder %v15536_v51, %v11941_v2  ;;  %v6891_v37 = vadd.f32 %v6635_v25, %v6053_v33  ;;  %v4248_v13 = vadd.f32 %v3992_v19, %v3410_v5 }
 0x460   : > { %v5668_v60 = vsel %vm5374_vm2, %v11971_v44, 0.0  ;;  %v1862_v39 = vadd.f32 %v1606_v17, %v1024_v34  ;;  %v6506_v0 = vsel %vm6212_vm6, %v11984_v54, 0.0  ;;  %v3282_v29 = vsel %vm2988_vm7, %v11934_v55, 0.0 }
 0x461   : > { %v4120_v40 = vsel %vm3826_vm9, %v11944_v57, 0.0  ;;  %vm4664_vm10 = vcmp.eq.s32.totalorder %v15536_v51, %v11950_v14  ;;  %7233 = vmatprep.subr.mxu1 %v6891_v37  ;;  %v5086_v43 = vadd.f32 %v4830_v27, %v4248_v13  ;;  %vm5502_vm8 = vcmp.eq.s32.totalorder %v15536_v51, %v11958_v21 }
 0x462   : > { %v2700_v35 = vadd.f32 %v2444_v1, %v1862_v39  ;;  %vm6340_vm11 = vcmp.eq.s32.totalorder %v15536_v51, %v11976_v8  ;;  %v4958_v30 = vsel %vm4664_vm10, %v11953_v58, 0.0  ;;  %vm599_vm12 = vcmp.eq.s32.totalorder %v15537_v4, %v11751_v38  ;;  %v15538_v51 = vld [vmem:[#allocation33_spill] sm:$0xff] }
 0x463   : > { %vm1181_vm13 = vcmp.eq.s32.totalorder %v15537_v4, %v11759_v62  ;;  %vm2019_vm14 = vcmp.eq.s32.totalorder %v15537_v4, %v11778_v45  ;;  %v5924_v59 = vadd.f32 %v5668_v60, %v5086_v43  ;;  %v893_v25 = vsel %vm599_vm12, %v11756_v52, 0.0 }
 0x464   : > { %v3538_v23 = vadd.f32 %v3282_v29, %v2700_v35  ;;  %v1475_v61 = vsel %vm1181_vm13, %v11762_v20, 0.0  ;;  %v2313_v12 = vsel %vm2019_vm14, %v11784_v9, 0.0  ;;  %vm2857_vm15 = vcmp.eq.s32.totalorder %v15537_v4, %v11793_v22 }
 0x465   : > { %v1731_v50 = vadd.f32 %v1475_v61, %v893_v25  ;;  %vm3695_vm0 = vcmp.eq.s32.totalorder %v15537_v4, %v11802_v3  ;;  %v6762_v19 = vadd.f32 %v6506_v0, %v5924_v59  ;;  %v5796_v33 = vsel %vm5502_vm8, %v11971_v44, 0.0 }
 0x466   : > { %v4376_v27 = vadd.f32 %v4120_v40, %v3538_v23  ;;  %v3151_v5 = vsel %vm2857_vm15, %v11799_v46, 0.0  ;;  %v6634_v34 = vsel %vm6340_vm11, %v11984_v54, 0.0  ;;  %v3989_v1 = vsel %vm3695_vm0, %v11809_v15, 0.0 }
 0x467   : > { %v2569_v17 = vadd.f32 %v2313_v12, %v1731_v50  ;;  %vm4533_vm1 = vcmp.eq.s32.totalorder %v15537_v4, %v11817_v36  ;;  %7163 = vmatpush1.msra.mxu0 %v6762_v19  ;;  %vm5371_vm2 = vcmp.eq.s32.totalorder %v15537_v4, %v11830_v11  ;;  %vm6209_vm3 = vcmp.eq.s32.totalorder %v15537_v4, %v11845_v10 }
 0x468   : > { %v5214_v37 = vadd.f32 %v4958_v30, %v4376_v27  ;;  %v4827_v13 = vsel %vm4533_vm1, %v11823_v42, 0.0  ;;  %vm727_vm4 = vcmp.eq.s32.totalorder %v15538_v51, %v11751_v38  ;;  %vm1309_vm5 = vcmp.eq.s32.totalorder %v15538_v51, %v11759_v62 }
 0x469   : > { %v3407_v60 = vadd.f32 %v3151_v5, %v2569_v17  ;;  %vm2147_vm6 = vcmp.eq.s32.totalorder %v15538_v51, %v11778_v45  ;;  %v1021_v0 = vsel %vm727_vm4, %v11756_v52, 0.0  ;;  %v1603_v29 = vsel %vm1309_vm5, %v11762_v20, 0.0 }
 0x46a   : > { %v6052_v39 = vadd.f32 %v5796_v33, %v5214_v37  ;;  %v2441_v40 = vsel %vm2147_vm6, %v11784_v9, 0.0  ;;  %v1859_v35 = vadd.f32 %v1603_v29, %v1021_v0  ;;  %vm2985_vm7 = vcmp.eq.s32.totalorder %v15538_v51, %v11793_v22 }
 0x46b   : > { %v4245_v43 = vadd.f32 %v3989_v1, %v3407_v60  ;;  %vm3823_vm9 = vcmp.eq.s32.totalorder %v15538_v51, %v11802_v3  ;;  %v5665_v59 = vsel %vm5371_vm2, %v11838_v53, 0.0  ;;  %v3279_v23 = vsel %vm2985_vm7, %v11799_v46, 0.0 }
 0x46c   : > { %v6890_v30 = vadd.f32 %v6634_v34, %v6052_v39  ;;  %vm4661_vm10 = vcmp.eq.s32.totalorder %v15538_v51, %v11817_v36  ;;  %v6503_v61 = vsel %vm6209_vm3, %v11848_v18, 0.0  ;;  %v2697_v50 = vadd.f32 %v2441_v40, %v1859_v35 }
 0x46d   : > { %v5083_v25 = vadd.f32 %v4827_v13, %v4245_v43  ;;  %v4117_v12 = vsel %vm3823_vm9, %v11809_v15, 0.0  ;;  %v4955_v19 = vsel %vm4661_vm10, %v11823_v42, 0.0  ;;  %vm5499_vm8 = vcmp.eq.s32.totalorder %v15538_v51, %v11830_v11 }
 0x46e   : > { %7234 = vmatpush1.msra.mxu1 %v6890_v30  ;;  %vm598_vm11 = vcmp.eq.s32.totalorder %v15537_v4, %v11880_v47  ;;  %vm1180_vm12 = vcmp.eq.s32.totalorder %v15537_v4, %v11888_v32  ;;  %v3535_v33 = vadd.f32 %v3279_v23, %v2697_v50  ;;  %vm6337_vm13 = vcmp.eq.s32.totalorder %v15538_v51, %v11845_v10 }
 0x46f   : > { %v5921_v27 = vadd.f32 %v5665_v59, %v5083_v25  ;;  %v892_v5 = vsel %vm598_vm11, %v11901_v16, 0.0  ;;  %v1474_v34 = vsel %vm1180_vm12, %v11918_v31, 0.0  ;;  %vm2018_vm14 = vcmp.eq.s32.totalorder %v15537_v4, %v11896_v49 }
 0x470   : > { %vm2856_vm15 = vcmp.eq.s32.totalorder %v15537_v4, %v11913_v48  ;;  %vm3694_vm0 = vcmp.eq.s32.totalorder %v15537_v4, %v11941_v2  ;;  %v4373_v1 = vadd.f32 %v4117_v12, %v3535_v33  ;;  %v1730_v37 = vadd.f32 %v1474_v34, %v892_v5 }
 0x471   : > { %v6759_v17 = vadd.f32 %v6503_v61, %v5921_v27  ;;  %v2312_v13 = vsel %vm2018_vm14, %v11907_v7, 0.0  ;;  %v5793_v60 = vsel %vm5499_vm8, %v11838_v53, 0.0  ;;  %v6631_v39 = vsel %vm6337_vm13, %v11848_v18, 0.0 }
 0x472   : > { %v3150_v0 = vsel %vm2856_vm15, %v11934_v55, 0.0  ;;  %vm4532_vm1 = vcmp.eq.s32.totalorder %v15537_v4, %v11950_v14  ;;  %v5211_v29 = vadd.f32 %v4955_v19, %v4373_v1  ;;  %v2568_v40 = vadd.f32 %v2312_v13, %v1730_v37  ;;  %v15539_v37 = vld [vmem:[#allocation34_spill] sm:$0xff] }
 0x473   : > { %7164 = vmatprep.subr.mxu0 %v6759_v17  ;;  %v3988_v43 = vsel %vm3694_vm0, %v11944_v57, 0.0  ;;  %vm5370_vm2 = vcmp.eq.s32.totalorder %v15537_v4, %v11958_v21  ;;  %v4826_v35 = vsel %vm4532_vm1, %v11953_v58, 0.0  ;;  %vm726_vm3 = vcmp.eq.s32.totalorder %v15538_v51, %v11880_v47 }
 0x474   : > { %vm1308_vm4 = vcmp.eq.s32.totalorder %v15538_v51, %v11888_v32  ;;  %vm2146_vm5 = vcmp.eq.s32.totalorder %v15538_v51, %v11896_v49  ;;  %v6049_v30 = vadd.f32 %v5793_v60, %v5211_v29  ;;  %v3406_v59 = vadd.f32 %v3150_v0, %v2568_v40 }
 0x475   : > { %vm6208_vm6 = vcmp.eq.s32.totalorder %v15537_v4, %v11976_v8  ;;  %v1020_v23 = vsel %vm726_vm3, %v11901_v16, 0.0  ;;  %v1602_v25 = vsel %vm1308_vm4, %v11918_v31, 0.0  ;;  %v2440_v61 = vsel %vm2146_vm5, %v11907_v7, 0.0 }
 0x476   : > { %vm2984_vm7 = vcmp.eq.s32.totalorder %v15538_v51, %v11913_v48  ;;  %vm3822_vm9 = vcmp.eq.s32.totalorder %v15538_v51, %v11941_v2  ;;  %v6887_v50 = vadd.f32 %v6631_v39, %v6049_v30  ;;  %v4244_v12 = vadd.f32 %v3988_v43, %v3406_v59 }
 0x477   : > { %v5664_v19 = vsel %vm5370_vm2, %v11971_v44, 0.0  ;;  %v1858_v27 = vadd.f32 %v1602_v25, %v1020_v23  ;;  %v6502_v33 = vsel %vm6208_vm6, %v11984_v54, 0.0  ;;  %v3278_v4 = vsel %vm2984_vm7, %v11934_v55, 0.0 }
 0x478   : > { %v4116_v5 = vsel %vm3822_vm9, %v11944_v57, 0.0  ;;  %vm4660_vm10 = vcmp.eq.s32.totalorder %v15538_v51, %v11950_v14  ;;  %7235 = vmatprep.subr.mxu1 %v6887_v50  ;;  %v5082_v34 = vadd.f32 %v4826_v35, %v4244_v12  ;;  %vm5498_vm8 = vcmp.eq.s32.totalorder %v15538_v51, %v11958_v21 }
 0x479   : > { %v2696_v17 = vadd.f32 %v2440_v61, %v1858_v27  ;;  %vm6336_vm11 = vcmp.eq.s32.totalorder %v15538_v51, %v11976_v8  ;;  %v4954_v1 = vsel %vm4660_vm10, %v11953_v58, 0.0  ;;  %vm595_vm12 = vcmp.eq.s32.totalorder %v15539_v37, %v11751_v38  ;;  %v15540_v51 = vld [vmem:[#allocation35_spill] sm:$0xff] }
 0x47a   : > { %vm1177_vm13 = vcmp.eq.s32.totalorder %v15539_v37, %v11759_v62  ;;  %vm2015_vm14 = vcmp.eq.s32.totalorder %v15539_v37, %v11778_v45  ;;  %v5920_v13 = vadd.f32 %v5664_v19, %v5082_v34  ;;  %v889_v39 = vsel %vm595_vm12, %v11756_v52, 0.0 }
 0x47b   : > { %v3534_v60 = vadd.f32 %v3278_v4, %v2696_v17  ;;  %v1471_v0 = vsel %vm1177_vm13, %v11762_v20, 0.0  ;;  %v2309_v40 = vsel %vm2015_vm14, %v11784_v9, 0.0  ;;  %vm2853_vm15 = vcmp.eq.s32.totalorder %v15539_v37, %v11793_v22 }
 0x47c   : > { %v1727_v29 = vadd.f32 %v1471_v0, %v889_v39  ;;  %vm3691_vm0 = vcmp.eq.s32.totalorder %v15539_v37, %v11802_v3  ;;  %v6758_v43 = vadd.f32 %v6502_v33, %v5920_v13  ;;  %v5792_v30 = vsel %vm5498_vm8, %v11971_v44, 0.0 }
 0x47d   : > { %v4372_v35 = vadd.f32 %v4116_v5, %v3534_v60  ;;  %v3147_v59 = vsel %vm2853_vm15, %v11799_v46, 0.0  ;;  %v6630_v23 = vsel %vm6336_vm11, %v11984_v54, 0.0  ;;  %v3985_v61 = vsel %vm3691_vm0, %v11809_v15, 0.0 }
 0x47e   : > { %v2565_v25 = vadd.f32 %v2309_v40, %v1727_v29  ;;  %vm4529_vm1 = vcmp.eq.s32.totalorder %v15539_v37, %v11817_v36  ;;  %7165 = vmatpush1.msra.mxu0 %v6758_v43  ;;  %vm5367_vm2 = vcmp.eq.s32.totalorder %v15539_v37, %v11830_v11  ;;  %vm6205_vm3 = vcmp.eq.s32.totalorder %v15539_v37, %v11845_v10 }
 0x47f   : > { %v5210_v50 = vadd.f32 %v4954_v1, %v4372_v35  ;;  %v4823_v12 = vsel %vm4529_vm1, %v11823_v42, 0.0  ;;  %vm723_vm4 = vcmp.eq.s32.totalorder %v15540_v51, %v11751_v38  ;;  %vm1305_vm5 = vcmp.eq.s32.totalorder %v15540_v51, %v11759_v62 }
 0x480   : > { %v3403_v19 = vadd.f32 %v3147_v59, %v2565_v25  ;;  %vm2143_vm6 = vcmp.eq.s32.totalorder %v15540_v51, %v11778_v45  ;;  %v1017_v33 = vsel %vm723_vm4, %v11756_v52, 0.0  ;;  %v1599_v4 = vsel %vm1305_vm5, %v11762_v20, 0.0 }
 0x481   : > { %v6048_v27 = vadd.f32 %v5792_v30, %v5210_v50  ;;  %v2437_v5 = vsel %vm2143_vm6, %v11784_v9, 0.0  ;;  %v1855_v17 = vadd.f32 %v1599_v4, %v1017_v33  ;;  %vm2981_vm7 = vcmp.eq.s32.totalorder %v15540_v51, %v11793_v22 }
 0x482   : > { %v4241_v34 = vadd.f32 %v3985_v61, %v3403_v19  ;;  %vm3819_vm9 = vcmp.eq.s32.totalorder %v15540_v51, %v11802_v3  ;;  %v5661_v13 = vsel %vm5367_vm2, %v11838_v53, 0.0  ;;  %v3275_v60 = vsel %vm2981_vm7, %v11799_v46, 0.0 }
 0x483   : > { %v6886_v1 = vadd.f32 %v6630_v23, %v6048_v27  ;;  %vm4657_vm10 = vcmp.eq.s32.totalorder %v15540_v51, %v11817_v36  ;;  %v6499_v0 = vsel %vm6205_vm3, %v11848_v18, 0.0  ;;  %v2693_v29 = vadd.f32 %v2437_v5, %v1855_v17 }
 0x484   : > { %v5079_v39 = vadd.f32 %v4823_v12, %v4241_v34  ;;  %v4113_v40 = vsel %vm3819_vm9, %v11809_v15, 0.0  ;;  %v4951_v43 = vsel %vm4657_vm10, %v11823_v42, 0.0  ;;  %vm5495_vm8 = vcmp.eq.s32.totalorder %v15540_v51, %v11830_v11 }
 0x485   : > { %7236 = vmatpush1.msra.mxu1 %v6886_v1  ;;  %vm594_vm11 = vcmp.eq.s32.totalorder %v15539_v37, %v11880_v47  ;;  %vm1176_vm12 = vcmp.eq.s32.totalorder %v15539_v37, %v11888_v32  ;;  %v3531_v30 = vadd.f32 %v3275_v60, %v2693_v29  ;;  %vm6333_vm13 = vcmp.eq.s32.totalorder %v15540_v51, %v11845_v10 }
 0x486   : > { %v5917_v35 = vadd.f32 %v5661_v13, %v5079_v39  ;;  %v888_v59 = vsel %vm594_vm11, %v11901_v16, 0.0  ;;  %v1470_v23 = vsel %vm1176_vm12, %v11918_v31, 0.0  ;;  %vm2014_vm14 = vcmp.eq.s32.totalorder %v15539_v37, %v11896_v49 }
 0x487   : > { %vm2852_vm15 = vcmp.eq.s32.totalorder %v15539_v37, %v11913_v48  ;;  %vm3690_vm0 = vcmp.eq.s32.totalorder %v15539_v37, %v11941_v2  ;;  %v4369_v61 = vadd.f32 %v4113_v40, %v3531_v30  ;;  %v1726_v50 = vadd.f32 %v1470_v23, %v888_v59 }
 0x488   : > { %v6755_v25 = vadd.f32 %v6499_v0, %v5917_v35  ;;  %v2308_v12 = vsel %vm2014_vm14, %v11907_v7, 0.0  ;;  %v5789_v19 = vsel %vm5495_vm8, %v11838_v53, 0.0  ;;  %v6627_v27 = vsel %vm6333_vm13, %v11848_v18, 0.0 }
 0x489   : > { %v3146_v33 = vsel %vm2852_vm15, %v11934_v55, 0.0  ;;  %vm4528_vm1 = vcmp.eq.s32.totalorder %v15539_v37, %v11950_v14  ;;  %v5207_v4 = vadd.f32 %v4951_v43, %v4369_v61  ;;  %v2564_v5 = vadd.f32 %v2308_v12, %v1726_v50 }
 0x48a   : > { %7166 = vmatprep.subr.mxu0 %v6755_v25  ;;  %v3984_v34 = vsel %vm3690_vm0, %v11944_v57, 0.0  ;;  %vm5366_vm2 = vcmp.eq.s32.totalorder %v15539_v37, %v11958_v21  ;;  %v4822_v17 = vsel %vm4528_vm1, %v11953_v58, 0.0  ;;  %vm722_vm3 = vcmp.eq.s32.totalorder %v15540_v51, %v11880_v47 }
 0x48b   : > { %vm1304_vm4 = vcmp.eq.s32.totalorder %v15540_v51, %v11888_v32  ;;  %vm2142_vm5 = vcmp.eq.s32.totalorder %v15540_v51, %v11896_v49  ;;  %v6045_v1 = vadd.f32 %v5789_v19, %v5207_v4  ;;  %v3402_v13 = vadd.f32 %v3146_v33, %v2564_v5 }
 0x48c   : > { %vm6204_vm6 = vcmp.eq.s32.totalorder %v15539_v37, %v11976_v8  ;;  %v1016_v60 = vsel %vm722_vm3, %v11901_v16, 0.0  ;;  %v1598_v39 = vsel %vm1304_vm4, %v11918_v31, 0.0  ;;  %v2436_v0 = vsel %vm2142_vm5, %v11907_v7, 0.0 }
 0x48d   : > { %vm2980_vm7 = vcmp.eq.s32.totalorder %v15540_v51, %v11913_v48  ;;  %vm3818_vm9 = vcmp.eq.s32.totalorder %v15540_v51, %v11941_v2  ;;  %v6883_v29 = vadd.f32 %v6627_v27, %v6045_v1  ;;  %v4240_v40 = vadd.f32 %v3984_v34, %v3402_v13 }
 0x48e   : > { %v5660_v43 = vsel %vm5366_vm2, %v11971_v44, 0.0  ;;  %v1854_v35 = vadd.f32 %v1598_v39, %v1016_v60  ;;  %v6498_v30 = vsel %vm6204_vm6, %v11984_v54, 0.0  ;;  %v3274_v37 = vsel %vm2980_vm7, %v11934_v55, 0.0 }
 0x48f   : > { %v4112_v59 = vsel %vm3818_vm9, %v11944_v57, 0.0  ;;  %vm4656_vm10 = vcmp.eq.s32.totalorder %v15540_v51, %v11950_v14  ;;  %7237 = vmatprep.subr.mxu1 %v6883_v29  ;;  %v5078_v23 = vadd.f32 %v4822_v17, %v4240_v40  ;;  %vm5494_vm8 = vcmp.eq.s32.totalorder %v15540_v51, %v11958_v21 }
 0x490   : > { %v2692_v25 = vadd.f32 %v2436_v0, %v1854_v35  ;;  %vm6332_vm11 = vcmp.eq.s32.totalorder %v15540_v51, %v11976_v8  ;;  %v4950_v61 = vsel %vm4656_vm10, %v11953_v58, 0.0  ;;  %vm591_vm12 = vcmp.eq.s32.totalorder %v9321_v56, %v11751_v38 }
 0x491   : > { %vm1173_vm13 = vcmp.eq.s32.totalorder %v9321_v56, %v11759_v62  ;;  %vm2011_vm14 = vcmp.eq.s32.totalorder %v9321_v56, %v11778_v45  ;;  %v5916_v50 = vadd.f32 %v5660_v43, %v5078_v23  ;;  %v885_v19 = vsel %vm591_vm12, %v11756_v52, 0.0 }
 0x492   : > { %v3530_v12 = vadd.f32 %v3274_v37, %v2692_v25  ;;  %v1467_v27 = vsel %vm1173_vm13, %v11762_v20, 0.0  ;;  %v2305_v4 = vsel %vm2011_vm14, %v11784_v9, 0.0  ;;  %vm2849_vm15 = vcmp.eq.s32.totalorder %v9321_v56, %v11793_v22 }
 0x493   : > { %v1723_v33 = vadd.f32 %v1467_v27, %v885_v19  ;;  %vm3687_vm0 = vcmp.eq.s32.totalorder %v9321_v56, %v11802_v3  ;;  %v6754_v5 = vadd.f32 %v6498_v30, %v5916_v50  ;;  %v5788_v17 = vsel %vm5494_vm8, %v11971_v44, 0.0 }
 0x494   : > { %v4368_v34 = vadd.f32 %v4112_v59, %v3530_v12  ;;  %v3143_v1 = vsel %vm2849_vm15, %v11799_v46, 0.0  ;;  %v6626_v13 = vsel %vm6332_vm11, %v11984_v54, 0.0  ;;  %v3981_v39 = vsel %vm3687_vm0, %v11809_v15, 0.0 }
 0x495   : > { %v2561_v60 = vadd.f32 %v2305_v4, %v1723_v33  ;;  %vm4525_vm1 = vcmp.eq.s32.totalorder %v9321_v56, %v11817_v36  ;;  %7167 = vmatpush1.msra.mxu0 %v6754_v5  ;;  %vm5363_vm2 = vcmp.eq.s32.totalorder %v9321_v56, %v11830_v11  ;;  %vm6201_vm3 = vcmp.eq.s32.totalorder %v9321_v56, %v11845_v10 }
 0x496   : > { %v5206_v0 = vadd.f32 %v4950_v61, %v4368_v34  ;;  %v4819_v29 = vsel %vm4525_vm1, %v11823_v42, 0.0  ;;  %vm719_vm4 = vcmp.eq.s32.totalorder %v9361_v24, %v11751_v38  ;;  %vm1301_vm5 = vcmp.eq.s32.totalorder %v9361_v24, %v11759_v62 }
 0x497   : > { %v3399_v40 = vadd.f32 %v3143_v1, %v2561_v60  ;;  %vm2139_vm6 = vcmp.eq.s32.totalorder %v9361_v24, %v11778_v45  ;;  %v1013_v43 = vsel %vm719_vm4, %v11756_v52, 0.0  ;;  %v1595_v35 = vsel %vm1301_vm5, %v11762_v20, 0.0 }
 0x498   : > { %v6044_v51 = vadd.f32 %v5788_v17, %v5206_v0  ;;  %v2433_v30 = vsel %vm2139_vm6, %v11784_v9, 0.0  ;;  %v1851_v59 = vadd.f32 %v1595_v35, %v1013_v43  ;;  %vm2977_vm7 = vcmp.eq.s32.totalorder %v9361_v24, %v11793_v22 }
 0x499   : > { %v4237_v37 = vadd.f32 %v3981_v39, %v3399_v40  ;;  %vm3815_vm9 = vcmp.eq.s32.totalorder %v9361_v24, %v11802_v3  ;;  %v5657_v25 = vsel %vm5363_vm2, %v11838_v53, 0.0  ;;  %v3271_v61 = vsel %vm2977_vm7, %v11799_v46, 0.0 }
 0x49a   : > { %v6882_v23 = vadd.f32 %v6626_v13, %v6044_v51  ;;  %vm4653_vm10 = vcmp.eq.s32.totalorder %v9361_v24, %v11817_v36  ;;  %v6495_v12 = vsel %vm6201_vm3, %v11848_v18, 0.0  ;;  %v2689_v19 = vadd.f32 %v2433_v30, %v1851_v59 }
 0x49b   : > { %v5075_v50 = vadd.f32 %v4819_v29, %v4237_v37  ;;  %v4109_v27 = vsel %vm3815_vm9, %v11809_v15, 0.0  ;;  %v4947_v33 = vsel %vm4653_vm10, %v11823_v42, 0.0  ;;  %vm5491_vm8 = vcmp.eq.s32.totalorder %v9361_v24, %v11830_v11 }
 0x49c   : > { %7238 = vmatpush1.msra.mxu1 %v6882_v23  ;;  %vm590_vm11 = vcmp.eq.s32.totalorder %v9321_v56, %v11880_v47  ;;  %vm1172_vm12 = vcmp.eq.s32.totalorder %v9321_v56, %v11888_v32  ;;  %v3527_v5 = vadd.f32 %v3271_v61, %v2689_v19  ;;  %vm6329_vm13 = vcmp.eq.s32.totalorder %v9361_v24, %v11845_v10 }
 0x49d   : > { %v5913_v4 = vadd.f32 %v5657_v25, %v5075_v50  ;;  %v884_v34 = vsel %vm590_vm11, %v11901_v16, 0.0  ;;  %v1466_v17 = vsel %vm1172_vm12, %v11918_v31, 0.0  ;;  %vm2010_vm14 = vcmp.eq.s32.totalorder %v9321_v56, %v11896_v49 }
 0x49e   : > { %vm2848_vm15 = vcmp.eq.s32.totalorder %v9321_v56, %v11913_v48  ;;  %vm3686_vm0 = vcmp.eq.s32.totalorder %v9321_v56, %v11941_v2  ;;  %v4365_v13 = vadd.f32 %v4109_v27, %v3527_v5  ;;  %v1722_v60 = vadd.f32 %v1466_v17, %v884_v34 }
 0x49f   : > { %v6751_v1 = vadd.f32 %v6495_v12, %v5913_v4  ;;  %v2304_v39 = vsel %vm2010_vm14, %v11907_v7, 0.0  ;;  %v5785_v0 = vsel %vm5491_vm8, %v11838_v53, 0.0  ;;  %v6623_v29 = vsel %vm6329_vm13, %v11848_v18, 0.0 }
 0x4a0   : > { %v3142_v40 = vsel %vm2848_vm15, %v11934_v55, 0.0  ;;  %vm4524_vm1 = vcmp.eq.s32.totalorder %v9321_v56, %v11950_v14  ;;  %v5203_v51 = vadd.f32 %v4947_v33, %v4365_v13  ;;  %v2560_v43 = vadd.f32 %v2304_v39, %v1722_v60 }
 0x4a1   : > { %7168 = vmatprep.subr.mxu0 %v6751_v1  ;;  %v3980_v35 = vsel %vm3686_vm0, %v11944_v57, 0.0  ;;  %vm5362_vm2 = vcmp.eq.s32.totalorder %v9321_v56, %v11958_v21  ;;  %v4818_v30 = vsel %vm4524_vm1, %v11953_v58, 0.0  ;;  %vm718_vm3 = vcmp.eq.s32.totalorder %v9361_v24, %v11880_v47 }
 0x4a2   : > { %vm1300_vm4 = vcmp.eq.s32.totalorder %v9361_v24, %v11888_v32  ;;  %vm2138_vm5 = vcmp.eq.s32.totalorder %v9361_v24, %v11896_v49  ;;  %v6041_v37 = vadd.f32 %v5785_v0, %v5203_v51  ;;  %v3398_v59 = vadd.f32 %v3142_v40, %v2560_v43 }
 0x4a3   : > { %vm6200_vm6 = vcmp.eq.s32.totalorder %v9321_v56, %v11976_v8  ;;  %v1012_v23 = vsel %vm718_vm3, %v11901_v16, 0.0  ;;  %v1594_v25 = vsel %vm1300_vm4, %v11918_v31, 0.0  ;;  %v2432_v61 = vsel %vm2138_vm5, %v11907_v7, 0.0 }
 0x4a4   : > { %vm2976_vm7 = vcmp.eq.s32.totalorder %v9361_v24, %v11913_v48  ;;  %vm3814_vm9 = vcmp.eq.s32.totalorder %v9361_v24, %v11941_v2  ;;  %v6879_v50 = vadd.f32 %v6623_v29, %v6041_v37  ;;  %v4236_v12 = vadd.f32 %v3980_v35, %v3398_v59 }
 0x4a5   : > { %v5656_v19 = vsel %vm5362_vm2, %v11971_v44, 0.0  ;;  %v1850_v27 = vadd.f32 %v1594_v25, %v1012_v23  ;;  %v6494_v33 = vsel %vm6200_vm6, %v11984_v54, 0.0  ;;  %v3270_v56 = vsel %vm2976_vm7, %v11934_v55, 0.0 }
 0x4a6   : > { %v4108_v4 = vsel %vm3814_vm9, %v11944_v57, 0.0  ;;  %vm4652_vm10 = vcmp.eq.s32.totalorder %v9361_v24, %v11950_v14  ;;  %7239 = vmatprep.subr.mxu1 %v6879_v50  ;;  %v5074_v5 = vadd.f32 %v4818_v30, %v4236_v12  ;;  %vm5490_vm8 = vcmp.eq.s32.totalorder %v9361_v24, %v11958_v21 }
 0x4a7   : > { %v2688_v34 = vadd.f32 %v2432_v61, %v1850_v27  ;;  %vm6328_vm11 = vcmp.eq.s32.totalorder %v9361_v24, %v11976_v8  ;;  %v4946_v17 = vsel %vm4652_vm10, %v11953_v58, 0.0  ;;  %vm587_vm12 = vcmp.eq.s32.totalorder %v9444_v28, %v11751_v38  ;;  %v15541_v24 = vld [vmem:[#allocation37_spill] sm:$0xff] }
 0x4a8   : > { %vm1169_vm13 = vcmp.eq.s32.totalorder %v9444_v28, %v11759_v62  ;;  %vm2007_vm14 = vcmp.eq.s32.totalorder %v9444_v28, %v11778_v45  ;;  %v5912_v1 = vadd.f32 %v5656_v19, %v5074_v5  ;;  %v881_v60 = vsel %vm587_vm12, %v11756_v52, 0.0 }
 0x4a9   : > { %v3526_v13 = vadd.f32 %v3270_v56, %v2688_v34  ;;  %v1463_v39 = vsel %vm1169_vm13, %v11762_v20, 0.0  ;;  %v2301_v29 = vsel %vm2007_vm14, %v11784_v9, 0.0  ;;  %vm2845_vm15 = vcmp.eq.s32.totalorder %v9444_v28, %v11793_v22 }
 0x4aa   : > { %v1719_v0 = vadd.f32 %v1463_v39, %v881_v60  ;;  %vm3683_vm0 = vcmp.eq.s32.totalorder %v9444_v28, %v11802_v3  ;;  %v6750_v40 = vadd.f32 %v6494_v33, %v5912_v1  ;;  %v5784_v43 = vsel %vm5490_vm8, %v11971_v44, 0.0 }
 0x4ab   : > { %v4364_v51 = vadd.f32 %v4108_v4, %v3526_v13  ;;  %v3139_v35 = vsel %vm2845_vm15, %v11799_v46, 0.0  ;;  %v6622_v30 = vsel %vm6328_vm11, %v11984_v54, 0.0  ;;  %v3977_v59 = vsel %vm3683_vm0, %v11809_v15, 0.0 }
 0x4ac   : > { %v2557_v37 = vadd.f32 %v2301_v29, %v1719_v0  ;;  %vm4521_vm1 = vcmp.eq.s32.totalorder %v9444_v28, %v11817_v36  ;;  %7169 = vmatpush1.msra.mxu0 %v6750_v40  ;;  %vm5359_vm2 = vcmp.eq.s32.totalorder %v9444_v28, %v11830_v11  ;;  %vm6197_vm3 = vcmp.eq.s32.totalorder %v9444_v28, %v11845_v10 }
 0x4ad   : > { %v5202_v23 = vadd.f32 %v4946_v17, %v4364_v51  ;;  %v4815_v25 = vsel %vm4521_vm1, %v11823_v42, 0.0  ;;  %vm715_vm4 = vcmp.eq.s32.totalorder %v15541_v24, %v11751_v38  ;;  %vm1297_vm5 = vcmp.eq.s32.totalorder %v15541_v24, %v11759_v62 }
 0x4ae   : > { %v3395_v61 = vadd.f32 %v3139_v35, %v2557_v37  ;;  %vm2135_vm6 = vcmp.eq.s32.totalorder %v15541_v24, %v11778_v45  ;;  %v1009_v12 = vsel %vm715_vm4, %v11756_v52, 0.0  ;;  %v1591_v19 = vsel %vm1297_vm5, %v11762_v20, 0.0 }
 0x4af   : > { %v6040_v50 = vadd.f32 %v5784_v43, %v5202_v23  ;;  %v2429_v27 = vsel %vm2135_vm6, %v11784_v9, 0.0  ;;  %v1847_v56 = vadd.f32 %v1591_v19, %v1009_v12  ;;  %vm2973_vm7 = vcmp.eq.s32.totalorder %v15541_v24, %v11793_v22 }
 0x4b0   : > { %v4233_v33 = vadd.f32 %v3977_v59, %v3395_v61  ;;  %vm3811_vm9 = vcmp.eq.s32.totalorder %v15541_v24, %v11802_v3  ;;  %v5653_v5 = vsel %vm5359_vm2, %v11838_v53, 0.0  ;;  %v3267_v34 = vsel %vm2973_vm7, %v11799_v46, 0.0 }
 0x4b1   : > { %v6878_v4 = vadd.f32 %v6622_v30, %v6040_v50  ;;  %vm4649_vm10 = vcmp.eq.s32.totalorder %v15541_v24, %v11817_v36  ;;  %v6491_v1 = vsel %vm6197_vm3, %v11848_v18, 0.0  ;;  %v2685_v13 = vadd.f32 %v2429_v27, %v1847_v56 }
 0x4b2   : > { %v5071_v17 = vadd.f32 %v4815_v25, %v4233_v33  ;;  %v4105_v60 = vsel %vm3811_vm9, %v11809_v15, 0.0  ;;  %v4943_v39 = vsel %vm4649_vm10, %v11823_v42, 0.0  ;;  %vm5487_vm8 = vcmp.eq.s32.totalorder %v15541_v24, %v11830_v11 }
 0x4b3   : > { %7240 = vmatpush1.msra.mxu1 %v6878_v4  ;;  %vm586_vm11 = vcmp.eq.s32.totalorder %v9444_v28, %v11880_v47  ;;  %vm1168_vm12 = vcmp.eq.s32.totalorder %v9444_v28, %v11888_v32  ;;  %v3523_v29 = vadd.f32 %v3267_v34, %v2685_v13  ;;  %vm6325_vm13 = vcmp.eq.s32.totalorder %v15541_v24, %v11845_v10 }
 0x4b4   : > { %v5909_v0 = vadd.f32 %v5653_v5, %v5071_v17  ;;  %v880_v40 = vsel %vm586_vm11, %v11901_v16, 0.0  ;;  %v1462_v51 = vsel %vm1168_vm12, %v11918_v31, 0.0  ;;  %vm2006_vm14 = vcmp.eq.s32.totalorder %v9444_v28, %v11896_v49 }
 0x4b5   : > { %vm2844_vm15 = vcmp.eq.s32.totalorder %v9444_v28, %v11913_v48  ;;  %vm3682_vm0 = vcmp.eq.s32.totalorder %v9444_v28, %v11941_v2  ;;  %v4361_v35 = vadd.f32 %v4105_v60, %v3523_v29  ;;  %v1718_v30 = vadd.f32 %v1462_v51, %v880_v40  ;;  %v15542_v51 = vld [vmem:[#allocation38_spill] sm:$0xff] }
 0x4b6   : > { %v6747_v43 = vadd.f32 %v6491_v1, %v5909_v0  ;;  %v2300_v37 = vsel %vm2006_vm14, %v11907_v7, 0.0  ;;  %v5781_v59 = vsel %vm5487_vm8, %v11838_v53, 0.0  ;;  %v6619_v23 = vsel %vm6325_vm13, %v11848_v18, 0.0 }
 0x4b7   : > { %v3138_v25 = vsel %vm2844_vm15, %v11934_v55, 0.0  ;;  %vm4520_vm1 = vcmp.eq.s32.totalorder %v9444_v28, %v11950_v14  ;;  %v5199_v61 = vadd.f32 %v4943_v39, %v4361_v35  ;;  %v2556_v50 = vadd.f32 %v2300_v37, %v1718_v30 }
 0x4b8   : > { %7170 = vmatprep.subr.mxu0 %v6747_v43  ;;  %v3976_v12 = vsel %vm3682_vm0, %v11944_v57, 0.0  ;;  %vm5358_vm2 = vcmp.eq.s32.totalorder %v9444_v28, %v11958_v21  ;;  %v4814_v19 = vsel %vm4520_vm1, %v11953_v58, 0.0  ;;  %vm714_vm3 = vcmp.eq.s32.totalorder %v15541_v24, %v11880_v47 }
 0x4b9   : > { %vm1296_vm4 = vcmp.eq.s32.totalorder %v15541_v24, %v11888_v32  ;;  %vm2134_vm5 = vcmp.eq.s32.totalorder %v15541_v24, %v11896_v49  ;;  %v6037_v27 = vadd.f32 %v5781_v59, %v5199_v61  ;;  %v3394_v33 = vadd.f32 %v3138_v25, %v2556_v50 }
 0x4ba   : > { %vm6196_vm6 = vcmp.eq.s32.totalorder %v9444_v28, %v11976_v8  ;;  %v1008_v56 = vsel %vm714_vm3, %v11901_v16, 0.0  ;;  %v1590_v4 = vsel %vm1296_vm4, %v11918_v31, 0.0  ;;  %v2428_v5 = vsel %vm2134_vm5, %v11907_v7, 0.0 }
 0x4bb   : > { %vm2972_vm7 = vcmp.eq.s32.totalorder %v15541_v24, %v11913_v48  ;;  %vm3810_vm9 = vcmp.eq.s32.totalorder %v15541_v24, %v11941_v2  ;;  %v6875_v34 = vadd.f32 %v6619_v23, %v6037_v27  ;;  %v4232_v17 = vadd.f32 %v3976_v12, %v3394_v33 }
 0x4bc   : > { %v5652_v1 = vsel %vm5358_vm2, %v11971_v44, 0.0  ;;  %v1846_v13 = vadd.f32 %v1590_v4, %v1008_v56  ;;  %v6490_v60 = vsel %vm6196_vm6, %v11984_v54, 0.0  ;;  %v3266_v28 = vsel %vm2972_vm7, %v11934_v55, 0.0 }
 0x4bd   : > { %v4104_v39 = vsel %vm3810_vm9, %v11944_v57, 0.0  ;;  %vm4648_vm10 = vcmp.eq.s32.totalorder %v15541_v24, %v11950_v14  ;;  %7241 = vmatprep.subr.mxu1 %v6875_v34  ;;  %v5070_v0 = vadd.f32 %v4814_v19, %v4232_v17  ;;  %vm5486_vm8 = vcmp.eq.s32.totalorder %v15541_v24, %v11958_v21 }
 0x4be   : > { %v2684_v29 = vadd.f32 %v2428_v5, %v1846_v13  ;;  %vm6324_vm11 = vcmp.eq.s32.totalorder %v15541_v24, %v11976_v8  ;;  %v4942_v40 = vsel %vm4648_vm10, %v11953_v58, 0.0  ;;  %vm583_vm12 = vcmp.eq.s32.totalorder %v15542_v51, %v11751_v38  ;;  %v15543_v24 = vld [vmem:[#allocation39_spill] sm:$0xff] }
 0x4bf   : > { %vm1165_vm13 = vcmp.eq.s32.totalorder %v15542_v51, %v11759_v62  ;;  %vm2003_vm14 = vcmp.eq.s32.totalorder %v15542_v51, %v11778_v45  ;;  %v5908_v43 = vadd.f32 %v5652_v1, %v5070_v0  ;;  %v877_v30 = vsel %vm583_vm12, %v11756_v52, 0.0 }
 0x4c0   : > { %v3522_v35 = vadd.f32 %v3266_v28, %v2684_v29  ;;  %v1459_v37 = vsel %vm1165_vm13, %v11762_v20, 0.0  ;;  %v2297_v23 = vsel %vm2003_vm14, %v11784_v9, 0.0  ;;  %vm2841_vm15 = vcmp.eq.s32.totalorder %v15542_v51, %v11793_v22 }
 0x4c1   : > { %v1715_v59 = vadd.f32 %v1459_v37, %v877_v30  ;;  %vm3679_vm0 = vcmp.eq.s32.totalorder %v15542_v51, %v11802_v3  ;;  %v6746_v25 = vadd.f32 %v6490_v60, %v5908_v43  ;;  %v5780_v50 = vsel %vm5486_vm8, %v11971_v44, 0.0 }
 0x4c2   : > { %v4360_v61 = vadd.f32 %v4104_v39, %v3522_v35  ;;  %v3135_v12 = vsel %vm2841_vm15, %v11799_v46, 0.0  ;;  %v6618_v19 = vsel %vm6324_vm11, %v11984_v54, 0.0  ;;  %v3973_v33 = vsel %vm3679_vm0, %v11809_v15, 0.0 }
 0x4c3   : > { %v2553_v27 = vadd.f32 %v2297_v23, %v1715_v59  ;;  %vm4517_vm1 = vcmp.eq.s32.totalorder %v15542_v51, %v11817_v36  ;;  %7171 = vmatpush1.msra.mxu0 %v6746_v25  ;;  %vm5355_vm2 = vcmp.eq.s32.totalorder %v15542_v51, %v11830_v11  ;;  %vm6193_vm3 = vcmp.eq.s32.totalorder %v15542_v51, %v11845_v10 }
 0x4c4   : > { %v5198_v56 = vadd.f32 %v4942_v40, %v4360_v61  ;;  %v4811_v4 = vsel %vm4517_vm1, %v11823_v42, 0.0  ;;  %vm711_vm4 = vcmp.eq.s32.totalorder %v15543_v24, %v11751_v38  ;;  %vm1293_vm5 = vcmp.eq.s32.totalorder %v15543_v24, %v11759_v62 }
 0x4c5   : > { %v3391_v5 = vadd.f32 %v3135_v12, %v2553_v27  ;;  %vm2131_vm6 = vcmp.eq.s32.totalorder %v15543_v24, %v11778_v45  ;;  %v1005_v17 = vsel %vm711_vm4, %v11756_v52, 0.0  ;;  %v1587_v1 = vsel %vm1293_vm5, %v11762_v20, 0.0 }
 0x4c6   : > { %v6036_v34 = vadd.f32 %v5780_v50, %v5198_v56  ;;  %v2425_v13 = vsel %vm2131_vm6, %v11784_v9, 0.0  ;;  %v1843_v28 = vadd.f32 %v1587_v1, %v1005_v17  ;;  %vm2969_vm7 = vcmp.eq.s32.totalorder %v15543_v24, %v11793_v22 }
 0x4c7   : > { %v4229_v60 = vadd.f32 %v3973_v33, %v3391_v5  ;;  %vm3807_vm9 = vcmp.eq.s32.totalorder %v15543_v24, %v11802_v3  ;;  %v5649_v0 = vsel %vm5355_vm2, %v11838_v53, 0.0  ;;  %v3263_v29 = vsel %vm2969_vm7, %v11799_v46, 0.0 }
 0x4c8   : > { %v6874_v39 = vadd.f32 %v6618_v19, %v6036_v34  ;;  %vm4645_vm10 = vcmp.eq.s32.totalorder %v15543_v24, %v11817_v36  ;;  %v6487_v43 = vsel %vm6193_vm3, %v11848_v18, 0.0  ;;  %v2681_v35 = vadd.f32 %v2425_v13, %v1843_v28 }
 0x4c9   : > { %v5067_v40 = vadd.f32 %v4811_v4, %v4229_v60  ;;  %v4101_v30 = vsel %vm3807_vm9, %v11809_v15, 0.0  ;;  %v4939_v37 = vsel %vm4645_vm10, %v11823_v42, 0.0  ;;  %vm5483_vm8 = vcmp.eq.s32.totalorder %v15543_v24, %v11830_v11 }
 0x4ca   : > { %7242 = vmatpush1.msra.mxu1 %v6874_v39  ;;  %vm582_vm11 = vcmp.eq.s32.totalorder %v15542_v51, %v11880_v47  ;;  %vm1164_vm12 = vcmp.eq.s32.totalorder %v15542_v51, %v11888_v32  ;;  %v3519_v23 = vadd.f32 %v3263_v29, %v2681_v35  ;;  %vm6321_vm13 = vcmp.eq.s32.totalorder %v15543_v24, %v11845_v10 }
 0x4cb   : > { %v5905_v59 = vadd.f32 %v5649_v0, %v5067_v40  ;;  %v876_v25 = vsel %vm582_vm11, %v11901_v16, 0.0  ;;  %v1458_v61 = vsel %vm1164_vm12, %v11918_v31, 0.0  ;;  %vm2002_vm14 = vcmp.eq.s32.totalorder %v15542_v51, %v11896_v49 }
 0x4cc   : > { %vm2840_vm15 = vcmp.eq.s32.totalorder %v15542_v51, %v11913_v48  ;;  %vm3678_vm0 = vcmp.eq.s32.totalorder %v15542_v51, %v11941_v2  ;;  %v4357_v12 = vadd.f32 %v4101_v30, %v3519_v23  ;;  %v1714_v19 = vadd.f32 %v1458_v61, %v876_v25  ;;  %v15544_v61 = vld [vmem:[#allocation36_spill] sm:$0xff] }
 0x4cd   : > { %v6743_v50 = vadd.f32 %v6487_v43, %v5905_v59  ;;  %v2296_v27 = vsel %vm2002_vm14, %v11907_v7, 0.0  ;;  %v5777_v33 = vsel %vm5483_vm8, %v11838_v53, 0.0  ;;  %v6615_v56 = vsel %vm6321_vm13, %v11848_v18, 0.0 }
 0x4ce   : > { %v3134_v4 = vsel %vm2840_vm15, %v11934_v55, 0.0  ;;  %vm4516_vm1 = vcmp.eq.s32.totalorder %v15542_v51, %v11950_v14  ;;  %v5195_v5 = vadd.f32 %v4939_v37, %v4357_v12  ;;  %v2552_v34 = vadd.f32 %v2296_v27, %v1714_v19 }
 0x4cf   : > { %7172 = vmatprep.subr.mxu0 %v6743_v50  ;;  %v3972_v17 = vsel %vm3678_vm0, %v11944_v57, 0.0  ;;  %vm5354_vm2 = vcmp.eq.s32.totalorder %v15542_v51, %v11958_v21  ;;  %v4810_v1 = vsel %vm4516_vm1, %v11953_v58, 0.0  ;;  %vm710_vm3 = vcmp.eq.s32.totalorder %v15543_v24, %v11880_v47 }
 0x4d0   : > { %vm1292_vm4 = vcmp.eq.s32.totalorder %v15543_v24, %v11888_v32  ;;  %vm2130_vm5 = vcmp.eq.s32.totalorder %v15543_v24, %v11896_v49  ;;  %v6033_v13 = vadd.f32 %v5777_v33, %v5195_v5  ;;  %v3390_v60 = vadd.f32 %v3134_v4, %v2552_v34 }
 0x4d1   : > { %vm6192_vm6 = vcmp.eq.s32.totalorder %v15542_v51, %v11976_v8  ;;  %v1004_v28 = vsel %vm710_vm3, %v11901_v16, 0.0  ;;  %v1586_v39 = vsel %vm1292_vm4, %v11918_v31, 0.0  ;;  %v2424_v0 = vsel %vm2130_vm5, %v11907_v7, 0.0 }
 0x4d2   : > { %vm2968_vm7 = vcmp.eq.s32.totalorder %v15543_v24, %v11913_v48  ;;  %vm3806_vm9 = vcmp.eq.s32.totalorder %v15543_v24, %v11941_v2  ;;  %v6871_v29 = vadd.f32 %v6615_v56, %v6033_v13  ;;  %v4228_v40 = vadd.f32 %v3972_v17, %v3390_v60 }
 0x4d3   : > { %v5648_v43 = vsel %vm5354_vm2, %v11971_v44, 0.0  ;;  %v1842_v35 = vadd.f32 %v1586_v39, %v1004_v28  ;;  %v6486_v30 = vsel %vm6192_vm6, %v11984_v54, 0.0  ;;  %v3262_v51 = vsel %vm2968_vm7, %v11934_v55, 0.0 }
 0x4d4   : > { %v4100_v37 = vsel %vm3806_vm9, %v11944_v57, 0.0  ;;  %vm4644_vm10 = vcmp.eq.s32.totalorder %v15543_v24, %v11950_v14  ;;  %7243 = vmatprep.subr.mxu1 %v6871_v29  ;;  %v5066_v59 = vadd.f32 %v4810_v1, %v4228_v40  ;;  %vm5482_vm8 = vcmp.eq.s32.totalorder %v15543_v24, %v11958_v21 }
 0x4d5   : > { %v2680_v23 = vadd.f32 %v2424_v0, %v1842_v35  ;;  %vm6320_vm11 = vcmp.eq.s32.totalorder %v15543_v24, %v11976_v8  ;;  %v4938_v25 = vsel %vm4644_vm10, %v11953_v58, 0.0  ;;  %vm579_vm12 = vcmp.eq.s32.totalorder %v15544_v61, %v11751_v38  ;;  %v15545_v24 = vld [vmem:[#allocation40_spill] sm:$0xff] }
 0x4d6   : > { %vm1161_vm13 = vcmp.eq.s32.totalorder %v15544_v61, %v11759_v62  ;;  %vm1999_vm14 = vcmp.eq.s32.totalorder %v15544_v61, %v11778_v45  ;;  %v5904_v50 = vadd.f32 %v5648_v43, %v5066_v59  ;;  %v873_v19 = vsel %vm579_vm12, %v11756_v52, 0.0 }
 0x4d7   : > { %v3518_v12 = vadd.f32 %v3262_v51, %v2680_v23  ;;  %v1455_v27 = vsel %vm1161_vm13, %v11762_v20, 0.0  ;;  %v2293_v56 = vsel %vm1999_vm14, %v11784_v9, 0.0  ;;  %vm2837_vm15 = vcmp.eq.s32.totalorder %v15544_v61, %v11793_v22 }
 0x4d8   : > { %v1711_v33 = vadd.f32 %v1455_v27, %v873_v19  ;;  %vm3675_vm0 = vcmp.eq.s32.totalorder %v15544_v61, %v11802_v3  ;;  %v6742_v4 = vadd.f32 %v6486_v30, %v5904_v50  ;;  %v5776_v34 = vsel %vm5482_vm8, %v11971_v44, 0.0 }
 0x4d9   : > { %v4356_v5 = vadd.f32 %v4100_v37, %v3518_v12  ;;  %v3131_v17 = vsel %vm2837_vm15, %v11799_v46, 0.0  ;;  %v6614_v1 = vsel %vm6320_vm11, %v11984_v54, 0.0  ;;  %v3969_v60 = vsel %vm3675_vm0, %v11809_v15, 0.0 }
 0x4da   : > { %v2549_v13 = vadd.f32 %v2293_v56, %v1711_v33  ;;  %vm4513_vm1 = vcmp.eq.s32.totalorder %v15544_v61, %v11817_v36  ;;  %7173 = vmatpush1.msra.mxu0 %v6742_v4  ;;  %vm5351_vm2 = vcmp.eq.s32.totalorder %v15544_v61, %v11830_v11  ;;  %vm6189_vm3 = vcmp.eq.s32.totalorder %v15544_v61, %v11845_v10 }
 0x4db   : > { %v5194_v28 = vadd.f32 %v4938_v25, %v4356_v5  ;;  %v4807_v39 = vsel %vm4513_vm1, %v11823_v42, 0.0  ;;  %vm707_vm4 = vcmp.eq.s32.totalorder %v15545_v24, %v11751_v38  ;;  %vm1289_vm5 = vcmp.eq.s32.totalorder %v15545_v24, %v11759_v62 }
 0x4dc   : > { %v3387_v0 = vadd.f32 %v3131_v17, %v2549_v13  ;;  %vm2127_vm6 = vcmp.eq.s32.totalorder %v15545_v24, %v11778_v45  ;;  %v1001_v40 = vsel %vm707_vm4, %v11756_v52, 0.0  ;;  %v1583_v43 = vsel %vm1289_vm5, %v11762_v20, 0.0 }
 0x4dd   : > { %v6032_v29 = vadd.f32 %v5776_v34, %v5194_v28  ;;  %v2421_v35 = vsel %vm2127_vm6, %v11784_v9, 0.0  ;;  %v1839_v51 = vadd.f32 %v1583_v43, %v1001_v40  ;;  %vm2965_vm7 = vcmp.eq.s32.totalorder %v15545_v24, %v11793_v22 }
 0x4de   : > { %v4225_v30 = vadd.f32 %v3969_v60, %v3387_v0  ;;  %vm3803_vm9 = vcmp.eq.s32.totalorder %v15545_v24, %v11802_v3  ;;  %v5645_v59 = vsel %vm5351_vm2, %v11838_v53, 0.0  ;;  %v3259_v23 = vsel %vm2965_vm7, %v11799_v46, 0.0 }
 0x4df   : > { %v6870_v37 = vadd.f32 %v6614_v1, %v6032_v29  ;;  %vm4641_vm10 = vcmp.eq.s32.totalorder %v15545_v24, %v11817_v36  ;;  %v6483_v50 = vsel %vm6189_vm3, %v11848_v18, 0.0  ;;  %v2677_v12 = vadd.f32 %v2421_v35, %v1839_v51 }
 0x4e0   : > { %v5063_v25 = vadd.f32 %v4807_v39, %v4225_v30  ;;  %v4097_v19 = vsel %vm3803_vm9, %v11809_v15, 0.0  ;;  %v4935_v27 = vsel %vm4641_vm10, %v11823_v42, 0.0  ;;  %vm5479_vm8 = vcmp.eq.s32.totalorder %v15545_v24, %v11830_v11 }
 0x4e1   : > { %7244 = vmatpush1.msra.mxu1 %v6870_v37  ;;  %vm578_vm11 = vcmp.eq.s32.totalorder %v15544_v61, %v11880_v47  ;;  %vm1160_vm12 = vcmp.eq.s32.totalorder %v15544_v61, %v11888_v32  ;;  %v3515_v56 = vadd.f32 %v3259_v23, %v2677_v12  ;;  %vm6317_vm13 = vcmp.eq.s32.totalorder %v15545_v24, %v11845_v10 }
 0x4e2   : > { %v5901_v33 = vadd.f32 %v5645_v59, %v5063_v25  ;;  %v872_v4 = vsel %vm578_vm11, %v11901_v16, 0.0  ;;  %v1454_v5 = vsel %vm1160_vm12, %v11918_v31, 0.0  ;;  %vm1998_vm14 = vcmp.eq.s32.totalorder %v15544_v61, %v11896_v49 }
 0x4e3   : > { %vm2836_vm15 = vcmp.eq.s32.totalorder %v15544_v61, %v11913_v48  ;;  %vm3674_vm0 = vcmp.eq.s32.totalorder %v15544_v61, %v11941_v2  ;;  %v4353_v17 = vadd.f32 %v4097_v19, %v3515_v56  ;;  %v1710_v1 = vadd.f32 %v1454_v5, %v872_v4  ;;  %v15546_v5 = vld [vmem:[#allocation41_spill] sm:$0xff] }
 0x4e4   : > { %v6739_v34 = vadd.f32 %v6483_v50, %v5901_v33  ;;  %v2292_v13 = vsel %vm1998_vm14, %v11907_v7, 0.0  ;;  %v5773_v60 = vsel %vm5479_vm8, %v11838_v53, 0.0  ;;  %v6611_v28 = vsel %vm6317_vm13, %v11848_v18, 0.0 }
 0x4e5   : > { %v3130_v39 = vsel %vm2836_vm15, %v11934_v55, 0.0  ;;  %vm4512_vm1 = vcmp.eq.s32.totalorder %v15544_v61, %v11950_v14  ;;  %v5191_v0 = vadd.f32 %v4935_v27, %v4353_v17  ;;  %v2548_v29 = vadd.f32 %v2292_v13, %v1710_v1 }
 0x4e6   : > { %7174 = vmatprep.subr.mxu0 %v6739_v34  ;;  %v3968_v40 = vsel %vm3674_vm0, %v11944_v57, 0.0  ;;  %vm5350_vm2 = vcmp.eq.s32.totalorder %v15544_v61, %v11958_v21  ;;  %v4806_v43 = vsel %vm4512_vm1, %v11953_v58, 0.0  ;;  %vm706_vm3 = vcmp.eq.s32.totalorder %v15545_v24, %v11880_v47 }
 0x4e7   : > { %vm1288_vm4 = vcmp.eq.s32.totalorder %v15545_v24, %v11888_v32  ;;  %vm2126_vm5 = vcmp.eq.s32.totalorder %v15545_v24, %v11896_v49  ;;  %v6029_v35 = vadd.f32 %v5773_v60, %v5191_v0  ;;  %v3386_v30 = vadd.f32 %v3130_v39, %v2548_v29 }
 0x4e8   : > { %vm6188_vm6 = vcmp.eq.s32.totalorder %v15544_v61, %v11976_v8  ;;  %v1000_v51 = vsel %vm706_vm3, %v11901_v16, 0.0  ;;  %v1582_v37 = vsel %vm1288_vm4, %v11918_v31, 0.0  ;;  %v2420_v59 = vsel %vm2126_vm5, %v11907_v7, 0.0 }
 0x4e9   : > { %vm2964_vm7 = vcmp.eq.s32.totalorder %v15545_v24, %v11913_v48  ;;  %vm3802_vm9 = vcmp.eq.s32.totalorder %v15545_v24, %v11941_v2  ;;  %v6867_v23 = vadd.f32 %v6611_v28, %v6029_v35  ;;  %v4224_v25 = vadd.f32 %v3968_v40, %v3386_v30 }
 0x4ea   : > { %v5644_v50 = vsel %vm5350_vm2, %v11971_v44, 0.0  ;;  %v1838_v12 = vadd.f32 %v1582_v37, %v1000_v51  ;;  %v6482_v19 = vsel %vm6188_vm6, %v11984_v54, 0.0  ;;  %v3258_v61 = vsel %vm2964_vm7, %v11934_v55, 0.0 }
 0x4eb   : > { %v4096_v27 = vsel %vm3802_vm9, %v11944_v57, 0.0  ;;  %vm4640_vm10 = vcmp.eq.s32.totalorder %v15545_v24, %v11950_v14  ;;  %7245 = vmatprep.subr.mxu1 %v6867_v23  ;;  %v5062_v33 = vadd.f32 %v4806_v43, %v4224_v25  ;;  %vm5478_vm8 = vcmp.eq.s32.totalorder %v15545_v24, %v11958_v21 }
 0x4ec   : > { %v2676_v56 = vadd.f32 %v2420_v59, %v1838_v12  ;;  %vm6316_vm11 = vcmp.eq.s32.totalorder %v15545_v24, %v11976_v8  ;;  %v4934_v4 = vsel %vm4640_vm10, %v11953_v58, 0.0  ;;  %vm703_vm12 = vcmp.eq.s32.totalorder %v15546_v5, %v11751_v38  ;;  %v15547_v24 = vld [vmem:[#allocation42_spill] sm:$0xff] }
 0x4ed   : > { %vm1285_vm13 = vcmp.eq.s32.totalorder %v15546_v5, %v11759_v62  ;;  %vm2123_vm14 = vcmp.eq.s32.totalorder %v15546_v5, %v11778_v45  ;;  %v5900_v34 = vadd.f32 %v5644_v50, %v5062_v33  ;;  %v997_v1 = vsel %vm703_vm12, %v11756_v52, 0.0 }
 0x4ee   : > { %v3514_v17 = vadd.f32 %v3258_v61, %v2676_v56  ;;  %v1579_v13 = vsel %vm1285_vm13, %v11762_v20, 0.0  ;;  %v2417_v28 = vsel %vm2123_vm14, %v11784_v9, 0.0  ;;  %vm2961_vm15 = vcmp.eq.s32.totalorder %v15546_v5, %v11793_v22 }
 0x4ef   : > { %v1835_v60 = vadd.f32 %v1579_v13, %v997_v1  ;;  %vm3799_vm0 = vcmp.eq.s32.totalorder %v15546_v5, %v11802_v3  ;;  %v6738_v39 = vadd.f32 %v6482_v19, %v5900_v34  ;;  %v5772_v29 = vsel %vm5478_vm8, %v11971_v44, 0.0 }
 0x4f0   : > { %v4352_v0 = vadd.f32 %v4096_v27, %v3514_v17  ;;  %v3255_v40 = vsel %vm2961_vm15, %v11799_v46, 0.0  ;;  %v6610_v43 = vsel %vm6316_vm11, %v11984_v54, 0.0  ;;  %v4093_v30 = vsel %vm3799_vm0, %v11809_v15, 0.0 }
 0x4f1   : > { %v2673_v35 = vadd.f32 %v2417_v28, %v1835_v60  ;;  %vm4637_vm1 = vcmp.eq.s32.totalorder %v15546_v5, %v11817_v36  ;;  %7175 = vmatpush1.msra.mxu0 %v6738_v39  ;;  %vm5475_vm2 = vcmp.eq.s32.totalorder %v15546_v5, %v11830_v11  ;;  %vm6313_vm3 = vcmp.eq.s32.totalorder %v15546_v5, %v11845_v10 }
 0x4f2   : > { %v5190_v51 = vadd.f32 %v4934_v4, %v4352_v0  ;;  %v4931_v37 = vsel %vm4637_vm1, %v11823_v42, 0.0  ;;  %vm831_vm4 = vcmp.eq.s32.totalorder %v15547_v24, %v11751_v38  ;;  %vm1413_vm5 = vcmp.eq.s32.totalorder %v15547_v24, %v11759_v62 }
 0x4f3   : > { %v3511_v59 = vadd.f32 %v3255_v40, %v2673_v35  ;;  %vm2251_vm6 = vcmp.eq.s32.totalorder %v15547_v24, %v11778_v45  ;;  %v1125_v25 = vsel %vm831_vm4, %v11756_v52, 0.0  ;;  %v1707_v50 = vsel %vm1413_vm5, %v11762_v20, 0.0 }
 0x4f4   : > { %v6028_v23 = vadd.f32 %v5772_v29, %v5190_v51  ;;  %v2545_v12 = vsel %vm2251_vm6, %v11784_v9, 0.0  ;;  %v1963_v61 = vadd.f32 %v1707_v50, %v1125_v25  ;;  %vm3089_vm7 = vcmp.eq.s32.totalorder %v15547_v24, %v11793_v22 }
 0x4f5   : > { %v4349_v19 = vadd.f32 %v4093_v30, %v3511_v59  ;;  %vm3927_vm9 = vcmp.eq.s32.totalorder %v15547_v24, %v11802_v3  ;;  %v5769_v33 = vsel %vm5475_vm2, %v11838_v53, 0.0  ;;  %v3383_v56 = vsel %vm3089_vm7, %v11799_v46, 0.0 }
 0x4f6   : > { %v6866_v27 = vadd.f32 %v6610_v43, %v6028_v23  ;;  %vm4765_vm10 = vcmp.eq.s32.totalorder %v15547_v24, %v11817_v36  ;;  %v6607_v34 = vsel %vm6313_vm3, %v11848_v18, 0.0  ;;  %v2801_v17 = vadd.f32 %v2545_v12, %v1963_v61 }
 0x4f7   : > { %v5187_v4 = vadd.f32 %v4931_v37, %v4349_v19  ;;  %v4221_v1 = vsel %vm3927_vm9, %v11809_v15, 0.0  ;;  %v5059_v13 = vsel %vm4765_vm10, %v11823_v42, 0.0  ;;  %vm5603_vm8 = vcmp.eq.s32.totalorder %v15547_v24, %v11830_v11 }
 0x4f8   : > { %7246 = vmatpush1.msra.mxu1 %v6866_v27  ;;  %vm702_vm11 = vcmp.eq.s32.totalorder %v15546_v5, %v11880_v47  ;;  %vm1284_vm12 = vcmp.eq.s32.totalorder %v15546_v5, %v11888_v32  ;;  %v3639_v28 = vadd.f32 %v3383_v56, %v2801_v17  ;;  %vm6441_vm13 = vcmp.eq.s32.totalorder %v15547_v24, %v11845_v10 }
 0x4f9   : > { %v6025_v60 = vadd.f32 %v5769_v33, %v5187_v4  ;;  %v996_v39 = vsel %vm702_vm11, %v11901_v16, 0.0  ;;  %v1578_v0 = vsel %vm1284_vm12, %v11918_v31, 0.0  ;;  %vm2122_vm14 = vcmp.eq.s32.totalorder %v15546_v5, %v11896_v49 }
 0x4fa   : > { %vm2960_vm15 = vcmp.eq.s32.totalorder %v15546_v5, %v11913_v48  ;;  %vm3798_vm0 = vcmp.eq.s32.totalorder %v15546_v5, %v11941_v2  ;;  %v4477_v40 = vadd.f32 %v4221_v1, %v3639_v28  ;;  %v1834_v43 = vadd.f32 %v1578_v0, %v996_v39  ;;  %v15548_v0 = vld [vmem:[#allocation43_spill] sm:$0xff] }
 0x4fb   : > { %v6863_v29 = vadd.f32 %v6607_v34, %v6025_v60  ;;  %v2416_v35 = vsel %vm2122_vm14, %v11907_v7, 0.0  ;;  %v5897_v30 = vsel %vm5603_vm8, %v11838_v53, 0.0  ;;  %v6735_v51 = vsel %vm6441_vm13, %v11848_v18, 0.0 }
 0x4fc   : > { %v3254_v37 = vsel %vm2960_vm15, %v11934_v55, 0.0  ;;  %vm4636_vm1 = vcmp.eq.s32.totalorder %v15546_v5, %v11950_v14  ;;  %v5315_v59 = vadd.f32 %v5059_v13, %v4477_v40  ;;  %v2672_v23 = vadd.f32 %v2416_v35, %v1834_v43 }
 0x4fd   : > { %7176 = vmatprep.subr.mxu0 %v6863_v29  ;;  %v4092_v25 = vsel %vm3798_vm0, %v11944_v57, 0.0  ;;  %vm5474_vm2 = vcmp.eq.s32.totalorder %v15546_v5, %v11958_v21  ;;  %v4930_v50 = vsel %vm4636_vm1, %v11953_v58, 0.0  ;;  %vm830_vm3 = vcmp.eq.s32.totalorder %v15547_v24, %v11880_v47 }
 0x4fe   : > { %vm1412_vm4 = vcmp.eq.s32.totalorder %v15547_v24, %v11888_v32  ;;  %vm2250_vm5 = vcmp.eq.s32.totalorder %v15547_v24, %v11896_v49  ;;  %v6153_v12 = vadd.f32 %v5897_v30, %v5315_v59  ;;  %v3510_v19 = vadd.f32 %v3254_v37, %v2672_v23 }
 0x4ff   : > { %vm6312_vm6 = vcmp.eq.s32.totalorder %v15546_v5, %v11976_v8  ;;  %v1124_v61 = vsel %vm830_vm3, %v11901_v16, 0.0  ;;  %v1706_v27 = vsel %vm1412_vm4, %v11918_v31, 0.0  ;;  %v2544_v33 = vsel %vm2250_vm5, %v11907_v7, 0.0 }
 0x500   : > { %vm3088_vm7 = vcmp.eq.s32.totalorder %v15547_v24, %v11913_v48  ;;  %vm3926_vm9 = vcmp.eq.s32.totalorder %v15547_v24, %v11941_v2  ;;  %v6991_v56 = vadd.f32 %v6735_v51, %v6153_v12  ;;  %v4348_v4 = vadd.f32 %v4092_v25, %v3510_v19 }
 0x501   : > { %v5768_v34 = vsel %vm5474_vm2, %v11971_v44, 0.0  ;;  %v1962_v17 = vadd.f32 %v1706_v27, %v1124_v61  ;;  %v6606_v1 = vsel %vm6312_vm6, %v11984_v54, 0.0  ;;  %v3382_v5 = vsel %vm3088_vm7, %v11934_v55, 0.0 }
 0x502   : > { %v4220_v13 = vsel %vm3926_vm9, %v11944_v57, 0.0  ;;  %vm4764_vm10 = vcmp.eq.s32.totalorder %v15547_v24, %v11950_v14  ;;  %7247 = vmatprep.subr.mxu1 %v6991_v56  ;;  %v5186_v60 = vadd.f32 %v4930_v50, %v4348_v4  ;;  %vm5602_vm8 = vcmp.eq.s32.totalorder %v15547_v24, %v11958_v21 }
 0x503   : > { %v2800_v28 = vadd.f32 %v2544_v33, %v1962_v17  ;;  %vm6440_vm11 = vcmp.eq.s32.totalorder %v15547_v24, %v11976_v8  ;;  %v5058_v39 = vsel %vm4764_vm10, %v11953_v58, 0.0  ;;  %vm699_vm12 = vcmp.eq.s32.totalorder %v15548_v0, %v11751_v38  ;;  %v15549_v24 = vld [vmem:[#allocation44_spill] sm:$0xff] }
 0x504   : > { %vm1281_vm13 = vcmp.eq.s32.totalorder %v15548_v0, %v11759_v62  ;;  %vm2119_vm14 = vcmp.eq.s32.totalorder %v15548_v0, %v11778_v45  ;;  %v6024_v29 = vadd.f32 %v5768_v34, %v5186_v60  ;;  %v993_v43 = vsel %vm699_vm12, %v11756_v52, 0.0 }
 0x505   : > { %v3638_v40 = vadd.f32 %v3382_v5, %v2800_v28  ;;  %v1575_v35 = vsel %vm1281_vm13, %v11762_v20, 0.0  ;;  %v2413_v51 = vsel %vm2119_vm14, %v11784_v9, 0.0  ;;  %vm2957_vm15 = vcmp.eq.s32.totalorder %v15548_v0, %v11793_v22 }
 0x506   : > { %v1831_v30 = vadd.f32 %v1575_v35, %v993_v43  ;;  %vm3795_vm0 = vcmp.eq.s32.totalorder %v15548_v0, %v11802_v3  ;;  %v6862_v37 = vadd.f32 %v6606_v1, %v6024_v29  ;;  %v5896_v23 = vsel %vm5602_vm8, %v11971_v44, 0.0 }
 0x507   : > { %v4476_v59 = vadd.f32 %v4220_v13, %v3638_v40  ;;  %v3251_v25 = vsel %vm2957_vm15, %v11799_v46, 0.0  ;;  %v6734_v50 = vsel %vm6440_vm11, %v11984_v54, 0.0  ;;  %v4089_v19 = vsel %vm3795_vm0, %v11809_v15, 0.0 }
 0x508   : > { %v2669_v12 = vadd.f32 %v2413_v51, %v1831_v30  ;;  %vm4633_vm1 = vcmp.eq.s32.totalorder %v15548_v0, %v11817_v36  ;;  %7177 = vmatpush2.msra.mxu0 %v6862_v37  ;;  %vm5471_vm2 = vcmp.eq.s32.totalorder %v15548_v0, %v11830_v11  ;;  %vm6309_vm3 = vcmp.eq.s32.totalorder %v15548_v0, %v11845_v10 }
 0x509   : > { %v5314_v61 = vadd.f32 %v5058_v39, %v4476_v59  ;;  %v4927_v27 = vsel %vm4633_vm1, %v11823_v42, 0.0  ;;  %vm827_vm4 = vcmp.eq.s32.totalorder %v15549_v24, %v11751_v38  ;;  %vm1409_vm5 = vcmp.eq.s32.totalorder %v15549_v24, %v11759_v62 }
 0x50a   : > { %v3507_v33 = vadd.f32 %v3251_v25, %v2669_v12  ;;  %vm2247_vm6 = vcmp.eq.s32.totalorder %v15549_v24, %v11778_v45  ;;  %v1121_v4 = vsel %vm827_vm4, %v11756_v52, 0.0  ;;  %v1703_v34 = vsel %vm1409_vm5, %v11762_v20, 0.0 }
 0x50b   : > { %v6152_v56 = vadd.f32 %v5896_v23, %v5314_v61  ;;  %v2541_v17 = vsel %vm2247_vm6, %v11784_v9, 0.0  ;;  %v1959_v5 = vadd.f32 %v1703_v34, %v1121_v4  ;;  %vm3085_vm7 = vcmp.eq.s32.totalorder %v15549_v24, %v11793_v22 }
 0x50c   : > { %v4345_v1 = vadd.f32 %v4089_v19, %v3507_v33  ;;  %vm3923_vm9 = vcmp.eq.s32.totalorder %v15549_v24, %v11802_v3  ;;  %v5765_v60 = vsel %vm5471_vm2, %v11838_v53, 0.0  ;;  %v3379_v28 = vsel %vm3085_vm7, %v11799_v46, 0.0 }
 0x50d   : > { %v6990_v13 = vadd.f32 %v6734_v50, %v6152_v56  ;;  %vm4761_vm10 = vcmp.eq.s32.totalorder %v15549_v24, %v11817_v36  ;;  %v6603_v29 = vsel %vm6309_vm3, %v11848_v18, 0.0  ;;  %v2797_v40 = vadd.f32 %v2541_v17, %v1959_v5 }
 0x50e   : > { %v5183_v39 = vadd.f32 %v4927_v27, %v4345_v1  ;;  %v4217_v43 = vsel %vm3923_vm9, %v11809_v15, 0.0  ;;  %v5055_v35 = vsel %vm4761_vm10, %v11823_v42, 0.0  ;;  %vm5599_vm8 = vcmp.eq.s32.totalorder %v15549_v24, %v11830_v11 }
 0x50f   : > { %7248 = vmatpush2.msra.mxu1 %v6990_v13  ;;  %vm698_vm11 = vcmp.eq.s32.totalorder %v15548_v0, %v11880_v47  ;;  %vm1280_vm12 = vcmp.eq.s32.totalorder %v15548_v0, %v11888_v32  ;;  %v3635_v51 = vadd.f32 %v3379_v28, %v2797_v40  ;;  %vm6437_vm13 = vcmp.eq.s32.totalorder %v15549_v24, %v11845_v10 }
 0x510   : > { %v6021_v30 = vadd.f32 %v5765_v60, %v5183_v39  ;;  %v992_v37 = vsel %vm698_vm11, %v11901_v16, 0.0  ;;  %v1574_v59 = vsel %vm1280_vm12, %v11918_v31, 0.0  ;;  %vm2118_vm14 = vcmp.eq.s32.totalorder %v15548_v0, %v11896_v49 }
 0x511   : > { %vm2956_vm15 = vcmp.eq.s32.totalorder %v15548_v0, %v11913_v48  ;;  %vm3794_vm0 = vcmp.eq.s32.totalorder %v15548_v0, %v11941_v2  ;;  %v4473_v25 = vadd.f32 %v4217_v43, %v3635_v51  ;;  %v1830_v50 = vadd.f32 %v1574_v59, %v992_v37  ;;  %v15550_v59 = vld [vmem:[#allocation45_spill] sm:$0xff] }
 0x512   : > { %v6859_v23 = vadd.f32 %v6603_v29, %v6021_v30  ;;  %v2412_v12 = vsel %vm2118_vm14, %v11907_v7, 0.0  ;;  %v5893_v19 = vsel %vm5599_vm8, %v11838_v53, 0.0  ;;  %v6731_v61 = vsel %vm6437_vm13, %v11848_v18, 0.0 }
 0x513   : > { %v3250_v27 = vsel %vm2956_vm15, %v11934_v55, 0.0  ;;  %vm4632_vm1 = vcmp.eq.s32.totalorder %v15548_v0, %v11950_v14  ;;  %v5311_v33 = vadd.f32 %v5055_v35, %v4473_v25  ;;  %v2668_v56 = vadd.f32 %v2412_v12, %v1830_v50 }
 0x514   : > { %7178 = vmatprep.subr.mxu0 %v6859_v23  ;;  %v4088_v4 = vsel %vm3794_vm0, %v11944_v57, 0.0  ;;  %vm5470_vm2 = vcmp.eq.s32.totalorder %v15548_v0, %v11958_v21  ;;  %v4926_v34 = vsel %vm4632_vm1, %v11953_v58, 0.0  ;;  %vm826_vm3 = vcmp.eq.s32.totalorder %v15549_v24, %v11880_v47 }
 0x515   : > { %vm1408_vm4 = vcmp.eq.s32.totalorder %v15549_v24, %v11888_v32  ;;  %vm2246_vm5 = vcmp.eq.s32.totalorder %v15549_v24, %v11896_v49  ;;  %v6149_v17 = vadd.f32 %v5893_v19, %v5311_v33  ;;  %v3506_v1 = vadd.f32 %v3250_v27, %v2668_v56 }
 0x516   : > { %vm6308_vm6 = vcmp.eq.s32.totalorder %v15548_v0, %v11976_v8  ;;  %v1120_v5 = vsel %vm826_vm3, %v11901_v16, 0.0  ;;  %v1702_v13 = vsel %vm1408_vm4, %v11918_v31, 0.0  ;;  %v2540_v60 = vsel %vm2246_vm5, %v11907_v7, 0.0 }
 0x517   : > { %vm3084_vm7 = vcmp.eq.s32.totalorder %v15549_v24, %v11913_v48  ;;  %vm3922_vm9 = vcmp.eq.s32.totalorder %v15549_v24, %v11941_v2  ;;  %v6987_v28 = vadd.f32 %v6731_v61, %v6149_v17  ;;  %v4344_v39 = vadd.f32 %v4088_v4, %v3506_v1 }
 0x518   : > { %v5764_v29 = vsel %vm5470_vm2, %v11971_v44, 0.0  ;;  %v1958_v40 = vadd.f32 %v1702_v13, %v1120_v5  ;;  %v6602_v43 = vsel %vm6308_vm6, %v11984_v54, 0.0  ;;  %v3378_v0 = vsel %vm3084_vm7, %v11934_v55, 0.0 }
 0x519   : > { %v4216_v35 = vsel %vm3922_vm9, %v11944_v57, 0.0  ;;  %vm4760_vm10 = vcmp.eq.s32.totalorder %v15549_v24, %v11950_v14  ;;  %7249 = vmatprep.subr.mxu1 %v6987_v28  ;;  %v5182_v30 = vadd.f32 %v4926_v34, %v4344_v39  ;;  %vm5598_vm8 = vcmp.eq.s32.totalorder %v15549_v24, %v11958_v21 }
 0x51a   : > { %v2796_v51 = vadd.f32 %v2540_v60, %v1958_v40  ;;  %vm6436_vm11 = vcmp.eq.s32.totalorder %v15549_v24, %v11976_v8  ;;  %v5054_v37 = vsel %vm4760_vm10, %v11953_v58, 0.0  ;;  %vm695_vm12 = vcmp.eq.s32.totalorder %v15550_v59, %v11751_v38  ;;  %v15551_v24 = vld [vmem:[#allocation46_spill] sm:$0xff] }
 0x51b   : > { %vm1277_vm13 = vcmp.eq.s32.totalorder %v15550_v59, %v11759_v62  ;;  %vm2115_vm14 = vcmp.eq.s32.totalorder %v15550_v59, %v11778_v45  ;;  %v6020_v23 = vadd.f32 %v5764_v29, %v5182_v30  ;;  %v989_v50 = vsel %vm695_vm12, %v11756_v52, 0.0 }
 0x51c   : > { %v3634_v25 = vadd.f32 %v3378_v0, %v2796_v51  ;;  %v1571_v12 = vsel %vm1277_vm13, %v11762_v20, 0.0  ;;  %v2409_v61 = vsel %vm2115_vm14, %v11784_v9, 0.0  ;;  %vm2953_vm15 = vcmp.eq.s32.totalorder %v15550_v59, %v11793_v22 }
 0x51d   : > { %v1827_v19 = vadd.f32 %v1571_v12, %v989_v50  ;;  %vm3791_vm0 = vcmp.eq.s32.totalorder %v15550_v59, %v11802_v3  ;;  %v6858_v27 = vadd.f32 %v6602_v43, %v6020_v23  ;;  %v5892_v56 = vsel %vm5598_vm8, %v11971_v44, 0.0 }
 0x51e   : > { %v4472_v33 = vadd.f32 %v4216_v35, %v3634_v25  ;;  %v3247_v4 = vsel %vm2953_vm15, %v11799_v46, 0.0  ;;  %v6730_v34 = vsel %vm6436_vm11, %v11984_v54, 0.0  ;;  %v4085_v1 = vsel %vm3791_vm0, %v11809_v15, 0.0 }
 0x51f   : > { %v2665_v17 = vadd.f32 %v2409_v61, %v1827_v19  ;;  %vm4629_vm1 = vcmp.eq.s32.totalorder %v15550_v59, %v11817_v36  ;;  %7179 = vmatpush2.msra.mxu0 %v6858_v27  ;;  %vm5467_vm2 = vcmp.eq.s32.totalorder %v15550_v59, %v11830_v11  ;;  %vm6305_vm3 = vcmp.eq.s32.totalorder %v15550_v59, %v11845_v10 }
 0x520   : > { %v5310_v5 = vadd.f32 %v5054_v37, %v4472_v33  ;;  %v4923_v13 = vsel %vm4629_vm1, %v11823_v42, 0.0  ;;  %vm823_vm4 = vcmp.eq.s32.totalorder %v15551_v24, %v11751_v38  ;;  %vm1405_vm5 = vcmp.eq.s32.totalorder %v15551_v24, %v11759_v62 }
 0x521   : > { %v3503_v60 = vadd.f32 %v3247_v4, %v2665_v17  ;;  %vm2243_vm6 = vcmp.eq.s32.totalorder %v15551_v24, %v11778_v45  ;;  %v1117_v39 = vsel %vm823_vm4, %v11756_v52, 0.0  ;;  %v1699_v29 = vsel %vm1405_vm5, %v11762_v20, 0.0 }
 0x522   : > { %v6148_v28 = vadd.f32 %v5892_v56, %v5310_v5  ;;  %v2537_v40 = vsel %vm2243_vm6, %v11784_v9, 0.0  ;;  %v1955_v0 = vadd.f32 %v1699_v29, %v1117_v39  ;;  %vm3081_vm7 = vcmp.eq.s32.totalorder %v15551_v24, %v11793_v22 }
 0x523   : > { %v4341_v43 = vadd.f32 %v4085_v1, %v3503_v60  ;;  %vm3919_vm9 = vcmp.eq.s32.totalorder %v15551_v24, %v11802_v3  ;;  %v5761_v30 = vsel %vm5467_vm2, %v11838_v53, 0.0  ;;  %v3375_v51 = vsel %vm3081_vm7, %v11799_v46, 0.0 }
 0x524   : > { %v6986_v35 = vadd.f32 %v6730_v34, %v6148_v28  ;;  %vm4757_vm10 = vcmp.eq.s32.totalorder %v15551_v24, %v11817_v36  ;;  %v6599_v23 = vsel %vm6305_vm3, %v11848_v18, 0.0  ;;  %v2793_v25 = vadd.f32 %v2537_v40, %v1955_v0 }
 0x525   : > { %v5179_v37 = vadd.f32 %v4923_v13, %v4341_v43  ;;  %v4213_v50 = vsel %vm3919_vm9, %v11809_v15, 0.0  ;;  %v5051_v12 = vsel %vm4757_vm10, %v11823_v42, 0.0  ;;  %vm5595_vm8 = vcmp.eq.s32.totalorder %v15551_v24, %v11830_v11 }
 0x526   : > { %7250 = vmatpush2.msra.mxu1 %v6986_v35  ;;  %vm694_vm11 = vcmp.eq.s32.totalorder %v15550_v59, %v11880_v47  ;;  %vm1276_vm12 = vcmp.eq.s32.totalorder %v15550_v59, %v11888_v32  ;;  %v3631_v61 = vadd.f32 %v3375_v51, %v2793_v25  ;;  %vm6433_vm13 = vcmp.eq.s32.totalorder %v15551_v24, %v11845_v10 }
 0x527   : > { %v6017_v19 = vadd.f32 %v5761_v30, %v5179_v37  ;;  %v988_v27 = vsel %vm694_vm11, %v11901_v16, 0.0  ;;  %v1570_v33 = vsel %vm1276_vm12, %v11918_v31, 0.0  ;;  %vm2114_vm14 = vcmp.eq.s32.totalorder %v15550_v59, %v11896_v49 }
 0x528   : > { %vm2952_vm15 = vcmp.eq.s32.totalorder %v15550_v59, %v11913_v48  ;;  %vm3790_vm0 = vcmp.eq.s32.totalorder %v15550_v59, %v11941_v2  ;;  %v4469_v4 = vadd.f32 %v4213_v50, %v3631_v61  ;;  %v1826_v34 = vadd.f32 %v1570_v33, %v988_v27  ;;  %v15552_v33 = vld [vmem:[#allocation47_spill] sm:$0xff] }
 0x529   : > { %v6855_v56 = vadd.f32 %v6599_v23, %v6017_v19  ;;  %v2408_v17 = vsel %vm2114_vm14, %v11907_v7, 0.0  ;;  %v5889_v1 = vsel %vm5595_vm8, %v11838_v53, 0.0  ;;  %v6727_v5 = vsel %vm6433_vm13, %v11848_v18, 0.0 }
 0x52a   : > { %v3246_v13 = vsel %vm2952_vm15, %v11934_v55, 0.0  ;;  %vm4628_vm1 = vcmp.eq.s32.totalorder %v15550_v59, %v11950_v14  ;;  %v5307_v60 = vadd.f32 %v5051_v12, %v4469_v4  ;;  %v2664_v28 = vadd.f32 %v2408_v17, %v1826_v34 }
 0x52b   : > { %7180 = vmatprep.subr.mxu0 %v6855_v56  ;;  %v4084_v39 = vsel %vm3790_vm0, %v11944_v57, 0.0  ;;  %vm5466_vm2 = vcmp.eq.s32.totalorder %v15550_v59, %v11958_v21  ;;  %v4922_v29 = vsel %vm4628_vm1, %v11953_v58, 0.0  ;;  %vm822_vm3 = vcmp.eq.s32.totalorder %v15551_v24, %v11880_v47 }
 0x52c   : > { %vm1404_vm4 = vcmp.eq.s32.totalorder %v15551_v24, %v11888_v32  ;;  %vm2242_vm5 = vcmp.eq.s32.totalorder %v15551_v24, %v11896_v49  ;;  %v6145_v40 = vadd.f32 %v5889_v1, %v5307_v60  ;;  %v3502_v43 = vadd.f32 %v3246_v13, %v2664_v28 }
 0x52d   : > { %vm6304_vm6 = vcmp.eq.s32.totalorder %v15550_v59, %v11976_v8  ;;  %v1116_v0 = vsel %vm822_vm3, %v11901_v16, 0.0  ;;  %v1698_v35 = vsel %vm1404_vm4, %v11918_v31, 0.0  ;;  %v2536_v30 = vsel %vm2242_vm5, %v11907_v7, 0.0 }
 0x52e   : > { %vm3080_vm7 = vcmp.eq.s32.totalorder %v15551_v24, %v11913_v48  ;;  %vm3918_vm9 = vcmp.eq.s32.totalorder %v15551_v24, %v11941_v2  ;;  %v6983_v51 = vadd.f32 %v6727_v5, %v6145_v40  ;;  %v4340_v37 = vadd.f32 %v4084_v39, %v3502_v43 }
 0x52f   : > { %v5760_v23 = vsel %vm5466_vm2, %v11971_v44, 0.0  ;;  %v1954_v25 = vadd.f32 %v1698_v35, %v1116_v0  ;;  %v6598_v50 = vsel %vm6304_vm6, %v11984_v54, 0.0  ;;  %v3374_v59 = vsel %vm3080_vm7, %v11934_v55, 0.0 }
 0x530   : > { %v4212_v12 = vsel %vm3918_vm9, %v11944_v57, 0.0  ;;  %vm4756_vm10 = vcmp.eq.s32.totalorder %v15551_v24, %v11950_v14  ;;  %7251 = vmatprep.subr.mxu1 %v6983_v51  ;;  %v5178_v19 = vadd.f32 %v4922_v29, %v4340_v37  ;;  %vm5594_vm8 = vcmp.eq.s32.totalorder %v15551_v24, %v11958_v21 }
 0x531   : > { %v2792_v61 = vadd.f32 %v2536_v30, %v1954_v25  ;;  %vm6432_vm11 = vcmp.eq.s32.totalorder %v15551_v24, %v11976_v8  ;;  %v5050_v27 = vsel %vm4756_vm10, %v11953_v58, 0.0  ;;  %vm691_vm12 = vcmp.eq.s32.totalorder %v15552_v33, %v11751_v38  ;;  %v15553_v24 = vld [vmem:[#allocation48_spill] sm:$0xff] }
 0x532   : > { %vm1273_vm13 = vcmp.eq.s32.totalorder %v15552_v33, %v11759_v62  ;;  %vm2111_vm14 = vcmp.eq.s32.totalorder %v15552_v33, %v11778_v45  ;;  %v6016_v56 = vadd.f32 %v5760_v23, %v5178_v19  ;;  %v985_v34 = vsel %vm691_vm12, %v11756_v52, 0.0 }
 0x533   : > { %v3630_v4 = vadd.f32 %v3374_v59, %v2792_v61  ;;  %v1567_v17 = vsel %vm1273_vm13, %v11762_v20, 0.0  ;;  %v2405_v5 = vsel %vm2111_vm14, %v11784_v9, 0.0  ;;  %vm2949_vm15 = vcmp.eq.s32.totalorder %v15552_v33, %v11793_v22 }
 0x534   : > { %v1823_v1 = vadd.f32 %v1567_v17, %v985_v34  ;;  %vm3787_vm0 = vcmp.eq.s32.totalorder %v15552_v33, %v11802_v3  ;;  %v6854_v13 = vadd.f32 %v6598_v50, %v6016_v56  ;;  %v5888_v28 = vsel %vm5594_vm8, %v11971_v44, 0.0 }
 0x535   : > { %v4468_v60 = vadd.f32 %v4212_v12, %v3630_v4  ;;  %v3243_v39 = vsel %vm2949_vm15, %v11799_v46, 0.0  ;;  %v6726_v29 = vsel %vm6432_vm11, %v11984_v54, 0.0  ;;  %v4081_v43 = vsel %vm3787_vm0, %v11809_v15, 0.0 }
 0x536   : > { %v2661_v40 = vadd.f32 %v2405_v5, %v1823_v1  ;;  %vm4625_vm1 = vcmp.eq.s32.totalorder %v15552_v33, %v11817_v36  ;;  %7181 = vmatpush2.msra.mxu0 %v6854_v13  ;;  %vm5463_vm2 = vcmp.eq.s32.totalorder %v15552_v33, %v11830_v11  ;;  %vm6301_vm3 = vcmp.eq.s32.totalorder %v15552_v33, %v11845_v10 }
 0x537   : > { %v5306_v0 = vadd.f32 %v5050_v27, %v4468_v60  ;;  %v4919_v35 = vsel %vm4625_vm1, %v11823_v42, 0.0  ;;  %vm819_vm4 = vcmp.eq.s32.totalorder %v15553_v24, %v11751_v38  ;;  %vm1401_vm5 = vcmp.eq.s32.totalorder %v15553_v24, %v11759_v62 }
 0x538   : > { %v3499_v30 = vadd.f32 %v3243_v39, %v2661_v40  ;;  %vm2239_vm6 = vcmp.eq.s32.totalorder %v15553_v24, %v11778_v45  ;;  %v1113_v37 = vsel %vm819_vm4, %v11756_v52, 0.0  ;;  %v1695_v23 = vsel %vm1401_vm5, %v11762_v20, 0.0 }
 0x539   : > { %v6144_v51 = vadd.f32 %v5888_v28, %v5306_v0  ;;  %v2533_v25 = vsel %vm2239_vm6, %v11784_v9, 0.0  ;;  %v1951_v59 = vadd.f32 %v1695_v23, %v1113_v37  ;;  %vm3077_vm7 = vcmp.eq.s32.totalorder %v15553_v24, %v11793_v22 }
 0x53a   : > { %v4337_v50 = vadd.f32 %v4081_v43, %v3499_v30  ;;  %vm3915_vm9 = vcmp.eq.s32.totalorder %v15553_v24, %v11802_v3  ;;  %v5757_v19 = vsel %vm5463_vm2, %v11838_v53, 0.0  ;;  %v3371_v61 = vsel %vm3077_vm7, %v11799_v46, 0.0 }
 0x53b   : > { %v6982_v12 = vadd.f32 %v6726_v29, %v6144_v51  ;;  %vm4753_vm10 = vcmp.eq.s32.totalorder %v15553_v24, %v11817_v36  ;;  %v6595_v56 = vsel %vm6301_vm3, %v11848_v18, 0.0  ;;  %v2789_v4 = vadd.f32 %v2533_v25, %v1951_v59 }
 0x53c   : > { %v5175_v27 = vadd.f32 %v4919_v35, %v4337_v50  ;;  %v4209_v34 = vsel %vm3915_vm9, %v11809_v15, 0.0  ;;  %v5047_v17 = vsel %vm4753_vm10, %v11823_v42, 0.0  ;;  %vm5591_vm8 = vcmp.eq.s32.totalorder %v15553_v24, %v11830_v11 }
 0x53d   : > { %7252 = vmatpush2.msra.mxu1 %v6982_v12  ;;  %vm690_vm11 = vcmp.eq.s32.totalorder %v15552_v33, %v11880_v47  ;;  %vm1272_vm12 = vcmp.eq.s32.totalorder %v15552_v33, %v11888_v32  ;;  %v3627_v5 = vadd.f32 %v3371_v61, %v2789_v4  ;;  %vm6429_vm13 = vcmp.eq.s32.totalorder %v15553_v24, %v11845_v10 }
 0x53e   : > { %v6013_v1 = vadd.f32 %v5757_v19, %v5175_v27  ;;  %v984_v13 = vsel %vm690_vm11, %v11901_v16, 0.0  ;;  %v1566_v60 = vsel %vm1272_vm12, %v11918_v31, 0.0  ;;  %vm2110_vm14 = vcmp.eq.s32.totalorder %v15552_v33, %v11896_v49 }
 0x53f   : > { %vm2948_vm15 = vcmp.eq.s32.totalorder %v15552_v33, %v11913_v48  ;;  %vm3786_vm0 = vcmp.eq.s32.totalorder %v15552_v33, %v11941_v2  ;;  %v4465_v39 = vadd.f32 %v4209_v34, %v3627_v5  ;;  %v1822_v29 = vadd.f32 %v1566_v60, %v984_v13  ;;  %v15554_v60 = vld [vmem:[#allocation49_spill] sm:$0xff] }
 0x540   : > { %v6851_v28 = vadd.f32 %v6595_v56, %v6013_v1  ;;  %v2404_v40 = vsel %vm2110_vm14, %v11907_v7, 0.0  ;;  %v5885_v43 = vsel %vm5591_vm8, %v11838_v53, 0.0  ;;  %v6723_v0 = vsel %vm6429_vm13, %v11848_v18, 0.0 }
 0x541   : > { %v3242_v35 = vsel %vm2948_vm15, %v11934_v55, 0.0  ;;  %vm4624_vm1 = vcmp.eq.s32.totalorder %v15552_v33, %v11950_v14  ;;  %v5303_v30 = vadd.f32 %v5047_v17, %v4465_v39  ;;  %v2660_v51 = vadd.f32 %v2404_v40, %v1822_v29 }
 0x542   : > { %7182 = vmatprep.subr.mxu0 %v6851_v28  ;;  %v4080_v37 = vsel %vm3786_vm0, %v11944_v57, 0.0  ;;  %vm5462_vm2 = vcmp.eq.s32.totalorder %v15552_v33, %v11958_v21  ;;  %v4918_v23 = vsel %vm4624_vm1, %v11953_v58, 0.0  ;;  %vm818_vm3 = vcmp.eq.s32.totalorder %v15553_v24, %v11880_v47 }
 0x543   : > { %vm1400_vm4 = vcmp.eq.s32.totalorder %v15553_v24, %v11888_v32  ;;  %vm2238_vm5 = vcmp.eq.s32.totalorder %v15553_v24, %v11896_v49  ;;  %v6141_v25 = vadd.f32 %v5885_v43, %v5303_v30  ;;  %v3498_v50 = vadd.f32 %v3242_v35, %v2660_v51 }
 0x544   : > { %vm6300_vm6 = vcmp.eq.s32.totalorder %v15552_v33, %v11976_v8  ;;  %v1112_v59 = vsel %vm818_vm3, %v11901_v16, 0.0  ;;  %v1694_v12 = vsel %vm1400_vm4, %v11918_v31, 0.0  ;;  %v2532_v19 = vsel %vm2238_vm5, %v11907_v7, 0.0 }
 0x545   : > { %vm3076_vm7 = vcmp.eq.s32.totalorder %v15553_v24, %v11913_v48  ;;  %vm3914_vm9 = vcmp.eq.s32.totalorder %v15553_v24, %v11941_v2  ;;  %v6979_v61 = vadd.f32 %v6723_v0, %v6141_v25  ;;  %v4336_v27 = vadd.f32 %v4080_v37, %v3498_v50 }
 0x546   : > { %v5756_v56 = vsel %vm5462_vm2, %v11971_v44, 0.0  ;;  %v1950_v4 = vadd.f32 %v1694_v12, %v1112_v59  ;;  %v6594_v34 = vsel %vm6300_vm6, %v11984_v54, 0.0  ;;  %v3370_v33 = vsel %vm3076_vm7, %v11934_v55, 0.0 }
 0x547   : > { %v4208_v17 = vsel %vm3914_vm9, %v11944_v57, 0.0  ;;  %vm4752_vm10 = vcmp.eq.s32.totalorder %v15553_v24, %v11950_v14  ;;  %7253 = vmatprep.subr.mxu1 %v6979_v61  ;;  %v5174_v1 = vadd.f32 %v4918_v23, %v4336_v27  ;;  %vm5590_vm8 = vcmp.eq.s32.totalorder %v15553_v24, %v11958_v21 }
 0x548   : > { %v2788_v5 = vadd.f32 %v2532_v19, %v1950_v4  ;;  %vm6428_vm11 = vcmp.eq.s32.totalorder %v15553_v24, %v11976_v8  ;;  %v5046_v13 = vsel %vm4752_vm10, %v11953_v58, 0.0  ;;  %vm687_vm12 = vcmp.eq.s32.totalorder %v15554_v60, %v11751_v38  ;;  %v15555_v24 = vld [vmem:[#allocation50_spill] sm:$0xff] }
 0x549   : > { %vm1269_vm13 = vcmp.eq.s32.totalorder %v15554_v60, %v11759_v62  ;;  %vm2107_vm14 = vcmp.eq.s32.totalorder %v15554_v60, %v11778_v45  ;;  %v6012_v28 = vadd.f32 %v5756_v56, %v5174_v1  ;;  %v981_v29 = vsel %vm687_vm12, %v11756_v52, 0.0 }
 0x54a   : > { %v3626_v39 = vadd.f32 %v3370_v33, %v2788_v5  ;;  %v1563_v40 = vsel %vm1269_vm13, %v11762_v20, 0.0  ;;  %v2401_v0 = vsel %vm2107_vm14, %v11784_v9, 0.0  ;;  %vm2945_vm15 = vcmp.eq.s32.totalorder %v15554_v60, %v11793_v22 }
 0x54b   : > { %v1819_v43 = vadd.f32 %v1563_v40, %v981_v29  ;;  %vm3783_vm0 = vcmp.eq.s32.totalorder %v15554_v60, %v11802_v3  ;;  %v6850_v35 = vadd.f32 %v6594_v34, %v6012_v28  ;;  %v5884_v51 = vsel %vm5590_vm8, %v11971_v44, 0.0 }
 0x54c   : > { %v4464_v30 = vadd.f32 %v4208_v17, %v3626_v39  ;;  %v3239_v37 = vsel %vm2945_vm15, %v11799_v46, 0.0  ;;  %v6722_v23 = vsel %vm6428_vm11, %v11984_v54, 0.0  ;;  %v4077_v50 = vsel %vm3783_vm0, %v11809_v15, 0.0 }
 0x54d   : > { %v2657_v25 = vadd.f32 %v2401_v0, %v1819_v43  ;;  %vm4621_vm1 = vcmp.eq.s32.totalorder %v15554_v60, %v11817_v36  ;;  %7183 = vmatpush2.msra.mxu0 %v6850_v35  ;;  %vm5459_vm2 = vcmp.eq.s32.totalorder %v15554_v60, %v11830_v11  ;;  %vm6297_vm3 = vcmp.eq.s32.totalorder %v15554_v60, %v11845_v10 }
 0x54e   : > { %v5302_v59 = vadd.f32 %v5046_v13, %v4464_v30  ;;  %v4915_v12 = vsel %vm4621_vm1, %v11823_v42, 0.0  ;;  %vm815_vm4 = vcmp.eq.s32.totalorder %v15555_v24, %v11751_v38  ;;  %vm1397_vm5 = vcmp.eq.s32.totalorder %v15555_v24, %v11759_v62 }
 0x54f   : > { %v3495_v19 = vadd.f32 %v3239_v37, %v2657_v25  ;;  %vm2235_vm6 = vcmp.eq.s32.totalorder %v15555_v24, %v11778_v45  ;;  %v1109_v27 = vsel %vm815_vm4, %v11756_v52, 0.0  ;;  %v1691_v56 = vsel %vm1397_vm5, %v11762_v20, 0.0 }
 0x550   : > { %v6140_v61 = vadd.f32 %v5884_v51, %v5302_v59  ;;  %v2529_v4 = vsel %vm2235_vm6, %v11784_v9, 0.0  ;;  %v1947_v33 = vadd.f32 %v1691_v56, %v1109_v27  ;;  %vm3073_vm7 = vcmp.eq.s32.totalorder %v15555_v24, %v11793_v22 }
 0x551   : > { %v4333_v34 = vadd.f32 %v4077_v50, %v3495_v19  ;;  %vm3911_vm9 = vcmp.eq.s32.totalorder %v15555_v24, %v11802_v3  ;;  %v5753_v1 = vsel %vm5459_vm2, %v11838_v53, 0.0  ;;  %v3367_v5 = vsel %vm3073_vm7, %v11799_v46, 0.0 }
 0x552   : > { %v6978_v17 = vadd.f32 %v6722_v23, %v6140_v61  ;;  %vm4749_vm10 = vcmp.eq.s32.totalorder %v15555_v24, %v11817_v36  ;;  %v6591_v28 = vsel %vm6297_vm3, %v11848_v18, 0.0  ;;  %v2785_v39 = vadd.f32 %v2529_v4, %v1947_v33 }
 0x553   : > { %v5171_v13 = vadd.f32 %v4915_v12, %v4333_v34  ;;  %v4205_v29 = vsel %vm3911_vm9, %v11809_v15, 0.0  ;;  %v5043_v40 = vsel %vm4749_vm10, %v11823_v42, 0.0  ;;  %vm5587_vm8 = vcmp.eq.s32.totalorder %v15555_v24, %v11830_v11 }
 0x554   : > { %7254 = vmatpush2.msra.mxu1 %v6978_v17  ;;  %vm686_vm11 = vcmp.eq.s32.totalorder %v15554_v60, %v11880_v47  ;;  %vm1268_vm12 = vcmp.eq.s32.totalorder %v15554_v60, %v11888_v32  ;;  %v3623_v0 = vadd.f32 %v3367_v5, %v2785_v39  ;;  %vm6425_vm13 = vcmp.eq.s32.totalorder %v15555_v24, %v11845_v10 }
 0x555   : > { %v6009_v43 = vadd.f32 %v5753_v1, %v5171_v13  ;;  %v980_v35 = vsel %vm686_vm11, %v11901_v16, 0.0  ;;  %v1562_v30 = vsel %vm1268_vm12, %v11918_v31, 0.0  ;;  %vm2106_vm14 = vcmp.eq.s32.totalorder %v15554_v60, %v11896_v49 }
 0x556   : > { %vm2944_vm15 = vcmp.eq.s32.totalorder %v15554_v60, %v11913_v48  ;;  %vm3782_vm0 = vcmp.eq.s32.totalorder %v15554_v60, %v11941_v2  ;;  %v4461_v37 = vadd.f32 %v4205_v29, %v3623_v0  ;;  %v1818_v23 = vadd.f32 %v1562_v30, %v980_v35  ;;  %v15556_v30 = vld [vmem:[#allocation51_spill] sm:$0xff] }
 0x557   : > { %v6847_v51 = vadd.f32 %v6591_v28, %v6009_v43  ;;  %v2400_v25 = vsel %vm2106_vm14, %v11907_v7, 0.0  ;;  %v5881_v50 = vsel %vm5587_vm8, %v11838_v53, 0.0  ;;  %v6719_v59 = vsel %vm6425_vm13, %v11848_v18, 0.0 }
 0x558   : > { %v3238_v12 = vsel %vm2944_vm15, %v11934_v55, 0.0  ;;  %vm4620_vm1 = vcmp.eq.s32.totalorder %v15554_v60, %v11950_v14  ;;  %v5299_v19 = vadd.f32 %v5043_v40, %v4461_v37  ;;  %v2656_v61 = vadd.f32 %v2400_v25, %v1818_v23 }
 0x559   : > { %7184 = vmatprep.subr.mxu0 %v6847_v51  ;;  %v4076_v27 = vsel %vm3782_vm0, %v11944_v57, 0.0  ;;  %vm5458_vm2 = vcmp.eq.s32.totalorder %v15554_v60, %v11958_v21  ;;  %v4914_v56 = vsel %vm4620_vm1, %v11953_v58, 0.0  ;;  %vm814_vm3 = vcmp.eq.s32.totalorder %v15555_v24, %v11880_v47 }
 0x55a   : > { %vm1396_vm4 = vcmp.eq.s32.totalorder %v15555_v24, %v11888_v32  ;;  %vm2234_vm5 = vcmp.eq.s32.totalorder %v15555_v24, %v11896_v49  ;;  %v6137_v4 = vadd.f32 %v5881_v50, %v5299_v19  ;;  %v3494_v34 = vadd.f32 %v3238_v12, %v2656_v61 }
 0x55b   : > { %vm6296_vm6 = vcmp.eq.s32.totalorder %v15554_v60, %v11976_v8  ;;  %v1108_v33 = vsel %vm814_vm3, %v11901_v16, 0.0  ;;  %v1690_v17 = vsel %vm1396_vm4, %v11918_v31, 0.0  ;;  %v2528_v1 = vsel %vm2234_vm5, %v11907_v7, 0.0 }
 0x55c   : > { %vm3072_vm7 = vcmp.eq.s32.totalorder %v15555_v24, %v11913_v48  ;;  %vm3910_vm9 = vcmp.eq.s32.totalorder %v15555_v24, %v11941_v2  ;;  %v6975_v5 = vadd.f32 %v6719_v59, %v6137_v4  ;;  %v4332_v13 = vadd.f32 %v4076_v27, %v3494_v34 }
 0x55d   : > { %v5752_v28 = vsel %vm5458_vm2, %v11971_v44, 0.0  ;;  %v1946_v39 = vadd.f32 %v1690_v17, %v1108_v33  ;;  %v6590_v29 = vsel %vm6296_vm6, %v11984_v54, 0.0  ;;  %v3366_v60 = vsel %vm3072_vm7, %v11934_v55, 0.0 }
 0x55e   : > { %v4204_v40 = vsel %vm3910_vm9, %v11944_v57, 0.0  ;;  %vm4748_vm10 = vcmp.eq.s32.totalorder %v15555_v24, %v11950_v14  ;;  %7255 = vmatprep.subr.mxu1 %v6975_v5  ;;  %v5170_v43 = vadd.f32 %v4914_v56, %v4332_v13  ;;  %vm5586_vm8 = vcmp.eq.s32.totalorder %v15555_v24, %v11958_v21 }
 0x55f   : > { %v2784_v0 = vadd.f32 %v2528_v1, %v1946_v39  ;;  %vm6424_vm11 = vcmp.eq.s32.totalorder %v15555_v24, %v11976_v8  ;;  %v5042_v35 = vsel %vm4748_vm10, %v11953_v58, 0.0  ;;  %vm683_vm12 = vcmp.eq.s32.totalorder %v15556_v30, %v11751_v38  ;;  %v15557_v24 = vld [vmem:[#allocation52_spill] sm:$0xff] }
 0x560   : > { %vm1265_vm13 = vcmp.eq.s32.totalorder %v15556_v30, %v11759_v62  ;;  %vm2103_vm14 = vcmp.eq.s32.totalorder %v15556_v30, %v11778_v45  ;;  %v6008_v51 = vadd.f32 %v5752_v28, %v5170_v43  ;;  %v977_v23 = vsel %vm683_vm12, %v11756_v52, 0.0 }
 0x561   : > { %v3622_v37 = vadd.f32 %v3366_v60, %v2784_v0  ;;  %v1559_v25 = vsel %vm1265_vm13, %v11762_v20, 0.0  ;;  %v2397_v59 = vsel %vm2103_vm14, %v11784_v9, 0.0  ;;  %vm2941_vm15 = vcmp.eq.s32.totalorder %v15556_v30, %v11793_v22 }
 0x562   : > { %v1815_v50 = vadd.f32 %v1559_v25, %v977_v23  ;;  %vm3779_vm0 = vcmp.eq.s32.totalorder %v15556_v30, %v11802_v3  ;;  %v6846_v12 = vadd.f32 %v6590_v29, %v6008_v51  ;;  %v5880_v61 = vsel %vm5586_vm8, %v11971_v44, 0.0 }
 0x563   : > { %v4460_v19 = vadd.f32 %v4204_v40, %v3622_v37  ;;  %v3235_v27 = vsel %vm2941_vm15, %v11799_v46, 0.0  ;;  %v6718_v56 = vsel %vm6424_vm11, %v11984_v54, 0.0  ;;  %v4073_v34 = vsel %vm3779_vm0, %v11809_v15, 0.0 }
 0x564   : > { %v2653_v4 = vadd.f32 %v2397_v59, %v1815_v50  ;;  %vm4617_vm1 = vcmp.eq.s32.totalorder %v15556_v30, %v11817_v36  ;;  %7185 = vmatpush2.msra.mxu0 %v6846_v12  ;;  %vm5455_vm2 = vcmp.eq.s32.totalorder %v15556_v30, %v11830_v11  ;;  %vm6293_vm3 = vcmp.eq.s32.totalorder %v15556_v30, %v11845_v10 }
 0x565   : > { %v5298_v33 = vadd.f32 %v5042_v35, %v4460_v19  ;;  %v4911_v17 = vsel %vm4617_vm1, %v11823_v42, 0.0  ;;  %vm811_vm4 = vcmp.eq.s32.totalorder %v15557_v24, %v11751_v38  ;;  %vm1393_vm5 = vcmp.eq.s32.totalorder %v15557_v24, %v11759_v62 }
 0x566   : > { %v3491_v1 = vadd.f32 %v3235_v27, %v2653_v4  ;;  %vm2231_vm6 = vcmp.eq.s32.totalorder %v15557_v24, %v11778_v45  ;;  %v1105_v13 = vsel %vm811_vm4, %v11756_v52, 0.0  ;;  %v1687_v28 = vsel %vm1393_vm5, %v11762_v20, 0.0 }
 0x567   : > { %v6136_v5 = vadd.f32 %v5880_v61, %v5298_v33  ;;  %v2525_v39 = vsel %vm2231_vm6, %v11784_v9, 0.0  ;;  %v1943_v60 = vadd.f32 %v1687_v28, %v1105_v13  ;;  %vm3069_vm7 = vcmp.eq.s32.totalorder %v15557_v24, %v11793_v22 }
 0x568   : > { %v4329_v29 = vadd.f32 %v4073_v34, %v3491_v1  ;;  %vm3907_vm9 = vcmp.eq.s32.totalorder %v15557_v24, %v11802_v3  ;;  %v5749_v43 = vsel %vm5455_vm2, %v11838_v53, 0.0  ;;  %v3363_v0 = vsel %vm3069_vm7, %v11799_v46, 0.0 }
 0x569   : > { %v6974_v40 = vadd.f32 %v6718_v56, %v6136_v5  ;;  %vm4745_vm10 = vcmp.eq.s32.totalorder %v15557_v24, %v11817_v36  ;;  %v6587_v51 = vsel %vm6293_vm3, %v11848_v18, 0.0  ;;  %v2781_v37 = vadd.f32 %v2525_v39, %v1943_v60 }
 0x56a   : > { %v5167_v35 = vadd.f32 %v4911_v17, %v4329_v29  ;;  %v4201_v23 = vsel %vm3907_vm9, %v11809_v15, 0.0  ;;  %v5039_v25 = vsel %vm4745_vm10, %v11823_v42, 0.0  ;;  %vm5583_vm8 = vcmp.eq.s32.totalorder %v15557_v24, %v11830_v11 }
 0x56b   : > { %7256 = vmatpush2.msra.mxu1 %v6974_v40  ;;  %vm682_vm11 = vcmp.eq.s32.totalorder %v15556_v30, %v11880_v47  ;;  %vm1264_vm12 = vcmp.eq.s32.totalorder %v15556_v30, %v11888_v32  ;;  %v3619_v59 = vadd.f32 %v3363_v0, %v2781_v37  ;;  %vm6421_vm13 = vcmp.eq.s32.totalorder %v15557_v24, %v11845_v10 }
 0x56c   : > { %v6005_v50 = vadd.f32 %v5749_v43, %v5167_v35  ;;  %v976_v12 = vsel %vm682_vm11, %v11901_v16, 0.0  ;;  %v1558_v19 = vsel %vm1264_vm12, %v11918_v31, 0.0  ;;  %vm2102_vm14 = vcmp.eq.s32.totalorder %v15556_v30, %v11896_v49 }
 0x56d   : > { %vm2940_vm15 = vcmp.eq.s32.totalorder %v15556_v30, %v11913_v48  ;;  %vm3778_vm0 = vcmp.eq.s32.totalorder %v15556_v30, %v11941_v2  ;;  %v4457_v27 = vadd.f32 %v4201_v23, %v3619_v59  ;;  %v1814_v56 = vadd.f32 %v1558_v19, %v976_v12  ;;  %v15558_v19 = vld [vmem:[#allocation53_spill] sm:$0xff] }
 0x56e   : > { %v6843_v61 = vadd.f32 %v6587_v51, %v6005_v50  ;;  %v2396_v4 = vsel %vm2102_vm14, %v11907_v7, 0.0  ;;  %v5877_v34 = vsel %vm5583_vm8, %v11838_v53, 0.0  ;;  %v6715_v33 = vsel %vm6421_vm13, %v11848_v18, 0.0 }
 0x56f   : > { %v3234_v17 = vsel %vm2940_vm15, %v11934_v55, 0.0  ;;  %vm4616_vm1 = vcmp.eq.s32.totalorder %v15556_v30, %v11950_v14  ;;  %v5295_v1 = vadd.f32 %v5039_v25, %v4457_v27  ;;  %v2652_v5 = vadd.f32 %v2396_v4, %v1814_v56 }
 0x570   : > { %7186 = vmatprep.subr.mxu0 %v6843_v61  ;;  %v4072_v13 = vsel %vm3778_vm0, %v11944_v57, 0.0  ;;  %vm5454_vm2 = vcmp.eq.s32.totalorder %v15556_v30, %v11958_v21  ;;  %v4910_v28 = vsel %vm4616_vm1, %v11953_v58, 0.0  ;;  %vm810_vm3 = vcmp.eq.s32.totalorder %v15557_v24, %v11880_v47 }
 0x571   : > { %vm1392_vm4 = vcmp.eq.s32.totalorder %v15557_v24, %v11888_v32  ;;  %vm2230_vm5 = vcmp.eq.s32.totalorder %v15557_v24, %v11896_v49  ;;  %v6133_v39 = vadd.f32 %v5877_v34, %v5295_v1  ;;  %v3490_v29 = vadd.f32 %v3234_v17, %v2652_v5 }
 0x572   : > { %vm6292_vm6 = vcmp.eq.s32.totalorder %v15556_v30, %v11976_v8  ;;  %v1104_v60 = vsel %vm810_vm3, %v11901_v16, 0.0  ;;  %v1686_v40 = vsel %vm1392_vm4, %v11918_v31, 0.0  ;;  %v2524_v43 = vsel %vm2230_vm5, %v11907_v7, 0.0 }
 0x573   : > { %vm3068_vm7 = vcmp.eq.s32.totalorder %v15557_v24, %v11913_v48  ;;  %vm3906_vm9 = vcmp.eq.s32.totalorder %v15557_v24, %v11941_v2  ;;  %v6971_v0 = vadd.f32 %v6715_v33, %v6133_v39  ;;  %v4328_v35 = vadd.f32 %v4072_v13, %v3490_v29 }
 0x574   : > { %v5748_v51 = vsel %vm5454_vm2, %v11971_v44, 0.0  ;;  %v1942_v37 = vadd.f32 %v1686_v40, %v1104_v60  ;;  %v6586_v23 = vsel %vm6292_vm6, %v11984_v54, 0.0  ;;  %v3362_v30 = vsel %vm3068_vm7, %v11934_v55, 0.0 }
 0x575   : > { %v4200_v25 = vsel %vm3906_vm9, %v11944_v57, 0.0  ;;  %vm4744_vm10 = vcmp.eq.s32.totalorder %v15557_v24, %v11950_v14  ;;  %7257 = vmatprep.subr.mxu1 %v6971_v0  ;;  %v5166_v50 = vadd.f32 %v4910_v28, %v4328_v35  ;;  %vm5582_vm8 = vcmp.eq.s32.totalorder %v15557_v24, %v11958_v21 }
 0x576   : > { %v2780_v59 = vadd.f32 %v2524_v43, %v1942_v37  ;;  %vm6420_vm11 = vcmp.eq.s32.totalorder %v15557_v24, %v11976_v8  ;;  %v5038_v12 = vsel %vm4744_vm10, %v11953_v58, 0.0  ;;  %vm679_vm12 = vcmp.eq.s32.totalorder %v15558_v19, %v11751_v38  ;;  %v15559_v24 = vld [vmem:[#allocation54_spill] sm:$0xff] }
 0x577   : > { %vm1261_vm13 = vcmp.eq.s32.totalorder %v15558_v19, %v11759_v62  ;;  %vm2099_vm14 = vcmp.eq.s32.totalorder %v15558_v19, %v11778_v45  ;;  %v6004_v61 = vadd.f32 %v5748_v51, %v5166_v50  ;;  %v973_v56 = vsel %vm679_vm12, %v11756_v52, 0.0 }
 0x578   : > { %v3618_v27 = vadd.f32 %v3362_v30, %v2780_v59  ;;  %v1555_v4 = vsel %vm1261_vm13, %v11762_v20, 0.0  ;;  %v2393_v33 = vsel %vm2099_vm14, %v11784_v9, 0.0  ;;  %vm2937_vm15 = vcmp.eq.s32.totalorder %v15558_v19, %v11793_v22 }
 0x579   : > { %v1811_v34 = vadd.f32 %v1555_v4, %v973_v56  ;;  %vm3775_vm0 = vcmp.eq.s32.totalorder %v15558_v19, %v11802_v3  ;;  %v6842_v17 = vadd.f32 %v6586_v23, %v6004_v61  ;;  %v5876_v5 = vsel %vm5582_vm8, %v11971_v44, 0.0 }
 0x57a   : > { %v4456_v1 = vadd.f32 %v4200_v25, %v3618_v27  ;;  %v3231_v13 = vsel %vm2937_vm15, %v11799_v46, 0.0  ;;  %v6714_v28 = vsel %vm6420_vm11, %v11984_v54, 0.0  ;;  %v4069_v29 = vsel %vm3775_vm0, %v11809_v15, 0.0 }
 0x57b   : > { %v2649_v39 = vadd.f32 %v2393_v33, %v1811_v34  ;;  %vm4613_vm1 = vcmp.eq.s32.totalorder %v15558_v19, %v11817_v36  ;;  %7187 = vmatpush2.msra.mxu0 %v6842_v17  ;;  %vm5451_vm2 = vcmp.eq.s32.totalorder %v15558_v19, %v11830_v11  ;;  %vm6289_vm3 = vcmp.eq.s32.totalorder %v15558_v19, %v11845_v10 }
 0x57c   : > { %v5294_v60 = vadd.f32 %v5038_v12, %v4456_v1  ;;  %v4907_v40 = vsel %vm4613_vm1, %v11823_v42, 0.0  ;;  %vm807_vm4 = vcmp.eq.s32.totalorder %v15559_v24, %v11751_v38  ;;  %vm1389_vm5 = vcmp.eq.s32.totalorder %v15559_v24, %v11759_v62 }
 0x57d   : > { %v3487_v43 = vadd.f32 %v3231_v13, %v2649_v39  ;;  %vm2227_vm6 = vcmp.eq.s32.totalorder %v15559_v24, %v11778_v45  ;;  %v1101_v35 = vsel %vm807_vm4, %v11756_v52, 0.0  ;;  %v1683_v51 = vsel %vm1389_vm5, %v11762_v20, 0.0 }
 0x57e   : > { %v6132_v0 = vadd.f32 %v5876_v5, %v5294_v60  ;;  %v2521_v37 = vsel %vm2227_vm6, %v11784_v9, 0.0  ;;  %v1939_v30 = vadd.f32 %v1683_v51, %v1101_v35  ;;  %vm3065_vm7 = vcmp.eq.s32.totalorder %v15559_v24, %v11793_v22 }
 0x57f   : > { %v4325_v23 = vadd.f32 %v4069_v29, %v3487_v43  ;;  %vm3903_vm9 = vcmp.eq.s32.totalorder %v15559_v24, %v11802_v3  ;;  %v5745_v50 = vsel %vm5451_vm2, %v11838_v53, 0.0  ;;  %v3359_v59 = vsel %vm3065_vm7, %v11799_v46, 0.0 }
 0x580   : > { %v6970_v25 = vadd.f32 %v6714_v28, %v6132_v0  ;;  %vm4741_vm10 = vcmp.eq.s32.totalorder %v15559_v24, %v11817_v36  ;;  %v6583_v61 = vsel %vm6289_vm3, %v11848_v18, 0.0  ;;  %v2777_v27 = vadd.f32 %v2521_v37, %v1939_v30 }
 0x581   : > { %v5163_v12 = vadd.f32 %v4907_v40, %v4325_v23  ;;  %v4197_v56 = vsel %vm3903_vm9, %v11809_v15, 0.0  ;;  %v5035_v4 = vsel %vm4741_vm10, %v11823_v42, 0.0  ;;  %vm5579_vm8 = vcmp.eq.s32.totalorder %v15559_v24, %v11830_v11 }
 0x582   : > { %7258 = vmatpush2.msra.mxu1 %v6970_v25  ;;  %vm678_vm11 = vcmp.eq.s32.totalorder %v15558_v19, %v11880_v47  ;;  %vm1260_vm12 = vcmp.eq.s32.totalorder %v15558_v19, %v11888_v32  ;;  %v3615_v33 = vadd.f32 %v3359_v59, %v2777_v27  ;;  %vm6417_vm13 = vcmp.eq.s32.totalorder %v15559_v24, %v11845_v10 }
 0x583   : > { %v6001_v34 = vadd.f32 %v5745_v50, %v5163_v12  ;;  %v972_v17 = vsel %vm678_vm11, %v11901_v16, 0.0  ;;  %v1554_v1 = vsel %vm1260_vm12, %v11918_v31, 0.0  ;;  %vm2098_vm14 = vcmp.eq.s32.totalorder %v15558_v19, %v11896_v49 }
 0x584   : > { %vm2936_vm15 = vcmp.eq.s32.totalorder %v15558_v19, %v11913_v48  ;;  %vm3774_vm0 = vcmp.eq.s32.totalorder %v15558_v19, %v11941_v2  ;;  %v4453_v13 = vadd.f32 %v4197_v56, %v3615_v33  ;;  %v1810_v28 = vadd.f32 %v1554_v1, %v972_v17  ;;  %v15560_v1 = vld [vmem:[#allocation55_spill] sm:$0xff] }
 0x585   : > { %v6839_v5 = vadd.f32 %v6583_v61, %v6001_v34  ;;  %v2392_v39 = vsel %vm2098_vm14, %v11907_v7, 0.0  ;;  %v5873_v29 = vsel %vm5579_vm8, %v11838_v53, 0.0  ;;  %v6711_v60 = vsel %vm6417_vm13, %v11848_v18, 0.0 }
 0x586   : > { %v3230_v40 = vsel %vm2936_vm15, %v11934_v55, 0.0  ;;  %vm4612_vm1 = vcmp.eq.s32.totalorder %v15558_v19, %v11950_v14  ;;  %v5291_v43 = vadd.f32 %v5035_v4, %v4453_v13  ;;  %v2648_v0 = vadd.f32 %v2392_v39, %v1810_v28 }
 0x587   : > { %7188 = vmatprep.subr.mxu0 %v6839_v5  ;;  %v4068_v35 = vsel %vm3774_vm0, %v11944_v57, 0.0  ;;  %vm5450_vm2 = vcmp.eq.s32.totalorder %v15558_v19, %v11958_v21  ;;  %v4906_v51 = vsel %vm4612_vm1, %v11953_v58, 0.0  ;;  %vm806_vm3 = vcmp.eq.s32.totalorder %v15559_v24, %v11880_v47 }
 0x588   : > { %vm1388_vm4 = vcmp.eq.s32.totalorder %v15559_v24, %v11888_v32  ;;  %vm2226_vm5 = vcmp.eq.s32.totalorder %v15559_v24, %v11896_v49  ;;  %v6129_v37 = vadd.f32 %v5873_v29, %v5291_v43  ;;  %v3486_v23 = vadd.f32 %v3230_v40, %v2648_v0 }
 0x589   : > { %vm6288_vm6 = vcmp.eq.s32.totalorder %v15558_v19, %v11976_v8  ;;  %v1100_v30 = vsel %vm806_vm3, %v11901_v16, 0.0  ;;  %v1682_v25 = vsel %vm1388_vm4, %v11918_v31, 0.0  ;;  %v2520_v50 = vsel %vm2226_vm5, %v11907_v7, 0.0 }
 0x58a   : > { %vm3064_vm7 = vcmp.eq.s32.totalorder %v15559_v24, %v11913_v48  ;;  %vm3902_vm9 = vcmp.eq.s32.totalorder %v15559_v24, %v11941_v2  ;;  %v6967_v59 = vadd.f32 %v6711_v60, %v6129_v37  ;;  %v4324_v12 = vadd.f32 %v4068_v35, %v3486_v23 }
 0x58b   : > { %v5744_v61 = vsel %vm5450_vm2, %v11971_v44, 0.0  ;;  %v1938_v27 = vadd.f32 %v1682_v25, %v1100_v30  ;;  %v6582_v56 = vsel %vm6288_vm6, %v11984_v54, 0.0  ;;  %v3358_v19 = vsel %vm3064_vm7, %v11934_v55, 0.0 }
 0x58c   : > { %v4196_v4 = vsel %vm3902_vm9, %v11944_v57, 0.0  ;;  %vm4740_vm10 = vcmp.eq.s32.totalorder %v15559_v24, %v11950_v14  ;;  %7259 = vmatprep.subr.mxu1 %v6967_v59  ;;  %v5162_v34 = vadd.f32 %v4906_v51, %v4324_v12  ;;  %vm5578_vm8 = vcmp.eq.s32.totalorder %v15559_v24, %v11958_v21 }
 0x58d   : > { %v2776_v33 = vadd.f32 %v2520_v50, %v1938_v27  ;;  %vm6416_vm11 = vcmp.eq.s32.totalorder %v15559_v24, %v11976_v8  ;;  %v5034_v17 = vsel %vm4740_vm10, %v11953_v58, 0.0  ;;  %vm675_vm12 = vcmp.eq.s32.totalorder %v15560_v1, %v11751_v38  ;;  %v15561_v24 = vld [vmem:[#allocation56_spill] sm:$0xff] }
 0x58e   : > { %vm1257_vm13 = vcmp.eq.s32.totalorder %v15560_v1, %v11759_v62  ;;  %vm2095_vm14 = vcmp.eq.s32.totalorder %v15560_v1, %v11778_v45  ;;  %v6000_v5 = vadd.f32 %v5744_v61, %v5162_v34  ;;  %v969_v28 = vsel %vm675_vm12, %v11756_v52, 0.0 }
 0x58f   : > { %v3614_v13 = vadd.f32 %v3358_v19, %v2776_v33  ;;  %v1551_v39 = vsel %vm1257_vm13, %v11762_v20, 0.0  ;;  %v2389_v60 = vsel %vm2095_vm14, %v11784_v9, 0.0  ;;  %vm2933_vm15 = vcmp.eq.s32.totalorder %v15560_v1, %v11793_v22 }
 0x590   : > { %v1807_v29 = vadd.f32 %v1551_v39, %v969_v28  ;;  %vm3771_vm0 = vcmp.eq.s32.totalorder %v15560_v1, %v11802_v3  ;;  %v6838_v40 = vadd.f32 %v6582_v56, %v6000_v5  ;;  %v5872_v0 = vsel %vm5578_vm8, %v11971_v44, 0.0 }
 0x591   : > { %v4452_v43 = vadd.f32 %v4196_v4, %v3614_v13  ;;  %v3227_v35 = vsel %vm2933_vm15, %v11799_v46, 0.0  ;;  %v6710_v51 = vsel %vm6416_vm11, %v11984_v54, 0.0  ;;  %v4065_v23 = vsel %vm3771_vm0, %v11809_v15, 0.0 }
 0x592   : > { %v2645_v37 = vadd.f32 %v2389_v60, %v1807_v29  ;;  %vm4609_vm1 = vcmp.eq.s32.totalorder %v15560_v1, %v11817_v36  ;;  %7189 = vmatpush2.msra.mxu0 %v6838_v40  ;;  %vm5447_vm2 = vcmp.eq.s32.totalorder %v15560_v1, %v11830_v11  ;;  %vm6285_vm3 = vcmp.eq.s32.totalorder %v15560_v1, %v11845_v10 }
 0x593   : > { %v5290_v30 = vadd.f32 %v5034_v17, %v4452_v43  ;;  %v4903_v25 = vsel %vm4609_vm1, %v11823_v42, 0.0  ;;  %vm803_vm4 = vcmp.eq.s32.totalorder %v15561_v24, %v11751_v38  ;;  %vm1385_vm5 = vcmp.eq.s32.totalorder %v15561_v24, %v11759_v62 }
 0x594   : > { %v3483_v50 = vadd.f32 %v3227_v35, %v2645_v37  ;;  %vm2223_vm6 = vcmp.eq.s32.totalorder %v15561_v24, %v11778_v45  ;;  %v1097_v12 = vsel %vm803_vm4, %v11756_v52, 0.0  ;;  %v1679_v61 = vsel %vm1385_vm5, %v11762_v20, 0.0 }
 0x595   : > { %v6128_v59 = vadd.f32 %v5872_v0, %v5290_v30  ;;  %v2517_v27 = vsel %vm2223_vm6, %v11784_v9, 0.0  ;;  %v1935_v19 = vadd.f32 %v1679_v61, %v1097_v12  ;;  %vm3061_vm7 = vcmp.eq.s32.totalorder %v15561_v24, %v11793_v22 }
 0x596   : > { %v4321_v56 = vadd.f32 %v4065_v23, %v3483_v50  ;;  %vm3899_vm9 = vcmp.eq.s32.totalorder %v15561_v24, %v11802_v3  ;;  %v5741_v34 = vsel %vm5447_vm2, %v11838_v53, 0.0  ;;  %v3355_v33 = vsel %vm3061_vm7, %v11799_v46, 0.0 }
 0x597   : > { %v6966_v4 = vadd.f32 %v6710_v51, %v6128_v59  ;;  %vm4737_vm10 = vcmp.eq.s32.totalorder %v15561_v24, %v11817_v36  ;;  %v6579_v5 = vsel %vm6285_vm3, %v11848_v18, 0.0  ;;  %v2773_v13 = vadd.f32 %v2517_v27, %v1935_v19 }
 0x598   : > { %v5159_v17 = vadd.f32 %v4903_v25, %v4321_v56  ;;  %v4193_v28 = vsel %vm3899_vm9, %v11809_v15, 0.0  ;;  %v5031_v39 = vsel %vm4737_vm10, %v11823_v42, 0.0  ;;  %vm5575_vm8 = vcmp.eq.s32.totalorder %v15561_v24, %v11830_v11 }
 0x599   : > { %7260 = vmatpush2.msra.mxu1 %v6966_v4  ;;  %vm674_vm11 = vcmp.eq.s32.totalorder %v15560_v1, %v11880_v47  ;;  %vm1256_vm12 = vcmp.eq.s32.totalorder %v15560_v1, %v11888_v32  ;;  %v3611_v60 = vadd.f32 %v3355_v33, %v2773_v13  ;;  %vm6413_vm13 = vcmp.eq.s32.totalorder %v15561_v24, %v11845_v10 }
 0x59a   : > { %v5997_v29 = vadd.f32 %v5741_v34, %v5159_v17  ;;  %v968_v40 = vsel %vm674_vm11, %v11901_v16, 0.0  ;;  %v1550_v43 = vsel %vm1256_vm12, %v11918_v31, 0.0  ;;  %vm2094_vm14 = vcmp.eq.s32.totalorder %v15560_v1, %v11896_v49 }
 0x59b   : > { %vm2932_vm15 = vcmp.eq.s32.totalorder %v15560_v1, %v11913_v48  ;;  %vm3770_vm0 = vcmp.eq.s32.totalorder %v15560_v1, %v11941_v2  ;;  %v4449_v35 = vadd.f32 %v4193_v28, %v3611_v60  ;;  %v1806_v51 = vadd.f32 %v1550_v43, %v968_v40  ;;  %v15562_v43 = vld [vmem:[#allocation57_spill] sm:$0xff] }
 0x59c   : > { %v6835_v0 = vadd.f32 %v6579_v5, %v5997_v29  ;;  %v2388_v37 = vsel %vm2094_vm14, %v11907_v7, 0.0  ;;  %v5869_v23 = vsel %vm5575_vm8, %v11838_v53, 0.0  ;;  %v6707_v30 = vsel %vm6413_vm13, %v11848_v18, 0.0 }
 0x59d   : > { %v3226_v25 = vsel %vm2932_vm15, %v11934_v55, 0.0  ;;  %vm4608_vm1 = vcmp.eq.s32.totalorder %v15560_v1, %v11950_v14  ;;  %v5287_v50 = vadd.f32 %v5031_v39, %v4449_v35  ;;  %v2644_v59 = vadd.f32 %v2388_v37, %v1806_v51 }
 0x59e   : > { %7190 = vmatprep.subr.mxu0 %v6835_v0  ;;  %v4064_v12 = vsel %vm3770_vm0, %v11944_v57, 0.0  ;;  %vm5446_vm2 = vcmp.eq.s32.totalorder %v15560_v1, %v11958_v21  ;;  %v4902_v61 = vsel %vm4608_vm1, %v11953_v58, 0.0  ;;  %vm802_vm3 = vcmp.eq.s32.totalorder %v15561_v24, %v11880_v47 }
 0x59f   : > { %vm1384_vm4 = vcmp.eq.s32.totalorder %v15561_v24, %v11888_v32  ;;  %vm2222_vm5 = vcmp.eq.s32.totalorder %v15561_v24, %v11896_v49  ;;  %v6125_v27 = vadd.f32 %v5869_v23, %v5287_v50  ;;  %v3482_v56 = vadd.f32 %v3226_v25, %v2644_v59 }
 0x5a0   : > { %vm6284_vm6 = vcmp.eq.s32.totalorder %v15560_v1, %v11976_v8  ;;  %v1096_v19 = vsel %vm802_vm3, %v11901_v16, 0.0  ;;  %v1678_v4 = vsel %vm1384_vm4, %v11918_v31, 0.0  ;;  %v2516_v34 = vsel %vm2222_vm5, %v11907_v7, 0.0 }
 0x5a1   : > { %vm3060_vm7 = vcmp.eq.s32.totalorder %v15561_v24, %v11913_v48  ;;  %vm3898_vm9 = vcmp.eq.s32.totalorder %v15561_v24, %v11941_v2  ;;  %v6963_v33 = vadd.f32 %v6707_v30, %v6125_v27  ;;  %v4320_v17 = vadd.f32 %v4064_v12, %v3482_v56 }
 0x5a2   : > { %v5740_v5 = vsel %vm5446_vm2, %v11971_v44, 0.0  ;;  %v1934_v13 = vadd.f32 %v1678_v4, %v1096_v19  ;;  %v6578_v28 = vsel %vm6284_vm6, %v11984_v54, 0.0  ;;  %v3354_v1 = vsel %vm3060_vm7, %v11934_v55, 0.0 }
 0x5a3   : > { %v4192_v39 = vsel %vm3898_vm9, %v11944_v57, 0.0  ;;  %vm4736_vm10 = vcmp.eq.s32.totalorder %v15561_v24, %v11950_v14  ;;  %7261 = vmatprep.subr.mxu1 %v6963_v33  ;;  %v5158_v29 = vadd.f32 %v4902_v61, %v4320_v17  ;;  %vm5574_vm8 = vcmp.eq.s32.totalorder %v15561_v24, %v11958_v21 }
 0x5a4   : > { %v2772_v60 = vadd.f32 %v2516_v34, %v1934_v13  ;;  %vm6412_vm11 = vcmp.eq.s32.totalorder %v15561_v24, %v11976_v8  ;;  %v5030_v40 = vsel %vm4736_vm10, %v11953_v58, 0.0  ;;  %vm671_vm12 = vcmp.eq.s32.totalorder %v15562_v43, %v11751_v38  ;;  %v15563_v24 = vld [vmem:[#allocation58_spill] sm:$0xff] }
 0x5a5   : > { %vm1253_vm13 = vcmp.eq.s32.totalorder %v15562_v43, %v11759_v62  ;;  %vm2091_vm14 = vcmp.eq.s32.totalorder %v15562_v43, %v11778_v45  ;;  %v5996_v0 = vadd.f32 %v5740_v5, %v5158_v29  ;;  %v965_v51 = vsel %vm671_vm12, %v11756_v52, 0.0 }
 0x5a6   : > { %v3610_v35 = vadd.f32 %v3354_v1, %v2772_v60  ;;  %v1547_v37 = vsel %vm1253_vm13, %v11762_v20, 0.0  ;;  %v2385_v30 = vsel %vm2091_vm14, %v11784_v9, 0.0  ;;  %vm2929_vm15 = vcmp.eq.s32.totalorder %v15562_v43, %v11793_v22 }
 0x5a7   : > { %v1803_v23 = vadd.f32 %v1547_v37, %v965_v51  ;;  %vm3767_vm0 = vcmp.eq.s32.totalorder %v15562_v43, %v11802_v3  ;;  %v6834_v25 = vadd.f32 %v6578_v28, %v5996_v0  ;;  %v5868_v59 = vsel %vm5574_vm8, %v11971_v44, 0.0 }
 0x5a8   : > { %v4448_v50 = vadd.f32 %v4192_v39, %v3610_v35  ;;  %v3223_v12 = vsel %vm2929_vm15, %v11799_v46, 0.0  ;;  %v6706_v61 = vsel %vm6412_vm11, %v11984_v54, 0.0  ;;  %v4061_v56 = vsel %vm3767_vm0, %v11809_v15, 0.0 }
 0x5a9   : > { %v2641_v27 = vadd.f32 %v2385_v30, %v1803_v23  ;;  %vm4605_vm1 = vcmp.eq.s32.totalorder %v15562_v43, %v11817_v36  ;;  %7191 = vmatpush2.msra.mxu0 %v6834_v25  ;;  %vm5443_vm2 = vcmp.eq.s32.totalorder %v15562_v43, %v11830_v11  ;;  %vm6281_vm3 = vcmp.eq.s32.totalorder %v15562_v43, %v11845_v10 }
 0x5aa   : > { %v5286_v19 = vadd.f32 %v5030_v40, %v4448_v50  ;;  %v4899_v4 = vsel %vm4605_vm1, %v11823_v42, 0.0  ;;  %vm799_vm4 = vcmp.eq.s32.totalorder %v15563_v24, %v11751_v38  ;;  %vm1381_vm5 = vcmp.eq.s32.totalorder %v15563_v24, %v11759_v62 }
 0x5ab   : > { %v3479_v34 = vadd.f32 %v3223_v12, %v2641_v27  ;;  %vm2219_vm6 = vcmp.eq.s32.totalorder %v15563_v24, %v11778_v45  ;;  %v1093_v17 = vsel %vm799_vm4, %v11756_v52, 0.0  ;;  %v1675_v5 = vsel %vm1381_vm5, %v11762_v20, 0.0 }
 0x5ac   : > { %v6124_v33 = vadd.f32 %v5868_v59, %v5286_v19  ;;  %v2513_v13 = vsel %vm2219_vm6, %v11784_v9, 0.0  ;;  %v1931_v1 = vadd.f32 %v1675_v5, %v1093_v17  ;;  %vm3057_vm7 = vcmp.eq.s32.totalorder %v15563_v24, %v11793_v22 }
 0x5ad   : > { %v4317_v28 = vadd.f32 %v4061_v56, %v3479_v34  ;;  %vm3895_vm9 = vcmp.eq.s32.totalorder %v15563_v24, %v11802_v3  ;;  %v5737_v29 = vsel %vm5443_vm2, %v11838_v53, 0.0  ;;  %v3351_v60 = vsel %vm3057_vm7, %v11799_v46, 0.0 }
 0x5ae   : > { %v6962_v39 = vadd.f32 %v6706_v61, %v6124_v33  ;;  %vm4733_vm10 = vcmp.eq.s32.totalorder %v15563_v24, %v11817_v36  ;;  %v6575_v0 = vsel %vm6281_vm3, %v11848_v18, 0.0  ;;  %v2769_v35 = vadd.f32 %v2513_v13, %v1931_v1 }
 0x5af   : > { %v5155_v40 = vadd.f32 %v4899_v4, %v4317_v28  ;;  %v4189_v51 = vsel %vm3895_vm9, %v11809_v15, 0.0  ;;  %v5027_v37 = vsel %vm4733_vm10, %v11823_v42, 0.0  ;;  %vm5571_vm8 = vcmp.eq.s32.totalorder %v15563_v24, %v11830_v11 }
 0x5b0   : > { %7262 = vmatpush2.msra.mxu1 %v6962_v39  ;;  %vm670_vm11 = vcmp.eq.s32.totalorder %v15562_v43, %v11880_v47  ;;  %vm1252_vm12 = vcmp.eq.s32.totalorder %v15562_v43, %v11888_v32  ;;  %v3607_v30 = vadd.f32 %v3351_v60, %v2769_v35  ;;  %vm6409_vm13 = vcmp.eq.s32.totalorder %v15563_v24, %v11845_v10 }
 0x5b1   : > { %v5993_v23 = vadd.f32 %v5737_v29, %v5155_v40  ;;  %v964_v25 = vsel %vm670_vm11, %v11901_v16, 0.0  ;;  %v1546_v50 = vsel %vm1252_vm12, %v11918_v31, 0.0  ;;  %vm2090_vm14 = vcmp.eq.s32.totalorder %v15562_v43, %v11896_v49 }
 0x5b2   : > { %vm2928_vm15 = vcmp.eq.s32.totalorder %v15562_v43, %v11913_v48  ;;  %vm3766_vm0 = vcmp.eq.s32.totalorder %v15562_v43, %v11941_v2  ;;  %v4445_v12 = vadd.f32 %v4189_v51, %v3607_v30  ;;  %v1802_v61 = vadd.f32 %v1546_v50, %v964_v25  ;;  %v15564_v50 = vld [vmem:[#allocation59_spill] sm:$0xff] }
 0x5b3   : > { %v6831_v59 = vadd.f32 %v6575_v0, %v5993_v23  ;;  %v2384_v27 = vsel %vm2090_vm14, %v11907_v7, 0.0  ;;  %v5865_v56 = vsel %vm5571_vm8, %v11838_v53, 0.0  ;;  %v6703_v19 = vsel %vm6409_vm13, %v11848_v18, 0.0 }
 0x5b4   : > { %v3222_v4 = vsel %vm2928_vm15, %v11934_v55, 0.0  ;;  %vm4604_vm1 = vcmp.eq.s32.totalorder %v15562_v43, %v11950_v14  ;;  %v5283_v34 = vadd.f32 %v5027_v37, %v4445_v12  ;;  %v2640_v33 = vadd.f32 %v2384_v27, %v1802_v61 }
 0x5b5   : > { %7192 = vmatprep.subr.mxu0 %v6831_v59  ;;  %v4060_v17 = vsel %vm3766_vm0, %v11944_v57, 0.0  ;;  %vm5442_vm2 = vcmp.eq.s32.totalorder %v15562_v43, %v11958_v21  ;;  %v4898_v5 = vsel %vm4604_vm1, %v11953_v58, 0.0  ;;  %vm798_vm3 = vcmp.eq.s32.totalorder %v15563_v24, %v11880_v47 }
 0x5b6   : > { %vm1380_vm4 = vcmp.eq.s32.totalorder %v15563_v24, %v11888_v32  ;;  %vm2218_vm5 = vcmp.eq.s32.totalorder %v15563_v24, %v11896_v49  ;;  %v6121_v13 = vadd.f32 %v5865_v56, %v5283_v34  ;;  %v3478_v28 = vadd.f32 %v3222_v4, %v2640_v33 }
 0x5b7   : > { %vm6280_vm6 = vcmp.eq.s32.totalorder %v15562_v43, %v11976_v8  ;;  %v1092_v1 = vsel %vm798_vm3, %v11901_v16, 0.0  ;;  %v1674_v39 = vsel %vm1380_vm4, %v11918_v31, 0.0  ;;  %v2512_v29 = vsel %vm2218_vm5, %v11907_v7, 0.0 }
 0x5b8   : > { %vm3056_vm7 = vcmp.eq.s32.totalorder %v15563_v24, %v11913_v48  ;;  %vm3894_vm9 = vcmp.eq.s32.totalorder %v15563_v24, %v11941_v2  ;;  %v6959_v60 = vadd.f32 %v6703_v19, %v6121_v13  ;;  %v4316_v40 = vadd.f32 %v4060_v17, %v3478_v28 }
 0x5b9   : > { %v5736_v0 = vsel %vm5442_vm2, %v11971_v44, 0.0  ;;  %v1930_v35 = vadd.f32 %v1674_v39, %v1092_v1  ;;  %v6574_v51 = vsel %vm6280_vm6, %v11984_v54, 0.0  ;;  %v3350_v43 = vsel %vm3056_vm7, %v11934_v55, 0.0 }
 0x5ba   : > { %v4188_v37 = vsel %vm3894_vm9, %v11944_v57, 0.0  ;;  %vm4732_vm10 = vcmp.eq.s32.totalorder %v15563_v24, %v11950_v14  ;;  %7263 = vmatprep.subr.mxu1 %v6959_v60  ;;  %v5154_v23 = vadd.f32 %v4898_v5, %v4316_v40  ;;  %vm5570_vm8 = vcmp.eq.s32.totalorder %v15563_v24, %v11958_v21 }
 0x5bb   : > { %v2768_v30 = vadd.f32 %v2512_v29, %v1930_v35  ;;  %vm6408_vm11 = vcmp.eq.s32.totalorder %v15563_v24, %v11976_v8  ;;  %v5026_v25 = vsel %vm4732_vm10, %v11953_v58, 0.0  ;;  %vm667_vm12 = vcmp.eq.s32.totalorder %v15564_v50, %v11751_v38  ;;  %v15565_v24 = vld [vmem:[#allocation60_spill] sm:$0xff] }
 0x5bc   : > { %vm1249_vm13 = vcmp.eq.s32.totalorder %v15564_v50, %v11759_v62  ;;  %vm2087_vm14 = vcmp.eq.s32.totalorder %v15564_v50, %v11778_v45  ;;  %v5992_v59 = vadd.f32 %v5736_v0, %v5154_v23  ;;  %v961_v61 = vsel %vm667_vm12, %v11756_v52, 0.0 }
 0x5bd   : > { %v3606_v12 = vadd.f32 %v3350_v43, %v2768_v30  ;;  %v1543_v27 = vsel %vm1249_vm13, %v11762_v20, 0.0  ;;  %v2381_v19 = vsel %vm2087_vm14, %v11784_v9, 0.0  ;;  %vm2925_vm15 = vcmp.eq.s32.totalorder %v15564_v50, %v11793_v22 }
 0x5be   : > { %v1799_v56 = vadd.f32 %v1543_v27, %v961_v61  ;;  %vm3763_vm0 = vcmp.eq.s32.totalorder %v15564_v50, %v11802_v3  ;;  %v6830_v4 = vadd.f32 %v6574_v51, %v5992_v59  ;;  %v5864_v33 = vsel %vm5570_vm8, %v11971_v44, 0.0 }
 0x5bf   : > { %v4444_v34 = vadd.f32 %v4188_v37, %v3606_v12  ;;  %v3219_v17 = vsel %vm2925_vm15, %v11799_v46, 0.0  ;;  %v6702_v5 = vsel %vm6408_vm11, %v11984_v54, 0.0  ;;  %v4057_v28 = vsel %vm3763_vm0, %v11809_v15, 0.0 }
 0x5c0   : > { %v2637_v13 = vadd.f32 %v2381_v19, %v1799_v56  ;;  %vm4601_vm1 = vcmp.eq.s32.totalorder %v15564_v50, %v11817_v36  ;;  %7193 = vmatpush2.msra.mxu0 %v6830_v4  ;;  %vm5439_vm2 = vcmp.eq.s32.totalorder %v15564_v50, %v11830_v11  ;;  %vm6277_vm3 = vcmp.eq.s32.totalorder %v15564_v50, %v11845_v10 }
 0x5c1   : > { %v5282_v1 = vadd.f32 %v5026_v25, %v4444_v34  ;;  %v4895_v39 = vsel %vm4601_vm1, %v11823_v42, 0.0  ;;  %vm795_vm4 = vcmp.eq.s32.totalorder %v15565_v24, %v11751_v38  ;;  %vm1377_vm5 = vcmp.eq.s32.totalorder %v15565_v24, %v11759_v62 }
 0x5c2   : > { %v3475_v29 = vadd.f32 %v3219_v17, %v2637_v13  ;;  %vm2215_vm6 = vcmp.eq.s32.totalorder %v15565_v24, %v11778_v45  ;;  %v1089_v40 = vsel %vm795_vm4, %v11756_v52, 0.0  ;;  %v1671_v0 = vsel %vm1377_vm5, %v11762_v20, 0.0 }
 0x5c3   : > { %v6120_v60 = vadd.f32 %v5864_v33, %v5282_v1  ;;  %v2509_v35 = vsel %vm2215_vm6, %v11784_v9, 0.0  ;;  %v1927_v43 = vadd.f32 %v1671_v0, %v1089_v40  ;;  %vm3053_vm7 = vcmp.eq.s32.totalorder %v15565_v24, %v11793_v22 }
 0x5c4   : > { %v4313_v51 = vadd.f32 %v4057_v28, %v3475_v29  ;;  %vm3891_vm9 = vcmp.eq.s32.totalorder %v15565_v24, %v11802_v3  ;;  %v5733_v23 = vsel %vm5439_vm2, %v11838_v53, 0.0  ;;  %v3347_v30 = vsel %vm3053_vm7, %v11799_v46, 0.0 }
 0x5c5   : > { %v6958_v37 = vadd.f32 %v6702_v5, %v6120_v60  ;;  %vm4729_vm10 = vcmp.eq.s32.totalorder %v15565_v24, %v11817_v36  ;;  %v6571_v59 = vsel %vm6277_vm3, %v11848_v18, 0.0  ;;  %v2765_v12 = vadd.f32 %v2509_v35, %v1927_v43 }
 0x5c6   : > { %v5151_v25 = vadd.f32 %v4895_v39, %v4313_v51  ;;  %v4185_v61 = vsel %vm3891_vm9, %v11809_v15, 0.0  ;;  %v5023_v27 = vsel %vm4729_vm10, %v11823_v42, 0.0  ;;  %vm5567_vm8 = vcmp.eq.s32.totalorder %v15565_v24, %v11830_v11 }
 0x5c7   : > { %7264 = vmatpush2.msra.mxu1 %v6958_v37  ;;  %vm666_vm11 = vcmp.eq.s32.totalorder %v15564_v50, %v11880_v47  ;;  %vm1248_vm12 = vcmp.eq.s32.totalorder %v15564_v50, %v11888_v32  ;;  %v3603_v19 = vadd.f32 %v3347_v30, %v2765_v12  ;;  %vm6405_vm13 = vcmp.eq.s32.totalorder %v15565_v24, %v11845_v10 }
 0x5c8   : > { %v5989_v56 = vadd.f32 %v5733_v23, %v5151_v25  ;;  %v960_v4 = vsel %vm666_vm11, %v11901_v16, 0.0  ;;  %v1542_v34 = vsel %vm1248_vm12, %v11918_v31, 0.0  ;;  %vm2086_vm14 = vcmp.eq.s32.totalorder %v15564_v50, %v11896_v49 }
 0x5c9   : > { %vm2924_vm15 = vcmp.eq.s32.totalorder %v15564_v50, %v11913_v48  ;;  %vm3762_vm0 = vcmp.eq.s32.totalorder %v15564_v50, %v11941_v2  ;;  %v4441_v17 = vadd.f32 %v4185_v61, %v3603_v19  ;;  %v1798_v5 = vadd.f32 %v1542_v34, %v960_v4  ;;  %v15566_v34 = vld [vmem:[#allocation61_spill] sm:$0xff] }
 0x5ca   : > { %v6827_v33 = vadd.f32 %v6571_v59, %v5989_v56  ;;  %v2380_v13 = vsel %vm2086_vm14, %v11907_v7, 0.0  ;;  %v5861_v28 = vsel %vm5567_vm8, %v11838_v53, 0.0  ;;  %v6699_v1 = vsel %vm6405_vm13, %v11848_v18, 0.0 }
 0x5cb   : > { %v3218_v39 = vsel %vm2924_vm15, %v11934_v55, 0.0  ;;  %vm4600_vm1 = vcmp.eq.s32.totalorder %v15564_v50, %v11950_v14  ;;  %v5279_v29 = vadd.f32 %v5023_v27, %v4441_v17  ;;  %v2636_v60 = vadd.f32 %v2380_v13, %v1798_v5 }
 0x5cc   : > { %7194 = vmatprep.subr.mxu0 %v6827_v33  ;;  %v4056_v40 = vsel %vm3762_vm0, %v11944_v57, 0.0  ;;  %vm5438_vm2 = vcmp.eq.s32.totalorder %v15564_v50, %v11958_v21  ;;  %v4894_v0 = vsel %vm4600_vm1, %v11953_v58, 0.0  ;;  %vm794_vm3 = vcmp.eq.s32.totalorder %v15565_v24, %v11880_v47 }
 0x5cd   : > { %vm1376_vm4 = vcmp.eq.s32.totalorder %v15565_v24, %v11888_v32  ;;  %vm2214_vm5 = vcmp.eq.s32.totalorder %v15565_v24, %v11896_v49  ;;  %v6117_v35 = vadd.f32 %v5861_v28, %v5279_v29  ;;  %v3474_v51 = vadd.f32 %v3218_v39, %v2636_v60 }
 0x5ce   : > { %vm6276_vm6 = vcmp.eq.s32.totalorder %v15564_v50, %v11976_v8  ;;  %v1088_v43 = vsel %vm794_vm3, %v11901_v16, 0.0  ;;  %v1670_v37 = vsel %vm1376_vm4, %v11918_v31, 0.0  ;;  %v2508_v23 = vsel %vm2214_vm5, %v11907_v7, 0.0 }
 0x5cf   : > { %vm3052_vm7 = vcmp.eq.s32.totalorder %v15565_v24, %v11913_v48  ;;  %vm3890_vm9 = vcmp.eq.s32.totalorder %v15565_v24, %v11941_v2  ;;  %v6955_v30 = vadd.f32 %v6699_v1, %v6117_v35  ;;  %v4312_v25 = vadd.f32 %v4056_v40, %v3474_v51 }
 0x5d0   : > { %v5732_v59 = vsel %vm5438_vm2, %v11971_v44, 0.0  ;;  %v1926_v12 = vadd.f32 %v1670_v37, %v1088_v43  ;;  %v6570_v61 = vsel %vm6276_vm6, %v11984_v54, 0.0  ;;  %v3346_v50 = vsel %vm3052_vm7, %v11934_v55, 0.0 }
 0x5d1   : > { %v4184_v27 = vsel %vm3890_vm9, %v11944_v57, 0.0  ;;  %vm4728_vm10 = vcmp.eq.s32.totalorder %v15565_v24, %v11950_v14  ;;  %7265 = vmatprep.subr.mxu1 %v6955_v30  ;;  %v5150_v56 = vadd.f32 %v4894_v0, %v4312_v25  ;;  %vm5566_vm8 = vcmp.eq.s32.totalorder %v15565_v24, %v11958_v21 }
 0x5d2   : > { %v2764_v19 = vadd.f32 %v2508_v23, %v1926_v12  ;;  %vm6404_vm11 = vcmp.eq.s32.totalorder %v15565_v24, %v11976_v8  ;;  %v5022_v4 = vsel %vm4728_vm10, %v11953_v58, 0.0  ;;  %vm663_vm12 = vcmp.eq.s32.totalorder %v15566_v34, %v11751_v38  ;;  %v15567_v24 = vld [vmem:[#allocation62_spill] sm:$0xff] }
 0x5d3   : > { %vm1245_vm13 = vcmp.eq.s32.totalorder %v15566_v34, %v11759_v62  ;;  %vm2083_vm14 = vcmp.eq.s32.totalorder %v15566_v34, %v11778_v45  ;;  %v5988_v33 = vadd.f32 %v5732_v59, %v5150_v56  ;;  %v957_v5 = vsel %vm663_vm12, %v11756_v52, 0.0 }
 0x5d4   : > { %v3602_v17 = vadd.f32 %v3346_v50, %v2764_v19  ;;  %v1539_v13 = vsel %vm1245_vm13, %v11762_v20, 0.0  ;;  %v2377_v1 = vsel %vm2083_vm14, %v11784_v9, 0.0  ;;  %vm2921_vm15 = vcmp.eq.s32.totalorder %v15566_v34, %v11793_v22 }
 0x5d5   : > { %v1795_v28 = vadd.f32 %v1539_v13, %v957_v5  ;;  %vm3759_vm0 = vcmp.eq.s32.totalorder %v15566_v34, %v11802_v3  ;;  %v6826_v39 = vadd.f32 %v6570_v61, %v5988_v33  ;;  %v5860_v60 = vsel %vm5566_vm8, %v11971_v44, 0.0 }
 0x5d6   : > { %v4440_v29 = vadd.f32 %v4184_v27, %v3602_v17  ;;  %v3215_v40 = vsel %vm2921_vm15, %v11799_v46, 0.0  ;;  %v6698_v0 = vsel %vm6404_vm11, %v11984_v54, 0.0  ;;  %v4053_v51 = vsel %vm3759_vm0, %v11809_v15, 0.0 }
 0x5d7   : > { %v2633_v35 = vadd.f32 %v2377_v1, %v1795_v28  ;;  %vm4597_vm1 = vcmp.eq.s32.totalorder %v15566_v34, %v11817_v36  ;;  %7195 = vmatpush2.msra.mxu0 %v6826_v39  ;;  %vm5435_vm2 = vcmp.eq.s32.totalorder %v15566_v34, %v11830_v11  ;;  %vm6273_vm3 = vcmp.eq.s32.totalorder %v15566_v34, %v11845_v10 }
 0x5d8   : > { %v5278_v43 = vadd.f32 %v5022_v4, %v4440_v29  ;;  %v4891_v37 = vsel %vm4597_vm1, %v11823_v42, 0.0  ;;  %vm791_vm4 = vcmp.eq.s32.totalorder %v15567_v24, %v11751_v38  ;;  %vm1373_vm5 = vcmp.eq.s32.totalorder %v15567_v24, %v11759_v62 }
 0x5d9   : > { %v3471_v23 = vadd.f32 %v3215_v40, %v2633_v35  ;;  %vm2211_vm6 = vcmp.eq.s32.totalorder %v15567_v24, %v11778_v45  ;;  %v1085_v25 = vsel %vm791_vm4, %v11756_v52, 0.0  ;;  %v1667_v59 = vsel %vm1373_vm5, %v11762_v20, 0.0 }
 0x5da   : > { %v6116_v30 = vadd.f32 %v5860_v60, %v5278_v43  ;;  %v2505_v12 = vsel %vm2211_vm6, %v11784_v9, 0.0  ;;  %v1923_v50 = vadd.f32 %v1667_v59, %v1085_v25  ;;  %vm3049_vm7 = vcmp.eq.s32.totalorder %v15567_v24, %v11793_v22 }
 0x5db   : > { %v4309_v61 = vadd.f32 %v4053_v51, %v3471_v23  ;;  %vm3887_vm9 = vcmp.eq.s32.totalorder %v15567_v24, %v11802_v3  ;;  %v5729_v56 = vsel %vm5435_vm2, %v11838_v53, 0.0  ;;  %v3343_v19 = vsel %vm3049_vm7, %v11799_v46, 0.0 }
 0x5dc   : > { %v6954_v27 = vadd.f32 %v6698_v0, %v6116_v30  ;;  %vm4725_vm10 = vcmp.eq.s32.totalorder %v15567_v24, %v11817_v36  ;;  %v6567_v33 = vsel %vm6273_vm3, %v11848_v18, 0.0  ;;  %v2761_v17 = vadd.f32 %v2505_v12, %v1923_v50 }
 0x5dd   : > { %v5147_v4 = vadd.f32 %v4891_v37, %v4309_v61  ;;  %v4181_v5 = vsel %vm3887_vm9, %v11809_v15, 0.0  ;;  %v5019_v13 = vsel %vm4725_vm10, %v11823_v42, 0.0  ;;  %vm5563_vm8 = vcmp.eq.s32.totalorder %v15567_v24, %v11830_v11 }
 0x5de   : > { %7266 = vmatpush2.msra.mxu1 %v6954_v27  ;;  %vm662_vm11 = vcmp.eq.s32.totalorder %v15566_v34, %v11880_v47  ;;  %vm1244_vm12 = vcmp.eq.s32.totalorder %v15566_v34, %v11888_v32  ;;  %v3599_v1 = vadd.f32 %v3343_v19, %v2761_v17  ;;  %vm6401_vm13 = vcmp.eq.s32.totalorder %v15567_v24, %v11845_v10 }
 0x5df   : > { %v5985_v28 = vadd.f32 %v5729_v56, %v5147_v4  ;;  %v956_v39 = vsel %vm662_vm11, %v11901_v16, 0.0  ;;  %v1538_v29 = vsel %vm1244_vm12, %v11918_v31, 0.0  ;;  %vm2082_vm14 = vcmp.eq.s32.totalorder %v15566_v34, %v11896_v49 }
 0x5e0   : > { %vm2920_vm15 = vcmp.eq.s32.totalorder %v15566_v34, %v11913_v48  ;;  %vm3758_vm0 = vcmp.eq.s32.totalorder %v15566_v34, %v11941_v2  ;;  %v4437_v40 = vadd.f32 %v4181_v5, %v3599_v1  ;;  %v1794_v0 = vadd.f32 %v1538_v29, %v956_v39  ;;  %v15568_v29 = vld [vmem:[#allocation63_spill] sm:$0xff] }
 0x5e1   : > { %v6823_v60 = vadd.f32 %v6567_v33, %v5985_v28  ;;  %v2376_v35 = vsel %vm2082_vm14, %v11907_v7, 0.0  ;;  %v5857_v51 = vsel %vm5563_vm8, %v11838_v53, 0.0  ;;  %v6695_v43 = vsel %vm6401_vm13, %v11848_v18, 0.0 }
 0x5e2   : > { %v3214_v37 = vsel %vm2920_vm15, %v11934_v55, 0.0  ;;  %vm4596_vm1 = vcmp.eq.s32.totalorder %v15566_v34, %v11950_v14  ;;  %v5275_v23 = vadd.f32 %v5019_v13, %v4437_v40  ;;  %v2632_v30 = vadd.f32 %v2376_v35, %v1794_v0 }
 0x5e3   : > { %7196 = vmatprep.subr.mxu0 %v6823_v60  ;;  %v4052_v25 = vsel %vm3758_vm0, %v11944_v57, 0.0  ;;  %vm5434_vm2 = vcmp.eq.s32.totalorder %v15566_v34, %v11958_v21  ;;  %v4890_v59 = vsel %vm4596_vm1, %v11953_v58, 0.0  ;;  %vm790_vm3 = vcmp.eq.s32.totalorder %v15567_v24, %v11880_v47 }
 0x5e4   : > { %vm1372_vm4 = vcmp.eq.s32.totalorder %v15567_v24, %v11888_v32  ;;  %vm2210_vm5 = vcmp.eq.s32.totalorder %v15567_v24, %v11896_v49  ;;  %v6113_v12 = vadd.f32 %v5857_v51, %v5275_v23  ;;  %v3470_v61 = vadd.f32 %v3214_v37, %v2632_v30 }
 0x5e5   : > { %vm6272_vm6 = vcmp.eq.s32.totalorder %v15566_v34, %v11976_v8  ;;  %v1084_v50 = vsel %vm790_vm3, %v11901_v16, 0.0  ;;  %v1666_v27 = vsel %vm1372_vm4, %v11918_v31, 0.0  ;;  %v2504_v56 = vsel %vm2210_vm5, %v11907_v7, 0.0 }
 0x5e6   : > { %vm3048_vm7 = vcmp.eq.s32.totalorder %v15567_v24, %v11913_v48  ;;  %vm3886_vm9 = vcmp.eq.s32.totalorder %v15567_v24, %v11941_v2  ;;  %v6951_v19 = vadd.f32 %v6695_v43, %v6113_v12  ;;  %v4308_v4 = vadd.f32 %v4052_v25, %v3470_v61 }
 0x5e7   : > { %v5728_v33 = vsel %vm5434_vm2, %v11971_v44, 0.0  ;;  %v1922_v17 = vadd.f32 %v1666_v27, %v1084_v50  ;;  %v6566_v5 = vsel %vm6272_vm6, %v11984_v54, 0.0  ;;  %v3342_v34 = vsel %vm3048_vm7, %v11934_v55, 0.0 }
 0x5e8   : > { %v4180_v13 = vsel %vm3886_vm9, %v11944_v57, 0.0  ;;  %vm4724_vm10 = vcmp.eq.s32.totalorder %v15567_v24, %v11950_v14  ;;  %7267 = vmatprep.subr.mxu1 %v6951_v19  ;;  %v5146_v28 = vadd.f32 %v4890_v59, %v4308_v4  ;;  %vm5562_vm8 = vcmp.eq.s32.totalorder %v15567_v24, %v11958_v21 }
 0x5e9   : > { %v2760_v1 = vadd.f32 %v2504_v56, %v1922_v17  ;;  %vm6400_vm11 = vcmp.eq.s32.totalorder %v15567_v24, %v11976_v8  ;;  %v5018_v39 = vsel %vm4724_vm10, %v11953_v58, 0.0  ;;  %vm659_vm12 = vcmp.eq.s32.totalorder %v15568_v29, %v11751_v38  ;;  %v15569_v24 = vld [vmem:[#allocation64_spill] sm:$0xff] }
 0x5ea   : > { %vm1241_vm13 = vcmp.eq.s32.totalorder %v15568_v29, %v11759_v62  ;;  %vm2079_vm14 = vcmp.eq.s32.totalorder %v15568_v29, %v11778_v45  ;;  %v5984_v60 = vadd.f32 %v5728_v33, %v5146_v28  ;;  %v953_v0 = vsel %vm659_vm12, %v11756_v52, 0.0 }
 0x5eb   : > { %v3598_v40 = vadd.f32 %v3342_v34, %v2760_v1  ;;  %v1535_v35 = vsel %vm1241_vm13, %v11762_v20, 0.0  ;;  %v2373_v43 = vsel %vm2079_vm14, %v11784_v9, 0.0  ;;  %vm2917_vm15 = vcmp.eq.s32.totalorder %v15568_v29, %v11793_v22 }
 0x5ec   : > { %v1791_v51 = vadd.f32 %v1535_v35, %v953_v0  ;;  %vm3755_vm0 = vcmp.eq.s32.totalorder %v15568_v29, %v11802_v3  ;;  %v6822_v37 = vadd.f32 %v6566_v5, %v5984_v60  ;;  %v5856_v30 = vsel %vm5562_vm8, %v11971_v44, 0.0 }
 0x5ed   : > { %v4436_v23 = vadd.f32 %v4180_v13, %v3598_v40  ;;  %v3211_v25 = vsel %vm2917_vm15, %v11799_v46, 0.0  ;;  %v6694_v59 = vsel %vm6400_vm11, %v11984_v54, 0.0  ;;  %v4049_v61 = vsel %vm3755_vm0, %v11809_v15, 0.0 }
 0x5ee   : > { %v2629_v12 = vadd.f32 %v2373_v43, %v1791_v51  ;;  %vm4593_vm1 = vcmp.eq.s32.totalorder %v15568_v29, %v11817_v36  ;;  %7197 = vmatpush2.msra.mxu0 %v6822_v37  ;;  %vm5431_vm2 = vcmp.eq.s32.totalorder %v15568_v29, %v11830_v11  ;;  %vm6269_vm3 = vcmp.eq.s32.totalorder %v15568_v29, %v11845_v10 }
 0x5ef   : > { %v5274_v50 = vadd.f32 %v5018_v39, %v4436_v23  ;;  %v4887_v27 = vsel %vm4593_vm1, %v11823_v42, 0.0  ;;  %vm787_vm4 = vcmp.eq.s32.totalorder %v15569_v24, %v11751_v38  ;;  %vm1369_vm5 = vcmp.eq.s32.totalorder %v15569_v24, %v11759_v62 }
 0x5f0   : > { %v3467_v56 = vadd.f32 %v3211_v25, %v2629_v12  ;;  %vm2207_vm6 = vcmp.eq.s32.totalorder %v15569_v24, %v11778_v45  ;;  %v1081_v4 = vsel %vm787_vm4, %v11756_v52, 0.0  ;;  %v1663_v33 = vsel %vm1369_vm5, %v11762_v20, 0.0 }
 0x5f1   : > { %v6112_v19 = vadd.f32 %v5856_v30, %v5274_v50  ;;  %v2501_v17 = vsel %vm2207_vm6, %v11784_v9, 0.0  ;;  %v1919_v34 = vadd.f32 %v1663_v33, %v1081_v4  ;;  %vm3045_vm7 = vcmp.eq.s32.totalorder %v15569_v24, %v11793_v22 }
 0x5f2   : > { %v4305_v5 = vadd.f32 %v4049_v61, %v3467_v56  ;;  %vm3883_vm9 = vcmp.eq.s32.totalorder %v15569_v24, %v11802_v3  ;;  %v5725_v28 = vsel %vm5431_vm2, %v11838_v53, 0.0  ;;  %v3339_v1 = vsel %vm3045_vm7, %v11799_v46, 0.0 }
 0x5f3   : > { %v6950_v13 = vadd.f32 %v6694_v59, %v6112_v19  ;;  %vm4721_vm10 = vcmp.eq.s32.totalorder %v15569_v24, %v11817_v36  ;;  %v6563_v60 = vsel %vm6269_vm3, %v11848_v18, 0.0  ;;  %v2757_v40 = vadd.f32 %v2501_v17, %v1919_v34 }
 0x5f4   : > { %v5143_v39 = vadd.f32 %v4887_v27, %v4305_v5  ;;  %v4177_v0 = vsel %vm3883_vm9, %v11809_v15, 0.0  ;;  %v5015_v35 = vsel %vm4721_vm10, %v11823_v42, 0.0  ;;  %vm5559_vm8 = vcmp.eq.s32.totalorder %v15569_v24, %v11830_v11 }
 0x5f5   : > { %7268 = vmatpush2.msra.mxu1 %v6950_v13  ;;  %vm658_vm11 = vcmp.eq.s32.totalorder %v15568_v29, %v11880_v47  ;;  %vm1240_vm12 = vcmp.eq.s32.totalorder %v15568_v29, %v11888_v32  ;;  %v3595_v43 = vadd.f32 %v3339_v1, %v2757_v40  ;;  %vm6397_vm13 = vcmp.eq.s32.totalorder %v15569_v24, %v11845_v10 }
 0x5f6   : > { %v5981_v51 = vadd.f32 %v5725_v28, %v5143_v39  ;;  %v952_v37 = vsel %vm658_vm11, %v11901_v16, 0.0  ;;  %v1534_v23 = vsel %vm1240_vm12, %v11918_v31, 0.0  ;;  %vm2078_vm14 = vcmp.eq.s32.totalorder %v15568_v29, %v11896_v49 }
 0x5f7   : > { %vm2916_vm15 = vcmp.eq.s32.totalorder %v15568_v29, %v11913_v48  ;;  %vm3754_vm0 = vcmp.eq.s32.totalorder %v15568_v29, %v11941_v2  ;;  %v4433_v25 = vadd.f32 %v4177_v0, %v3595_v43  ;;  %v1790_v59 = vadd.f32 %v1534_v23, %v952_v37  ;;  %v15570_v23 = vld [vmem:[#allocation65_spill] sm:$0xff] }
 0x5f8   : > { %v6819_v30 = vadd.f32 %v6563_v60, %v5981_v51  ;;  %v2372_v12 = vsel %vm2078_vm14, %v11907_v7, 0.0  ;;  %v5853_v61 = vsel %vm5559_vm8, %v11838_v53, 0.0  ;;  %v6691_v50 = vsel %vm6397_vm13, %v11848_v18, 0.0 }
 0x5f9   : > { %v3210_v27 = vsel %vm2916_vm15, %v11934_v55, 0.0  ;;  %vm4592_vm1 = vcmp.eq.s32.totalorder %v15568_v29, %v11950_v14  ;;  %v5271_v56 = vadd.f32 %v5015_v35, %v4433_v25  ;;  %v2628_v19 = vadd.f32 %v2372_v12, %v1790_v59 }
 0x5fa   : > { %7198 = vmatprep.subr.mxu0 %v6819_v30  ;;  %v4048_v4 = vsel %vm3754_vm0, %v11944_v57, 0.0  ;;  %vm5430_vm2 = vcmp.eq.s32.totalorder %v15568_v29, %v11958_v21  ;;  %v4886_v33 = vsel %vm4592_vm1, %v11953_v58, 0.0  ;;  %vm786_vm3 = vcmp.eq.s32.totalorder %v15569_v24, %v11880_v47 }
 0x5fb   : > { %vm1368_vm4 = vcmp.eq.s32.totalorder %v15569_v24, %v11888_v32  ;;  %vm2206_vm5 = vcmp.eq.s32.totalorder %v15569_v24, %v11896_v49  ;;  %v6109_v17 = vadd.f32 %v5853_v61, %v5271_v56  ;;  %v3466_v5 = vadd.f32 %v3210_v27, %v2628_v19 }
 0x5fc   : > { %vm6268_vm6 = vcmp.eq.s32.totalorder %v15568_v29, %v11976_v8  ;;  %v1080_v34 = vsel %vm786_vm3, %v11901_v16, 0.0  ;;  %v1662_v13 = vsel %vm1368_vm4, %v11918_v31, 0.0  ;;  %v2500_v28 = vsel %vm2206_vm5, %v11907_v7, 0.0 }
 0x5fd   : > { %vm3044_vm7 = vcmp.eq.s32.totalorder %v15569_v24, %v11913_v48  ;;  %vm3882_vm9 = vcmp.eq.s32.totalorder %v15569_v24, %v11941_v2  ;;  %v6947_v1 = vadd.f32 %v6691_v50, %v6109_v17  ;;  %v4304_v39 = vadd.f32 %v4048_v4, %v3466_v5 }
 0x5fe   : > { %v5724_v60 = vsel %vm5430_vm2, %v11971_v44, 0.0  ;;  %v1918_v40 = vadd.f32 %v1662_v13, %v1080_v34  ;;  %v6562_v0 = vsel %vm6268_vm6, %v11984_v54, 0.0  ;;  %v3338_v29 = vsel %vm3044_vm7, %v11934_v55, 0.0 }
 0x5ff   : > { %v4176_v35 = vsel %vm3882_vm9, %v11944_v57, 0.0  ;;  %vm4720_vm10 = vcmp.eq.s32.totalorder %v15569_v24, %v11950_v14  ;;  %7269 = vmatprep.subr.mxu1 %v6947_v1  ;;  %v5142_v51 = vadd.f32 %v4886_v33, %v4304_v39  ;;  %vm5558_vm8 = vcmp.eq.s32.totalorder %v15569_v24, %v11958_v21 }
 0x600   : > { %v2756_v43 = vadd.f32 %v2500_v28, %v1918_v40  ;;  %vm6396_vm11 = vcmp.eq.s32.totalorder %v15569_v24, %v11976_v8  ;;  %v5014_v37 = vsel %vm4720_vm10, %v11953_v58, 0.0  ;;  %vm655_vm12 = vcmp.eq.s32.totalorder %v15570_v23, %v11751_v38 }
 0x601   : > { %vm1237_vm13 = vcmp.eq.s32.totalorder %v15570_v23, %v11759_v62  ;;  %vm2075_vm14 = vcmp.eq.s32.totalorder %v15570_v23, %v11778_v45  ;;  %v5980_v30 = vadd.f32 %v5724_v60, %v5142_v51  ;;  %v949_v59 = vsel %vm655_vm12, %v11756_v52, 0.0 }
 0x602   : > { %v3594_v25 = vadd.f32 %v3338_v29, %v2756_v43  ;;  %v1531_v12 = vsel %vm1237_vm13, %v11762_v20, 0.0  ;;  %v2369_v50 = vsel %vm2075_vm14, %v11784_v9, 0.0  ;;  %vm2913_vm15 = vcmp.eq.s32.totalorder %v15570_v23, %v11793_v22 }
 0x603   : > { %v1787_v61 = vadd.f32 %v1531_v12, %v949_v59  ;;  %vm3751_vm0 = vcmp.eq.s32.totalorder %v15570_v23, %v11802_v3  ;;  %v6818_v27 = vadd.f32 %v6562_v0, %v5980_v30  ;;  %v5852_v19 = vsel %vm5558_vm8, %v11971_v44, 0.0 }
 0x604   : > { %v4432_v56 = vadd.f32 %v4176_v35, %v3594_v25  ;;  %v3207_v4 = vsel %vm2913_vm15, %v11799_v46, 0.0  ;;  %v6690_v33 = vsel %vm6396_vm11, %v11984_v54, 0.0  ;;  %v4045_v5 = vsel %vm3751_vm0, %v11809_v15, 0.0 }
 0x605   : > { %v2625_v17 = vadd.f32 %v2369_v50, %v1787_v61  ;;  %vm4589_vm1 = vcmp.eq.s32.totalorder %v15570_v23, %v11817_v36  ;;  %7199 = vmatpush2.msra.mxu0 %v6818_v27  ;;  %vm5427_vm2 = vcmp.eq.s32.totalorder %v15570_v23, %v11830_v11  ;;  %vm6265_vm3 = vcmp.eq.s32.totalorder %v15570_v23, %v11845_v10 }
 0x606   : > { %v5270_v34 = vadd.f32 %v5014_v37, %v4432_v56  ;;  %v4883_v13 = vsel %vm4589_vm1, %v11823_v42, 0.0  ;;  %vm783_vm4 = vcmp.eq.s32.totalorder %v11223_v41, %v11751_v38  ;;  %vm1365_vm5 = vcmp.eq.s32.totalorder %v11223_v41, %v11759_v62 }
 0x607   : > { %v3463_v28 = vadd.f32 %v3207_v4, %v2625_v17  ;;  %vm2203_vm6 = vcmp.eq.s32.totalorder %v11223_v41, %v11778_v45  ;;  %v1077_v1 = vsel %vm783_vm4, %v11756_v52, 0.0  ;;  %v1659_v39 = vsel %vm1365_vm5, %v11762_v20, 0.0 }
 0x608   : > { %v6108_v24 = vadd.f32 %v5852_v19, %v5270_v34  ;;  %v2497_v60 = vsel %vm2203_vm6, %v11784_v9, 0.0  ;;  %v1915_v0 = vadd.f32 %v1659_v39, %v1077_v1  ;;  %vm3041_vm7 = vcmp.eq.s32.totalorder %v11223_v41, %v11793_v22 }
 0x609   : > { %v4301_v40 = vadd.f32 %v4045_v5, %v3463_v28  ;;  %vm3879_vm9 = vcmp.eq.s32.totalorder %v11223_v41, %v11802_v3  ;;  %v5721_v35 = vsel %vm5427_vm2, %v11838_v53, 0.0  ;;  %v3335_v51 = vsel %vm3041_vm7, %v11799_v46, 0.0 }
 0x60a   : > { %v6946_v29 = vadd.f32 %v6690_v33, %v6108_v24  ;;  %vm4717_vm10 = vcmp.eq.s32.totalorder %v11223_v41, %v11817_v36  ;;  %v6559_v37 = vsel %vm6265_vm3, %v11848_v18, 0.0  ;;  %v2753_v30 = vadd.f32 %v2497_v60, %v1915_v0 }
 0x60b   : > { %v5139_v43 = vadd.f32 %v4883_v13, %v4301_v40  ;;  %v4173_v25 = vsel %vm3879_vm9, %v11809_v15, 0.0  ;;  %v5011_v59 = vsel %vm4717_vm10, %v11823_v42, 0.0  ;;  %vm5555_vm8 = vcmp.eq.s32.totalorder %v11223_v41, %v11830_v11 }
 0x60c   : > { %7270 = vmatpush2.msra.mxu1 %v6946_v29  ;;  %vm654_vm11 = vcmp.eq.s32.totalorder %v15570_v23, %v11880_v47  ;;  %vm1236_vm12 = vcmp.eq.s32.totalorder %v15570_v23, %v11888_v32  ;;  %v3591_v61 = vadd.f32 %v3335_v51, %v2753_v30  ;;  %vm6393_vm13 = vcmp.eq.s32.totalorder %v11223_v41, %v11845_v10 }
 0x60d   : > { %v5977_v12 = vadd.f32 %v5721_v35, %v5139_v43  ;;  %v948_v50 = vsel %vm654_vm11, %v11901_v16, 0.0  ;;  %v1530_v27 = vsel %vm1236_vm12, %v11918_v31, 0.0  ;;  %vm2074_vm14 = vcmp.eq.s32.totalorder %v15570_v23, %v11896_v49 }
 0x60e   : > { %vm2912_vm15 = vcmp.eq.s32.totalorder %v15570_v23, %v11913_v48  ;;  %vm3750_vm0 = vcmp.eq.s32.totalorder %v15570_v23, %v11941_v2  ;;  %v4429_v19 = vadd.f32 %v4173_v25, %v3591_v61  ;;  %v1786_v4 = vadd.f32 %v1530_v27, %v948_v50  ;;  %v15571_v50 = vld [vmem:[#allocation66_spill] sm:$0xff] }
 0x60f   : > { %v6815_v56 = vadd.f32 %v6559_v37, %v5977_v12  ;;  %v2368_v33 = vsel %vm2074_vm14, %v11907_v7, 0.0  ;;  %v5849_v17 = vsel %vm5555_vm8, %v11838_v53, 0.0  ;;  %v6687_v5 = vsel %vm6393_vm13, %v11848_v18, 0.0 }
 0x610   : > { %v3206_v34 = vsel %vm2912_vm15, %v11934_v55, 0.0  ;;  %vm4588_vm1 = vcmp.eq.s32.totalorder %v15570_v23, %v11950_v14  ;;  %v5267_v13 = vadd.f32 %v5011_v59, %v4429_v19  ;;  %v2624_v28 = vadd.f32 %v2368_v33, %v1786_v4 }
 0x611   : > { %7200 = vmatprep.subr.mxu0 %v6815_v56  ;;  %v4044_v24 = vsel %vm3750_vm0, %v11944_v57, 0.0  ;;  %vm5426_vm2 = vcmp.eq.s32.totalorder %v15570_v23, %v11958_v21  ;;  %v4882_v1 = vsel %vm4588_vm1, %v11953_v58, 0.0  ;;  %vm782_vm3 = vcmp.eq.s32.totalorder %v11223_v41, %v11880_v47 }
 0x612   : > { %vm1364_vm4 = vcmp.eq.s32.totalorder %v11223_v41, %v11888_v32  ;;  %vm2202_vm5 = vcmp.eq.s32.totalorder %v11223_v41, %v11896_v49  ;;  %v6105_v39 = vadd.f32 %v5849_v17, %v5267_v13  ;;  %v3462_v60 = vadd.f32 %v3206_v34, %v2624_v28 }
 0x613   : > { %vm6264_vm6 = vcmp.eq.s32.totalorder %v15570_v23, %v11976_v8  ;;  %v1076_v40 = vsel %vm782_vm3, %v11901_v16, 0.0  ;;  %v1658_v0 = vsel %vm1364_vm4, %v11918_v31, 0.0  ;;  %v2496_v29 = vsel %vm2202_vm5, %v11907_v7, 0.0 }
 0x614   : > { %vm3040_vm7 = vcmp.eq.s32.totalorder %v11223_v41, %v11913_v48  ;;  %vm3878_vm9 = vcmp.eq.s32.totalorder %v11223_v41, %v11941_v2  ;;  %v6943_v35 = vadd.f32 %v6687_v5, %v6105_v39  ;;  %v4300_v51 = vadd.f32 %v4044_v24, %v3462_v60 }
 0x615   : > { %v5720_v43 = vsel %vm5426_vm2, %v11971_v44, 0.0  ;;  %v1914_v37 = vadd.f32 %v1658_v0, %v1076_v40  ;;  %v6558_v30 = vsel %vm6264_vm6, %v11984_v54, 0.0  ;;  %v3334_v23 = vsel %vm3040_vm7, %v11934_v55, 0.0 }
 0x616   : > { %v4172_v25 = vsel %vm3878_vm9, %v11944_v57, 0.0  ;;  %vm4716_vm10 = vcmp.eq.s32.totalorder %v11223_v41, %v11950_v14  ;;  %7271 = vmatprep.subr.mxu1 %v6943_v35  ;;  %v5138_v59 = vadd.f32 %v4882_v1, %v4300_v51  ;;  %vm5554_vm8 = vcmp.eq.s32.totalorder %v11223_v41, %v11958_v21 }
 0x617   : > { %v2752_v12 = vadd.f32 %v2496_v29, %v1914_v37  ;;  %vm6392_vm11 = vcmp.eq.s32.totalorder %v11223_v41, %v11976_v8  ;;  %v5010_v61 = vsel %vm4716_vm10, %v11953_v58, 0.0  ;;  %vm651_vm12 = vcmp.eq.s32.totalorder %v15571_v50, %v11751_v38  ;;  %v15572_v41 = vld [vmem:[#allocation67_spill] sm:$0xff] }
 0x618   : > { %vm1233_vm13 = vcmp.eq.s32.totalorder %v15571_v50, %v11759_v62  ;;  %vm2071_vm14 = vcmp.eq.s32.totalorder %v15571_v50, %v11778_v45  ;;  %v5976_v27 = vadd.f32 %v5720_v43, %v5138_v59  ;;  %v945_v19 = vsel %vm651_vm12, %v11756_v52, 0.0 }
 0x619   : > { %v3590_v56 = vadd.f32 %v3334_v23, %v2752_v12  ;;  %v1527_v4 = vsel %vm1233_vm13, %v11762_v20, 0.0  ;;  %v2365_v17 = vsel %vm2071_vm14, %v11784_v9, 0.0  ;;  %vm2909_vm15 = vcmp.eq.s32.totalorder %v15571_v50, %v11793_v22 }
 0x61a   : > { %v1783_v33 = vadd.f32 %v1527_v4, %v945_v19  ;;  %vm3747_vm0 = vcmp.eq.s32.totalorder %v15571_v50, %v11802_v3  ;;  %v6814_v5 = vadd.f32 %v6558_v30, %v5976_v27  ;;  %v5848_v13 = vsel %vm5554_vm8, %v11971_v44, 0.0 }
 0x61b   : > { %v4428_v34 = vadd.f32 %v4172_v25, %v3590_v56  ;;  %v3203_v28 = vsel %vm2909_vm15, %v11799_v46, 0.0  ;;  %v6686_v24 = vsel %vm6392_vm11, %v11984_v54, 0.0  ;;  %v4041_v39 = vsel %vm3747_vm0, %v11809_v15, 0.0 }
 0x61c   : > { %v2621_v1 = vadd.f32 %v2365_v17, %v1783_v33  ;;  %vm4585_vm1 = vcmp.eq.s32.totalorder %v15571_v50, %v11817_v36  ;;  %7201 = vmatpush2.msra.mxu0 %v6814_v5  ;;  %vm5423_vm2 = vcmp.eq.s32.totalorder %v15571_v50, %v11830_v11  ;;  %vm6261_vm3 = vcmp.eq.s32.totalorder %v15571_v50, %v11845_v10 }
 0x61d   : > { %v5266_v60 = vadd.f32 %v5010_v61, %v4428_v34  ;;  %v4879_v40 = vsel %vm4585_vm1, %v11823_v42, 0.0  ;;  %vm779_vm4 = vcmp.eq.s32.totalorder %v15572_v41, %v11751_v38  ;;  %vm1361_vm5 = vcmp.eq.s32.totalorder %v15572_v41, %v11759_v62 }
 0x61e   : > { %v3459_v0 = vadd.f32 %v3203_v28, %v2621_v1  ;;  %vm2199_vm6 = vcmp.eq.s32.totalorder %v15572_v41, %v11778_v45  ;;  %v1073_v35 = vsel %vm779_vm4, %v11756_v52, 0.0  ;;  %v1655_v51 = vsel %vm1361_vm5, %v11762_v20, 0.0 }
 0x61f   : > { %v6104_v29 = vadd.f32 %v5848_v13, %v5266_v60  ;;  %v2493_v43 = vsel %vm2199_vm6, %v11784_v9, 0.0  ;;  %v1911_v30 = vadd.f32 %v1655_v51, %v1073_v35  ;;  %vm3037_vm7 = vcmp.eq.s32.totalorder %v15572_v41, %v11793_v22 }
 0x620   : > { %v4297_v37 = vadd.f32 %v4041_v39, %v3459_v0  ;;  %vm3875_vm9 = vcmp.eq.s32.totalorder %v15572_v41, %v11802_v3  ;;  %v5717_v25 = vsel %vm5423_vm2, %v11838_v53, 0.0  ;;  %v3331_v59 = vsel %vm3037_vm7, %v11799_v46, 0.0 }
 0x621   : > { %v6942_v23 = vadd.f32 %v6686_v24, %v6104_v29  ;;  %vm4713_vm10 = vcmp.eq.s32.totalorder %v15572_v41, %v11817_v36  ;;  %v6555_v61 = vsel %vm6261_vm3, %v11848_v18, 0.0  ;;  %v2749_v27 = vadd.f32 %v2493_v43, %v1911_v30 }
 0x622   : > { %v5135_v12 = vadd.f32 %v4879_v40, %v4297_v37  ;;  %v4169_v56 = vsel %vm3875_vm9, %v11809_v15, 0.0  ;;  %v5007_v19 = vsel %vm4713_vm10, %v11823_v42, 0.0  ;;  %vm5551_vm8 = vcmp.eq.s32.totalorder %v15572_v41, %v11830_v11 }
 0x623   : > { %7272 = vmatpush2.msra.mxu1 %v6942_v23  ;;  %vm650_vm11 = vcmp.eq.s32.totalorder %v15571_v50, %v11880_v47  ;;  %vm1232_vm12 = vcmp.eq.s32.totalorder %v15571_v50, %v11888_v32  ;;  %v3587_v33 = vadd.f32 %v3331_v59, %v2749_v27  ;;  %vm6389_vm13 = vcmp.eq.s32.totalorder %v15572_v41, %v11845_v10 }
 0x624   : > { %v5973_v4 = vadd.f32 %v5717_v25, %v5135_v12  ;;  %v944_v17 = vsel %vm650_vm11, %v11901_v16, 0.0  ;;  %v1526_v5 = vsel %vm1232_vm12, %v11918_v31, 0.0  ;;  %vm2070_vm14 = vcmp.eq.s32.totalorder %v15571_v50, %v11896_v49 }
 0x625   : > { %vm2908_vm15 = vcmp.eq.s32.totalorder %v15571_v50, %v11913_v48  ;;  %vm3746_vm0 = vcmp.eq.s32.totalorder %v15571_v50, %v11941_v2  ;;  %v4425_v13 = vadd.f32 %v4169_v56, %v3587_v33  ;;  %v1782_v28 = vadd.f32 %v1526_v5, %v944_v17  ;;  %v15573_v17 = vld [vmem:[#allocation68_spill] sm:$0xff] }
 0x626   : > { %v6811_v34 = vadd.f32 %v6555_v61, %v5973_v4  ;;  %v2364_v24 = vsel %vm2070_vm14, %v11907_v7, 0.0  ;;  %v5845_v1 = vsel %vm5551_vm8, %v11838_v53, 0.0  ;;  %v6683_v39 = vsel %vm6389_vm13, %v11848_v18, 0.0 }
 0x627   : > { %v3202_v60 = vsel %vm2908_vm15, %v11934_v55, 0.0  ;;  %vm4584_vm1 = vcmp.eq.s32.totalorder %v15571_v50, %v11950_v14  ;;  %v5263_v40 = vadd.f32 %v5007_v19, %v4425_v13  ;;  %v2620_v0 = vadd.f32 %v2364_v24, %v1782_v28 }
 0x628   : > { %7202 = vmatprep.subr.mxu0 %v6811_v34  ;;  %v4040_v29 = vsel %vm3746_vm0, %v11944_v57, 0.0  ;;  %vm5422_vm2 = vcmp.eq.s32.totalorder %v15571_v50, %v11958_v21  ;;  %v4878_v35 = vsel %vm4584_vm1, %v11953_v58, 0.0  ;;  %vm778_vm3 = vcmp.eq.s32.totalorder %v15572_v41, %v11880_v47 }
 0x629   : > { %vm1360_vm4 = vcmp.eq.s32.totalorder %v15572_v41, %v11888_v32  ;;  %vm2198_vm5 = vcmp.eq.s32.totalorder %v15572_v41, %v11896_v49  ;;  %v6101_v51 = vadd.f32 %v5845_v1, %v5263_v40  ;;  %v3458_v43 = vadd.f32 %v3202_v60, %v2620_v0 }
 0x62a   : > { %vm6260_vm6 = vcmp.eq.s32.totalorder %v15571_v50, %v11976_v8  ;;  %v1072_v37 = vsel %vm778_vm3, %v11901_v16, 0.0  ;;  %v1654_v30 = vsel %vm1360_vm4, %v11918_v31, 0.0  ;;  %v2492_v23 = vsel %vm2198_vm5, %v11907_v7, 0.0 }
 0x62b   : > { %vm3036_vm7 = vcmp.eq.s32.totalorder %v15572_v41, %v11913_v48  ;;  %vm3874_vm9 = vcmp.eq.s32.totalorder %v15572_v41, %v11941_v2  ;;  %v6939_v25 = vadd.f32 %v6683_v39, %v6101_v51  ;;  %v4296_v59 = vadd.f32 %v4040_v29, %v3458_v43 }
 0x62c   : > { %v5716_v12 = vsel %vm5422_vm2, %v11971_v44, 0.0  ;;  %v1910_v61 = vadd.f32 %v1654_v30, %v1072_v37  ;;  %v6554_v27 = vsel %vm6260_vm6, %v11984_v54, 0.0  ;;  %v3330_v50 = vsel %vm3036_vm7, %v11934_v55, 0.0 }
 0x62d   : > { %v4168_v56 = vsel %vm3874_vm9, %v11944_v57, 0.0  ;;  %vm4712_vm10 = vcmp.eq.s32.totalorder %v15572_v41, %v11950_v14  ;;  %7273 = vmatprep.subr.mxu1 %v6939_v25  ;;  %v5134_v19 = vadd.f32 %v4878_v35, %v4296_v59  ;;  %vm5550_vm8 = vcmp.eq.s32.totalorder %v15572_v41, %v11958_v21 }
 0x62e   : > { %v2748_v4 = vadd.f32 %v2492_v23, %v1910_v61  ;;  %vm6388_vm11 = vcmp.eq.s32.totalorder %v15572_v41, %v11976_v8  ;;  %v5006_v33 = vsel %vm4712_vm10, %v11953_v58, 0.0  ;;  %vm647_vm12 = vcmp.eq.s32.totalorder %v15573_v17, %v11751_v38 }
 0x62f   : > { %vm1229_vm13 = vcmp.eq.s32.totalorder %v15573_v17, %v11759_v62  ;;  %vm2067_vm14 = vcmp.eq.s32.totalorder %v15573_v17, %v11778_v45  ;;  %v5972_v5 = vadd.f32 %v5716_v12, %v5134_v19  ;;  %v941_v13 = vsel %vm647_vm12, %v11756_v52, 0.0 }
 0x630   : > { %v3586_v34 = vadd.f32 %v3330_v50, %v2748_v4  ;;  %v1523_v28 = vsel %vm1229_vm13, %v11762_v20, 0.0  ;;  %v2361_v1 = vsel %vm2067_vm14, %v11784_v9, 0.0  ;;  %vm2905_vm15 = vcmp.eq.s32.totalorder %v15573_v17, %v11793_v22 }
 0x631   : > { %v1779_v24 = vadd.f32 %v1523_v28, %v941_v13  ;;  %vm3743_vm0 = vcmp.eq.s32.totalorder %v15573_v17, %v11802_v3  ;;  %v6810_v39 = vadd.f32 %v6554_v27, %v5972_v5  ;;  %v5844_v40 = vsel %vm5550_vm8, %v11971_v44, 0.0 }
 0x632   : > { %v4424_v60 = vadd.f32 %v4168_v56, %v3586_v34  ;;  %v3199_v0 = vsel %vm2905_vm15, %v11799_v46, 0.0  ;;  %v6682_v29 = vsel %vm6388_vm11, %v11984_v54, 0.0  ;;  %v4037_v51 = vsel %vm3743_vm0, %v11809_v15, 0.0 }
 0x633   : > { %v2617_v35 = vadd.f32 %v2361_v1, %v1779_v24  ;;  %vm4581_vm1 = vcmp.eq.s32.totalorder %v15573_v17, %v11817_v36  ;;  %7203 = vmatpush2.msra.mxu0 %v6810_v39  ;;  %vm5419_vm2 = vcmp.eq.s32.totalorder %v15573_v17, %v11830_v11  ;;  %vm6257_vm3 = vcmp.eq.s32.totalorder %v15573_v17, %v11845_v10 }
 0x634   : > { %v5262_v43 = vadd.f32 %v5006_v33, %v4424_v60  ;;  %v4875_v37 = vsel %vm4581_vm1, %v11823_v42, 0.0  ;;  %vm775_vm4 = vcmp.eq.s32.totalorder %v11459_v26, %v11751_v38  ;;  %vm1357_vm5 = vcmp.eq.s32.totalorder %v11459_v26, %v11759_v62 }
 0x635   : > { %v3455_v30 = vadd.f32 %v3199_v0, %v2617_v35  ;;  %vm2195_vm6 = vcmp.eq.s32.totalorder %v11459_v26, %v11778_v45  ;;  %v1069_v23 = vsel %vm775_vm4, %v11756_v52, 0.0  ;;  %v1651_v25 = vsel %vm1357_vm5, %v11762_v20, 0.0 }
 0x636   : > { %v6100_v41 = vadd.f32 %v5844_v40, %v5262_v43  ;;  %v2489_v59 = vsel %vm2195_vm6, %v11784_v9, 0.0  ;;  %v1907_v61 = vadd.f32 %v1651_v25, %v1069_v23  ;;  %vm3033_vm7 = vcmp.eq.s32.totalorder %v11459_v26, %v11793_v22 }
 0x637   : > { %v4293_v12 = vadd.f32 %v4037_v51, %v3455_v30  ;;  %vm3871_vm9 = vcmp.eq.s32.totalorder %v11459_v26, %v11802_v3  ;;  %v5713_v50 = vsel %vm5419_vm2, %v11838_v53, 0.0  ;;  %v3327_v56 = vsel %vm3033_vm7, %v11799_v46, 0.0 }
 0x638   : > { %v6938_v27 = vadd.f32 %v6682_v29, %v6100_v41  ;;  %vm4709_vm10 = vcmp.eq.s32.totalorder %v11459_v26, %v11817_v36  ;;  %v6551_v4 = vsel %vm6257_vm3, %v11848_v18, 0.0  ;;  %v2745_v33 = vadd.f32 %v2489_v59, %v1907_v61 }
 0x639   : > { %v5131_v19 = vadd.f32 %v4875_v37, %v4293_v12  ;;  %v4165_v5 = vsel %vm3871_vm9, %v11809_v15, 0.0  ;;  %v5003_v34 = vsel %vm4709_vm10, %v11823_v42, 0.0  ;;  %vm5547_vm8 = vcmp.eq.s32.totalorder %v11459_v26, %v11830_v11 }
 0x63a   : > { %7274 = vmatpush2.msra.mxu1 %v6938_v27  ;;  %vm646_vm11 = vcmp.eq.s32.totalorder %v15573_v17, %v11880_v47  ;;  %vm1228_vm12 = vcmp.eq.s32.totalorder %v15573_v17, %v11888_v32  ;;  %v3583_v28 = vadd.f32 %v3327_v56, %v2745_v33  ;;  %vm6385_vm13 = vcmp.eq.s32.totalorder %v11459_v26, %v11845_v10 }
 0x63b   : > { %v5969_v13 = vadd.f32 %v5713_v50, %v5131_v19  ;;  %v940_v24 = vsel %vm646_vm11, %v11901_v16, 0.0  ;;  %v1522_v1 = vsel %vm1228_vm12, %v11918_v31, 0.0  ;;  %vm2066_vm14 = vcmp.eq.s32.totalorder %v15573_v17, %v11896_v49 }
 0x63c   : > { %vm2904_vm15 = vcmp.eq.s32.totalorder %v15573_v17, %v11913_v48  ;;  %vm3742_vm0 = vcmp.eq.s32.totalorder %v15573_v17, %v11941_v2  ;;  %v4421_v60 = vadd.f32 %v4165_v5, %v3583_v28  ;;  %v1778_v40 = vadd.f32 %v1522_v1, %v940_v24 }
 0x63d   : > { %v6807_v39 = vadd.f32 %v6551_v4, %v5969_v13  ;;  %v2360_v0 = vsel %vm2066_vm14, %v11907_v7, 0.0  ;;  %v5841_v29 = vsel %vm5547_vm8, %v11838_v53, 0.0  ;;  %v6679_v35 = vsel %vm6385_vm13, %v11848_v18, 0.0 }
 0x63e   : > { %v3198_v51 = vsel %vm2904_vm15, %v11934_v55, 0.0  ;;  %vm4580_vm1 = vcmp.eq.s32.totalorder %v15573_v17, %v11950_v14  ;;  %v5259_v43 = vadd.f32 %v5003_v34, %v4421_v60  ;;  %v2616_v37 = vadd.f32 %v2360_v0, %v1778_v40 }
 0x63f   : > { %7204 = vmatprep.subr.mxu0 %v6807_v39  ;;  %v4036_v30 = vsel %vm3742_vm0, %v11944_v57, 0.0  ;;  %vm5418_vm2 = vcmp.eq.s32.totalorder %v15573_v17, %v11958_v21  ;;  %v4874_v41 = vsel %vm4580_vm1, %v11953_v58, 0.0  ;;  %vm774_vm3 = vcmp.eq.s32.totalorder %v11459_v26, %v11880_v47 }
 0x640   : > { %vm1356_vm4 = vcmp.eq.s32.totalorder %v11459_v26, %v11888_v32  ;;  %vm2194_vm5 = vcmp.eq.s32.totalorder %v11459_v26, %v11896_v49  ;;  %v6097_v23 = vadd.f32 %v5841_v29, %v5259_v43  ;;  %v3454_v25 = vadd.f32 %v3198_v51, %v2616_v37 }
 0x641   : > { %vm6256_vm6 = vcmp.eq.s32.totalorder %v15573_v17, %v11976_v8  ;;  %v1068_v59 = vsel %vm774_vm3, %v11901_v16, 0.0  ;;  %v1650_v12 = vsel %vm1356_vm4, %v11918_v31, 0.0  ;;  %v2488_v61 = vsel %vm2194_vm5, %v11907_v7, 0.0 }
 0x642   : > { %vm3032_vm7 = vcmp.eq.s32.totalorder %v11459_v26, %v11913_v48  ;;  %vm3870_vm9 = vcmp.eq.s32.totalorder %v11459_v26, %v11941_v2  ;;  %v6935_v27 = vadd.f32 %v6679_v35, %v6097_v23  ;;  %v4292_v50 = vadd.f32 %v4036_v30, %v3454_v25 }
 0x643   : > { %v5712_v56 = vsel %vm5418_vm2, %v11971_v44, 0.0  ;;  %v1906_v19 = vadd.f32 %v1650_v12, %v1068_v59  ;;  %v6550_v4 = vsel %vm6256_vm6, %v11984_v54, 0.0  ;;  %v3326_v17 = vsel %vm3032_vm7, %v11934_v55, 0.0 }
 0x644   : > { %v4164_v33 = vsel %vm3870_vm9, %v11944_v57, 0.0  ;;  %vm4708_vm10 = vcmp.eq.s32.totalorder %v11459_v26, %v11950_v14  ;;  %7275 = vmatprep.subr.mxu1 %v6935_v27  ;;  %v5130_v5 = vadd.f32 %v4874_v41, %v4292_v50  ;;  %vm5546_vm8 = vcmp.eq.s32.totalorder %v11459_v26, %v11958_v21 }
 0x645   : > { %v2744_v34 = vadd.f32 %v2488_v61, %v1906_v19  ;;  %vm6384_vm11 = vcmp.eq.s32.totalorder %v11459_v26, %v11976_v8  ;;  %v5002_v13 = vsel %vm4708_vm10, %v11953_v58, 0.0  ;;  %vm643_vm12 = vcmp.eq.s32.totalorder %v11584_v63, %v11751_v38 }
 0x646   : > { %vm1225_vm13 = vcmp.eq.s32.totalorder %v11584_v63, %v11759_v62  ;;  %vm2063_vm14 = vcmp.eq.s32.totalorder %v11584_v63, %v11778_v45  ;;  %v5968_v28 = vadd.f32 %v5712_v56, %v5130_v5  ;;  %v937_v1 = vsel %vm643_vm12, %v11756_v52, 0.0 }
 0x647   : > { %v3582_v24 = vadd.f32 %v3326_v17, %v2744_v34  ;;  %v1519_v39 = vsel %vm1225_vm13, %v11762_v20, 0.0  ;;  %v2357_v40 = vsel %vm2063_vm14, %v11784_v9, 0.0  ;;  %vm2901_vm15 = vcmp.eq.s32.totalorder %v11584_v63, %v11793_v22 }
 0x648   : > { %v1775_v60 = vadd.f32 %v1519_v39, %v937_v1  ;;  %vm3739_vm0 = vcmp.eq.s32.totalorder %v11584_v63, %v11802_v3  ;;  %v6806_v0 = vadd.f32 %v6550_v4, %v5968_v28  ;;  %v5840_v35 = vsel %vm5546_vm8, %v11971_v44, 0.0  ;;  %v7068_v28 = vpop.f32.mrf.mxu0 }
 0x649   : > { %v4420_v29 = vadd.f32 %v4164_v33, %v3582_v24  ;;  %v3195_v51 = vsel %vm2901_vm15, %v11799_v46, 0.0  ;;  %v6678_v43 = vsel %vm6384_vm11, %v11984_v54, 0.0  ;;  %v4033_v30 = vsel %vm3739_vm0, %v11809_v15, 0.0  ;;  %v7139_v24 = vpop.f32.mrf.mxu1 }
 0x64a   : > { %v2613_v37 = vadd.f32 %v2357_v40, %v1775_v60  ;;  %vm4577_vm1 = vcmp.eq.s32.totalorder %v11584_v63, %v11817_v36  ;;  %7205 = vmatpush2.msra.mxu0 %v6806_v0  ;;  %vm5415_vm2 = vcmp.eq.s32.totalorder %v11584_v63, %v11830_v11  ;;  %vm6253_vm3 = vcmp.eq.s32.totalorder %v11584_v63, %v11845_v10 }
 0x64b   : > { %v5258_v41 = vadd.f32 %v5002_v13, %v4420_v29  ;;  %v4871_v23 = vsel %vm4577_vm1, %v11823_v42, 0.0  ;;  %vm771_vm4 = vcmp.eq.s32.totalorder %v11593_v6, %v11751_v38  ;;  %vm1353_vm5 = vcmp.eq.s32.totalorder %v11593_v6, %v11759_v62  ;;  %v7141_v29 = vpop.f32.mrf.mxu1 }
 0x64c   : > { %v3451_v25 = vadd.f32 %v3195_v51, %v2613_v37  ;;  %vm2191_vm6 = vcmp.eq.s32.totalorder %v11593_v6, %v11778_v45  ;;  %v1065_v59 = vsel %vm771_vm4, %v11756_v52, 0.0  ;;  %v1647_v12 = vsel %vm1353_vm5, %v11762_v20, 0.0 }
 0x64d   : > { %v6096_v26 = vadd.f32 %v5840_v35, %v5258_v41  ;;  %v2485_v61 = vsel %vm2191_vm6, %v11784_v9, 0.0  ;;  %v1903_v50 = vadd.f32 %v1647_v12, %v1065_v59  ;;  %vm3029_vm7 = vcmp.eq.s32.totalorder %v11593_v6, %v11793_v22  ;;  %v7555_v12 = vld [vmem:[%s7798_s14] sm:$0xff] }
 0x64e   : > { %v4289_v27 = vadd.f32 %v4033_v30, %v3451_v25  ;;  %vm3867_vm9 = vcmp.eq.s32.totalorder %v11593_v6, %v11802_v3  ;;  %v5709_v62 = vsel %vm5415_vm2, %v11838_v53, 0.0  ;;  %v3323_v45 = vsel %vm3029_vm7, %v11799_v46, 0.0 }
 0x64f   : > { %v6934_v38 = vadd.f32 %v6678_v43, %v6096_v26  ;;  %vm4705_vm10 = vcmp.eq.s32.totalorder %v11593_v6, %v11817_v36  ;;  %v6547_v20 = vsel %vm6253_vm3, %v11848_v18, 0.0  ;;  %v2741_v9 = vadd.f32 %v2485_v61, %v1903_v50 }
 0x650   : > { %v5127_v52 = vadd.f32 %v4871_v23, %v4289_v27  ;;  %v4161_v22 = vsel %vm3867_vm9, %v11809_v15, 0.0  ;;  %v4999_v3 = vsel %vm4705_vm10, %v11823_v42, 0.0  ;;  %vm5543_vm8 = vcmp.eq.s32.totalorder %v11593_v6, %v11830_v11 }
 0x651   : > { %7276 = vmatpush2.msra.mxu1 %v6934_v38  ;;  %vm642_vm11 = vcmp.eq.s32.totalorder %v11584_v63, %v11880_v47  ;;  %vm1224_vm12 = vcmp.eq.s32.totalorder %v11584_v63, %v11888_v32  ;;  %v3579_v36 = vadd.f32 %v3323_v45, %v2741_v9  ;;  %vm6381_vm13 = vcmp.eq.s32.totalorder %v11593_v6, %v11845_v10 }
 0x652   : > { %v5965_v46 = vadd.f32 %v5709_v62, %v5127_v52  ;;  %v936_v56 = vsel %vm642_vm11, %v11901_v16, 0.0  ;;  %v1518_v15 = vsel %vm1224_vm12, %v11918_v31, 0.0  ;;  %vm2062_vm14 = vcmp.eq.s32.totalorder %v11584_v63, %v11896_v49 }
 0x653   : > { %vm2900_vm15 = vcmp.eq.s32.totalorder %v11584_v63, %v11913_v48  ;;  %vm3738_vm0 = vcmp.eq.s32.totalorder %v11584_v63, %v11941_v2  ;;  %v4417_v11 = vadd.f32 %v4161_v22, %v3579_v36  ;;  %v1774_v19 = vadd.f32 %v1518_v15, %v936_v56 }
 0x654   : > { %v6803_v42 = vadd.f32 %v6547_v20, %v5965_v46  ;;  %v2356_v4 = vsel %vm2062_vm14, %v11907_v7, 0.0  ;;  %v5837_v10 = vsel %vm5543_vm8, %v11838_v53, 0.0  ;;  %v3194_v17 = vsel %vm2900_vm15, %v11934_v55, 0.0 }
 0x655   : > { %vm4576_vm1 = vcmp.eq.s32.totalorder %v11584_v63, %v11950_v14  ;;  %v5255_v33 = vadd.f32 %v4999_v3, %v4417_v11  ;;  %v6675_v5 = vsel %vm6381_vm13, %v11848_v18, 0.0  ;;  %v2612_v34 = vadd.f32 %v2356_v4, %v1774_v19 }
 0x656   : > { %7206 = vmatprep.subr.mxu0 %v6803_v42  ;;  %v4032_v13 = vsel %vm3738_vm0, %v11944_v57, 0.0  ;;  %vm5414_vm2 = vcmp.eq.s32.totalorder %v11584_v63, %v11958_v21  ;;  %vm770_vm3 = vcmp.eq.s32.totalorder %v11593_v6, %v11880_v47  ;;  %vm1352_vm4 = vcmp.eq.s32.totalorder %v11593_v6, %v11888_v32 }
 0x657   : > { %vm2190_vm5 = vcmp.eq.s32.totalorder %v11593_v6, %v11896_v49  ;;  %v6093_v53 = vadd.f32 %v5837_v10, %v5255_v33  ;;  %v3450_v1 = vadd.f32 %v3194_v17, %v2612_v34  ;;  %v4870_v18 = vsel %vm4576_vm1, %v11953_v58, 0.0  ;;  %v7070_v49 = vpop.f32.mrf.mxu0 }
 0x658   : > { %v1064_v39 = vsel %vm770_vm3, %v11901_v16, 0.0  ;;  %vm6252_vm6 = vcmp.eq.s32.totalorder %v11584_v63, %v11976_v8  ;;  %v1646_v60 = vsel %vm1352_vm4, %v11918_v31, 0.0  ;;  %v2484_v40 = vsel %vm2190_vm5, %v11907_v7, 0.0 }
 0x659   : > { %vm3028_vm7 = vcmp.eq.s32.totalorder %v11593_v6, %v11913_v48  ;;  %v6931_v47 = vadd.f32 %v6675_v5, %v6093_v53  ;;  %v4288_v32 = vadd.f32 %v4032_v13, %v3450_v1  ;;  %v1902_v0 = vadd.f32 %v1646_v60, %v1064_v39 }
 0x65a   : > { %vm3866_vm9 = vcmp.eq.s32.totalorder %v11593_v6, %v11941_v2  ;;  %v5708_v16 = vsel %vm5414_vm2, %v11971_v44, 0.0  ;;  %v3322_v31 = vsel %vm3028_vm7, %v11934_v55, 0.0  ;;  %vm4704_vm10 = vcmp.eq.s32.totalorder %v11593_v6, %v11950_v14  ;;  %v6992_v55 = vld [vmem:[#allocation2] sm:$0xff] }
 0x65b   : > { %7277 = vmatprep.subr.mxu1 %v6931_v47  ;;  %v5126_v7 = vadd.f32 %v4870_v18, %v4288_v32  ;;  %v2740_v35 = vadd.f32 %v2484_v40, %v1902_v0  ;;  %v6546_v48 = vsel %vm6252_vm6, %v11984_v54, 0.0  ;;  %v4160_v2 = vsel %vm3866_vm9, %v11944_v57, 0.0 }
 0x65c   : > { %v7140_v51 = vadd.f32 %v7139_v24, %v7068_v28  ;;  %v7142_v43 = vadd.f32 %v7141_v29, %v7070_v49  ;;  %vm5542_vm8 = vcmp.eq.s32.totalorder %v11593_v6, %v11958_v21  ;;  %v4998_v41 = vsel %vm4704_vm10, %v11953_v58, 0.0  ;;  %v7556_v58 = vld [vmem:[%s7798_s14 + $0x8] sm:$0xff] }
 0x65d   : > { %v5964_v37 = vadd.f32 %v5708_v16, %v5126_v7  ;;  %v3578_v30 = vadd.f32 %v3322_v31, %v2740_v35  ;;  %vm6380_vm11 = vcmp.eq.s32.totalorder %v11593_v6, %v11976_v8  ;;  %v5836_v63 = vsel %vm5542_vm8, %v11971_v44, 0.0  ;;  %v6993_v44 = vld [vmem:[#allocation2 + $0x8] sm:$0xff] }
 0x65e   : > { %v7290_v14 = vcombine.low %v7140_v51, %v7142_v43  ;;  %v6674_v59 = vsel %vm6380_vm11, %v11984_v54, 0.0 }
 0x65f   : > { %v6802_v23 = vadd.f32 %v6546_v48, %v5964_v37  ;;  %v4416_v25 = vadd.f32 %v4160_v2, %v3578_v30 }
 0x660   : > { %v7294_v57 = vadd.f32 %v7290_v14, %v6992_v55 }
 0x661   : > { %7207 = vmatpush2.msra.mxu0 %v6802_v23  ;;  %v5254_v26 = vadd.f32 %v4998_v41, %v4416_v25 }
 0x662   : > { %7209 = vmatmul.mubr.f32.vlgmr.msra.gmra.mxu0 %v7555_v12  ;;  %7296 = vst [vmem:[#allocation2] sm:$0xff] %v7294_v57 }
 0x663   : > { %v6092_v21 = vadd.f32 %v5836_v63, %v5254_v26 }
 0x665   : > { %v6930_v61 = vadd.f32 %v6674_v59, %v6092_v21 }
 0x667   : > { %7278 = vmatpush2.msra.mxu1 %v6930_v61 }
 0x668   : > { %7280 = vmatmul.mubr.f32.vlgmr.msra.gmra.mxu1 %v7556_v58 }
 0x722   : > { %v7210_v27 = vpop.f32.mrf.mxu0 }
 0x724   : > { %v7212_v38 = vpop.f32.mrf.mxu0 }
 0x728   : > { %v7281_v50 = vpop.f32.mrf.mxu1 }
 0x729   : > { %v7282_v6 = vadd.f32 %v7281_v50, %v7210_v27 }
 0x72a   : > { %v7283_v62 = vpop.f32.mrf.mxu1 }
 0x72b   : > { %v7284_v8 = vadd.f32 %v7283_v62, %v7212_v38 }
 0x72d   : > { %v7291_v45 = vcombine.low %v7282_v6, %v7284_v8  ;;  %7301 = sbr.rel (%p7454_p3) target bundleno = 1850 (0x73a), region = 40 }
 0x72f   : > { %v7295_v52 = vadd.f32 %v7291_v45, %v6993_v44 }
 0x731   : > { %7297 = vst [vmem:[#allocation2 + $0x8] sm:$0xff] %v7295_v52 }
 0x732   : > { %v7302_v54 = vld [vmem:[#allocation2] sm:$0xff] }
 0x733   : > { %7304 = vst [vmem:[%s7800_s29] sm:$0xff] %v7302_v54 }
 0x738   : > { %v7303_v20 = vld [vmem:[#allocation2 + $0x8] sm:$0xff] }
 0x739   : > { %7305 = vst [vmem:[%s7800_s29 + $0x8] sm:$0xff] %v7303_v20 }
 0x73a PF: > { %s7457_s14 = sshll.u32 %s7649_s17, 3  ;;  %s7323_s20 = sshll.u32 %s7800_s29, 4  ;;  %s7324_s20 = int_to_ptr.vmem [resolvable:$true] %s7323_s20 }
 0x73b   : > { %s7319_s19 = sadd.s32 %s7457_s14, %s7776_s8  ;;  %s15574_s6 = sand.u32 1, %s7633_s13  }
 0x73c   : > { %s7458_s24 = sshll.u32 %s7319_s19, 6  ;;  %s7307_s7 = scalar_lea.sflag [#allocation4], %s15574_s6 }
 0x73d   : > { %s7321_s26 = scalar_lea.hbm %s15335_s3, %s7458_s24  ;;  %s7557_s9 = scalar_lea.vmem %s7324_s20, 256 }
 0x73e   : > { %p7558_p4 = scmp.ne.s32.totalorder %s7324_s20, %s7557_s9  ;;  %s7668_s10 = smov [#allocation3]  }
 0x73f   : > { %s7561_s11 = sshll.u32 %s7668_s10, 4  ;;  %s7562_s11 = int_to_ptr.vmem [resolvable:$false] %s7561_s11 }
 0x740   : > { %p7559_p5 = pnand %p7558_p4, %p7751_p6  ;;  %s7563_s22 = scalar_lea.vmem %s7562_s11, 512 }
 0x741   : > { %p7564_p9 = scmp.lt.s32.totalorder %s7324_s20, %s7562_s11  ;;  %p7565_p10 = scmp.lt.s32.totalorder %s7563_s22, %s7557_s9 }
 0x742   : > { %p7560_p8 = pneg %p7559_p5 }
 0x743   : > { %p7566_p11 = por %p7565_p10, %p7564_p9 }
 0x745   : > { %p7567_p12 = pnand %p7566_p11, %p7560_p8 }
 0x747   : > { %7570 = shalt.err (!%p7567_p12)
}
 0x748   : > { %s7571_s17 = scalar_lea.hbm %s7321_s26, 256  ;;  %s7575_s30 = scalar_lea.hbm %s15335_s3, 1024 }
 0x749   : > { %p7572_p13 = scmp.ne.s32.totalorder %s7321_s26, %s7571_s17  ;;  %p7576_p2 = scmp.lt.s32.totalorder %s7321_s26, %s15335_s3 }
 0x74a   : > { %p7577_p3 = scmp.lt.s32.totalorder %s7575_s30, %s7571_s17 }
 0x74b   : > { %p7573_p0 = pnand %p7572_p13, %p7751_p6 }
 0x74c   : > { %p7578_p4 = por %p7577_p3, %p7576_p2 }
 0x74d   : > { %p7574_p1 = pneg %p7573_p0 }
 0x74f   : > { %p7579_p5 = pnand %p7578_p4, %p7574_p1 }
 0x751   : > { %7582 = shalt.err (!%p7579_p5)
}
 0x752   : > { %7465 = dma.vmem_to_hbm [thread:$0]  (%p7751_p6), %s7324_s20, 256, %s7321_s26, %s7307_s7  }
 0x753 PF: > { %p7471_p8 = scmp.ge.s32.totalorder %s7665_s21, 2  ;;  %s7335_s16 = sand.u32 1, %s7629_s12  }
 0x754   : > { %s7336_s29 = scalar_lea.sflag [#allocation4], %s7335_s16 }
 0x755   : > { %p7468_p9 = pnand %p7471_p8, %p7758_p7 }
 0x757   : > { %p7469_p10 = pneg %p7468_p9 }
 0x759   : > { %7624 = dma.done.wait (%p7469_p10), %s7336_s29, 256  }
 0x75a   : > { %7626 = vsyncadd (%p7469_p10), %s7336_s29, 4294967040  ;;  %s16_s21 = sadd.s32 1, %s7665_s21   ;;  %s15575_s18 = sld [smem:[#allocation6_spill]] }
 0x75b   : > { %p13_p11 = scmp.ge.s32.totalorder %s16_s21, 10   ;;  %s15576_s14 = sld [smem:[#allocation13_spill]] }
 0x75c   : > { %s15577_s15 = sld [smem:[#allocation7_spill]]  ;;  %s15583_s12 = smov %s7633_s13 }
 0x75d   : > { %s15578_s16 = sld [smem:[#allocation8_spill]] }
 0x75e   : > { %s15579_s17 = sld [smem:[#allocation9_spill]] }
 0x75f   : > { %s15580_s27 = sld [smem:[#allocation10_spill]] }
 0x760   : > { %s15581_s19 = sld [smem:[#allocation11_spill]]  ;;  %s15584_s13 = smov %s15575_s18 }
 0x761   : > { %s15582_s20 = sld [smem:[#allocation12_spill]]  ;;  %15 = sbr.rel (!%p13_p11) target bundleno = 6 (0x6), region = 81 }
 0x765   : > { %s15585_s18 = smov %s15580_s27 }
 0x766   :  { %7341 = vsyncpa [#allocation4], 1 }
 0x767   :  { %7343 = vsyncpa [#allocation4 + $0x1], 1 }

</bundles_post_ra>
